<compile_context>
chip_gen: v6e
topology: v6e:2x2x1
jax: 0.10.0
libtpu: 0.0.40
codegen_flags: <defaults>
</compile_context>

<pallas_src>
import math
import numpy as np
import jax
import jax.numpy as jnp
from jax.experimental import pallas as pl
from jax.experimental.pallas import tpu as pltpu

patch_size = 7


# ---------------- mask construction (faithful port of bsm) ----------------
def bsm(n, d):
    a = [[0] * n for _ in range(n)]
    p = 0
    q = n - 1
    w = (n + 1) / 2
    w = int(w)
    t = 0
    while p < d:
        for i in range(p, q):
            a[p][i] = t
        for i in range(p, q):
            a[i][q] = t
        for i in range(q, p, -1):
            a[q][i] = t
        for i in range(q, p, -1):
            a[i][p] = t
        p += 1
        q -= 1
    while p == d or (p > d and p < q):
        for i in range(p, q):
            a[p][i] = 1
        for i in range(p, q):
            a[i][q] = 1
        for i in range(q, p, -1):
            a[q][i] = 1
        for i in range(q, p, -1):
            a[i][p] = 1
        a[w - 1][w - 1] = 1
        p += 1
        q -= 1
    return np.array(a)


# -------- fold Conv2d(1,1,(2,k)) over [vec ; reversed(vec)] into (C,C) --------
def build_conv_matrix(weight_2k, C, k):
    """conv output row = vec @ (T0 + R @ T1) where
       T_h[i, j] = W[h, i - j + pad] (banded Toeplitz, zero padding on C axis)
       R = channel-reversal matrix (R @ T1 == T1 with rows reversed)."""
    w = jnp.asarray(weight_2k, jnp.float32).reshape(2, k)
    pad = (k - 1) // 2
    i = np.arange(C)[:, None]
    j = np.arange(C)[None, :]
    dw = i - j + pad
    valid = (dw >= 0) & (dw < k)          # static numpy mask
    dw_c = np.clip(dw, 0, k - 1)          # static gather indices
    T0 = jnp.where(valid, w[0][dw_c], 0.0)
    T1 = jnp.where(valid, w[1][dw_c], 0.0)
    return T0 + T1[::-1, :]


# ------------------------------ Pallas kernel ------------------------------
def ncam_kernel(x_ref, w_ref, e_ref, bias_ref, o_ref):
    # x_ref : (bblk, Dg)       lane-dense grouped rows (Dg % 128 == 0)
    # w_ref : (Dg, 2*Gg)       fused [plain | masked] pool+conv weights (resident)
    # e_ref : (Gg, Dg)         gate -> per-element broadcast matrix (resident)
    # bias_ref : (2,) in SMEM  conv biases (plain, masked)
    x = x_ref[...].astype(jnp.float32)                                # (bblk, Dg)

    # One fused MXU pass produces both gate families for every grouped image.
    gates = jnp.dot(x, w_ref[...], preferred_element_type=jnp.float32)
    gg = gates.shape[-1] // 2                                         # lane aligned
    g_plain = jax.nn.sigmoid(gates[:, :gg] + bias_ref[0])             # (bblk, Gg)
    g_mask = jax.nn.sigmoid(gates[:, gg:] + bias_ref[1])              # (bblk, Gg)
    at = jax.nn.sigmoid((g_plain * g_mask - 0.2) * 2.0)               # (bblk, Gg)

    # Broadcast the per-(image, channel) gate back to the lane-dense flat layout.
    scale = jnp.dot(at, e_ref[...], preferred_element_type=jnp.float32)
    o_ref[...] = (x * scale).astype(o_ref.dtype)


# ------------------------------- wrapper -----------------------------------
def _tpu_budget():
    """(x-block byte target, vmem_limit_bytes), dispatched on TPU generation."""
    try:
        vmem_cap = pltpu.get_tpu_info().vmem_capacity_bytes
    except Exception:
        vmem_cap = 64 << 20                       # conservative fallback
    if vmem_cap <= (64 << 20):                    # v7x-class: 64 MiB per TC
        return 4 << 20, 48 << 20
    return 8 << 20, 96 << 20                      # v5e / v6e: 128 MiB physical


def _choose_block_rows(n_rows, row_bytes, target_bytes, sublane):
    """Sublane-aligned rows-per-block: as large as the byte target allows while
    still leaving >= 2 grid steps (so both v7x TensorCores stream)."""
    cap = target_bytes // max(row_bytes, 1)
    cap = max(sublane, (cap // sublane) * sublane)
    half = pl.cdiv(max(n_rows, 2 * sublane), 2)
    half = max(sublane, (half // sublane) * sublane)
    return int(min(cap, half))


def ncam2d_forward(x_nchw, mask2d, w_conv1d, b_conv1d, w_conv1d1, b_conv1d1, k):
    B, C, H, W = x_nchw.shape
    HW = H * W
    D = C * HW

    # Image-grouping factor so the flat row width is an exact lane multiple.
    G = 128 // math.gcd(D, 128)
    # Keep the block-diagonal fused weight modest; fall back to per-image rows.
    if G * D * (2 * G * C) * 4 > (32 << 20):
        G = 1
    Dg = G * D
    Gg = G * C

    # Fold {mean pool, ring-masked mean pool, Conv2d(1,1,(2,k)) over
    # [vec ; reversed(vec)]} into (D, C) matrices, fuse and block-diagonalise.
    A = build_conv_matrix(w_conv1d, C, k)      # pairs with the plain mean
    Bm = build_conv_matrix(w_conv1d1, C, k)    # pairs with the ring-masked mean
    mask_flat = np.asarray(mask2d, np.float32).reshape(HW)
    eye_c = np.eye(C, dtype=np.float32)
    S = np.kron(eye_c, np.ones((HW, 1), np.float32) / HW)       # plain mean  (D,C)
    M = np.kron(eye_c, (mask_flat / HW).reshape(HW, 1))         # masked mean (D,C)
    E = np.kron(eye_c, np.ones((1, HW), np.float32))            # gate bcast  (C,D)

    eye_g = jnp.eye(G, dtype=jnp.float32)
    SA = jnp.kron(eye_g, jnp.asarray(S) @ A)                    # (Dg, Gg)
    MB = jnp.kron(eye_g, jnp.asarray(M) @ Bm)                   # (Dg, Gg)
    Wf = jnp.concatenate([SA, MB], axis=1)                      # (Dg, 2*Gg)
    Eg = jnp.kron(eye_g, jnp.asarray(E))                        # (Gg, Dg)
    bias = jnp.stack([jnp.asarray(b_conv1d, jnp.float32).reshape(()),
                      jnp.asarray(b_conv1d1, jnp.float32).reshape(())])

    # Lane-dense grouped layout + generation-aware block sizing.
    itemsize = x_nchw.dtype.itemsize
    sublane = max(1, 32 // itemsize)             # 8 (f32) / 16 (bf16) / 32 (int8)
    target_bytes, vmem_limit = _tpu_budget()
    rows = pl.cdiv(B, G)
    bblk = _choose_block_rows(rows, Dg * itemsize, target_bytes, sublane)
    rows_pad = pl.cdiv(rows, bblk) * bblk
    if rows_pad // bblk < 2:                     # guarantee >= 2 grid steps
        rows_pad = 2 * bblk
    b_pad = rows_pad * G

    # (B, C, H, W) -> (rows_pad, G*D): pure reshape (copy only if padding needed).
    x_flat = x_nchw.reshape(B, D)
    if b_pad != B:
        x_flat = jnp.pad(x_flat, ((0, b_pad - B), (0, 0)))
    x_grouped = x_flat.reshape(rows_pad, Dg)

    grid = (rows_pad // bblk,)

    out_grouped = pl.pallas_call(
        ncam_kernel,
        out_shape=jax.ShapeDtypeStruct((rows_pad, Dg), x_grouped.dtype),
        grid_spec=pltpu.PrefetchScalarGridSpec(
            num_scalar_prefetch=0,
            grid=grid,
            in_specs=[
                pl.BlockSpec((bblk, Dg), lambda b: (b, 0)),          # x, lane dense
                pl.BlockSpec((Dg, 2 * Gg), lambda b: (0, 0)),        # fused weights
                pl.BlockSpec((Gg, Dg), lambda b: (0, 0)),            # gate broadcast
                pl.BlockSpec(memory_space=pltpu.MemorySpace.SMEM),   # conv biases
            ],
            out_specs=pl.BlockSpec((bblk, Dg), lambda b: (b, 0)),
        ),
        compiler_params=pltpu.CompilerParams(
            dimension_semantics=("parallel",),
            vmem_limit_bytes=vmem_limit),
    )(x_grouped, Wf, Eg, bias)

    out_flat = out_grouped.reshape(b_pad, D)[:B]
    return out_flat.reshape(B, C, H, W)


# ----------------------- pure-JAX reference (NCHW) --------------------------
def ncam2d_reference(x, mask2d, w1, b1, w2, b2, k):
    B, C, H, W = x.shape
    pad = (k - 1) // 2
    mask = jnp.asarray(mask2d, jnp.float32)
    m_plain = x.mean(axis=(2, 3))                                 # (B, C)
    m_mask = (x * mask[None, None]).mean(axis=(2, 3))             # (B, C)

    def conv(vec, wt, bias):
        rev = vec[:, ::-1]
        stacked = jnp.stack([vec, rev], axis=1)                   # (B, 2, C)
        padded = jnp.pad(stacked, ((0, 0), (0, 0), (pad, pad)))
        out = jnp.zeros((B, C), jnp.float32)
        for h in range(2):
            for dw in range(k):
                out = out + wt[h, dw] * padded[:, h, dw:dw + C]
        return out + bias

    g1 = jax.nn.sigmoid(conv(m_plain, w1, b1))
    g2 = jax.nn.sigmoid(conv(m_mask, w2, b2))
    at = jax.nn.sigmoid(((g1 * g2) - 0.2) * 2.0)
    return x * at[:, :, None, None]


if __name__ == "__main__":
    # B=128 -> 16 grouped rows -> two sublane-aligned grid steps of 8 rows each.
    B, C, H, W = 128, 16, patch_size, patch_size

    # kernel_size from NCAM2D.__init__
    gamma, b_const = 2, 3
    k = int(abs((math.log(C, 2) + b_const) / gamma))
    k = k if k % 2 else k + 1

    key = jax.random.PRNGKey(0)
    kx, kw1, kb1, kw2, kb2 = jax.random.split(key, 5)
    x = jax.random.normal(kx, (B, C, H, W), dtype=jnp.float32)

    # Conv2d(1,1,(2,k)) parameters: weight (2,k), scalar bias.
    fan_in = 2 * k
    bound = 1.0 / math.sqrt(fan_in)
    w_conv1d = jax.random.uniform(kw1, (2, k), jnp.float32, -bound, bound)
    b_conv1d = jax.random.uniform(kb1, (), jnp.float32, -bound, bound)
    w_conv1d1 = jax.random.uniform(kw2, (2, k), jnp.float32, -bound, bound)
    b_conv1d1 = jax.random.uniform(kb2, (), jnp.float32, -bound, bound)

    d = (patch_size - 1) // 2 - 1
    mask2d = bsm(W, d).astype(np.float32)

    out = ncam2d_forward(x, mask2d, w_conv1d, b_conv1d, w_conv1d1, b_conv1d1, k)
    out = jax.block_until_ready(out)

    ref = ncam2d_reference(x, mask2d, w_conv1d, b_conv1d, w_conv1d1, b_conv1d1, k)
    np.testing.assert_allclose(np.asarray(out), np.asarray(ref), rtol=1e-5, atol=1e-5)

    print("KERNEL_OK")
</pallas_src>

<mosaic_0001>
module attributes {stable_mosaic.version = 11 : i64} {
  func.func @ncam_kernel(%arg0: i32, %arg1: memref<8x6272xf32, #tpu.memory_space<vmem>>, %arg2: memref<6272x256xf32, #tpu.memory_space<vmem>>, %arg3: memref<128x6272xf32, #tpu.memory_space<vmem>>, %arg4: memref<2xf32, #tpu.memory_space<smem>>, %arg5: memref<8x6272xf32, #tpu.memory_space<vmem>>) attributes {dimension_semantics = [#tpu.dimension_semantics<parallel>], iteration_bounds = array<i64: 2>, scalar_prefetch = 0 : i64, scratch_operands = 0 : i64, tpu.core_type = #tpu.core_type<tc>, window_params = [{transform_indices = @transform_0, window_bounds = array<i64: 8, 6272>}, {pipeline_mode = #tpu.pipeline_mode<synchronous>, transform_indices = @transform_1, window_bounds = array<i64: 6272, 256>}, {pipeline_mode = #tpu.pipeline_mode<synchronous>, transform_indices = @transform_2, window_bounds = array<i64: 128, 6272>}, {transform_indices = @transform_3, window_bounds = array<i64: 2>}, {transform_indices = @transform_4, window_bounds = array<i64: 8, 6272>}]} {
    %c0 = arith.constant 0 : index
    %c0_0 = arith.constant 0 : index
    %0 = vector.load %arg1[%c0, %c0_0] : memref<8x6272xf32, #tpu.memory_space<vmem>>, vector<8x6272xf32>
    %c0_1 = arith.constant 0 : index
    %c0_2 = arith.constant 0 : index
    %1 = vector.load %arg2[%c0_1, %c0_2] : memref<6272x256xf32, #tpu.memory_space<vmem>>, vector<6272x256xf32>
    %cst = arith.constant dense<0.000000e+00> : vector<8x256xf32>
    %2 = tpu.matmul %0, %1, %cst {dimension_numbers = #tpu.dot_dimension_numbers<[1], [0], [0], [1], [0, 0, 1, 1], [], []>} : vector<8x6272xf32>, vector<6272x256xf32>, vector<8x256xf32> -> vector<8x256xf32>
    %3 = vector.extract_strided_slice %2 {offsets = [0, 0], sizes = [8, 128], strides = [1, 1]} : vector<8x256xf32> to vector<8x128xf32>
    %c0_3 = arith.constant 0 : index
    %4 = memref.load %arg4[%c0_3] : memref<2xf32, #tpu.memory_space<smem>>
    %5 = vector.broadcast %4 : f32 to vector<8x128xf32>
    %6 = arith.addf %3, %5 : vector<8x128xf32>
    %7 = arith.negf %6 : vector<8x128xf32>
    %8 = math.exp %7 : vector<8x128xf32>
    %cst_4 = arith.constant 1.000000e+00 : f32
    %9 = vector.broadcast %cst_4 : f32 to vector<8x128xf32>
    %10 = arith.addf %9, %8 : vector<8x128xf32>
    %11 = arith.divf %9, %10 : vector<8x128xf32>
    %12 = vector.extract_strided_slice %2 {offsets = [0, 128], sizes = [8, 128], strides = [1, 1]} : vector<8x256xf32> to vector<8x128xf32>
    %c1 = arith.constant 1 : index
    %13 = memref.load %arg4[%c1] : memref<2xf32, #tpu.memory_space<smem>>
    %14 = vector.broadcast %13 : f32 to vector<8x128xf32>
    %15 = arith.addf %12, %14 : vector<8x128xf32>
    %16 = arith.negf %15 : vector<8x128xf32>
    %17 = math.exp %16 : vector<8x128xf32>
    %cst_5 = arith.constant 1.000000e+00 : f32
    %18 = vector.broadcast %cst_5 : f32 to vector<8x128xf32>
    %19 = arith.addf %18, %17 : vector<8x128xf32>
    %20 = arith.divf %18, %19 : vector<8x128xf32>
    %21 = arith.mulf %11, %20 : vector<8x128xf32>
    %cst_6 = arith.constant 2.000000e-01 : f32
    %22 = vector.broadcast %cst_6 : f32 to vector<8x128xf32>
    %23 = arith.subf %21, %22 : vector<8x128xf32>
    %cst_7 = arith.constant 2.000000e+00 : f32
    %24 = vector.broadcast %cst_7 : f32 to vector<8x128xf32>
    %25 = arith.mulf %23, %24 : vector<8x128xf32>
    %26 = arith.negf %25 : vector<8x128xf32>
    %27 = math.exp %26 : vector<8x128xf32>
    %cst_8 = arith.constant 1.000000e+00 : f32
    %28 = vector.broadcast %cst_8 : f32 to vector<8x128xf32>
    %29 = arith.addf %28, %27 : vector<8x128xf32>
    %30 = arith.divf %28, %29 : vector<8x128xf32>
    %c0_9 = arith.constant 0 : index
    %c0_10 = arith.constant 0 : index
    %31 = vector.load %arg3[%c0_9, %c0_10] : memref<128x6272xf32, #tpu.memory_space<vmem>>, vector<128x6272xf32>
    %cst_11 = arith.constant dense<0.000000e+00> : vector<8x6272xf32>
    %32 = tpu.matmul %30, %31, %cst_11 {dimension_numbers = #tpu.dot_dimension_numbers<[1], [0], [0], [1], [0, 0, 1, 1], [], []>} : vector<8x128xf32>, vector<128x6272xf32>, vector<8x6272xf32> -> vector<8x6272xf32>
    %33 = arith.mulf %0, %32 : vector<8x6272xf32>
    %c0_12 = arith.constant 0 : index
    %c0_13 = arith.constant 0 : index
    %34 = vector.load %arg5[%c0_12, %c0_13] : memref<8x6272xf32, #tpu.memory_space<vmem>>, vector<8x6272xf32>
    tpu.vector_store %arg5[%c0_12, %c0_13], %33 {strides = array<i32>} : memref<8x6272xf32, #tpu.memory_space<vmem>>, vector<8x6272xf32>,
    return
  }
  func.func @transform_0(%arg0: i32) -> (i32, i32) {
    %c0_i32 = arith.constant 0 : i32
    %c0_i32_0 = arith.constant 0 : i32
    return %arg0, %c0_i32 : i32, i32
  }
  func.func @transform_1(%arg0: i32) -> (i32, i32) {
    %c0_i32 = arith.constant 0 : i32
    %c0_i32_0 = arith.constant 0 : i32
    %c0_i32_1 = arith.constant 0 : i32
    return %c0_i32, %c0_i32_0 : i32, i32
  }
  func.func @transform_2(%arg0: i32) -> (i32, i32) {
    %c0_i32 = arith.constant 0 : i32
    %c0_i32_0 = arith.constant 0 : i32
    %c0_i32_1 = arith.constant 0 : i32
    return %c0_i32, %c0_i32_0 : i32, i32
  }
  func.func @transform_3(%arg0: i32) -> i32 {
    %c0_i32 = arith.constant 0 : i32
    %c0_i32_0 = arith.constant 0 : i32
    return %c0_i32 : i32
  }
  func.func @transform_4(%arg0: i32) -> (i32, i32) {
    %c0_i32 = arith.constant 0 : i32
    %c0_i32_0 = arith.constant 0 : i32
    return %arg0, %c0_i32 : i32, i32
  }
}

</mosaic_0001>

<bundles_post_ra>
// kernel: tpu_custom_call.1
= control target key start
LH: loop header
LB: loop body
LE: loop exit
PB: predicated region body
PF: predicated region fallthrough
CT: control target
= control target key end

     0   :  { %9 = vsyncpa [#allocation3], 0  ;;  %s7271_s0 = inlined_call_operand.hbm [shape: f32[16,6272], index: 0, kind: input, shape index: {}]   ;;  %s7272_s1 = inlined_call_operand.hbm [shape: f32[6272,256], index: 1, kind: input, shape index: {}]   ;;  %s7273_s2 = inlined_call_operand.hbm [shape: f32[128,6272], index: 2, kind: input, shape index: {}]   ;;  %s7274_s3 = inlined_call_operand.hbm [shape: f32[2], index: 3, kind: input, shape index: {}]   ;;  %s7275_s4 = inlined_call_operand.hbm [shape: f32[16,6272], index: 4, kind: output, shape index: {}]  }
   0x1   :  { %11 = vsyncpa [#allocation3 + $0x1], 0 }
   0x2   :  { %12 = vsyncpa [#allocation7], 0 }
   0x3   :  { %13 = vsyncpa [#allocation5], 0 }
   0x4   :  { %14 = vsyncpa [#allocation4], 0 }
   0x5   :  { %16 = vsyncpa [#allocation4 + $0x1], 0  ;;  %s6866_s15 = smov 0   ;;  %s6868_s16 = smov 0  }
   0x6   :  { %s6870_s17 = smov 0   ;;  %s6872_s18 = smov 0  }
   0x7 LB: > { %s6887_s19 = sadd.s32 4294967295, %s6828_s18   ;;  %s6446_s20 = sadd.s32 4294967294, %s6828_s18   ;;  %s6828_s18 = sphi %s6872_s18, %s7299_s18   ;;  %s6824_s17 = sphi %s6870_s17, %s7298_s17   ;;  %s6820_s16 = sphi %s6868_s16, %s7297_s16   ;;  %s6816_s15 = sphi %s6866_s15, %s7296_s15  }
   0x8   : > { %p42_p0 = scmp.ne.s32.totalorder %s6820_s16, %s6816_s15  ;;  %p7276_p1 = scmp.eq.s32.totalorder %s6887_s19, 0 }
   0x9   : > { %p135_p3 = scmp.eq.s32.totalorder %s6446_s20, 1  ;;  %p6447_p5 = scmp.ge.s32.totalorder %s6828_s18, 1 }
   0xa   : > { %p6896_p4 = por %p7276_p1, %p42_p0  ;;  %p142_p7 = scmp.lt.s32.totalorder %s6828_s18, 3 }
   0xb   : > { %p6901_p6 = por %p135_p3, %p42_p0  ;;  %s6830_s24 = smov [#allocation6]  }
   0xc   : > { %s7280_s21 = scalar_select %p6896_p4, 1, 0 }
   0xd   : > { %s7281_s22 = scalar_select %p6901_p6, 1, 0 }
   0xe   : > { %p6906_p8 = pnand %p6447_p5, %p142_p7  ;;  %s154_s25 = sshll.u32 %s6830_s24, 4  ;;  %s155_s25 = int_to_ptr.vmem [resolvable:$true] %s154_s25 }
   0xf   : > { %s6831_s27 = smov [#allocation8]   ;;  %s6676_s29 = scalar_lea.vmem %s155_s25, 200704 }
  0x10   : > { %s7282_s23 = scalar_select %p6906_p8, 1, 0 }
  0x11   : > { %p6537_p9 = pneg %p6906_p8  ;;  %s167_s28 = sshll.u32 %s6831_s27, 4  ;;  %s168_s28 = int_to_ptr.vmem [resolvable:$true] %s167_s28 }
  0x12   : > { %p6677_p13 = scmp.ne.s32.totalorder %s155_s25, %s6676_s29  ;;  %p6684_p5 = scmp.lt.s32.totalorder %s155_s25, %s155_s25 }
  0x13   : > { %p6915_p11 = pnand %p6537_p9, %p7276_p1  ;;  %p6685_p7 = scmp.lt.s32.totalorder %s6676_s29, %s6676_s29 }
  0x15   : > { %p6667_p12 = pneg %p6915_p11  ;;  %p6686_p10 = por %p6685_p7, %p6684_p5 }
  0x17   : > { %p6679_p0 = pnand %p6677_p13, %p6667_p12 }
  0x19   : > { %p6680_p3 = pneg %p6679_p0 }
  0x1b   : > { %p6687_p9 = pnand %p6686_p10, %p6680_p3 }
  0x1d   : > { %6690 = shalt.err (!%p6687_p9)
}
  0x1e   : > { %s6832_s30 = smov 256   ;;  %s6833_s5 = smov 16  }
  0x1f   : > { %6540 = dma.hbm_to_vmem [thread:$0]  (!%p6915_p11), %s7272_s1, 200704, %s155_s25, [#allocation7], %s6832_s30, %s6832_s30, %s6833_s5  }
  0x20   : > { %s6702_s8 = scalar_lea.vmem %s168_s28, 100352  ;;  %p6710_p2 = scmp.lt.s32.totalorder %s168_s28, %s168_s28 }
  0x21   : > { %p6703_p1 = scmp.ne.s32.totalorder %s168_s28, %s6702_s8  ;;  %p6711_p6 = scmp.lt.s32.totalorder %s6702_s8, %s6702_s8 }
  0x23   : > { %p6705_p13 = pnand %p6703_p1, %p6667_p12  ;;  %p6712_p5 = por %p6711_p6, %p6710_p2 }
  0x25   : > { %p6706_p0 = pneg %p6705_p13 }
  0x27   : > { %p6713_p10 = pnand %p6712_p5, %p6706_p0 }
  0x29   : > { %6716 = shalt.err (!%p6713_p10)
}
  0x2a   : > { %s6834_s9 = smov 6272   ;;  %s6835_s10 = smov 392  }
  0x2b   : > { %6543 = dma.hbm_to_vmem [thread:$0]  (!%p6915_p11), %s7273_s2, 100352, %s168_s28, [#allocation7], %s6834_s9, %s6834_s9, %s6835_s10  }
  0x2c   : > { %s6836_s13 = smov [#allocation9]   ;;  %s6943_s24 = sadd.s32 1, %s6828_s18  }
  0x2d   : > { %6546 = dma.hbm_to_smem (!%p6915_p11), %s7274_s3, 16, %s6836_s13, [#allocation5]  }
  0x2e   : > { %s26_s25 = ssub.s32 %s6828_s18, %s6943_s24  ;;  %s29_s27 = sadd.s32 1, %s6824_s17 }
  0x2f   : > { %p27_p1 = scmp.eq.s32.totalorder %s26_s25, 0  ;;  %p36_p2 = scmp.ne.s32.totalorder %s6824_s17, %s6820_s16 }
  0x30   : > { %p37_p6 = scmp.eq.s32.totalorder %s6828_s18, 0  ;;  %p6558_p12 = scmp.lt.s32.totalorder %s6828_s18, 2 }
  0x31   : > { %s6953_s29 = scalar_select %p27_p1, %s6824_s17, %s29_s27  }
  0x32   : > { %p38_p3 = por %p37_p6, %p36_p2  ;;  %p7284_p7 = scmp.eq.s32.totalorder %s6887_s19, 1 }
  0x33   : > { %s190_s26 = sand.u32 1, %s6824_s17   ;;  %s6518_s30 = smul.u32 6272, %s6828_s18 }
  0x34   : > { %p6957_p9 = por %p7284_p7, %p36_p2  ;;  %s6517_s5 = smul.u32 392, %s190_s26 }
  0x35   : > { %p6963_p11 = pnand %p6558_p12, %p38_p3  ;;  %s6970_s9 = scalar_lea.hbm %s7271_s0, %s6518_s30 }
  0x36   : > { %s7285_s28 = scalar_select %p6957_p9, 1, 0 }
  0x37   : > { %s194_s10 = scalar_lea.vmem [#allocation2], %s6517_s5  ;;  %s191_s12 = scalar_lea.sflag [#allocation3], %s190_s26 }
  0x38   : > { %s202_s11 = sshll.u32 %s194_s10, 4  ;;  %s6728_s13 = scalar_lea.hbm %s6970_s9, 6272  ;;  %s203_s11 = int_to_ptr.vmem [resolvable:$true] %s202_s11 }
  0x39   : > { %p6729_p13 = scmp.ne.s32.totalorder %s6970_s9, %s6728_s13  ;;  %p6730_p0 = pneg %p6963_p11 }
  0x3a   : > { %s6733_s25 = scalar_lea.hbm %s7271_s0, 12544  ;;  %p6734_p1 = scmp.lt.s32.totalorder %s6970_s9, %s7271_s0 }
  0x3b   : > { %p6731_p5 = pnand %p6730_p0, %p6729_p13  ;;  %p6735_p2 = scmp.lt.s32.totalorder %s6733_s25, %s6728_s13 }
  0x3d   : > { %p6732_p10 = pneg %p6731_p5  ;;  %p6736_p6 = por %p6735_p2, %p6734_p1 }
  0x3f   : > { %p6737_p12 = pnand %p6736_p6, %p6732_p10 }
  0x41   : > { %6740 = shalt.err (!%p6737_p12)
}
  0x42   : > { %s6741_s5 = scalar_lea.vmem %s203_s11, 6272  ;;  %s6837_s26 = smov [#allocation2]  }
  0x43   : > { %p6742_p3 = scmp.ne.s32.totalorder %s203_s11, %s6741_s5  ;;  %s6746_s7 = sshll.u32 %s6837_s26, 4  ;;  %s6747_s7 = int_to_ptr.vmem [resolvable:$false] %s6746_s7 }
  0x44   : > { %s6748_s8 = scalar_lea.vmem %s6747_s7, 12544  ;;  %p6749_p13 = scmp.lt.s32.totalorder %s203_s11, %s6747_s7 }
  0x45   : > { %p6744_p7 = pnand %p6742_p3, %p6730_p0  ;;  %p6750_p5 = scmp.lt.s32.totalorder %s6748_s8, %s6741_s5 }
  0x47   : > { %p6745_p9 = pneg %p6744_p7  ;;  %p6751_p4 = por %p6750_p5, %p6749_p13 }
  0x49   : > { %p6752_p8 = pnand %p6751_p4, %p6745_p9 }
  0x4b   : > { %6755 = shalt.err (!%p6752_p8)
}
  0x4c   : > { %6550 = dma.hbm_to_vmem [thread:$0]  (!%p6963_p11), %s6970_s9, 6272, %s203_s11, %s191_s12  }
  0x4d   : > { %p7287_p10 = scmp.ne.s32.totalorder %s7282_s23, 0 }
  0x4e   : > { %s6989_s10 = sand.u32 (!%p7287_p10), 1, %s6820_s16   ;;  %p7288_p4 = scmp.ne.s32.totalorder (!%p7287_p10), %s7280_s21, 0 }
  0x4f   : > { %211 = sbr.rel (%p7287_p10) target bundleno = 1801 (0x709), region = 36  ;;  %s214_s14 = scalar_lea.sflag (!%p7287_p10), [#allocation3], %s6989_s10 }
  0x50   : > { %s6519_s13 = smul.u32 (!%p7287_p10), 392, %s6989_s10 }
  0x52   : > { %s6995_s20 = scalar_lea.vmem (!%p7287_p10), [#allocation2], %s6519_s13 }
  0x54   : > { %6799 = dma.done.wait (%p7288_p4), %s214_s14, 6272  }
  0x55   : > { %6801 = vsyncadd (%p7288_p4), %s214_s14, 4294961024  ;;  %p7289_p8 = scmp.eq.s32.totalorder %s6887_s19, 0 }
  0x57   : > { %6803 = dma.done.wait (%p7289_p8), [#allocation7], 301056   ;;  %p7290_p9 = pmov %p7289_p8 }
  0x58   : > { %p7291_p11 = pmov %p7289_p8 }
  0x59   : > { %6805 = vsyncadd (%p7290_p9), [#allocation7], 4294666240 }
  0x5a   : > { %6807 = dma.done.wait (%p7291_p11), [#allocation5], 16   ;;  %p7292_p0 = pmov %p7289_p8 }
  0x5c   : > { %6809 = vsyncadd (%p7292_p0), [#allocation5], 4294967280 }
  0x5d   : > { %234 = sfence }
  0x5e   : > { %v335_v0 = vld [vmem:[#allocation6 + $0xf8] sm:$0xff]  ;;  %v334_v2 = vld [vmem:[#allocation6 + $0xf0] sm:$0xff]  ;;  %v333_v4 = vld [vmem:[#allocation6 + $0xe8] sm:$0xff]  ;;  %s3647_s21 = sld [smem:[#allocation9]]  ;;  %s7089_s6 = scalar_lea.vmem [#allocation10], %s6519_s13  ;;  %vm6839_vm0 = vmmov 0  }
  0x5f   : > { %v399_v1 = vld [vmem:[#allocation6 + $0x2f8] sm:$0xff]  ;;  %1872 = vmatprep.subr.mxu0 %v335_v0  ;;  %v398_v3 = vld [vmem:[#allocation6 + $0x2f0] sm:$0xff]  ;;  %v397_v5 = vld [vmem:[#allocation6 + $0x2e8] sm:$0xff]  ;;  %s6458_s23 = sld [smem:[#allocation9 + $0x1]]  ;;  %s6520_s9 = smul.u32 6272, %s6887_s19 }
  0x60   : > { %1943 = vmatprep.subr.mxu1 %v399_v1  ;;  %1873 = vmatpush1.msra.mxu0 %v334_v2  ;;  %v332_v6 = vld [vmem:[#allocation6 + $0xe0] sm:$0xff]  ;;  %v331_v8 = vld [vmem:[#allocation6 + $0xd8] sm:$0xff]  ;;  %v330_v10 = vld [vmem:[#allocation6 + $0xd0] sm:$0xff]  ;;  %s6345_s11 = sshll.u32 %s7089_s6, 4  ;;  %s6331_s30 = scalar_lea.sflag [#allocation4], %s6989_s10  ;;  %s6346_s11 = int_to_ptr.vmem [resolvable:$true] %s6345_s11 }
  0x61   : > { %1944 = vmatpush1.msra.mxu1 %v398_v3  ;;  %v396_v7 = vld [vmem:[#allocation6 + $0x2e0] sm:$0xff]  ;;  %1874 = vmatprep.subr.mxu0 %v333_v4  ;;  %v395_v9 = vld [vmem:[#allocation6 + $0x2d8] sm:$0xff]  ;;  %v394_v11 = vld [vmem:[#allocation6 + $0x2d0] sm:$0xff]  ;;  %s7233_s27 = scalar_lea.hbm %s7275_s4, %s6520_s9  ;;  %s6756_s5 = scalar_lea.vmem %s6346_s11, 6272 }
  0x62   : > { %1945 = vmatprep.subr.mxu1 %v397_v5  ;;  %1875 = vmatpush1.msra.mxu0 %v332_v6  ;;  %v329_v12 = vld [vmem:[#allocation6 + $0xc8] sm:$0xff]  ;;  %v328_v14 = vld [vmem:[#allocation6 + $0xc0] sm:$0xff]  ;;  %v327_v16 = vld [vmem:[#allocation6 + $0xb8] sm:$0xff]  ;;  %p6757_p1 = scmp.ne.s32.totalorder %s6346_s11, %s6756_s5  ;;  %p7293_p2 = scmp.ne.s32.totalorder %s7285_s28, 0 }
  0x63   : > { %1946 = vmatpush1.msra.mxu1 %v396_v7  ;;  %v393_v13 = vld [vmem:[#allocation6 + $0x2c8] sm:$0xff]  ;;  %1876 = vmatprep.subr.mxu0 %v331_v8  ;;  %v392_v15 = vld [vmem:[#allocation6 + $0x2c0] sm:$0xff]  ;;  %v391_v17 = vld [vmem:[#allocation6 + $0x2b8] sm:$0xff]  ;;  %s6840_s26 = smov [#allocation10]  }
  0x64   : > { %1947 = vmatprep.subr.mxu1 %v395_v9  ;;  %1877 = vmatpush1.msra.mxu0 %v330_v10  ;;  %v326_v18 = vld [vmem:[#allocation6 + $0xb0] sm:$0xff]  ;;  %v325_v20 = vld [vmem:[#allocation6 + $0xa8] sm:$0xff]  ;;  %v324_v22 = vld [vmem:[#allocation6 + $0xa0] sm:$0xff]  ;;  %p6758_p6 = pnand %p6757_p1, %p7293_p2  ;;  %s6760_s19 = sshll.u32 %s6840_s26, 4  ;;  %s6761_s19 = int_to_ptr.vmem [resolvable:$false] %s6760_s19 }
  0x65   : > { %1948 = vmatpush1.msra.mxu1 %v394_v11  ;;  %1878 = vmatprep.subr.mxu0 %v329_v12  ;;  %v390_v19 = vld [vmem:[#allocation6 + $0x2b0] sm:$0xff]  ;;  %v389_v21 = vld [vmem:[#allocation6 + $0x2a8] sm:$0xff]  ;;  %v388_v23 = vld [vmem:[#allocation6 + $0x2a0] sm:$0xff]  ;;  %s6762_s7 = scalar_lea.vmem %s6761_s19, 12544  ;;  %p6763_p3 = scmp.lt.s32.totalorder %s6346_s11, %s6761_s19 }
  0x66   : > { %1949 = vmatprep.subr.mxu1 %v393_v13  ;;  %1879 = vmatpush1.msra.mxu0 %v328_v14  ;;  %v323_v24 = vld [vmem:[#allocation6 + $0x98] sm:$0xff]  ;;  %v322_v26 = vld [vmem:[#allocation6 + $0x90] sm:$0xff]  ;;  %v321_v28 = vld [vmem:[#allocation6 + $0x88] sm:$0xff]  ;;  %p6759_p12 = pneg %p6758_p6  ;;  %p6764_p7 = scmp.lt.s32.totalorder %s6762_s7, %s6756_s5 }
  0x67   : > { %1950 = vmatpush1.msra.mxu1 %v392_v15  ;;  %1880 = vmatprep.subr.mxu0 %v327_v16  ;;  %v387_v25 = vld [vmem:[#allocation6 + $0x298] sm:$0xff]  ;;  %v386_v27 = vld [vmem:[#allocation6 + $0x290] sm:$0xff]  ;;  %v385_v29 = vld [vmem:[#allocation6 + $0x288] sm:$0xff] }
  0x68   : > { %1951 = vmatprep.subr.mxu1 %v391_v17  ;;  %1881 = vmatpush1.msra.mxu0 %v326_v18  ;;  %v320_v30 = vld [vmem:[#allocation6 + $0x80] sm:$0xff]  ;;  %v319_v32 = vld [vmem:[#allocation6 + $0x78] sm:$0xff]  ;;  %v318_v34 = vld [vmem:[#allocation6 + $0x70] sm:$0xff]  ;;  %p6765_p13 = por %p6764_p7, %p6763_p3 }
  0x69   : > { %1952 = vmatpush1.msra.mxu1 %v390_v19  ;;  %1882 = vmatprep.subr.mxu0 %v325_v20  ;;  %v384_v31 = vld [vmem:[#allocation6 + $0x280] sm:$0xff]  ;;  %v383_v33 = vld [vmem:[#allocation6 + $0x278] sm:$0xff]  ;;  %v382_v35 = vld [vmem:[#allocation6 + $0x270] sm:$0xff] }
  0x6a   : > { %1953 = vmatprep.subr.mxu1 %v389_v21  ;;  %1883 = vmatpush1.msra.mxu0 %v324_v22  ;;  %v317_v36 = vld [vmem:[#allocation6 + $0x68] sm:$0xff]  ;;  %v316_v38 = vld [vmem:[#allocation6 + $0x60] sm:$0xff]  ;;  %v315_v40 = vld [vmem:[#allocation6 + $0x58] sm:$0xff]  ;;  %p6766_p5 = pnand %p6765_p13, %p6759_p12 }
  0x6b   : > { %1954 = vmatpush1.msra.mxu1 %v388_v23  ;;  %1884 = vmatprep.subr.mxu0 %v323_v24  ;;  %v381_v37 = vld [vmem:[#allocation6 + $0x268] sm:$0xff]  ;;  %v380_v39 = vld [vmem:[#allocation6 + $0x260] sm:$0xff]  ;;  %v379_v41 = vld [vmem:[#allocation6 + $0x258] sm:$0xff] }
  0x6c   : > { %1955 = vmatprep.subr.mxu1 %v387_v25  ;;  %1885 = vmatpush1.msra.mxu0 %v322_v26  ;;  %v314_v42 = vld [vmem:[#allocation6 + $0x50] sm:$0xff]  ;;  %v313_v44 = vld [vmem:[#allocation6 + $0x48] sm:$0xff]  ;;  %v312_v46 = vld [vmem:[#allocation6 + $0x40] sm:$0xff] }
  0x6d   : > { %1956 = vmatpush1.msra.mxu1 %v386_v27  ;;  %1886 = vmatprep.subr.mxu0 %v321_v28  ;;  %v378_v43 = vld [vmem:[#allocation6 + $0x250] sm:$0xff]  ;;  %v377_v45 = vld [vmem:[#allocation6 + $0x248] sm:$0xff]  ;;  %v376_v47 = vld [vmem:[#allocation6 + $0x240] sm:$0xff] }
  0x6e   : > { %1957 = vmatprep.subr.mxu1 %v385_v29  ;;  %1887 = vmatpush1.msra.mxu0 %v320_v30  ;;  %v311_v48 = vld [vmem:[#allocation6 + $0x38] sm:$0xff]  ;;  %v310_v50 = vld [vmem:[#allocation6 + $0x30] sm:$0xff]  ;;  %v309_v52 = vld [vmem:[#allocation6 + $0x28] sm:$0xff] }
  0x6f   : > { %1958 = vmatpush1.msra.mxu1 %v384_v31  ;;  %1888 = vmatprep.subr.mxu0 %v319_v32  ;;  %v375_v49 = vld [vmem:[#allocation6 + $0x238] sm:$0xff]  ;;  %v374_v51 = vld [vmem:[#allocation6 + $0x230] sm:$0xff]  ;;  %v373_v53 = vld [vmem:[#allocation6 + $0x228] sm:$0xff] }
  0x70   : > { %1959 = vmatprep.subr.mxu1 %v383_v33  ;;  %1889 = vmatpush1.msra.mxu0 %v318_v34  ;;  %v308_v54 = vld [vmem:[#allocation6 + $0x20] sm:$0xff]  ;;  %v307_v56 = vld [vmem:[#allocation6 + $0x18] sm:$0xff]  ;;  %v306_v58 = vld [vmem:[#allocation6 + $0x10] sm:$0xff] }
  0x71   : > { %1960 = vmatpush1.msra.mxu1 %v382_v35  ;;  %1890 = vmatprep.subr.mxu0 %v317_v36  ;;  %v372_v55 = vld [vmem:[#allocation6 + $0x220] sm:$0xff]  ;;  %v371_v57 = vld [vmem:[#allocation6 + $0x218] sm:$0xff]  ;;  %v370_v59 = vld [vmem:[#allocation6 + $0x210] sm:$0xff] }
  0x72   : > { %1961 = vmatprep.subr.mxu1 %v381_v37  ;;  %1891 = vmatpush1.msra.mxu0 %v316_v38  ;;  %v305_v60 = vld [vmem:[#allocation6 + $0x8] sm:$0xff]  ;;  %v304_v62 = vld [vmem:[#allocation6] sm:$0xff]  ;;  %v367_v0 = vld [vmem:[#allocation6 + $0x1f8] sm:$0xff] }
  0x73   : > { %1962 = vmatpush1.msra.mxu1 %v380_v39  ;;  %1892 = vmatprep.subr.mxu0 %v315_v40  ;;  %v369_v61 = vld [vmem:[#allocation6 + $0x208] sm:$0xff]  ;;  %v368_v63 = vld [vmem:[#allocation6 + $0x200] sm:$0xff]  ;;  %v431_v1 = vld [vmem:[#allocation6 + $0x3f8] sm:$0xff] }
  0x74   : > { %1963 = vmatprep.subr.mxu1 %v379_v41  ;;  %1893 = vmatpush1.msra.mxu0 %v314_v42  ;;  %v366_v2 = vld [vmem:[#allocation6 + $0x1f0] sm:$0xff]  ;;  %v365_v4 = vld [vmem:[#allocation6 + $0x1e8] sm:$0xff]  ;;  %v364_v6 = vld [vmem:[#allocation6 + $0x1e0] sm:$0xff] }
  0x75   : > { %1964 = vmatpush1.msra.mxu1 %v378_v43  ;;  %1894 = vmatprep.subr.mxu0 %v313_v44  ;;  %v430_v3 = vld [vmem:[#allocation6 + $0x3f0] sm:$0xff]  ;;  %v429_v5 = vld [vmem:[#allocation6 + $0x3e8] sm:$0xff]  ;;  %v428_v7 = vld [vmem:[#allocation6 + $0x3e0] sm:$0xff] }
  0x76   : > { %1965 = vmatprep.subr.mxu1 %v377_v45  ;;  %1895 = vmatpush1.msra.mxu0 %v312_v46  ;;  %v363_v8 = vld [vmem:[#allocation6 + $0x1d8] sm:$0xff]  ;;  %v362_v10 = vld [vmem:[#allocation6 + $0x1d0] sm:$0xff]  ;;  %v361_v12 = vld [vmem:[#allocation6 + $0x1c8] sm:$0xff] }
  0x77   : > { %1966 = vmatpush1.msra.mxu1 %v376_v47  ;;  %1896 = vmatprep.subr.mxu0 %v311_v48  ;;  %v427_v9 = vld [vmem:[#allocation6 + $0x3d8] sm:$0xff]  ;;  %v426_v11 = vld [vmem:[#allocation6 + $0x3d0] sm:$0xff]  ;;  %v425_v13 = vld [vmem:[#allocation6 + $0x3c8] sm:$0xff] }
  0x78   : > { %1967 = vmatprep.subr.mxu1 %v375_v49  ;;  %1897 = vmatpush1.msra.mxu0 %v310_v50  ;;  %v360_v14 = vld [vmem:[#allocation6 + $0x1c0] sm:$0xff]  ;;  %v359_v16 = vld [vmem:[#allocation6 + $0x1b8] sm:$0xff]  ;;  %v358_v18 = vld [vmem:[#allocation6 + $0x1b0] sm:$0xff] }
  0x79   : > { %1968 = vmatpush1.msra.mxu1 %v374_v51  ;;  %1898 = vmatprep.subr.mxu0 %v309_v52  ;;  %v424_v15 = vld [vmem:[#allocation6 + $0x3c0] sm:$0xff]  ;;  %v423_v17 = vld [vmem:[#allocation6 + $0x3b8] sm:$0xff]  ;;  %v422_v19 = vld [vmem:[#allocation6 + $0x3b0] sm:$0xff] }
  0x7a   : > { %1969 = vmatprep.subr.mxu1 %v373_v53  ;;  %1899 = vmatpush1.msra.mxu0 %v308_v54  ;;  %v357_v20 = vld [vmem:[#allocation6 + $0x1a8] sm:$0xff]  ;;  %v356_v22 = vld [vmem:[#allocation6 + $0x1a0] sm:$0xff]  ;;  %v355_v24 = vld [vmem:[#allocation6 + $0x198] sm:$0xff] }
  0x7b   : > { %1970 = vmatpush1.msra.mxu1 %v372_v55  ;;  %1900 = vmatprep.subr.mxu0 %v307_v56  ;;  %v421_v21 = vld [vmem:[#allocation6 + $0x3a8] sm:$0xff]  ;;  %v420_v23 = vld [vmem:[#allocation6 + $0x3a0] sm:$0xff]  ;;  %v419_v25 = vld [vmem:[#allocation6 + $0x398] sm:$0xff] }
  0x7c   : > { %1971 = vmatprep.subr.mxu1 %v371_v57  ;;  %1901 = vmatpush1.msra.mxu0 %v306_v58  ;;  %v354_v26 = vld [vmem:[#allocation6 + $0x190] sm:$0xff]  ;;  %v353_v28 = vld [vmem:[#allocation6 + $0x188] sm:$0xff]  ;;  %v352_v30 = vld [vmem:[#allocation6 + $0x180] sm:$0xff] }
  0x7d   : > { %1972 = vmatpush1.msra.mxu1 %v370_v59  ;;  %1902 = vmatprep.subr.mxu0 %v305_v60  ;;  %v418_v27 = vld [vmem:[#allocation6 + $0x390] sm:$0xff]  ;;  %v417_v29 = vld [vmem:[#allocation6 + $0x388] sm:$0xff]  ;;  %v416_v31 = vld [vmem:[#allocation6 + $0x380] sm:$0xff] }
  0x7e   : > { %1973 = vmatprep.subr.mxu1 %v369_v61  ;;  %1903 = vmatpush1.msra.mxu0 %v304_v62  ;;  %v351_v32 = vld [vmem:[#allocation6 + $0x178] sm:$0xff]  ;;  %v350_v34 = vld [vmem:[#allocation6 + $0x170] sm:$0xff]  ;;  %v349_v36 = vld [vmem:[#allocation6 + $0x168] sm:$0xff] }
  0x7f   : > { %1974 = vmatpush1.msra.mxu1 %v368_v63  ;;  %1904 = vmatprep.subr.mxu0 %v367_v0  ;;  %v415_v33 = vld [vmem:[#allocation6 + $0x378] sm:$0xff]  ;;  %v414_v35 = vld [vmem:[#allocation6 + $0x370] sm:$0xff]  ;;  %v413_v37 = vld [vmem:[#allocation6 + $0x368] sm:$0xff] }
  0x80   : > { %1975 = vmatprep.subr.mxu1 %v431_v1  ;;  %1905 = vmatpush2.msra.mxu0 %v366_v2  ;;  %v348_v38 = vld [vmem:[#allocation6 + $0x160] sm:$0xff]  ;;  %v347_v40 = vld [vmem:[#allocation6 + $0x158] sm:$0xff]  ;;  %v346_v42 = vld [vmem:[#allocation6 + $0x150] sm:$0xff] }
  0x81   : > { %1976 = vmatpush2.msra.mxu1 %v430_v3  ;;  %1906 = vmatprep.subr.mxu0 %v365_v4  ;;  %v412_v39 = vld [vmem:[#allocation6 + $0x360] sm:$0xff]  ;;  %v411_v41 = vld [vmem:[#allocation6 + $0x358] sm:$0xff]  ;;  %v410_v43 = vld [vmem:[#allocation6 + $0x350] sm:$0xff] }
  0x82   : > { %1977 = vmatprep.subr.mxu1 %v429_v5  ;;  %1907 = vmatpush2.msra.mxu0 %v364_v6  ;;  %v345_v44 = vld [vmem:[#allocation6 + $0x148] sm:$0xff]  ;;  %v344_v46 = vld [vmem:[#allocation6 + $0x140] sm:$0xff]  ;;  %v343_v48 = vld [vmem:[#allocation6 + $0x138] sm:$0xff] }
  0x83   : > { %1978 = vmatpush2.msra.mxu1 %v428_v7  ;;  %1908 = vmatprep.subr.mxu0 %v363_v8  ;;  %v409_v45 = vld [vmem:[#allocation6 + $0x348] sm:$0xff]  ;;  %v408_v47 = vld [vmem:[#allocation6 + $0x340] sm:$0xff]  ;;  %v407_v49 = vld [vmem:[#allocation6 + $0x338] sm:$0xff] }
  0x84   : > { %1979 = vmatprep.subr.mxu1 %v427_v9  ;;  %1909 = vmatpush2.msra.mxu0 %v362_v10  ;;  %v342_v50 = vld [vmem:[#allocation6 + $0x130] sm:$0xff]  ;;  %v341_v52 = vld [vmem:[#allocation6 + $0x128] sm:$0xff]  ;;  %v340_v54 = vld [vmem:[#allocation6 + $0x120] sm:$0xff] }
  0x85   : > { %1980 = vmatpush2.msra.mxu1 %v426_v11  ;;  %1910 = vmatprep.subr.mxu0 %v361_v12  ;;  %v406_v51 = vld [vmem:[#allocation6 + $0x330] sm:$0xff]  ;;  %v405_v53 = vld [vmem:[#allocation6 + $0x328] sm:$0xff]  ;;  %v404_v55 = vld [vmem:[#allocation6 + $0x320] sm:$0xff] }
  0x86   : > { %1981 = vmatprep.subr.mxu1 %v425_v13  ;;  %1911 = vmatpush2.msra.mxu0 %v360_v14  ;;  %v339_v56 = vld [vmem:[#allocation6 + $0x118] sm:$0xff]  ;;  %v338_v58 = vld [vmem:[#allocation6 + $0x110] sm:$0xff]  ;;  %v337_v60 = vld [vmem:[#allocation6 + $0x108] sm:$0xff] }
  0x87   : > { %1982 = vmatpush2.msra.mxu1 %v424_v15  ;;  %1912 = vmatprep.subr.mxu0 %v359_v16  ;;  %v403_v57 = vld [vmem:[#allocation6 + $0x318] sm:$0xff]  ;;  %v402_v59 = vld [vmem:[#allocation6 + $0x310] sm:$0xff]  ;;  %v401_v61 = vld [vmem:[#allocation6 + $0x308] sm:$0xff] }
  0x88   : > { %1983 = vmatprep.subr.mxu1 %v423_v17  ;;  %1913 = vmatpush2.msra.mxu0 %v358_v18  ;;  %v336_v62 = vld [vmem:[#allocation6 + $0x100] sm:$0xff]  ;;  %v258_v1 = vld [vmem:[%s6995_s20 + $0x18] sm:$0xff]  ;;  %v255_v2 = vld [vmem:[%s6995_s20] sm:$0xff] }
  0x89   : > { %1984 = vmatpush2.msra.mxu1 %v422_v19  ;;  %1914 = vmatprep.subr.mxu0 %v357_v20  ;;  %v256_v63 = vld [vmem:[%s6995_s20 + $0x8] sm:$0xff]  ;;  %v257_v3 = vld [vmem:[%s6995_s20 + $0x10] sm:$0xff]  ;;  %v462_v6 = vld [vmem:[#allocation6 + $0x4f0] sm:$0xff] }
  0x8a   : > { %1985 = vmatprep.subr.mxu1 %v421_v21  ;;  %1915 = vmatpush2.msra.mxu0 %v356_v22  ;;  %v400_v0 = vld [vmem:[#allocation6 + $0x300] sm:$0xff]  ;;  %v463_v4 = vld [vmem:[#allocation6 + $0x4f8] sm:$0xff]  ;;  %v526_v7 = vld [vmem:[#allocation6 + $0x6f0] sm:$0xff] }
  0x8b   : > { %1986 = vmatpush2.msra.mxu1 %v420_v23  ;;  %1916 = vmatprep.subr.mxu0 %v355_v24  ;;  %v527_v5 = vld [vmem:[#allocation6 + $0x6f8] sm:$0xff]  ;;  %v461_v8 = vld [vmem:[#allocation6 + $0x4e8] sm:$0xff]  ;;  %v460_v10 = vld [vmem:[#allocation6 + $0x4e0] sm:$0xff] }
  0x8c   : > { %1987 = vmatprep.subr.mxu1 %v419_v25  ;;  %1917 = vmatpush2.msra.mxu0 %v354_v26  ;;  %v525_v9 = vld [vmem:[#allocation6 + $0x6e8] sm:$0xff]  ;;  %v524_v11 = vld [vmem:[#allocation6 + $0x6e0] sm:$0xff]  ;;  %v459_v12 = vld [vmem:[#allocation6 + $0x4d8] sm:$0xff] }
  0x8d   : > { %1988 = vmatpush2.msra.mxu1 %v418_v27  ;;  %1918 = vmatprep.subr.mxu0 %v353_v28  ;;  %v523_v13 = vld [vmem:[#allocation6 + $0x6d8] sm:$0xff]  ;;  %v458_v14 = vld [vmem:[#allocation6 + $0x4d0] sm:$0xff]  ;;  %v457_v16 = vld [vmem:[#allocation6 + $0x4c8] sm:$0xff] }
  0x8e   : > { %1989 = vmatprep.subr.mxu1 %v417_v29  ;;  %1919 = vmatpush2.msra.mxu0 %v352_v30  ;;  %v522_v15 = vld [vmem:[#allocation6 + $0x6d0] sm:$0xff]  ;;  %v521_v17 = vld [vmem:[#allocation6 + $0x6c8] sm:$0xff]  ;;  %v456_v18 = vld [vmem:[#allocation6 + $0x4c0] sm:$0xff] }
  0x8f   : > { %1990 = vmatpush2.msra.mxu1 %v416_v31  ;;  %1920 = vmatprep.subr.mxu0 %v351_v32  ;;  %v520_v19 = vld [vmem:[#allocation6 + $0x6c0] sm:$0xff]  ;;  %v455_v20 = vld [vmem:[#allocation6 + $0x4b8] sm:$0xff]  ;;  %v454_v22 = vld [vmem:[#allocation6 + $0x4b0] sm:$0xff] }
  0x90   : > { %1991 = vmatprep.subr.mxu1 %v415_v33  ;;  %1921 = vmatpush2.msra.mxu0 %v350_v34  ;;  %v519_v21 = vld [vmem:[#allocation6 + $0x6b8] sm:$0xff]  ;;  %v518_v23 = vld [vmem:[#allocation6 + $0x6b0] sm:$0xff]  ;;  %v453_v24 = vld [vmem:[#allocation6 + $0x4a8] sm:$0xff] }
  0x91   : > { %1992 = vmatpush2.msra.mxu1 %v414_v35  ;;  %1922 = vmatprep.subr.mxu0 %v349_v36  ;;  %v517_v25 = vld [vmem:[#allocation6 + $0x6a8] sm:$0xff]  ;;  %v452_v26 = vld [vmem:[#allocation6 + $0x4a0] sm:$0xff]  ;;  %v451_v28 = vld [vmem:[#allocation6 + $0x498] sm:$0xff] }
  0x92   : > { %1993 = vmatprep.subr.mxu1 %v413_v37  ;;  %1923 = vmatpush2.msra.mxu0 %v348_v38  ;;  %v516_v27 = vld [vmem:[#allocation6 + $0x6a0] sm:$0xff]  ;;  %v515_v29 = vld [vmem:[#allocation6 + $0x698] sm:$0xff]  ;;  %v450_v30 = vld [vmem:[#allocation6 + $0x490] sm:$0xff] }
  0x93   : > { %1994 = vmatpush2.msra.mxu1 %v412_v39  ;;  %1924 = vmatprep.subr.mxu0 %v347_v40  ;;  %v514_v31 = vld [vmem:[#allocation6 + $0x690] sm:$0xff]  ;;  %v449_v32 = vld [vmem:[#allocation6 + $0x488] sm:$0xff]  ;;  %v448_v34 = vld [vmem:[#allocation6 + $0x480] sm:$0xff] }
  0x94   : > { %1995 = vmatprep.subr.mxu1 %v411_v41  ;;  %1925 = vmatpush2.msra.mxu0 %v346_v42  ;;  %v513_v33 = vld [vmem:[#allocation6 + $0x688] sm:$0xff]  ;;  %v512_v35 = vld [vmem:[#allocation6 + $0x680] sm:$0xff]  ;;  %v447_v36 = vld [vmem:[#allocation6 + $0x478] sm:$0xff] }
  0x95   : > { %1996 = vmatpush2.msra.mxu1 %v410_v43  ;;  %1926 = vmatprep.subr.mxu0 %v345_v44  ;;  %v511_v37 = vld [vmem:[#allocation6 + $0x678] sm:$0xff]  ;;  %v446_v38 = vld [vmem:[#allocation6 + $0x470] sm:$0xff]  ;;  %v445_v40 = vld [vmem:[#allocation6 + $0x468] sm:$0xff] }
  0x96   : > { %1997 = vmatprep.subr.mxu1 %v409_v45  ;;  %1927 = vmatpush2.msra.mxu0 %v344_v46  ;;  %v510_v39 = vld [vmem:[#allocation6 + $0x670] sm:$0xff]  ;;  %v509_v41 = vld [vmem:[#allocation6 + $0x668] sm:$0xff]  ;;  %v444_v42 = vld [vmem:[#allocation6 + $0x460] sm:$0xff] }
  0x97   : > { %1998 = vmatpush2.msra.mxu1 %v408_v47  ;;  %1928 = vmatprep.subr.mxu0 %v343_v48  ;;  %v508_v43 = vld [vmem:[#allocation6 + $0x660] sm:$0xff]  ;;  %v443_v44 = vld [vmem:[#allocation6 + $0x458] sm:$0xff]  ;;  %v442_v46 = vld [vmem:[#allocation6 + $0x450] sm:$0xff] }
  0x98   : > { %1999 = vmatprep.subr.mxu1 %v407_v49  ;;  %1929 = vmatpush2.msra.mxu0 %v342_v50  ;;  %v507_v45 = vld [vmem:[#allocation6 + $0x658] sm:$0xff]  ;;  %v506_v47 = vld [vmem:[#allocation6 + $0x650] sm:$0xff]  ;;  %v441_v48 = vld [vmem:[#allocation6 + $0x448] sm:$0xff] }
  0x99   : > { %2000 = vmatpush2.msra.mxu1 %v406_v51  ;;  %1930 = vmatprep.subr.mxu0 %v341_v52  ;;  %v505_v49 = vld [vmem:[#allocation6 + $0x648] sm:$0xff]  ;;  %v440_v50 = vld [vmem:[#allocation6 + $0x440] sm:$0xff]  ;;  %v439_v52 = vld [vmem:[#allocation6 + $0x438] sm:$0xff] }
  0x9a   : > { %2001 = vmatprep.subr.mxu1 %v405_v53  ;;  %1931 = vmatpush2.msra.mxu0 %v340_v54  ;;  %v504_v51 = vld [vmem:[#allocation6 + $0x640] sm:$0xff]  ;;  %v503_v53 = vld [vmem:[#allocation6 + $0x638] sm:$0xff]  ;;  %v438_v54 = vld [vmem:[#allocation6 + $0x430] sm:$0xff] }
  0x9b   : > { %2002 = vmatpush2.msra.mxu1 %v404_v55  ;;  %1932 = vmatprep.subr.mxu0 %v339_v56  ;;  %v502_v55 = vld [vmem:[#allocation6 + $0x630] sm:$0xff]  ;;  %v437_v56 = vld [vmem:[#allocation6 + $0x428] sm:$0xff] }
  0x9c   : > { %2003 = vmatprep.subr.mxu1 %v403_v57  ;;  %1933 = vmatpush2.msra.mxu0 %v338_v58  ;;  %v501_v57 = vld [vmem:[#allocation6 + $0x628] sm:$0xff]  ;;  %v436_v58 = vld [vmem:[#allocation6 + $0x420] sm:$0xff] }
  0x9d   : > { %2004 = vmatpush2.msra.mxu1 %v402_v59  ;;  %1934 = vmatprep.subr.mxu0 %v337_v60  ;;  %v500_v59 = vld [vmem:[#allocation6 + $0x620] sm:$0xff]  ;;  %v435_v60 = vld [vmem:[#allocation6 + $0x418] sm:$0xff] }
  0x9e   : > { %2005 = vmatprep.subr.mxu1 %v401_v61  ;;  %1935 = vmatpush2.msra.mxu0 %v336_v62  ;;  %v499_v61 = vld [vmem:[#allocation6 + $0x618] sm:$0xff]  ;;  %v434_v62 = vld [vmem:[#allocation6 + $0x410] sm:$0xff] }
  0x9f   : > { %1936 = vmatprep.mubr.f32.mxu0 %v256_v63  ;;  %2006 = vmatpush2.msra.mxu1 %v400_v0  ;;  %v498_v63 = vld [vmem:[#allocation6 + $0x610] sm:$0xff]  ;;  %v433_v0 = vld [vmem:[#allocation6 + $0x408] sm:$0xff] }
  0xa0   : > { %2007 = vmatprep.mubr.f32.mxu1 %v258_v1  ;;  %1937 = vmatmul.mubr.f32.vlgmr.msra.gmra.mxu0 %v255_v2  ;;  %v497_v1 = vld [vmem:[#allocation6 + $0x608] sm:$0xff]  ;;  %v432_v2 = vld [vmem:[#allocation6 + $0x400] sm:$0xff] }
  0xa1   : > { %2008 = vmatmul.mubr.f32.vlgmr.msra.gmra.mxu1 %v257_v3  ;;  %2014 = vmatprep.subr.mxu0 %v463_v4  ;;  %v496_v3 = vld [vmem:[#allocation6 + $0x600] sm:$0xff]  ;;  %v495_v4 = vld [vmem:[#allocation6 + $0x5f8] sm:$0xff] }
  0xa2   : > { %2085 = vmatprep.subr.mxu1 %v527_v5  ;;  %2015 = vmatpush1.msra.mxu0 %v462_v6  ;;  %v559_v5 = vld [vmem:[#allocation6 + $0x7f8] sm:$0xff]  ;;  %v494_v6 = vld [vmem:[#allocation6 + $0x5f0] sm:$0xff] }
  0xa3   : > { %2086 = vmatpush1.msra.mxu1 %v526_v7  ;;  %2016 = vmatprep.subr.mxu0 %v461_v8  ;;  %v558_v7 = vld [vmem:[#allocation6 + $0x7f0] sm:$0xff]  ;;  %v493_v8 = vld [vmem:[#allocation6 + $0x5e8] sm:$0xff] }
  0xa4   : > { %2087 = vmatprep.subr.mxu1 %v525_v9  ;;  %2017 = vmatpush1.msra.mxu0 %v460_v10  ;;  %v557_v9 = vld [vmem:[#allocation6 + $0x7e8] sm:$0xff]  ;;  %v492_v10 = vld [vmem:[#allocation6 + $0x5e0] sm:$0xff] }
  0xa5   : > { %2088 = vmatpush1.msra.mxu1 %v524_v11  ;;  %2018 = vmatprep.subr.mxu0 %v459_v12  ;;  %v556_v11 = vld [vmem:[#allocation6 + $0x7e0] sm:$0xff]  ;;  %v491_v12 = vld [vmem:[#allocation6 + $0x5d8] sm:$0xff] }
  0xa6   : > { %2089 = vmatprep.subr.mxu1 %v523_v13  ;;  %2019 = vmatpush1.msra.mxu0 %v458_v14  ;;  %v555_v13 = vld [vmem:[#allocation6 + $0x7d8] sm:$0xff]  ;;  %v490_v14 = vld [vmem:[#allocation6 + $0x5d0] sm:$0xff] }
  0xa7   : > { %2090 = vmatpush1.msra.mxu1 %v522_v15  ;;  %2020 = vmatprep.subr.mxu0 %v457_v16  ;;  %v554_v15 = vld [vmem:[#allocation6 + $0x7d0] sm:$0xff]  ;;  %v489_v16 = vld [vmem:[#allocation6 + $0x5c8] sm:$0xff] }
  0xa8   : > { %2091 = vmatprep.subr.mxu1 %v521_v17  ;;  %2021 = vmatpush1.msra.mxu0 %v456_v18  ;;  %v553_v17 = vld [vmem:[#allocation6 + $0x7c8] sm:$0xff]  ;;  %v488_v18 = vld [vmem:[#allocation6 + $0x5c0] sm:$0xff] }
  0xa9   : > { %2092 = vmatpush1.msra.mxu1 %v520_v19  ;;  %2022 = vmatprep.subr.mxu0 %v455_v20  ;;  %v552_v19 = vld [vmem:[#allocation6 + $0x7c0] sm:$0xff]  ;;  %v487_v20 = vld [vmem:[#allocation6 + $0x5b8] sm:$0xff] }
  0xaa   : > { %2093 = vmatprep.subr.mxu1 %v519_v21  ;;  %2023 = vmatpush1.msra.mxu0 %v454_v22  ;;  %v551_v21 = vld [vmem:[#allocation6 + $0x7b8] sm:$0xff]  ;;  %v486_v22 = vld [vmem:[#allocation6 + $0x5b0] sm:$0xff] }
  0xab   : > { %2094 = vmatpush1.msra.mxu1 %v518_v23  ;;  %2024 = vmatprep.subr.mxu0 %v453_v24  ;;  %v550_v23 = vld [vmem:[#allocation6 + $0x7b0] sm:$0xff]  ;;  %v485_v24 = vld [vmem:[#allocation6 + $0x5a8] sm:$0xff] }
  0xac   : > { %2095 = vmatprep.subr.mxu1 %v517_v25  ;;  %2025 = vmatpush1.msra.mxu0 %v452_v26  ;;  %v549_v25 = vld [vmem:[#allocation6 + $0x7a8] sm:$0xff]  ;;  %v484_v26 = vld [vmem:[#allocation6 + $0x5a0] sm:$0xff] }
  0xad   : > { %2096 = vmatpush1.msra.mxu1 %v516_v27  ;;  %2026 = vmatprep.subr.mxu0 %v451_v28  ;;  %v548_v27 = vld [vmem:[#allocation6 + $0x7a0] sm:$0xff]  ;;  %v483_v28 = vld [vmem:[#allocation6 + $0x598] sm:$0xff] }
  0xae   : > { %2097 = vmatprep.subr.mxu1 %v515_v29  ;;  %2027 = vmatpush1.msra.mxu0 %v450_v30  ;;  %v547_v29 = vld [vmem:[#allocation6 + $0x798] sm:$0xff]  ;;  %v482_v30 = vld [vmem:[#allocation6 + $0x590] sm:$0xff] }
  0xaf   : > { %2098 = vmatpush1.msra.mxu1 %v514_v31  ;;  %2028 = vmatprep.subr.mxu0 %v449_v32  ;;  %v546_v31 = vld [vmem:[#allocation6 + $0x790] sm:$0xff]  ;;  %v481_v32 = vld [vmem:[#allocation6 + $0x588] sm:$0xff] }
  0xb0   : > { %2099 = vmatprep.subr.mxu1 %v513_v33  ;;  %2029 = vmatpush1.msra.mxu0 %v448_v34  ;;  %v545_v33 = vld [vmem:[#allocation6 + $0x788] sm:$0xff]  ;;  %v480_v34 = vld [vmem:[#allocation6 + $0x580] sm:$0xff] }
  0xb1   : > { %2100 = vmatpush1.msra.mxu1 %v512_v35  ;;  %2030 = vmatprep.subr.mxu0 %v447_v36  ;;  %v544_v35 = vld [vmem:[#allocation6 + $0x780] sm:$0xff]  ;;  %v479_v36 = vld [vmem:[#allocation6 + $0x578] sm:$0xff] }
  0xb2   : > { %2101 = vmatprep.subr.mxu1 %v511_v37  ;;  %2031 = vmatpush1.msra.mxu0 %v446_v38  ;;  %v543_v37 = vld [vmem:[#allocation6 + $0x778] sm:$0xff]  ;;  %v478_v38 = vld [vmem:[#allocation6 + $0x570] sm:$0xff] }
  0xb3   : > { %2102 = vmatpush1.msra.mxu1 %v510_v39  ;;  %2032 = vmatprep.subr.mxu0 %v445_v40  ;;  %v542_v39 = vld [vmem:[#allocation6 + $0x770] sm:$0xff]  ;;  %v477_v40 = vld [vmem:[#allocation6 + $0x568] sm:$0xff] }
  0xb4   : > { %2103 = vmatprep.subr.mxu1 %v509_v41  ;;  %2033 = vmatpush1.msra.mxu0 %v444_v42  ;;  %v541_v41 = vld [vmem:[#allocation6 + $0x768] sm:$0xff]  ;;  %v476_v42 = vld [vmem:[#allocation6 + $0x560] sm:$0xff] }
  0xb5   : > { %2104 = vmatpush1.msra.mxu1 %v508_v43  ;;  %2034 = vmatprep.subr.mxu0 %v443_v44  ;;  %v540_v43 = vld [vmem:[#allocation6 + $0x760] sm:$0xff]  ;;  %v475_v44 = vld [vmem:[#allocation6 + $0x558] sm:$0xff] }
  0xb6   : > { %2105 = vmatprep.subr.mxu1 %v507_v45  ;;  %2035 = vmatpush1.msra.mxu0 %v442_v46  ;;  %v539_v45 = vld [vmem:[#allocation6 + $0x758] sm:$0xff]  ;;  %v474_v46 = vld [vmem:[#allocation6 + $0x550] sm:$0xff] }
  0xb7   : > { %2106 = vmatpush1.msra.mxu1 %v506_v47  ;;  %2036 = vmatprep.subr.mxu0 %v441_v48  ;;  %v538_v47 = vld [vmem:[#allocation6 + $0x750] sm:$0xff]  ;;  %v473_v48 = vld [vmem:[#allocation6 + $0x548] sm:$0xff] }
  0xb8   : > { %2107 = vmatprep.subr.mxu1 %v505_v49  ;;  %2037 = vmatpush1.msra.mxu0 %v440_v50  ;;  %v537_v49 = vld [vmem:[#allocation6 + $0x748] sm:$0xff]  ;;  %v472_v50 = vld [vmem:[#allocation6 + $0x540] sm:$0xff] }
  0xb9   : > { %2108 = vmatpush1.msra.mxu1 %v504_v51  ;;  %2038 = vmatprep.subr.mxu0 %v439_v52  ;;  %v536_v51 = vld [vmem:[#allocation6 + $0x740] sm:$0xff]  ;;  %v471_v52 = vld [vmem:[#allocation6 + $0x538] sm:$0xff] }
  0xba   : > { %2109 = vmatprep.subr.mxu1 %v503_v53  ;;  %2039 = vmatpush1.msra.mxu0 %v438_v54  ;;  %v535_v53 = vld [vmem:[#allocation6 + $0x738] sm:$0xff]  ;;  %v470_v54 = vld [vmem:[#allocation6 + $0x530] sm:$0xff] }
  0xbb   : > { %2110 = vmatpush1.msra.mxu1 %v502_v55  ;;  %2040 = vmatprep.subr.mxu0 %v437_v56  ;;  %v534_v55 = vld [vmem:[#allocation6 + $0x730] sm:$0xff]  ;;  %v469_v56 = vld [vmem:[#allocation6 + $0x528] sm:$0xff] }
  0xbc   : > { %2111 = vmatprep.subr.mxu1 %v501_v57  ;;  %2041 = vmatpush1.msra.mxu0 %v436_v58  ;;  %v533_v57 = vld [vmem:[#allocation6 + $0x728] sm:$0xff]  ;;  %v468_v58 = vld [vmem:[#allocation6 + $0x520] sm:$0xff] }
  0xbd   : > { %2112 = vmatpush1.msra.mxu1 %v500_v59  ;;  %2042 = vmatprep.subr.mxu0 %v435_v60  ;;  %v532_v59 = vld [vmem:[#allocation6 + $0x720] sm:$0xff]  ;;  %v467_v60 = vld [vmem:[#allocation6 + $0x518] sm:$0xff] }
  0xbe   : > { %2113 = vmatprep.subr.mxu1 %v499_v61  ;;  %2043 = vmatpush1.msra.mxu0 %v434_v62  ;;  %v531_v61 = vld [vmem:[#allocation6 + $0x718] sm:$0xff]  ;;  %v466_v62 = vld [vmem:[#allocation6 + $0x510] sm:$0xff] }
  0xbf   : > { %2114 = vmatpush1.msra.mxu1 %v498_v63  ;;  %2044 = vmatprep.subr.mxu0 %v433_v0  ;;  %v260_v63 = vld [vmem:[%s6995_s20 + $0x28] sm:$0xff]  ;;  %v465_v0 = vld [vmem:[#allocation6 + $0x508] sm:$0xff] }
  0xc0   : > { %2115 = vmatprep.subr.mxu1 %v497_v1  ;;  %2045 = vmatpush1.msra.mxu0 %v432_v2  ;;  %v530_v1 = vld [vmem:[#allocation6 + $0x710] sm:$0xff]  ;;  %v464_v2 = vld [vmem:[#allocation6 + $0x500] sm:$0xff] }
  0xc1   : > { %2116 = vmatpush1.msra.mxu1 %v496_v3  ;;  %2046 = vmatprep.subr.mxu0 %v495_v4  ;;  %v529_v3 = vld [vmem:[#allocation6 + $0x708] sm:$0xff]  ;;  %v259_v4 = vld [vmem:[%s6995_s20 + $0x20] sm:$0xff] }
  0xc2   : > { %2117 = vmatprep.subr.mxu1 %v559_v5  ;;  %2047 = vmatpush2.msra.mxu0 %v494_v6  ;;  %v591_v5 = vld [vmem:[#allocation6 + $0x8f8] sm:$0xff]  ;;  %v528_v6 = vld [vmem:[#allocation6 + $0x700] sm:$0xff] }
  0xc3   : > { %2118 = vmatpush2.msra.mxu1 %v558_v7  ;;  %2048 = vmatprep.subr.mxu0 %v493_v8  ;;  %v262_v7 = vld [vmem:[%s6995_s20 + $0x38] sm:$0xff] }
  0xc4   : > { %2119 = vmatprep.subr.mxu1 %v557_v9  ;;  %2049 = vmatpush2.msra.mxu0 %v492_v10  ;;  %v590_v8 = vld [vmem:[#allocation6 + $0x8f0] sm:$0xff]  ;;  %v261_v9 = vld [vmem:[%s6995_s20 + $0x30] sm:$0xff] }
  0xc5   : > { %2120 = vmatpush2.msra.mxu1 %v556_v11  ;;  %2050 = vmatprep.subr.mxu0 %v491_v12  ;;  %v589_v10 = vld [vmem:[#allocation6 + $0x8e8] sm:$0xff]  ;;  %v655_v11 = vld [vmem:[#allocation6 + $0xaf8] sm:$0xff]  ;;  %v588_v12 = vld [vmem:[#allocation6 + $0x8e0] sm:$0xff] }
  0xc6   : > { %2121 = vmatprep.subr.mxu1 %v555_v13  ;;  %2051 = vmatpush2.msra.mxu0 %v490_v14  ;;  %v654_v13 = vld [vmem:[#allocation6 + $0xaf0] sm:$0xff]  ;;  %v587_v14 = vld [vmem:[#allocation6 + $0x8d8] sm:$0xff] }
  0xc7   : > { %2122 = vmatpush2.msra.mxu1 %v554_v15  ;;  %2052 = vmatprep.subr.mxu0 %v489_v16  ;;  %v653_v15 = vld [vmem:[#allocation6 + $0xae8] sm:$0xff]  ;;  %v586_v16 = vld [vmem:[#allocation6 + $0x8d0] sm:$0xff] }
  0xc8   : > { %2123 = vmatprep.subr.mxu1 %v553_v17  ;;  %2053 = vmatpush2.msra.mxu0 %v488_v18  ;;  %v652_v17 = vld [vmem:[#allocation6 + $0xae0] sm:$0xff]  ;;  %v585_v18 = vld [vmem:[#allocation6 + $0x8c8] sm:$0xff] }
  0xc9   : > { %2124 = vmatpush2.msra.mxu1 %v552_v19  ;;  %2054 = vmatprep.subr.mxu0 %v487_v20  ;;  %v651_v19 = vld [vmem:[#allocation6 + $0xad8] sm:$0xff]  ;;  %v584_v20 = vld [vmem:[#allocation6 + $0x8c0] sm:$0xff] }
  0xca   : > { %2125 = vmatprep.subr.mxu1 %v551_v21  ;;  %2055 = vmatpush2.msra.mxu0 %v486_v22  ;;  %v650_v21 = vld [vmem:[#allocation6 + $0xad0] sm:$0xff]  ;;  %v583_v22 = vld [vmem:[#allocation6 + $0x8b8] sm:$0xff] }
  0xcb   : > { %2126 = vmatpush2.msra.mxu1 %v550_v23  ;;  %2056 = vmatprep.subr.mxu0 %v485_v24  ;;  %v649_v23 = vld [vmem:[#allocation6 + $0xac8] sm:$0xff]  ;;  %v582_v24 = vld [vmem:[#allocation6 + $0x8b0] sm:$0xff] }
  0xcc   : > { %2127 = vmatprep.subr.mxu1 %v549_v25  ;;  %2057 = vmatpush2.msra.mxu0 %v484_v26  ;;  %v648_v25 = vld [vmem:[#allocation6 + $0xac0] sm:$0xff]  ;;  %v581_v26 = vld [vmem:[#allocation6 + $0x8a8] sm:$0xff] }
  0xcd   : > { %2128 = vmatpush2.msra.mxu1 %v548_v27  ;;  %2058 = vmatprep.subr.mxu0 %v483_v28  ;;  %v647_v27 = vld [vmem:[#allocation6 + $0xab8] sm:$0xff]  ;;  %v580_v28 = vld [vmem:[#allocation6 + $0x8a0] sm:$0xff] }
  0xce   : > { %2129 = vmatprep.subr.mxu1 %v547_v29  ;;  %2059 = vmatpush2.msra.mxu0 %v482_v30  ;;  %v646_v29 = vld [vmem:[#allocation6 + $0xab0] sm:$0xff]  ;;  %v579_v30 = vld [vmem:[#allocation6 + $0x898] sm:$0xff] }
  0xcf   : > { %2130 = vmatpush2.msra.mxu1 %v546_v31  ;;  %2060 = vmatprep.subr.mxu0 %v481_v32  ;;  %v645_v31 = vld [vmem:[#allocation6 + $0xaa8] sm:$0xff]  ;;  %v578_v32 = vld [vmem:[#allocation6 + $0x890] sm:$0xff] }
  0xd0   : > { %2131 = vmatprep.subr.mxu1 %v545_v33  ;;  %2061 = vmatpush2.msra.mxu0 %v480_v34  ;;  %v644_v33 = vld [vmem:[#allocation6 + $0xaa0] sm:$0xff]  ;;  %v577_v34 = vld [vmem:[#allocation6 + $0x888] sm:$0xff] }
  0xd1   : > { %2132 = vmatpush2.msra.mxu1 %v544_v35  ;;  %2062 = vmatprep.subr.mxu0 %v479_v36  ;;  %v643_v35 = vld [vmem:[#allocation6 + $0xa98] sm:$0xff]  ;;  %v576_v36 = vld [vmem:[#allocation6 + $0x880] sm:$0xff] }
  0xd2   : > { %2133 = vmatprep.subr.mxu1 %v543_v37  ;;  %2063 = vmatpush2.msra.mxu0 %v478_v38  ;;  %v642_v37 = vld [vmem:[#allocation6 + $0xa90] sm:$0xff]  ;;  %v575_v38 = vld [vmem:[#allocation6 + $0x878] sm:$0xff] }
  0xd3   : > { %2134 = vmatpush2.msra.mxu1 %v542_v39  ;;  %2064 = vmatprep.subr.mxu0 %v477_v40  ;;  %v641_v39 = vld [vmem:[#allocation6 + $0xa88] sm:$0xff]  ;;  %v574_v40 = vld [vmem:[#allocation6 + $0x870] sm:$0xff] }
  0xd4   : > { %2135 = vmatprep.subr.mxu1 %v541_v41  ;;  %2065 = vmatpush2.msra.mxu0 %v476_v42  ;;  %v640_v41 = vld [vmem:[#allocation6 + $0xa80] sm:$0xff]  ;;  %v573_v42 = vld [vmem:[#allocation6 + $0x868] sm:$0xff] }
  0xd5   : > { %2136 = vmatpush2.msra.mxu1 %v540_v43  ;;  %2066 = vmatprep.subr.mxu0 %v475_v44  ;;  %v639_v43 = vld [vmem:[#allocation6 + $0xa78] sm:$0xff]  ;;  %v572_v44 = vld [vmem:[#allocation6 + $0x860] sm:$0xff] }
  0xd6   : > { %2137 = vmatprep.subr.mxu1 %v539_v45  ;;  %2067 = vmatpush2.msra.mxu0 %v474_v46  ;;  %v638_v45 = vld [vmem:[#allocation6 + $0xa70] sm:$0xff]  ;;  %v571_v46 = vld [vmem:[#allocation6 + $0x858] sm:$0xff] }
  0xd7   : > { %2138 = vmatpush2.msra.mxu1 %v538_v47  ;;  %2068 = vmatprep.subr.mxu0 %v473_v48  ;;  %v637_v47 = vld [vmem:[#allocation6 + $0xa68] sm:$0xff]  ;;  %v570_v48 = vld [vmem:[#allocation6 + $0x850] sm:$0xff] }
  0xd8   : > { %2139 = vmatprep.subr.mxu1 %v537_v49  ;;  %2069 = vmatpush2.msra.mxu0 %v472_v50  ;;  %v636_v49 = vld [vmem:[#allocation6 + $0xa60] sm:$0xff]  ;;  %v569_v50 = vld [vmem:[#allocation6 + $0x848] sm:$0xff] }
  0xd9   : > { %2140 = vmatpush2.msra.mxu1 %v536_v51  ;;  %2070 = vmatprep.subr.mxu0 %v471_v52  ;;  %v635_v51 = vld [vmem:[#allocation6 + $0xa58] sm:$0xff]  ;;  %v568_v52 = vld [vmem:[#allocation6 + $0x840] sm:$0xff] }
  0xda   : > { %2141 = vmatprep.subr.mxu1 %v535_v53  ;;  %2071 = vmatpush2.msra.mxu0 %v470_v54  ;;  %v634_v53 = vld [vmem:[#allocation6 + $0xa50] sm:$0xff]  ;;  %v567_v54 = vld [vmem:[#allocation6 + $0x838] sm:$0xff] }
  0xdb   : > { %2142 = vmatpush2.msra.mxu1 %v534_v55  ;;  %2072 = vmatprep.subr.mxu0 %v469_v56  ;;  %v633_v55 = vld [vmem:[#allocation6 + $0xa48] sm:$0xff]  ;;  %v566_v56 = vld [vmem:[#allocation6 + $0x830] sm:$0xff] }
  0xdc   : > { %2143 = vmatprep.subr.mxu1 %v533_v57  ;;  %2073 = vmatpush2.msra.mxu0 %v468_v58  ;;  %v632_v57 = vld [vmem:[#allocation6 + $0xa40] sm:$0xff]  ;;  %v565_v58 = vld [vmem:[#allocation6 + $0x828] sm:$0xff] }
  0xdd   : > { %2144 = vmatpush2.msra.mxu1 %v532_v59  ;;  %2074 = vmatprep.subr.mxu0 %v467_v60  ;;  %v631_v59 = vld [vmem:[#allocation6 + $0xa38] sm:$0xff]  ;;  %v564_v60 = vld [vmem:[#allocation6 + $0x820] sm:$0xff] }
  0xde   : > { %2145 = vmatprep.subr.mxu1 %v531_v61  ;;  %2075 = vmatpush2.msra.mxu0 %v466_v62  ;;  %v630_v61 = vld [vmem:[#allocation6 + $0xa30] sm:$0xff]  ;;  %v563_v62 = vld [vmem:[#allocation6 + $0x818] sm:$0xff] }
  0xdf   : > { %2078 = vmatprep.mubr.f32.mxu0 %v260_v63  ;;  %2076 = vmatprep.subr.mxu0 %v465_v0  ;;  %v629_v63 = vld [vmem:[#allocation6 + $0xa28] sm:$0xff]  ;;  %v562_v0 = vld [vmem:[#allocation6 + $0x810] sm:$0xff] }
  0xe0   : > { %2146 = vmatpush2.msra.mxu1 %v530_v1  ;;  %2077 = vmatpush2.msra.mxu0 %v464_v2  ;;  %v628_v1 = vld [vmem:[#allocation6 + $0xa20] sm:$0xff]  ;;  %v561_v2 = vld [vmem:[#allocation6 + $0x808] sm:$0xff] }
  0xe1   : > { %2147 = vmatprep.subr.mxu1 %v529_v3  ;;  %2079 = vmatmul.mubr.f32.vlgmr.msra.gmra.mxu0 %v259_v4  ;;  %v627_v3 = vld [vmem:[#allocation6 + $0xa18] sm:$0xff]  ;;  %v560_v4 = vld [vmem:[#allocation6 + $0x800] sm:$0xff] }
  0xe2   : > { %2156 = vmatprep.subr.mxu0 %v591_v5  ;;  %2148 = vmatpush2.msra.mxu1 %v528_v6  ;;  %v626_v5 = vld [vmem:[#allocation6 + $0xa10] sm:$0xff]  ;;  %v623_v6 = vld [vmem:[#allocation6 + $0x9f8] sm:$0xff] }
  0xe3   : > { %2149 = vmatprep.mubr.f32.mxu1 %v262_v7  ;;  %2157 = vmatpush1.msra.mxu0 %v590_v8  ;;  %v625_v7 = vld [vmem:[#allocation6 + $0xa08] sm:$0xff]  ;;  %v622_v8 = vld [vmem:[#allocation6 + $0x9f0] sm:$0xff] }
  0xe4   : > { %2150 = vmatmul.mubr.f32.vlgmr.msra.gmra.mxu1 %v261_v9  ;;  %2158 = vmatprep.subr.mxu0 %v589_v10  ;;  %v624_v9 = vld [vmem:[#allocation6 + $0xa00] sm:$0xff]  ;;  %v621_v10 = vld [vmem:[#allocation6 + $0x9e8] sm:$0xff] }
  0xe5   : > { %2227 = vmatprep.subr.mxu1 %v655_v11  ;;  %2159 = vmatpush1.msra.mxu0 %v588_v12  ;;  %v687_v11 = vld [vmem:[#allocation6 + $0xbf8] sm:$0xff]  ;;  %v620_v12 = vld [vmem:[#allocation6 + $0x9e0] sm:$0xff] }
  0xe6   : > { %2228 = vmatpush1.msra.mxu1 %v654_v13  ;;  %2160 = vmatprep.subr.mxu0 %v587_v14  ;;  %v686_v13 = vld [vmem:[#allocation6 + $0xbf0] sm:$0xff]  ;;  %v619_v14 = vld [vmem:[#allocation6 + $0x9d8] sm:$0xff] }
  0xe7   : > { %2229 = vmatprep.subr.mxu1 %v653_v15  ;;  %2161 = vmatpush1.msra.mxu0 %v586_v16  ;;  %v685_v15 = vld [vmem:[#allocation6 + $0xbe8] sm:$0xff]  ;;  %v618_v16 = vld [vmem:[#allocation6 + $0x9d0] sm:$0xff] }
  0xe8   : > { %2230 = vmatpush1.msra.mxu1 %v652_v17  ;;  %2162 = vmatprep.subr.mxu0 %v585_v18  ;;  %v684_v17 = vld [vmem:[#allocation6 + $0xbe0] sm:$0xff]  ;;  %v617_v18 = vld [vmem:[#allocation6 + $0x9c8] sm:$0xff] }
  0xe9   : > { %2231 = vmatprep.subr.mxu1 %v651_v19  ;;  %2163 = vmatpush1.msra.mxu0 %v584_v20  ;;  %v683_v19 = vld [vmem:[#allocation6 + $0xbd8] sm:$0xff]  ;;  %v616_v20 = vld [vmem:[#allocation6 + $0x9c0] sm:$0xff] }
  0xea   : > { %2232 = vmatpush1.msra.mxu1 %v650_v21  ;;  %2164 = vmatprep.subr.mxu0 %v583_v22  ;;  %v682_v21 = vld [vmem:[#allocation6 + $0xbd0] sm:$0xff]  ;;  %v615_v22 = vld [vmem:[#allocation6 + $0x9b8] sm:$0xff] }
  0xeb   : > { %2233 = vmatprep.subr.mxu1 %v649_v23  ;;  %2165 = vmatpush1.msra.mxu0 %v582_v24  ;;  %v681_v23 = vld [vmem:[#allocation6 + $0xbc8] sm:$0xff]  ;;  %v614_v24 = vld [vmem:[#allocation6 + $0x9b0] sm:$0xff] }
  0xec   : > { %2234 = vmatpush1.msra.mxu1 %v648_v25  ;;  %2166 = vmatprep.subr.mxu0 %v581_v26  ;;  %v680_v25 = vld [vmem:[#allocation6 + $0xbc0] sm:$0xff]  ;;  %v613_v26 = vld [vmem:[#allocation6 + $0x9a8] sm:$0xff] }
  0xed   : > { %2235 = vmatprep.subr.mxu1 %v647_v27  ;;  %2167 = vmatpush1.msra.mxu0 %v580_v28  ;;  %v679_v27 = vld [vmem:[#allocation6 + $0xbb8] sm:$0xff]  ;;  %v612_v28 = vld [vmem:[#allocation6 + $0x9a0] sm:$0xff] }
  0xee   : > { %2236 = vmatpush1.msra.mxu1 %v646_v29  ;;  %2168 = vmatprep.subr.mxu0 %v579_v30  ;;  %v678_v29 = vld [vmem:[#allocation6 + $0xbb0] sm:$0xff]  ;;  %v611_v30 = vld [vmem:[#allocation6 + $0x998] sm:$0xff] }
  0xef   : > { %2237 = vmatprep.subr.mxu1 %v645_v31  ;;  %2169 = vmatpush1.msra.mxu0 %v578_v32  ;;  %v677_v31 = vld [vmem:[#allocation6 + $0xba8] sm:$0xff]  ;;  %v610_v32 = vld [vmem:[#allocation6 + $0x990] sm:$0xff] }
  0xf0   : > { %2238 = vmatpush1.msra.mxu1 %v644_v33  ;;  %2170 = vmatprep.subr.mxu0 %v577_v34  ;;  %v676_v33 = vld [vmem:[#allocation6 + $0xba0] sm:$0xff]  ;;  %v609_v34 = vld [vmem:[#allocation6 + $0x988] sm:$0xff] }
  0xf1   : > { %2239 = vmatprep.subr.mxu1 %v643_v35  ;;  %2171 = vmatpush1.msra.mxu0 %v576_v36  ;;  %v675_v35 = vld [vmem:[#allocation6 + $0xb98] sm:$0xff]  ;;  %v608_v36 = vld [vmem:[#allocation6 + $0x980] sm:$0xff] }
  0xf2   : > { %2240 = vmatpush1.msra.mxu1 %v642_v37  ;;  %2172 = vmatprep.subr.mxu0 %v575_v38  ;;  %v674_v37 = vld [vmem:[#allocation6 + $0xb90] sm:$0xff]  ;;  %v607_v38 = vld [vmem:[#allocation6 + $0x978] sm:$0xff] }
  0xf3   : > { %2241 = vmatprep.subr.mxu1 %v641_v39  ;;  %2173 = vmatpush1.msra.mxu0 %v574_v40  ;;  %v673_v39 = vld [vmem:[#allocation6 + $0xb88] sm:$0xff]  ;;  %v606_v40 = vld [vmem:[#allocation6 + $0x970] sm:$0xff] }
  0xf4   : > { %2242 = vmatpush1.msra.mxu1 %v640_v41  ;;  %2174 = vmatprep.subr.mxu0 %v573_v42  ;;  %v672_v41 = vld [vmem:[#allocation6 + $0xb80] sm:$0xff]  ;;  %v605_v42 = vld [vmem:[#allocation6 + $0x968] sm:$0xff] }
  0xf5   : > { %2243 = vmatprep.subr.mxu1 %v639_v43  ;;  %2175 = vmatpush1.msra.mxu0 %v572_v44  ;;  %v671_v43 = vld [vmem:[#allocation6 + $0xb78] sm:$0xff]  ;;  %v604_v44 = vld [vmem:[#allocation6 + $0x960] sm:$0xff] }
  0xf6   : > { %2244 = vmatpush1.msra.mxu1 %v638_v45  ;;  %2176 = vmatprep.subr.mxu0 %v571_v46  ;;  %v670_v45 = vld [vmem:[#allocation6 + $0xb70] sm:$0xff]  ;;  %v603_v46 = vld [vmem:[#allocation6 + $0x958] sm:$0xff] }
  0xf7   : > { %2245 = vmatprep.subr.mxu1 %v637_v47  ;;  %2177 = vmatpush1.msra.mxu0 %v570_v48  ;;  %v669_v47 = vld [vmem:[#allocation6 + $0xb68] sm:$0xff]  ;;  %v602_v48 = vld [vmem:[#allocation6 + $0x950] sm:$0xff] }
  0xf8   : > { %2246 = vmatpush1.msra.mxu1 %v636_v49  ;;  %2178 = vmatprep.subr.mxu0 %v569_v50  ;;  %v668_v49 = vld [vmem:[#allocation6 + $0xb60] sm:$0xff]  ;;  %v601_v50 = vld [vmem:[#allocation6 + $0x948] sm:$0xff] }
  0xf9   : > { %2247 = vmatprep.subr.mxu1 %v635_v51  ;;  %2179 = vmatpush1.msra.mxu0 %v568_v52  ;;  %v667_v51 = vld [vmem:[#allocation6 + $0xb58] sm:$0xff]  ;;  %v600_v52 = vld [vmem:[#allocation6 + $0x940] sm:$0xff] }
  0xfa   : > { %2248 = vmatpush1.msra.mxu1 %v634_v53  ;;  %2180 = vmatprep.subr.mxu0 %v567_v54  ;;  %v666_v53 = vld [vmem:[#allocation6 + $0xb50] sm:$0xff]  ;;  %v599_v54 = vld [vmem:[#allocation6 + $0x938] sm:$0xff] }
  0xfb   : > { %2249 = vmatprep.subr.mxu1 %v633_v55  ;;  %2181 = vmatpush1.msra.mxu0 %v566_v56  ;;  %v665_v55 = vld [vmem:[#allocation6 + $0xb48] sm:$0xff]  ;;  %v598_v56 = vld [vmem:[#allocation6 + $0x930] sm:$0xff] }
  0xfc   : > { %2250 = vmatpush1.msra.mxu1 %v632_v57  ;;  %2182 = vmatprep.subr.mxu0 %v565_v58  ;;  %v664_v57 = vld [vmem:[#allocation6 + $0xb40] sm:$0xff]  ;;  %v597_v58 = vld [vmem:[#allocation6 + $0x928] sm:$0xff] }
  0xfd   : > { %2251 = vmatprep.subr.mxu1 %v631_v59  ;;  %2183 = vmatpush1.msra.mxu0 %v564_v60  ;;  %v663_v59 = vld [vmem:[#allocation6 + $0xb38] sm:$0xff]  ;;  %v596_v60 = vld [vmem:[#allocation6 + $0x920] sm:$0xff] }
  0xfe   : > { %2252 = vmatpush1.msra.mxu1 %v630_v61  ;;  %2184 = vmatprep.subr.mxu0 %v563_v62  ;;  %v662_v61 = vld [vmem:[#allocation6 + $0xb30] sm:$0xff]  ;;  %v595_v62 = vld [vmem:[#allocation6 + $0x918] sm:$0xff] }
  0xff   : > { %2253 = vmatprep.subr.mxu1 %v629_v63  ;;  %2185 = vmatpush1.msra.mxu0 %v562_v0  ;;  %v661_v63 = vld [vmem:[#allocation6 + $0xb28] sm:$0xff]  ;;  %v594_v0 = vld [vmem:[#allocation6 + $0x910] sm:$0xff] }
 0x100   : > { %2254 = vmatpush1.msra.mxu1 %v628_v1  ;;  %2186 = vmatprep.subr.mxu0 %v561_v2  ;;  %v660_v1 = vld [vmem:[#allocation6 + $0xb20] sm:$0xff]  ;;  %v593_v2 = vld [vmem:[#allocation6 + $0x908] sm:$0xff] }
 0x101   : > { %2255 = vmatprep.subr.mxu1 %v627_v3  ;;  %2187 = vmatpush1.msra.mxu0 %v560_v4  ;;  %v659_v3 = vld [vmem:[#allocation6 + $0xb18] sm:$0xff]  ;;  %v592_v4 = vld [vmem:[#allocation6 + $0x900] sm:$0xff] }
 0x102   : > { %2256 = vmatpush1.msra.mxu1 %v626_v5  ;;  %2188 = vmatprep.subr.mxu0 %v623_v6  ;;  %v264_v5 = vld [vmem:[%s6995_s20 + $0x48] sm:$0xff]  ;;  %v658_v6 = vld [vmem:[#allocation6 + $0xb10] sm:$0xff] }
 0x103   : > { %2257 = vmatprep.subr.mxu1 %v625_v7  ;;  %2189 = vmatpush2.msra.mxu0 %v622_v8  ;;  %v263_v7 = vld [vmem:[%s6995_s20 + $0x40] sm:$0xff]  ;;  %v657_v8 = vld [vmem:[#allocation6 + $0xb08] sm:$0xff] }
 0x104   : > { %2258 = vmatpush1.msra.mxu1 %v624_v9  ;;  %2190 = vmatprep.subr.mxu0 %v621_v10  ;;  %v719_v9 = vld [vmem:[#allocation6 + $0xcf8] sm:$0xff]  ;;  %v656_v10 = vld [vmem:[#allocation6 + $0xb00] sm:$0xff] }
 0x105   : > { %2259 = vmatprep.subr.mxu1 %v687_v11  ;;  %2191 = vmatpush2.msra.mxu0 %v620_v12  ;;  %v266_v11 = vld [vmem:[%s6995_s20 + $0x58] sm:$0xff] }
 0x106   : > { %2260 = vmatpush2.msra.mxu1 %v686_v13  ;;  %2192 = vmatprep.subr.mxu0 %v619_v14  ;;  %v718_v12 = vld [vmem:[#allocation6 + $0xcf0] sm:$0xff]  ;;  %v265_v13 = vld [vmem:[%s6995_s20 + $0x50] sm:$0xff] }
 0x107   : > { %2261 = vmatprep.subr.mxu1 %v685_v15  ;;  %2193 = vmatpush2.msra.mxu0 %v618_v16  ;;  %v717_v14 = vld [vmem:[#allocation6 + $0xce8] sm:$0xff]  ;;  %v783_v15 = vld [vmem:[#allocation6 + $0xef8] sm:$0xff]  ;;  %v716_v16 = vld [vmem:[#allocation6 + $0xce0] sm:$0xff] }
 0x108   : > { %2262 = vmatpush2.msra.mxu1 %v684_v17  ;;  %2194 = vmatprep.subr.mxu0 %v617_v18  ;;  %v782_v17 = vld [vmem:[#allocation6 + $0xef0] sm:$0xff]  ;;  %v715_v18 = vld [vmem:[#allocation6 + $0xcd8] sm:$0xff] }
 0x109   : > { %2263 = vmatprep.subr.mxu1 %v683_v19  ;;  %2195 = vmatpush2.msra.mxu0 %v616_v20  ;;  %v781_v19 = vld [vmem:[#allocation6 + $0xee8] sm:$0xff]  ;;  %v714_v20 = vld [vmem:[#allocation6 + $0xcd0] sm:$0xff] }
 0x10a   : > { %2264 = vmatpush2.msra.mxu1 %v682_v21  ;;  %2196 = vmatprep.subr.mxu0 %v615_v22  ;;  %v780_v21 = vld [vmem:[#allocation6 + $0xee0] sm:$0xff]  ;;  %v713_v22 = vld [vmem:[#allocation6 + $0xcc8] sm:$0xff] }
 0x10b   : > { %2265 = vmatprep.subr.mxu1 %v681_v23  ;;  %2197 = vmatpush2.msra.mxu0 %v614_v24  ;;  %v779_v23 = vld [vmem:[#allocation6 + $0xed8] sm:$0xff]  ;;  %v712_v24 = vld [vmem:[#allocation6 + $0xcc0] sm:$0xff] }
 0x10c   : > { %2266 = vmatpush2.msra.mxu1 %v680_v25  ;;  %2198 = vmatprep.subr.mxu0 %v613_v26  ;;  %v778_v25 = vld [vmem:[#allocation6 + $0xed0] sm:$0xff]  ;;  %v711_v26 = vld [vmem:[#allocation6 + $0xcb8] sm:$0xff] }
 0x10d   : > { %2267 = vmatprep.subr.mxu1 %v679_v27  ;;  %2199 = vmatpush2.msra.mxu0 %v612_v28  ;;  %v777_v27 = vld [vmem:[#allocation6 + $0xec8] sm:$0xff]  ;;  %v710_v28 = vld [vmem:[#allocation6 + $0xcb0] sm:$0xff] }
 0x10e   : > { %2268 = vmatpush2.msra.mxu1 %v678_v29  ;;  %2200 = vmatprep.subr.mxu0 %v611_v30  ;;  %v776_v29 = vld [vmem:[#allocation6 + $0xec0] sm:$0xff]  ;;  %v709_v30 = vld [vmem:[#allocation6 + $0xca8] sm:$0xff] }
 0x10f   : > { %2269 = vmatprep.subr.mxu1 %v677_v31  ;;  %2201 = vmatpush2.msra.mxu0 %v610_v32  ;;  %v775_v31 = vld [vmem:[#allocation6 + $0xeb8] sm:$0xff]  ;;  %v708_v32 = vld [vmem:[#allocation6 + $0xca0] sm:$0xff] }
 0x110   : > { %2270 = vmatpush2.msra.mxu1 %v676_v33  ;;  %2202 = vmatprep.subr.mxu0 %v609_v34  ;;  %v774_v33 = vld [vmem:[#allocation6 + $0xeb0] sm:$0xff]  ;;  %v707_v34 = vld [vmem:[#allocation6 + $0xc98] sm:$0xff] }
 0x111   : > { %2271 = vmatprep.subr.mxu1 %v675_v35  ;;  %2203 = vmatpush2.msra.mxu0 %v608_v36  ;;  %v773_v35 = vld [vmem:[#allocation6 + $0xea8] sm:$0xff]  ;;  %v706_v36 = vld [vmem:[#allocation6 + $0xc90] sm:$0xff] }
 0x112   : > { %2272 = vmatpush2.msra.mxu1 %v674_v37  ;;  %2204 = vmatprep.subr.mxu0 %v607_v38  ;;  %v772_v37 = vld [vmem:[#allocation6 + $0xea0] sm:$0xff]  ;;  %v705_v38 = vld [vmem:[#allocation6 + $0xc88] sm:$0xff] }
 0x113   : > { %2273 = vmatprep.subr.mxu1 %v673_v39  ;;  %2205 = vmatpush2.msra.mxu0 %v606_v40  ;;  %v771_v39 = vld [vmem:[#allocation6 + $0xe98] sm:$0xff]  ;;  %v704_v40 = vld [vmem:[#allocation6 + $0xc80] sm:$0xff] }
 0x114   : > { %2274 = vmatpush2.msra.mxu1 %v672_v41  ;;  %2206 = vmatprep.subr.mxu0 %v605_v42  ;;  %v770_v41 = vld [vmem:[#allocation6 + $0xe90] sm:$0xff]  ;;  %v703_v42 = vld [vmem:[#allocation6 + $0xc78] sm:$0xff] }
 0x115   : > { %2275 = vmatprep.subr.mxu1 %v671_v43  ;;  %2207 = vmatpush2.msra.mxu0 %v604_v44  ;;  %v769_v43 = vld [vmem:[#allocation6 + $0xe88] sm:$0xff]  ;;  %v702_v44 = vld [vmem:[#allocation6 + $0xc70] sm:$0xff] }
 0x116   : > { %2276 = vmatpush2.msra.mxu1 %v670_v45  ;;  %2208 = vmatprep.subr.mxu0 %v603_v46  ;;  %v768_v45 = vld [vmem:[#allocation6 + $0xe80] sm:$0xff]  ;;  %v701_v46 = vld [vmem:[#allocation6 + $0xc68] sm:$0xff] }
 0x117   : > { %2277 = vmatprep.subr.mxu1 %v669_v47  ;;  %2209 = vmatpush2.msra.mxu0 %v602_v48  ;;  %v767_v47 = vld [vmem:[#allocation6 + $0xe78] sm:$0xff]  ;;  %v700_v48 = vld [vmem:[#allocation6 + $0xc60] sm:$0xff] }
 0x118   : > { %2278 = vmatpush2.msra.mxu1 %v668_v49  ;;  %2210 = vmatprep.subr.mxu0 %v601_v50  ;;  %v766_v49 = vld [vmem:[#allocation6 + $0xe70] sm:$0xff]  ;;  %v699_v50 = vld [vmem:[#allocation6 + $0xc58] sm:$0xff] }
 0x119   : > { %2279 = vmatprep.subr.mxu1 %v667_v51  ;;  %2211 = vmatpush2.msra.mxu0 %v600_v52  ;;  %v765_v51 = vld [vmem:[#allocation6 + $0xe68] sm:$0xff]  ;;  %v698_v52 = vld [vmem:[#allocation6 + $0xc50] sm:$0xff] }
 0x11a   : > { %2280 = vmatpush2.msra.mxu1 %v666_v53  ;;  %2212 = vmatprep.subr.mxu0 %v599_v54  ;;  %v764_v53 = vld [vmem:[#allocation6 + $0xe60] sm:$0xff]  ;;  %v697_v54 = vld [vmem:[#allocation6 + $0xc48] sm:$0xff] }
 0x11b   : > { %2281 = vmatprep.subr.mxu1 %v665_v55  ;;  %2213 = vmatpush2.msra.mxu0 %v598_v56  ;;  %v763_v55 = vld [vmem:[#allocation6 + $0xe58] sm:$0xff]  ;;  %v696_v56 = vld [vmem:[#allocation6 + $0xc40] sm:$0xff] }
 0x11c   : > { %2282 = vmatpush2.msra.mxu1 %v664_v57  ;;  %2214 = vmatprep.subr.mxu0 %v597_v58  ;;  %v762_v57 = vld [vmem:[#allocation6 + $0xe50] sm:$0xff]  ;;  %v695_v58 = vld [vmem:[#allocation6 + $0xc38] sm:$0xff] }
 0x11d   : > { %2283 = vmatprep.subr.mxu1 %v663_v59  ;;  %2215 = vmatpush2.msra.mxu0 %v596_v60  ;;  %v761_v59 = vld [vmem:[#allocation6 + $0xe48] sm:$0xff]  ;;  %v694_v60 = vld [vmem:[#allocation6 + $0xc30] sm:$0xff] }
 0x11e   : > { %2284 = vmatpush2.msra.mxu1 %v662_v61  ;;  %2216 = vmatprep.subr.mxu0 %v595_v62  ;;  %v760_v61 = vld [vmem:[#allocation6 + $0xe40] sm:$0xff]  ;;  %v693_v62 = vld [vmem:[#allocation6 + $0xc28] sm:$0xff] }
 0x11f   : > { %2285 = vmatprep.subr.mxu1 %v661_v63  ;;  %2217 = vmatpush2.msra.mxu0 %v594_v0  ;;  %v759_v63 = vld [vmem:[#allocation6 + $0xe38] sm:$0xff]  ;;  %v692_v0 = vld [vmem:[#allocation6 + $0xc20] sm:$0xff] }
 0x120   : > { %2286 = vmatpush2.msra.mxu1 %v660_v1  ;;  %2218 = vmatprep.subr.mxu0 %v593_v2  ;;  %v758_v1 = vld [vmem:[#allocation6 + $0xe30] sm:$0xff]  ;;  %v691_v2 = vld [vmem:[#allocation6 + $0xc18] sm:$0xff] }
 0x121   : > { %2287 = vmatprep.subr.mxu1 %v659_v3  ;;  %2219 = vmatpush2.msra.mxu0 %v592_v4  ;;  %v757_v3 = vld [vmem:[#allocation6 + $0xe28] sm:$0xff]  ;;  %v690_v4 = vld [vmem:[#allocation6 + $0xc10] sm:$0xff] }
 0x122   : > { %2220 = vmatprep.mubr.f32.mxu0 %v264_v5  ;;  %2288 = vmatpush2.msra.mxu1 %v658_v6  ;;  %v756_v5 = vld [vmem:[#allocation6 + $0xe20] sm:$0xff]  ;;  %v689_v6 = vld [vmem:[#allocation6 + $0xc08] sm:$0xff] }
 0x123   : > { %2221 = vmatmul.mubr.f32.vlgmr.msra.gmra.mxu0 %v263_v7  ;;  %2289 = vmatprep.subr.mxu1 %v657_v8  ;;  %v755_v7 = vld [vmem:[#allocation6 + $0xe18] sm:$0xff]  ;;  %v688_v8 = vld [vmem:[#allocation6 + $0xc00] sm:$0xff] }
 0x124   : > { %2298 = vmatprep.subr.mxu0 %v719_v9  ;;  %2290 = vmatpush2.msra.mxu1 %v656_v10  ;;  %v754_v9 = vld [vmem:[#allocation6 + $0xe10] sm:$0xff]  ;;  %v751_v10 = vld [vmem:[#allocation6 + $0xdf8] sm:$0xff] }
 0x125   : > { %2291 = vmatprep.mubr.f32.mxu1 %v266_v11  ;;  %2299 = vmatpush1.msra.mxu0 %v718_v12  ;;  %v753_v11 = vld [vmem:[#allocation6 + $0xe08] sm:$0xff]  ;;  %v750_v12 = vld [vmem:[#allocation6 + $0xdf0] sm:$0xff] }
 0x126   : > { %2292 = vmatmul.mubr.f32.vlgmr.msra.gmra.mxu1 %v265_v13  ;;  %2300 = vmatprep.subr.mxu0 %v717_v14  ;;  %v752_v13 = vld [vmem:[#allocation6 + $0xe00] sm:$0xff]  ;;  %v749_v14 = vld [vmem:[#allocation6 + $0xde8] sm:$0xff] }
 0x127   : > { %2369 = vmatprep.subr.mxu1 %v783_v15  ;;  %2301 = vmatpush1.msra.mxu0 %v716_v16  ;;  %v815_v15 = vld [vmem:[#allocation6 + $0xff8] sm:$0xff]  ;;  %v748_v16 = vld [vmem:[#allocation6 + $0xde0] sm:$0xff] }
 0x128   : > { %2370 = vmatpush1.msra.mxu1 %v782_v17  ;;  %2302 = vmatprep.subr.mxu0 %v715_v18  ;;  %v814_v17 = vld [vmem:[#allocation6 + $0xff0] sm:$0xff]  ;;  %v747_v18 = vld [vmem:[#allocation6 + $0xdd8] sm:$0xff] }
 0x129   : > { %2371 = vmatprep.subr.mxu1 %v781_v19  ;;  %2303 = vmatpush1.msra.mxu0 %v714_v20  ;;  %v813_v19 = vld [vmem:[#allocation6 + $0xfe8] sm:$0xff]  ;;  %v746_v20 = vld [vmem:[#allocation6 + $0xdd0] sm:$0xff] }
 0x12a   : > { %2372 = vmatpush1.msra.mxu1 %v780_v21  ;;  %2304 = vmatprep.subr.mxu0 %v713_v22  ;;  %v812_v21 = vld [vmem:[#allocation6 + $0xfe0] sm:$0xff]  ;;  %v745_v22 = vld [vmem:[#allocation6 + $0xdc8] sm:$0xff] }
 0x12b   : > { %2373 = vmatprep.subr.mxu1 %v779_v23  ;;  %2305 = vmatpush1.msra.mxu0 %v712_v24  ;;  %v811_v23 = vld [vmem:[#allocation6 + $0xfd8] sm:$0xff]  ;;  %v744_v24 = vld [vmem:[#allocation6 + $0xdc0] sm:$0xff] }
 0x12c   : > { %2374 = vmatpush1.msra.mxu1 %v778_v25  ;;  %2306 = vmatprep.subr.mxu0 %v711_v26  ;;  %v810_v25 = vld [vmem:[#allocation6 + $0xfd0] sm:$0xff]  ;;  %v743_v26 = vld [vmem:[#allocation6 + $0xdb8] sm:$0xff] }
 0x12d   : > { %2375 = vmatprep.subr.mxu1 %v777_v27  ;;  %2307 = vmatpush1.msra.mxu0 %v710_v28  ;;  %v809_v27 = vld [vmem:[#allocation6 + $0xfc8] sm:$0xff]  ;;  %v742_v28 = vld [vmem:[#allocation6 + $0xdb0] sm:$0xff] }
 0x12e   : > { %2376 = vmatpush1.msra.mxu1 %v776_v29  ;;  %2308 = vmatprep.subr.mxu0 %v709_v30  ;;  %v808_v29 = vld [vmem:[#allocation6 + $0xfc0] sm:$0xff]  ;;  %v741_v30 = vld [vmem:[#allocation6 + $0xda8] sm:$0xff] }
 0x12f   : > { %2377 = vmatprep.subr.mxu1 %v775_v31  ;;  %2309 = vmatpush1.msra.mxu0 %v708_v32  ;;  %v807_v31 = vld [vmem:[#allocation6 + $0xfb8] sm:$0xff]  ;;  %v740_v32 = vld [vmem:[#allocation6 + $0xda0] sm:$0xff] }
 0x130   : > { %2378 = vmatpush1.msra.mxu1 %v774_v33  ;;  %2310 = vmatprep.subr.mxu0 %v707_v34  ;;  %v806_v33 = vld [vmem:[#allocation6 + $0xfb0] sm:$0xff]  ;;  %v739_v34 = vld [vmem:[#allocation6 + $0xd98] sm:$0xff] }
 0x131   : > { %2379 = vmatprep.subr.mxu1 %v773_v35  ;;  %2311 = vmatpush1.msra.mxu0 %v706_v36  ;;  %v805_v35 = vld [vmem:[#allocation6 + $0xfa8] sm:$0xff]  ;;  %v738_v36 = vld [vmem:[#allocation6 + $0xd90] sm:$0xff] }
 0x132   : > { %2380 = vmatpush1.msra.mxu1 %v772_v37  ;;  %2312 = vmatprep.subr.mxu0 %v705_v38  ;;  %v804_v37 = vld [vmem:[#allocation6 + $0xfa0] sm:$0xff]  ;;  %v737_v38 = vld [vmem:[#allocation6 + $0xd88] sm:$0xff] }
 0x133   : > { %2381 = vmatprep.subr.mxu1 %v771_v39  ;;  %2313 = vmatpush1.msra.mxu0 %v704_v40  ;;  %v803_v39 = vld [vmem:[#allocation6 + $0xf98] sm:$0xff]  ;;  %v736_v40 = vld [vmem:[#allocation6 + $0xd80] sm:$0xff] }
 0x134   : > { %2382 = vmatpush1.msra.mxu1 %v770_v41  ;;  %2314 = vmatprep.subr.mxu0 %v703_v42  ;;  %v802_v41 = vld [vmem:[#allocation6 + $0xf90] sm:$0xff]  ;;  %v735_v42 = vld [vmem:[#allocation6 + $0xd78] sm:$0xff] }
 0x135   : > { %2383 = vmatprep.subr.mxu1 %v769_v43  ;;  %2315 = vmatpush1.msra.mxu0 %v702_v44  ;;  %v801_v43 = vld [vmem:[#allocation6 + $0xf88] sm:$0xff]  ;;  %v734_v44 = vld [vmem:[#allocation6 + $0xd70] sm:$0xff] }
 0x136   : > { %2384 = vmatpush1.msra.mxu1 %v768_v45  ;;  %2316 = vmatprep.subr.mxu0 %v701_v46  ;;  %v800_v45 = vld [vmem:[#allocation6 + $0xf80] sm:$0xff]  ;;  %v733_v46 = vld [vmem:[#allocation6 + $0xd68] sm:$0xff] }
 0x137   : > { %2385 = vmatprep.subr.mxu1 %v767_v47  ;;  %2317 = vmatpush1.msra.mxu0 %v700_v48  ;;  %v799_v47 = vld [vmem:[#allocation6 + $0xf78] sm:$0xff]  ;;  %v732_v48 = vld [vmem:[#allocation6 + $0xd60] sm:$0xff] }
 0x138   : > { %2386 = vmatpush1.msra.mxu1 %v766_v49  ;;  %2318 = vmatprep.subr.mxu0 %v699_v50  ;;  %v798_v49 = vld [vmem:[#allocation6 + $0xf70] sm:$0xff]  ;;  %v731_v50 = vld [vmem:[#allocation6 + $0xd58] sm:$0xff] }
 0x139   : > { %2387 = vmatprep.subr.mxu1 %v765_v51  ;;  %2319 = vmatpush1.msra.mxu0 %v698_v52  ;;  %v797_v51 = vld [vmem:[#allocation6 + $0xf68] sm:$0xff]  ;;  %v730_v52 = vld [vmem:[#allocation6 + $0xd50] sm:$0xff] }
 0x13a   : > { %2388 = vmatpush1.msra.mxu1 %v764_v53  ;;  %2320 = vmatprep.subr.mxu0 %v697_v54  ;;  %v796_v53 = vld [vmem:[#allocation6 + $0xf60] sm:$0xff]  ;;  %v729_v54 = vld [vmem:[#allocation6 + $0xd48] sm:$0xff] }
 0x13b   : > { %2389 = vmatprep.subr.mxu1 %v763_v55  ;;  %2321 = vmatpush1.msra.mxu0 %v696_v56  ;;  %v795_v55 = vld [vmem:[#allocation6 + $0xf58] sm:$0xff]  ;;  %v728_v56 = vld [vmem:[#allocation6 + $0xd40] sm:$0xff] }
 0x13c   : > { %2390 = vmatpush1.msra.mxu1 %v762_v57  ;;  %2322 = vmatprep.subr.mxu0 %v695_v58  ;;  %v794_v57 = vld [vmem:[#allocation6 + $0xf50] sm:$0xff]  ;;  %v727_v58 = vld [vmem:[#allocation6 + $0xd38] sm:$0xff] }
 0x13d   : > { %2391 = vmatprep.subr.mxu1 %v761_v59  ;;  %2323 = vmatpush1.msra.mxu0 %v694_v60  ;;  %v793_v59 = vld [vmem:[#allocation6 + $0xf48] sm:$0xff]  ;;  %v726_v60 = vld [vmem:[#allocation6 + $0xd30] sm:$0xff] }
 0x13e   : > { %2392 = vmatpush1.msra.mxu1 %v760_v61  ;;  %2324 = vmatprep.subr.mxu0 %v693_v62  ;;  %v792_v61 = vld [vmem:[#allocation6 + $0xf40] sm:$0xff]  ;;  %v725_v62 = vld [vmem:[#allocation6 + $0xd28] sm:$0xff] }
 0x13f   : > { %2393 = vmatprep.subr.mxu1 %v759_v63  ;;  %2325 = vmatpush1.msra.mxu0 %v692_v0  ;;  %v791_v63 = vld [vmem:[#allocation6 + $0xf38] sm:$0xff]  ;;  %v724_v0 = vld [vmem:[#allocation6 + $0xd20] sm:$0xff] }
 0x140   : > { %2394 = vmatpush1.msra.mxu1 %v758_v1  ;;  %2326 = vmatprep.subr.mxu0 %v691_v2  ;;  %v790_v1 = vld [vmem:[#allocation6 + $0xf30] sm:$0xff]  ;;  %v723_v2 = vld [vmem:[#allocation6 + $0xd18] sm:$0xff] }
 0x141   : > { %2395 = vmatprep.subr.mxu1 %v757_v3  ;;  %2327 = vmatpush1.msra.mxu0 %v690_v4  ;;  %v789_v3 = vld [vmem:[#allocation6 + $0xf28] sm:$0xff]  ;;  %v722_v4 = vld [vmem:[#allocation6 + $0xd10] sm:$0xff] }
 0x142   : > { %2396 = vmatpush1.msra.mxu1 %v756_v5  ;;  %2328 = vmatprep.subr.mxu0 %v689_v6  ;;  %v788_v5 = vld [vmem:[#allocation6 + $0xf20] sm:$0xff]  ;;  %v721_v6 = vld [vmem:[#allocation6 + $0xd08] sm:$0xff] }
 0x143   : > { %2397 = vmatprep.subr.mxu1 %v755_v7  ;;  %2329 = vmatpush1.msra.mxu0 %v688_v8  ;;  %v787_v7 = vld [vmem:[#allocation6 + $0xf18] sm:$0xff]  ;;  %v720_v8 = vld [vmem:[#allocation6 + $0xd00] sm:$0xff] }
 0x144   : > { %2398 = vmatpush1.msra.mxu1 %v754_v9  ;;  %2330 = vmatprep.subr.mxu0 %v751_v10  ;;  %v268_v9 = vld [vmem:[%s6995_s20 + $0x68] sm:$0xff]  ;;  %v786_v10 = vld [vmem:[#allocation6 + $0xf10] sm:$0xff] }
 0x145   : > { %2399 = vmatprep.subr.mxu1 %v753_v11  ;;  %2331 = vmatpush2.msra.mxu0 %v750_v12  ;;  %v267_v11 = vld [vmem:[%s6995_s20 + $0x60] sm:$0xff]  ;;  %v785_v12 = vld [vmem:[#allocation6 + $0xf08] sm:$0xff] }
 0x146   : > { %2400 = vmatpush1.msra.mxu1 %v752_v13  ;;  %2332 = vmatprep.subr.mxu0 %v749_v14  ;;  %v847_v13 = vld [vmem:[#allocation6 + $0x10f8] sm:$0xff]  ;;  %v784_v14 = vld [vmem:[#allocation6 + $0xf00] sm:$0xff] }
 0x147   : > { %2401 = vmatprep.subr.mxu1 %v815_v15  ;;  %2333 = vmatpush2.msra.mxu0 %v748_v16  ;;  %v270_v15 = vld [vmem:[%s6995_s20 + $0x78] sm:$0xff] }
 0x148   : > { %2402 = vmatpush2.msra.mxu1 %v814_v17  ;;  %2334 = vmatprep.subr.mxu0 %v747_v18  ;;  %v846_v16 = vld [vmem:[#allocation6 + $0x10f0] sm:$0xff]  ;;  %v269_v17 = vld [vmem:[%s6995_s20 + $0x70] sm:$0xff] }
 0x149   : > { %2403 = vmatprep.subr.mxu1 %v813_v19  ;;  %2335 = vmatpush2.msra.mxu0 %v746_v20  ;;  %v845_v18 = vld [vmem:[#allocation6 + $0x10e8] sm:$0xff]  ;;  %v911_v19 = vld [vmem:[#allocation6 + $0x12f8] sm:$0xff]  ;;  %v844_v20 = vld [vmem:[#allocation6 + $0x10e0] sm:$0xff] }
 0x14a   : > { %2404 = vmatpush2.msra.mxu1 %v812_v21  ;;  %2336 = vmatprep.subr.mxu0 %v745_v22  ;;  %v910_v21 = vld [vmem:[#allocation6 + $0x12f0] sm:$0xff]  ;;  %v843_v22 = vld [vmem:[#allocation6 + $0x10d8] sm:$0xff] }
 0x14b   : > { %2405 = vmatprep.subr.mxu1 %v811_v23  ;;  %2337 = vmatpush2.msra.mxu0 %v744_v24  ;;  %v909_v23 = vld [vmem:[#allocation6 + $0x12e8] sm:$0xff]  ;;  %v842_v24 = vld [vmem:[#allocation6 + $0x10d0] sm:$0xff] }
 0x14c   : > { %2406 = vmatpush2.msra.mxu1 %v810_v25  ;;  %2338 = vmatprep.subr.mxu0 %v743_v26  ;;  %v908_v25 = vld [vmem:[#allocation6 + $0x12e0] sm:$0xff]  ;;  %v841_v26 = vld [vmem:[#allocation6 + $0x10c8] sm:$0xff] }
 0x14d   : > { %2407 = vmatprep.subr.mxu1 %v809_v27  ;;  %2339 = vmatpush2.msra.mxu0 %v742_v28  ;;  %v907_v27 = vld [vmem:[#allocation6 + $0x12d8] sm:$0xff]  ;;  %v840_v28 = vld [vmem:[#allocation6 + $0x10c0] sm:$0xff] }
 0x14e   : > { %2408 = vmatpush2.msra.mxu1 %v808_v29  ;;  %2340 = vmatprep.subr.mxu0 %v741_v30  ;;  %v906_v29 = vld [vmem:[#allocation6 + $0x12d0] sm:$0xff]  ;;  %v839_v30 = vld [vmem:[#allocation6 + $0x10b8] sm:$0xff] }
 0x14f   : > { %2409 = vmatprep.subr.mxu1 %v807_v31  ;;  %2341 = vmatpush2.msra.mxu0 %v740_v32  ;;  %v905_v31 = vld [vmem:[#allocation6 + $0x12c8] sm:$0xff]  ;;  %v838_v32 = vld [vmem:[#allocation6 + $0x10b0] sm:$0xff] }
 0x150   : > { %2410 = vmatpush2.msra.mxu1 %v806_v33  ;;  %2342 = vmatprep.subr.mxu0 %v739_v34  ;;  %v904_v33 = vld [vmem:[#allocation6 + $0x12c0] sm:$0xff]  ;;  %v837_v34 = vld [vmem:[#allocation6 + $0x10a8] sm:$0xff] }
 0x151   : > { %2411 = vmatprep.subr.mxu1 %v805_v35  ;;  %2343 = vmatpush2.msra.mxu0 %v738_v36  ;;  %v903_v35 = vld [vmem:[#allocation6 + $0x12b8] sm:$0xff]  ;;  %v836_v36 = vld [vmem:[#allocation6 + $0x10a0] sm:$0xff] }
 0x152   : > { %2412 = vmatpush2.msra.mxu1 %v804_v37  ;;  %2344 = vmatprep.subr.mxu0 %v737_v38  ;;  %v902_v37 = vld [vmem:[#allocation6 + $0x12b0] sm:$0xff]  ;;  %v835_v38 = vld [vmem:[#allocation6 + $0x1098] sm:$0xff] }
 0x153   : > { %2413 = vmatprep.subr.mxu1 %v803_v39  ;;  %2345 = vmatpush2.msra.mxu0 %v736_v40  ;;  %v901_v39 = vld [vmem:[#allocation6 + $0x12a8] sm:$0xff]  ;;  %v834_v40 = vld [vmem:[#allocation6 + $0x1090] sm:$0xff] }
 0x154   : > { %2414 = vmatpush2.msra.mxu1 %v802_v41  ;;  %2346 = vmatprep.subr.mxu0 %v735_v42  ;;  %v900_v41 = vld [vmem:[#allocation6 + $0x12a0] sm:$0xff]  ;;  %v833_v42 = vld [vmem:[#allocation6 + $0x1088] sm:$0xff] }
 0x155   : > { %2415 = vmatprep.subr.mxu1 %v801_v43  ;;  %2347 = vmatpush2.msra.mxu0 %v734_v44  ;;  %v899_v43 = vld [vmem:[#allocation6 + $0x1298] sm:$0xff]  ;;  %v832_v44 = vld [vmem:[#allocation6 + $0x1080] sm:$0xff] }
 0x156   : > { %2416 = vmatpush2.msra.mxu1 %v800_v45  ;;  %2348 = vmatprep.subr.mxu0 %v733_v46  ;;  %v898_v45 = vld [vmem:[#allocation6 + $0x1290] sm:$0xff]  ;;  %v831_v46 = vld [vmem:[#allocation6 + $0x1078] sm:$0xff] }
 0x157   : > { %2417 = vmatprep.subr.mxu1 %v799_v47  ;;  %2349 = vmatpush2.msra.mxu0 %v732_v48  ;;  %v897_v47 = vld [vmem:[#allocation6 + $0x1288] sm:$0xff]  ;;  %v830_v48 = vld [vmem:[#allocation6 + $0x1070] sm:$0xff] }
 0x158   : > { %2418 = vmatpush2.msra.mxu1 %v798_v49  ;;  %2350 = vmatprep.subr.mxu0 %v731_v50  ;;  %v896_v49 = vld [vmem:[#allocation6 + $0x1280] sm:$0xff]  ;;  %v829_v50 = vld [vmem:[#allocation6 + $0x1068] sm:$0xff] }
 0x159   : > { %2419 = vmatprep.subr.mxu1 %v797_v51  ;;  %2351 = vmatpush2.msra.mxu0 %v730_v52  ;;  %v895_v51 = vld [vmem:[#allocation6 + $0x1278] sm:$0xff]  ;;  %v828_v52 = vld [vmem:[#allocation6 + $0x1060] sm:$0xff] }
 0x15a   : > { %2420 = vmatpush2.msra.mxu1 %v796_v53  ;;  %2352 = vmatprep.subr.mxu0 %v729_v54  ;;  %v894_v53 = vld [vmem:[#allocation6 + $0x1270] sm:$0xff]  ;;  %v827_v54 = vld [vmem:[#allocation6 + $0x1058] sm:$0xff] }
 0x15b   : > { %2421 = vmatprep.subr.mxu1 %v795_v55  ;;  %2353 = vmatpush2.msra.mxu0 %v728_v56  ;;  %v893_v55 = vld [vmem:[#allocation6 + $0x1268] sm:$0xff]  ;;  %v826_v56 = vld [vmem:[#allocation6 + $0x1050] sm:$0xff] }
 0x15c   : > { %2422 = vmatpush2.msra.mxu1 %v794_v57  ;;  %2354 = vmatprep.subr.mxu0 %v727_v58  ;;  %v892_v57 = vld [vmem:[#allocation6 + $0x1260] sm:$0xff]  ;;  %v825_v58 = vld [vmem:[#allocation6 + $0x1048] sm:$0xff] }
 0x15d   : > { %2423 = vmatprep.subr.mxu1 %v793_v59  ;;  %2355 = vmatpush2.msra.mxu0 %v726_v60  ;;  %v891_v59 = vld [vmem:[#allocation6 + $0x1258] sm:$0xff]  ;;  %v824_v60 = vld [vmem:[#allocation6 + $0x1040] sm:$0xff] }
 0x15e   : > { %2424 = vmatpush2.msra.mxu1 %v792_v61  ;;  %2356 = vmatprep.subr.mxu0 %v725_v62  ;;  %v890_v61 = vld [vmem:[#allocation6 + $0x1250] sm:$0xff]  ;;  %v823_v62 = vld [vmem:[#allocation6 + $0x1038] sm:$0xff] }
 0x15f   : > { %2425 = vmatprep.subr.mxu1 %v791_v63  ;;  %2357 = vmatpush2.msra.mxu0 %v724_v0  ;;  %v889_v63 = vld [vmem:[#allocation6 + $0x1248] sm:$0xff]  ;;  %v822_v0 = vld [vmem:[#allocation6 + $0x1030] sm:$0xff] }
 0x160   : > { %2426 = vmatpush2.msra.mxu1 %v790_v1  ;;  %2358 = vmatprep.subr.mxu0 %v723_v2  ;;  %v888_v1 = vld [vmem:[#allocation6 + $0x1240] sm:$0xff]  ;;  %v821_v2 = vld [vmem:[#allocation6 + $0x1028] sm:$0xff] }
 0x161   : > { %2427 = vmatprep.subr.mxu1 %v789_v3  ;;  %2359 = vmatpush2.msra.mxu0 %v722_v4  ;;  %v887_v3 = vld [vmem:[#allocation6 + $0x1238] sm:$0xff]  ;;  %v820_v4 = vld [vmem:[#allocation6 + $0x1020] sm:$0xff] }
 0x162   : > { %2428 = vmatpush2.msra.mxu1 %v788_v5  ;;  %2360 = vmatprep.subr.mxu0 %v721_v6  ;;  %v886_v5 = vld [vmem:[#allocation6 + $0x1230] sm:$0xff]  ;;  %v819_v6 = vld [vmem:[#allocation6 + $0x1018] sm:$0xff] }
 0x163   : > { %2429 = vmatprep.subr.mxu1 %v787_v7  ;;  %2361 = vmatpush2.msra.mxu0 %v720_v8  ;;  %v885_v7 = vld [vmem:[#allocation6 + $0x1228] sm:$0xff]  ;;  %v818_v8 = vld [vmem:[#allocation6 + $0x1010] sm:$0xff] }
 0x164   : > { %2362 = vmatprep.mubr.f32.mxu0 %v268_v9  ;;  %2430 = vmatpush2.msra.mxu1 %v786_v10  ;;  %v884_v9 = vld [vmem:[#allocation6 + $0x1220] sm:$0xff]  ;;  %v817_v10 = vld [vmem:[#allocation6 + $0x1008] sm:$0xff] }
 0x165   : > { %2363 = vmatmul.mubr.f32.vlgmr.msra.gmra.mxu0 %v267_v11  ;;  %2431 = vmatprep.subr.mxu1 %v785_v12  ;;  %v883_v11 = vld [vmem:[#allocation6 + $0x1218] sm:$0xff]  ;;  %v816_v12 = vld [vmem:[#allocation6 + $0x1000] sm:$0xff] }
 0x166   : > { %2440 = vmatprep.subr.mxu0 %v847_v13  ;;  %2432 = vmatpush2.msra.mxu1 %v784_v14  ;;  %v882_v13 = vld [vmem:[#allocation6 + $0x1210] sm:$0xff]  ;;  %v879_v14 = vld [vmem:[#allocation6 + $0x11f8] sm:$0xff] }
 0x167   : > { %2433 = vmatprep.mubr.f32.mxu1 %v270_v15  ;;  %2441 = vmatpush1.msra.mxu0 %v846_v16  ;;  %v881_v15 = vld [vmem:[#allocation6 + $0x1208] sm:$0xff]  ;;  %v878_v16 = vld [vmem:[#allocation6 + $0x11f0] sm:$0xff] }
 0x168   : > { %2434 = vmatmul.mubr.f32.vlgmr.msra.gmra.mxu1 %v269_v17  ;;  %2442 = vmatprep.subr.mxu0 %v845_v18  ;;  %v880_v17 = vld [vmem:[#allocation6 + $0x1200] sm:$0xff]  ;;  %v877_v18 = vld [vmem:[#allocation6 + $0x11e8] sm:$0xff] }
 0x169   : > { %2511 = vmatprep.subr.mxu1 %v911_v19  ;;  %2443 = vmatpush1.msra.mxu0 %v844_v20  ;;  %v943_v19 = vld [vmem:[#allocation6 + $0x13f8] sm:$0xff]  ;;  %v876_v20 = vld [vmem:[#allocation6 + $0x11e0] sm:$0xff] }
 0x16a   : > { %2512 = vmatpush1.msra.mxu1 %v910_v21  ;;  %2444 = vmatprep.subr.mxu0 %v843_v22  ;;  %v942_v21 = vld [vmem:[#allocation6 + $0x13f0] sm:$0xff]  ;;  %v875_v22 = vld [vmem:[#allocation6 + $0x11d8] sm:$0xff] }
 0x16b   : > { %2513 = vmatprep.subr.mxu1 %v909_v23  ;;  %2445 = vmatpush1.msra.mxu0 %v842_v24  ;;  %v941_v23 = vld [vmem:[#allocation6 + $0x13e8] sm:$0xff]  ;;  %v874_v24 = vld [vmem:[#allocation6 + $0x11d0] sm:$0xff] }
 0x16c   : > { %2514 = vmatpush1.msra.mxu1 %v908_v25  ;;  %2446 = vmatprep.subr.mxu0 %v841_v26  ;;  %v940_v25 = vld [vmem:[#allocation6 + $0x13e0] sm:$0xff]  ;;  %v873_v26 = vld [vmem:[#allocation6 + $0x11c8] sm:$0xff] }
 0x16d   : > { %2515 = vmatprep.subr.mxu1 %v907_v27  ;;  %2447 = vmatpush1.msra.mxu0 %v840_v28  ;;  %v939_v27 = vld [vmem:[#allocation6 + $0x13d8] sm:$0xff]  ;;  %v872_v28 = vld [vmem:[#allocation6 + $0x11c0] sm:$0xff] }
 0x16e   : > { %2516 = vmatpush1.msra.mxu1 %v906_v29  ;;  %2448 = vmatprep.subr.mxu0 %v839_v30  ;;  %v938_v29 = vld [vmem:[#allocation6 + $0x13d0] sm:$0xff]  ;;  %v871_v30 = vld [vmem:[#allocation6 + $0x11b8] sm:$0xff] }
 0x16f   : > { %2517 = vmatprep.subr.mxu1 %v905_v31  ;;  %2449 = vmatpush1.msra.mxu0 %v838_v32  ;;  %v937_v31 = vld [vmem:[#allocation6 + $0x13c8] sm:$0xff]  ;;  %v870_v32 = vld [vmem:[#allocation6 + $0x11b0] sm:$0xff] }
 0x170   : > { %2518 = vmatpush1.msra.mxu1 %v904_v33  ;;  %2450 = vmatprep.subr.mxu0 %v837_v34  ;;  %v936_v33 = vld [vmem:[#allocation6 + $0x13c0] sm:$0xff]  ;;  %v869_v34 = vld [vmem:[#allocation6 + $0x11a8] sm:$0xff] }
 0x171   : > { %2519 = vmatprep.subr.mxu1 %v903_v35  ;;  %2451 = vmatpush1.msra.mxu0 %v836_v36  ;;  %v935_v35 = vld [vmem:[#allocation6 + $0x13b8] sm:$0xff]  ;;  %v868_v36 = vld [vmem:[#allocation6 + $0x11a0] sm:$0xff] }
 0x172   : > { %2520 = vmatpush1.msra.mxu1 %v902_v37  ;;  %2452 = vmatprep.subr.mxu0 %v835_v38  ;;  %v934_v37 = vld [vmem:[#allocation6 + $0x13b0] sm:$0xff]  ;;  %v867_v38 = vld [vmem:[#allocation6 + $0x1198] sm:$0xff] }
 0x173   : > { %2521 = vmatprep.subr.mxu1 %v901_v39  ;;  %2453 = vmatpush1.msra.mxu0 %v834_v40  ;;  %v933_v39 = vld [vmem:[#allocation6 + $0x13a8] sm:$0xff]  ;;  %v866_v40 = vld [vmem:[#allocation6 + $0x1190] sm:$0xff] }
 0x174   : > { %2522 = vmatpush1.msra.mxu1 %v900_v41  ;;  %2454 = vmatprep.subr.mxu0 %v833_v42  ;;  %v932_v41 = vld [vmem:[#allocation6 + $0x13a0] sm:$0xff]  ;;  %v865_v42 = vld [vmem:[#allocation6 + $0x1188] sm:$0xff] }
 0x175   : > { %2523 = vmatprep.subr.mxu1 %v899_v43  ;;  %2455 = vmatpush1.msra.mxu0 %v832_v44  ;;  %v931_v43 = vld [vmem:[#allocation6 + $0x1398] sm:$0xff]  ;;  %v864_v44 = vld [vmem:[#allocation6 + $0x1180] sm:$0xff] }
 0x176   : > { %2524 = vmatpush1.msra.mxu1 %v898_v45  ;;  %2456 = vmatprep.subr.mxu0 %v831_v46  ;;  %v930_v45 = vld [vmem:[#allocation6 + $0x1390] sm:$0xff]  ;;  %v863_v46 = vld [vmem:[#allocation6 + $0x1178] sm:$0xff] }
 0x177   : > { %2525 = vmatprep.subr.mxu1 %v897_v47  ;;  %2457 = vmatpush1.msra.mxu0 %v830_v48  ;;  %v929_v47 = vld [vmem:[#allocation6 + $0x1388] sm:$0xff]  ;;  %v862_v48 = vld [vmem:[#allocation6 + $0x1170] sm:$0xff] }
 0x178   : > { %2526 = vmatpush1.msra.mxu1 %v896_v49  ;;  %2458 = vmatprep.subr.mxu0 %v829_v50  ;;  %v928_v49 = vld [vmem:[#allocation6 + $0x1380] sm:$0xff]  ;;  %v861_v50 = vld [vmem:[#allocation6 + $0x1168] sm:$0xff] }
 0x179   : > { %2527 = vmatprep.subr.mxu1 %v895_v51  ;;  %2459 = vmatpush1.msra.mxu0 %v828_v52  ;;  %v927_v51 = vld [vmem:[#allocation6 + $0x1378] sm:$0xff]  ;;  %v860_v52 = vld [vmem:[#allocation6 + $0x1160] sm:$0xff] }
 0x17a   : > { %2528 = vmatpush1.msra.mxu1 %v894_v53  ;;  %2460 = vmatprep.subr.mxu0 %v827_v54  ;;  %v926_v53 = vld [vmem:[#allocation6 + $0x1370] sm:$0xff]  ;;  %v859_v54 = vld [vmem:[#allocation6 + $0x1158] sm:$0xff] }
 0x17b   : > { %2529 = vmatprep.subr.mxu1 %v893_v55  ;;  %2461 = vmatpush1.msra.mxu0 %v826_v56  ;;  %v925_v55 = vld [vmem:[#allocation6 + $0x1368] sm:$0xff]  ;;  %v858_v56 = vld [vmem:[#allocation6 + $0x1150] sm:$0xff] }
 0x17c   : > { %2530 = vmatpush1.msra.mxu1 %v892_v57  ;;  %2462 = vmatprep.subr.mxu0 %v825_v58  ;;  %v924_v57 = vld [vmem:[#allocation6 + $0x1360] sm:$0xff]  ;;  %v857_v58 = vld [vmem:[#allocation6 + $0x1148] sm:$0xff] }
 0x17d   : > { %2531 = vmatprep.subr.mxu1 %v891_v59  ;;  %2463 = vmatpush1.msra.mxu0 %v824_v60  ;;  %v923_v59 = vld [vmem:[#allocation6 + $0x1358] sm:$0xff]  ;;  %v856_v60 = vld [vmem:[#allocation6 + $0x1140] sm:$0xff] }
 0x17e   : > { %2532 = vmatpush1.msra.mxu1 %v890_v61  ;;  %2464 = vmatprep.subr.mxu0 %v823_v62  ;;  %v922_v61 = vld [vmem:[#allocation6 + $0x1350] sm:$0xff]  ;;  %v855_v62 = vld [vmem:[#allocation6 + $0x1138] sm:$0xff] }
 0x17f   : > { %2533 = vmatprep.subr.mxu1 %v889_v63  ;;  %2465 = vmatpush1.msra.mxu0 %v822_v0  ;;  %v921_v63 = vld [vmem:[#allocation6 + $0x1348] sm:$0xff]  ;;  %v854_v0 = vld [vmem:[#allocation6 + $0x1130] sm:$0xff] }
 0x180   : > { %2534 = vmatpush1.msra.mxu1 %v888_v1  ;;  %2466 = vmatprep.subr.mxu0 %v821_v2  ;;  %v920_v1 = vld [vmem:[#allocation6 + $0x1340] sm:$0xff]  ;;  %v853_v2 = vld [vmem:[#allocation6 + $0x1128] sm:$0xff] }
 0x181   : > { %2535 = vmatprep.subr.mxu1 %v887_v3  ;;  %2467 = vmatpush1.msra.mxu0 %v820_v4  ;;  %v919_v3 = vld [vmem:[#allocation6 + $0x1338] sm:$0xff]  ;;  %v852_v4 = vld [vmem:[#allocation6 + $0x1120] sm:$0xff] }
 0x182   : > { %2536 = vmatpush1.msra.mxu1 %v886_v5  ;;  %2468 = vmatprep.subr.mxu0 %v819_v6  ;;  %v918_v5 = vld [vmem:[#allocation6 + $0x1330] sm:$0xff]  ;;  %v851_v6 = vld [vmem:[#allocation6 + $0x1118] sm:$0xff] }
 0x183   : > { %2537 = vmatprep.subr.mxu1 %v885_v7  ;;  %2469 = vmatpush1.msra.mxu0 %v818_v8  ;;  %v917_v7 = vld [vmem:[#allocation6 + $0x1328] sm:$0xff]  ;;  %v850_v8 = vld [vmem:[#allocation6 + $0x1110] sm:$0xff] }
 0x184   : > { %2538 = vmatpush1.msra.mxu1 %v884_v9  ;;  %2470 = vmatprep.subr.mxu0 %v817_v10  ;;  %v916_v9 = vld [vmem:[#allocation6 + $0x1320] sm:$0xff]  ;;  %v849_v10 = vld [vmem:[#allocation6 + $0x1108] sm:$0xff] }
 0x185   : > { %2539 = vmatprep.subr.mxu1 %v883_v11  ;;  %2471 = vmatpush1.msra.mxu0 %v816_v12  ;;  %v915_v11 = vld [vmem:[#allocation6 + $0x1318] sm:$0xff]  ;;  %v848_v12 = vld [vmem:[#allocation6 + $0x1100] sm:$0xff] }
 0x186   : > { %2540 = vmatpush1.msra.mxu1 %v882_v13  ;;  %2472 = vmatprep.subr.mxu0 %v879_v14  ;;  %v272_v13 = vld [vmem:[%s6995_s20 + $0x88] sm:$0xff]  ;;  %v914_v14 = vld [vmem:[#allocation6 + $0x1310] sm:$0xff] }
 0x187   : > { %2541 = vmatprep.subr.mxu1 %v881_v15  ;;  %2473 = vmatpush2.msra.mxu0 %v878_v16  ;;  %v271_v15 = vld [vmem:[%s6995_s20 + $0x80] sm:$0xff]  ;;  %v913_v16 = vld [vmem:[#allocation6 + $0x1308] sm:$0xff] }
 0x188   : > { %2542 = vmatpush1.msra.mxu1 %v880_v17  ;;  %2474 = vmatprep.subr.mxu0 %v877_v18  ;;  %v975_v17 = vld [vmem:[#allocation6 + $0x14f8] sm:$0xff]  ;;  %v912_v18 = vld [vmem:[#allocation6 + $0x1300] sm:$0xff] }
 0x189   : > { %2543 = vmatprep.subr.mxu1 %v943_v19  ;;  %2475 = vmatpush2.msra.mxu0 %v876_v20  ;;  %v274_v19 = vld [vmem:[%s6995_s20 + $0x98] sm:$0xff] }
 0x18a   : > { %2544 = vmatpush2.msra.mxu1 %v942_v21  ;;  %2476 = vmatprep.subr.mxu0 %v875_v22  ;;  %v974_v20 = vld [vmem:[#allocation6 + $0x14f0] sm:$0xff]  ;;  %v273_v21 = vld [vmem:[%s6995_s20 + $0x90] sm:$0xff] }
 0x18b   : > { %2545 = vmatprep.subr.mxu1 %v941_v23  ;;  %2477 = vmatpush2.msra.mxu0 %v874_v24  ;;  %v973_v22 = vld [vmem:[#allocation6 + $0x14e8] sm:$0xff]  ;;  %v1039_v23 = vld [vmem:[#allocation6 + $0x16f8] sm:$0xff]  ;;  %v972_v24 = vld [vmem:[#allocation6 + $0x14e0] sm:$0xff] }
 0x18c   : > { %2546 = vmatpush2.msra.mxu1 %v940_v25  ;;  %2478 = vmatprep.subr.mxu0 %v873_v26  ;;  %v1038_v25 = vld [vmem:[#allocation6 + $0x16f0] sm:$0xff]  ;;  %v971_v26 = vld [vmem:[#allocation6 + $0x14d8] sm:$0xff] }
 0x18d   : > { %2547 = vmatprep.subr.mxu1 %v939_v27  ;;  %2479 = vmatpush2.msra.mxu0 %v872_v28  ;;  %v1037_v27 = vld [vmem:[#allocation6 + $0x16e8] sm:$0xff]  ;;  %v970_v28 = vld [vmem:[#allocation6 + $0x14d0] sm:$0xff] }
 0x18e   : > { %2548 = vmatpush2.msra.mxu1 %v938_v29  ;;  %2480 = vmatprep.subr.mxu0 %v871_v30  ;;  %v1036_v29 = vld [vmem:[#allocation6 + $0x16e0] sm:$0xff]  ;;  %v969_v30 = vld [vmem:[#allocation6 + $0x14c8] sm:$0xff] }
 0x18f   : > { %2549 = vmatprep.subr.mxu1 %v937_v31  ;;  %2481 = vmatpush2.msra.mxu0 %v870_v32  ;;  %v1035_v31 = vld [vmem:[#allocation6 + $0x16d8] sm:$0xff]  ;;  %v968_v32 = vld [vmem:[#allocation6 + $0x14c0] sm:$0xff] }
 0x190   : > { %2550 = vmatpush2.msra.mxu1 %v936_v33  ;;  %2482 = vmatprep.subr.mxu0 %v869_v34  ;;  %v1034_v33 = vld [vmem:[#allocation6 + $0x16d0] sm:$0xff]  ;;  %v967_v34 = vld [vmem:[#allocation6 + $0x14b8] sm:$0xff] }
 0x191   : > { %2551 = vmatprep.subr.mxu1 %v935_v35  ;;  %2483 = vmatpush2.msra.mxu0 %v868_v36  ;;  %v1033_v35 = vld [vmem:[#allocation6 + $0x16c8] sm:$0xff]  ;;  %v966_v36 = vld [vmem:[#allocation6 + $0x14b0] sm:$0xff] }
 0x192   : > { %2552 = vmatpush2.msra.mxu1 %v934_v37  ;;  %2484 = vmatprep.subr.mxu0 %v867_v38  ;;  %v1032_v37 = vld [vmem:[#allocation6 + $0x16c0] sm:$0xff]  ;;  %v965_v38 = vld [vmem:[#allocation6 + $0x14a8] sm:$0xff] }
 0x193   : > { %2553 = vmatprep.subr.mxu1 %v933_v39  ;;  %2485 = vmatpush2.msra.mxu0 %v866_v40  ;;  %v1031_v39 = vld [vmem:[#allocation6 + $0x16b8] sm:$0xff]  ;;  %v964_v40 = vld [vmem:[#allocation6 + $0x14a0] sm:$0xff] }
 0x194   : > { %2554 = vmatpush2.msra.mxu1 %v932_v41  ;;  %2486 = vmatprep.subr.mxu0 %v865_v42  ;;  %v1030_v41 = vld [vmem:[#allocation6 + $0x16b0] sm:$0xff]  ;;  %v963_v42 = vld [vmem:[#allocation6 + $0x1498] sm:$0xff] }
 0x195   : > { %2555 = vmatprep.subr.mxu1 %v931_v43  ;;  %2487 = vmatpush2.msra.mxu0 %v864_v44  ;;  %v1029_v43 = vld [vmem:[#allocation6 + $0x16a8] sm:$0xff]  ;;  %v962_v44 = vld [vmem:[#allocation6 + $0x1490] sm:$0xff] }
 0x196   : > { %2556 = vmatpush2.msra.mxu1 %v930_v45  ;;  %2488 = vmatprep.subr.mxu0 %v863_v46  ;;  %v1028_v45 = vld [vmem:[#allocation6 + $0x16a0] sm:$0xff]  ;;  %v961_v46 = vld [vmem:[#allocation6 + $0x1488] sm:$0xff] }
 0x197   : > { %2557 = vmatprep.subr.mxu1 %v929_v47  ;;  %2489 = vmatpush2.msra.mxu0 %v862_v48  ;;  %v1027_v47 = vld [vmem:[#allocation6 + $0x1698] sm:$0xff]  ;;  %v960_v48 = vld [vmem:[#allocation6 + $0x1480] sm:$0xff] }
 0x198   : > { %2558 = vmatpush2.msra.mxu1 %v928_v49  ;;  %2490 = vmatprep.subr.mxu0 %v861_v50  ;;  %v1026_v49 = vld [vmem:[#allocation6 + $0x1690] sm:$0xff]  ;;  %v959_v50 = vld [vmem:[#allocation6 + $0x1478] sm:$0xff] }
 0x199   : > { %2559 = vmatprep.subr.mxu1 %v927_v51  ;;  %2491 = vmatpush2.msra.mxu0 %v860_v52  ;;  %v1025_v51 = vld [vmem:[#allocation6 + $0x1688] sm:$0xff]  ;;  %v958_v52 = vld [vmem:[#allocation6 + $0x1470] sm:$0xff] }
 0x19a   : > { %2560 = vmatpush2.msra.mxu1 %v926_v53  ;;  %2492 = vmatprep.subr.mxu0 %v859_v54  ;;  %v1024_v53 = vld [vmem:[#allocation6 + $0x1680] sm:$0xff]  ;;  %v957_v54 = vld [vmem:[#allocation6 + $0x1468] sm:$0xff] }
 0x19b   : > { %2561 = vmatprep.subr.mxu1 %v925_v55  ;;  %2493 = vmatpush2.msra.mxu0 %v858_v56  ;;  %v1023_v55 = vld [vmem:[#allocation6 + $0x1678] sm:$0xff]  ;;  %v956_v56 = vld [vmem:[#allocation6 + $0x1460] sm:$0xff] }
 0x19c   : > { %2562 = vmatpush2.msra.mxu1 %v924_v57  ;;  %2494 = vmatprep.subr.mxu0 %v857_v58  ;;  %v1022_v57 = vld [vmem:[#allocation6 + $0x1670] sm:$0xff]  ;;  %v955_v58 = vld [vmem:[#allocation6 + $0x1458] sm:$0xff] }
 0x19d   : > { %2563 = vmatprep.subr.mxu1 %v923_v59  ;;  %2495 = vmatpush2.msra.mxu0 %v856_v60  ;;  %v1021_v59 = vld [vmem:[#allocation6 + $0x1668] sm:$0xff]  ;;  %v954_v60 = vld [vmem:[#allocation6 + $0x1450] sm:$0xff] }
 0x19e   : > { %2564 = vmatpush2.msra.mxu1 %v922_v61  ;;  %2496 = vmatprep.subr.mxu0 %v855_v62  ;;  %v1020_v61 = vld [vmem:[#allocation6 + $0x1660] sm:$0xff]  ;;  %v953_v62 = vld [vmem:[#allocation6 + $0x1448] sm:$0xff] }
 0x19f   : > { %2565 = vmatprep.subr.mxu1 %v921_v63  ;;  %2497 = vmatpush2.msra.mxu0 %v854_v0  ;;  %v1019_v63 = vld [vmem:[#allocation6 + $0x1658] sm:$0xff]  ;;  %v952_v0 = vld [vmem:[#allocation6 + $0x1440] sm:$0xff] }
 0x1a0   : > { %2566 = vmatpush2.msra.mxu1 %v920_v1  ;;  %2498 = vmatprep.subr.mxu0 %v853_v2  ;;  %v1018_v1 = vld [vmem:[#allocation6 + $0x1650] sm:$0xff]  ;;  %v951_v2 = vld [vmem:[#allocation6 + $0x1438] sm:$0xff] }
 0x1a1   : > { %2567 = vmatprep.subr.mxu1 %v919_v3  ;;  %2499 = vmatpush2.msra.mxu0 %v852_v4  ;;  %v1017_v3 = vld [vmem:[#allocation6 + $0x1648] sm:$0xff]  ;;  %v950_v4 = vld [vmem:[#allocation6 + $0x1430] sm:$0xff] }
 0x1a2   : > { %2568 = vmatpush2.msra.mxu1 %v918_v5  ;;  %2500 = vmatprep.subr.mxu0 %v851_v6  ;;  %v1016_v5 = vld [vmem:[#allocation6 + $0x1640] sm:$0xff]  ;;  %v949_v6 = vld [vmem:[#allocation6 + $0x1428] sm:$0xff] }
 0x1a3   : > { %2569 = vmatprep.subr.mxu1 %v917_v7  ;;  %2501 = vmatpush2.msra.mxu0 %v850_v8  ;;  %v1015_v7 = vld [vmem:[#allocation6 + $0x1638] sm:$0xff]  ;;  %v948_v8 = vld [vmem:[#allocation6 + $0x1420] sm:$0xff] }
 0x1a4   : > { %2570 = vmatpush2.msra.mxu1 %v916_v9  ;;  %2502 = vmatprep.subr.mxu0 %v849_v10  ;;  %v1014_v9 = vld [vmem:[#allocation6 + $0x1630] sm:$0xff]  ;;  %v947_v10 = vld [vmem:[#allocation6 + $0x1418] sm:$0xff] }
 0x1a5   : > { %2571 = vmatprep.subr.mxu1 %v915_v11  ;;  %2503 = vmatpush2.msra.mxu0 %v848_v12  ;;  %v1013_v11 = vld [vmem:[#allocation6 + $0x1628] sm:$0xff]  ;;  %v946_v12 = vld [vmem:[#allocation6 + $0x1410] sm:$0xff] }
 0x1a6   : > { %2504 = vmatprep.mubr.f32.mxu0 %v272_v13  ;;  %2572 = vmatpush2.msra.mxu1 %v914_v14  ;;  %v1012_v13 = vld [vmem:[#allocation6 + $0x1620] sm:$0xff]  ;;  %v945_v14 = vld [vmem:[#allocation6 + $0x1408] sm:$0xff] }
 0x1a7   : > { %2505 = vmatmul.mubr.f32.vlgmr.msra.gmra.mxu0 %v271_v15  ;;  %2573 = vmatprep.subr.mxu1 %v913_v16  ;;  %v1011_v15 = vld [vmem:[#allocation6 + $0x1618] sm:$0xff]  ;;  %v944_v16 = vld [vmem:[#allocation6 + $0x1400] sm:$0xff] }
 0x1a8   : > { %2582 = vmatprep.subr.mxu0 %v975_v17  ;;  %2574 = vmatpush2.msra.mxu1 %v912_v18  ;;  %v1010_v17 = vld [vmem:[#allocation6 + $0x1610] sm:$0xff]  ;;  %v1007_v18 = vld [vmem:[#allocation6 + $0x15f8] sm:$0xff] }
 0x1a9   : > { %2575 = vmatprep.mubr.f32.mxu1 %v274_v19  ;;  %2583 = vmatpush1.msra.mxu0 %v974_v20  ;;  %v1009_v19 = vld [vmem:[#allocation6 + $0x1608] sm:$0xff]  ;;  %v1006_v20 = vld [vmem:[#allocation6 + $0x15f0] sm:$0xff] }
 0x1aa   : > { %2576 = vmatmul.mubr.f32.vlgmr.msra.gmra.mxu1 %v273_v21  ;;  %2584 = vmatprep.subr.mxu0 %v973_v22  ;;  %v1008_v21 = vld [vmem:[#allocation6 + $0x1600] sm:$0xff]  ;;  %v1005_v22 = vld [vmem:[#allocation6 + $0x15e8] sm:$0xff] }
 0x1ab   : > { %2653 = vmatprep.subr.mxu1 %v1039_v23  ;;  %2585 = vmatpush1.msra.mxu0 %v972_v24  ;;  %v1071_v23 = vld [vmem:[#allocation6 + $0x17f8] sm:$0xff]  ;;  %v1004_v24 = vld [vmem:[#allocation6 + $0x15e0] sm:$0xff] }
 0x1ac   : > { %2654 = vmatpush1.msra.mxu1 %v1038_v25  ;;  %2586 = vmatprep.subr.mxu0 %v971_v26  ;;  %v1070_v25 = vld [vmem:[#allocation6 + $0x17f0] sm:$0xff]  ;;  %v1003_v26 = vld [vmem:[#allocation6 + $0x15d8] sm:$0xff] }
 0x1ad   : > { %2655 = vmatprep.subr.mxu1 %v1037_v27  ;;  %2587 = vmatpush1.msra.mxu0 %v970_v28  ;;  %v1069_v27 = vld [vmem:[#allocation6 + $0x17e8] sm:$0xff]  ;;  %v1002_v28 = vld [vmem:[#allocation6 + $0x15d0] sm:$0xff] }
 0x1ae   : > { %2656 = vmatpush1.msra.mxu1 %v1036_v29  ;;  %2588 = vmatprep.subr.mxu0 %v969_v30  ;;  %v1068_v29 = vld [vmem:[#allocation6 + $0x17e0] sm:$0xff]  ;;  %v1001_v30 = vld [vmem:[#allocation6 + $0x15c8] sm:$0xff] }
 0x1af   : > { %2657 = vmatprep.subr.mxu1 %v1035_v31  ;;  %2589 = vmatpush1.msra.mxu0 %v968_v32  ;;  %v1067_v31 = vld [vmem:[#allocation6 + $0x17d8] sm:$0xff]  ;;  %v1000_v32 = vld [vmem:[#allocation6 + $0x15c0] sm:$0xff] }
 0x1b0   : > { %2658 = vmatpush1.msra.mxu1 %v1034_v33  ;;  %2590 = vmatprep.subr.mxu0 %v967_v34  ;;  %v1066_v33 = vld [vmem:[#allocation6 + $0x17d0] sm:$0xff]  ;;  %v999_v34 = vld [vmem:[#allocation6 + $0x15b8] sm:$0xff] }
 0x1b1   : > { %2659 = vmatprep.subr.mxu1 %v1033_v35  ;;  %2591 = vmatpush1.msra.mxu0 %v966_v36  ;;  %v1065_v35 = vld [vmem:[#allocation6 + $0x17c8] sm:$0xff]  ;;  %v998_v36 = vld [vmem:[#allocation6 + $0x15b0] sm:$0xff] }
 0x1b2   : > { %2660 = vmatpush1.msra.mxu1 %v1032_v37  ;;  %2592 = vmatprep.subr.mxu0 %v965_v38  ;;  %v1064_v37 = vld [vmem:[#allocation6 + $0x17c0] sm:$0xff]  ;;  %v997_v38 = vld [vmem:[#allocation6 + $0x15a8] sm:$0xff] }
 0x1b3   : > { %2661 = vmatprep.subr.mxu1 %v1031_v39  ;;  %2593 = vmatpush1.msra.mxu0 %v964_v40  ;;  %v1063_v39 = vld [vmem:[#allocation6 + $0x17b8] sm:$0xff]  ;;  %v996_v40 = vld [vmem:[#allocation6 + $0x15a0] sm:$0xff] }
 0x1b4   : > { %2662 = vmatpush1.msra.mxu1 %v1030_v41  ;;  %2594 = vmatprep.subr.mxu0 %v963_v42  ;;  %v1062_v41 = vld [vmem:[#allocation6 + $0x17b0] sm:$0xff]  ;;  %v995_v42 = vld [vmem:[#allocation6 + $0x1598] sm:$0xff] }
 0x1b5   : > { %2663 = vmatprep.subr.mxu1 %v1029_v43  ;;  %2595 = vmatpush1.msra.mxu0 %v962_v44  ;;  %v1061_v43 = vld [vmem:[#allocation6 + $0x17a8] sm:$0xff]  ;;  %v994_v44 = vld [vmem:[#allocation6 + $0x1590] sm:$0xff] }
 0x1b6   : > { %2664 = vmatpush1.msra.mxu1 %v1028_v45  ;;  %2596 = vmatprep.subr.mxu0 %v961_v46  ;;  %v1060_v45 = vld [vmem:[#allocation6 + $0x17a0] sm:$0xff]  ;;  %v993_v46 = vld [vmem:[#allocation6 + $0x1588] sm:$0xff] }
 0x1b7   : > { %2665 = vmatprep.subr.mxu1 %v1027_v47  ;;  %2597 = vmatpush1.msra.mxu0 %v960_v48  ;;  %v1059_v47 = vld [vmem:[#allocation6 + $0x1798] sm:$0xff]  ;;  %v992_v48 = vld [vmem:[#allocation6 + $0x1580] sm:$0xff] }
 0x1b8   : > { %2666 = vmatpush1.msra.mxu1 %v1026_v49  ;;  %2598 = vmatprep.subr.mxu0 %v959_v50  ;;  %v1058_v49 = vld [vmem:[#allocation6 + $0x1790] sm:$0xff]  ;;  %v991_v50 = vld [vmem:[#allocation6 + $0x1578] sm:$0xff] }
 0x1b9   : > { %2667 = vmatprep.subr.mxu1 %v1025_v51  ;;  %2599 = vmatpush1.msra.mxu0 %v958_v52  ;;  %v1057_v51 = vld [vmem:[#allocation6 + $0x1788] sm:$0xff]  ;;  %v990_v52 = vld [vmem:[#allocation6 + $0x1570] sm:$0xff] }
 0x1ba   : > { %2668 = vmatpush1.msra.mxu1 %v1024_v53  ;;  %2600 = vmatprep.subr.mxu0 %v957_v54  ;;  %v1056_v53 = vld [vmem:[#allocation6 + $0x1780] sm:$0xff]  ;;  %v989_v54 = vld [vmem:[#allocation6 + $0x1568] sm:$0xff] }
 0x1bb   : > { %2669 = vmatprep.subr.mxu1 %v1023_v55  ;;  %2601 = vmatpush1.msra.mxu0 %v956_v56  ;;  %v1055_v55 = vld [vmem:[#allocation6 + $0x1778] sm:$0xff]  ;;  %v988_v56 = vld [vmem:[#allocation6 + $0x1560] sm:$0xff] }
 0x1bc   : > { %2670 = vmatpush1.msra.mxu1 %v1022_v57  ;;  %2602 = vmatprep.subr.mxu0 %v955_v58  ;;  %v1054_v57 = vld [vmem:[#allocation6 + $0x1770] sm:$0xff]  ;;  %v987_v58 = vld [vmem:[#allocation6 + $0x1558] sm:$0xff] }
 0x1bd   : > { %2671 = vmatprep.subr.mxu1 %v1021_v59  ;;  %2603 = vmatpush1.msra.mxu0 %v954_v60  ;;  %v1053_v59 = vld [vmem:[#allocation6 + $0x1768] sm:$0xff]  ;;  %v986_v60 = vld [vmem:[#allocation6 + $0x1550] sm:$0xff] }
 0x1be   : > { %2672 = vmatpush1.msra.mxu1 %v1020_v61  ;;  %2604 = vmatprep.subr.mxu0 %v953_v62  ;;  %v1052_v61 = vld [vmem:[#allocation6 + $0x1760] sm:$0xff]  ;;  %v985_v62 = vld [vmem:[#allocation6 + $0x1548] sm:$0xff] }
 0x1bf   : > { %2673 = vmatprep.subr.mxu1 %v1019_v63  ;;  %2605 = vmatpush1.msra.mxu0 %v952_v0  ;;  %v1051_v63 = vld [vmem:[#allocation6 + $0x1758] sm:$0xff]  ;;  %v984_v0 = vld [vmem:[#allocation6 + $0x1540] sm:$0xff] }
 0x1c0   : > { %2674 = vmatpush1.msra.mxu1 %v1018_v1  ;;  %2606 = vmatprep.subr.mxu0 %v951_v2  ;;  %v1050_v1 = vld [vmem:[#allocation6 + $0x1750] sm:$0xff]  ;;  %v983_v2 = vld [vmem:[#allocation6 + $0x1538] sm:$0xff] }
 0x1c1   : > { %2675 = vmatprep.subr.mxu1 %v1017_v3  ;;  %2607 = vmatpush1.msra.mxu0 %v950_v4  ;;  %v1049_v3 = vld [vmem:[#allocation6 + $0x1748] sm:$0xff]  ;;  %v982_v4 = vld [vmem:[#allocation6 + $0x1530] sm:$0xff] }
 0x1c2   : > { %2676 = vmatpush1.msra.mxu1 %v1016_v5  ;;  %2608 = vmatprep.subr.mxu0 %v949_v6  ;;  %v1048_v5 = vld [vmem:[#allocation6 + $0x1740] sm:$0xff]  ;;  %v981_v6 = vld [vmem:[#allocation6 + $0x1528] sm:$0xff] }
 0x1c3   : > { %2677 = vmatprep.subr.mxu1 %v1015_v7  ;;  %2609 = vmatpush1.msra.mxu0 %v948_v8  ;;  %v1047_v7 = vld [vmem:[#allocation6 + $0x1738] sm:$0xff]  ;;  %v980_v8 = vld [vmem:[#allocation6 + $0x1520] sm:$0xff] }
 0x1c4   : > { %2678 = vmatpush1.msra.mxu1 %v1014_v9  ;;  %2610 = vmatprep.subr.mxu0 %v947_v10  ;;  %v1046_v9 = vld [vmem:[#allocation6 + $0x1730] sm:$0xff]  ;;  %v979_v10 = vld [vmem:[#allocation6 + $0x1518] sm:$0xff] }
 0x1c5   : > { %2679 = vmatprep.subr.mxu1 %v1013_v11  ;;  %2611 = vmatpush1.msra.mxu0 %v946_v12  ;;  %v1045_v11 = vld [vmem:[#allocation6 + $0x1728] sm:$0xff]  ;;  %v978_v12 = vld [vmem:[#allocation6 + $0x1510] sm:$0xff] }
 0x1c6   : > { %2680 = vmatpush1.msra.mxu1 %v1012_v13  ;;  %2612 = vmatprep.subr.mxu0 %v945_v14  ;;  %v1044_v13 = vld [vmem:[#allocation6 + $0x1720] sm:$0xff]  ;;  %v977_v14 = vld [vmem:[#allocation6 + $0x1508] sm:$0xff] }
 0x1c7   : > { %2681 = vmatprep.subr.mxu1 %v1011_v15  ;;  %2613 = vmatpush1.msra.mxu0 %v944_v16  ;;  %v1043_v15 = vld [vmem:[#allocation6 + $0x1718] sm:$0xff]  ;;  %v976_v16 = vld [vmem:[#allocation6 + $0x1500] sm:$0xff] }
 0x1c8   : > { %2682 = vmatpush1.msra.mxu1 %v1010_v17  ;;  %2614 = vmatprep.subr.mxu0 %v1007_v18  ;;  %v276_v17 = vld [vmem:[%s6995_s20 + $0xa8] sm:$0xff]  ;;  %v1042_v18 = vld [vmem:[#allocation6 + $0x1710] sm:$0xff] }
 0x1c9   : > { %2683 = vmatprep.subr.mxu1 %v1009_v19  ;;  %2615 = vmatpush2.msra.mxu0 %v1006_v20  ;;  %v275_v19 = vld [vmem:[%s6995_s20 + $0xa0] sm:$0xff]  ;;  %v1041_v20 = vld [vmem:[#allocation6 + $0x1708] sm:$0xff] }
 0x1ca   : > { %2684 = vmatpush1.msra.mxu1 %v1008_v21  ;;  %2616 = vmatprep.subr.mxu0 %v1005_v22  ;;  %v1103_v21 = vld [vmem:[#allocation6 + $0x18f8] sm:$0xff]  ;;  %v1040_v22 = vld [vmem:[#allocation6 + $0x1700] sm:$0xff] }
 0x1cb   : > { %2685 = vmatprep.subr.mxu1 %v1071_v23  ;;  %2617 = vmatpush2.msra.mxu0 %v1004_v24  ;;  %v278_v23 = vld [vmem:[%s6995_s20 + $0xb8] sm:$0xff] }
 0x1cc   : > { %2686 = vmatpush2.msra.mxu1 %v1070_v25  ;;  %2618 = vmatprep.subr.mxu0 %v1003_v26  ;;  %v1102_v24 = vld [vmem:[#allocation6 + $0x18f0] sm:$0xff]  ;;  %v277_v25 = vld [vmem:[%s6995_s20 + $0xb0] sm:$0xff] }
 0x1cd   : > { %2687 = vmatprep.subr.mxu1 %v1069_v27  ;;  %2619 = vmatpush2.msra.mxu0 %v1002_v28  ;;  %v1101_v26 = vld [vmem:[#allocation6 + $0x18e8] sm:$0xff]  ;;  %v1167_v27 = vld [vmem:[#allocation6 + $0x1af8] sm:$0xff]  ;;  %v1100_v28 = vld [vmem:[#allocation6 + $0x18e0] sm:$0xff] }
 0x1ce   : > { %2688 = vmatpush2.msra.mxu1 %v1068_v29  ;;  %2620 = vmatprep.subr.mxu0 %v1001_v30  ;;  %v1166_v29 = vld [vmem:[#allocation6 + $0x1af0] sm:$0xff]  ;;  %v1099_v30 = vld [vmem:[#allocation6 + $0x18d8] sm:$0xff] }
 0x1cf   : > { %2689 = vmatprep.subr.mxu1 %v1067_v31  ;;  %2621 = vmatpush2.msra.mxu0 %v1000_v32  ;;  %v1165_v31 = vld [vmem:[#allocation6 + $0x1ae8] sm:$0xff]  ;;  %v1098_v32 = vld [vmem:[#allocation6 + $0x18d0] sm:$0xff] }
 0x1d0   : > { %2690 = vmatpush2.msra.mxu1 %v1066_v33  ;;  %2622 = vmatprep.subr.mxu0 %v999_v34  ;;  %v1164_v33 = vld [vmem:[#allocation6 + $0x1ae0] sm:$0xff]  ;;  %v1097_v34 = vld [vmem:[#allocation6 + $0x18c8] sm:$0xff] }
 0x1d1   : > { %2691 = vmatprep.subr.mxu1 %v1065_v35  ;;  %2623 = vmatpush2.msra.mxu0 %v998_v36  ;;  %v1163_v35 = vld [vmem:[#allocation6 + $0x1ad8] sm:$0xff]  ;;  %v1096_v36 = vld [vmem:[#allocation6 + $0x18c0] sm:$0xff] }
 0x1d2   : > { %2692 = vmatpush2.msra.mxu1 %v1064_v37  ;;  %2624 = vmatprep.subr.mxu0 %v997_v38  ;;  %v1162_v37 = vld [vmem:[#allocation6 + $0x1ad0] sm:$0xff]  ;;  %v1095_v38 = vld [vmem:[#allocation6 + $0x18b8] sm:$0xff] }
 0x1d3   : > { %2693 = vmatprep.subr.mxu1 %v1063_v39  ;;  %2625 = vmatpush2.msra.mxu0 %v996_v40  ;;  %v1161_v39 = vld [vmem:[#allocation6 + $0x1ac8] sm:$0xff]  ;;  %v1094_v40 = vld [vmem:[#allocation6 + $0x18b0] sm:$0xff] }
 0x1d4   : > { %2694 = vmatpush2.msra.mxu1 %v1062_v41  ;;  %2626 = vmatprep.subr.mxu0 %v995_v42  ;;  %v1160_v41 = vld [vmem:[#allocation6 + $0x1ac0] sm:$0xff]  ;;  %v1093_v42 = vld [vmem:[#allocation6 + $0x18a8] sm:$0xff] }
 0x1d5   : > { %2695 = vmatprep.subr.mxu1 %v1061_v43  ;;  %2627 = vmatpush2.msra.mxu0 %v994_v44  ;;  %v1159_v43 = vld [vmem:[#allocation6 + $0x1ab8] sm:$0xff]  ;;  %v1092_v44 = vld [vmem:[#allocation6 + $0x18a0] sm:$0xff] }
 0x1d6   : > { %2696 = vmatpush2.msra.mxu1 %v1060_v45  ;;  %2628 = vmatprep.subr.mxu0 %v993_v46  ;;  %v1158_v45 = vld [vmem:[#allocation6 + $0x1ab0] sm:$0xff]  ;;  %v1091_v46 = vld [vmem:[#allocation6 + $0x1898] sm:$0xff] }
 0x1d7   : > { %2697 = vmatprep.subr.mxu1 %v1059_v47  ;;  %2629 = vmatpush2.msra.mxu0 %v992_v48  ;;  %v1157_v47 = vld [vmem:[#allocation6 + $0x1aa8] sm:$0xff]  ;;  %v1090_v48 = vld [vmem:[#allocation6 + $0x1890] sm:$0xff] }
 0x1d8   : > { %2698 = vmatpush2.msra.mxu1 %v1058_v49  ;;  %2630 = vmatprep.subr.mxu0 %v991_v50  ;;  %v1156_v49 = vld [vmem:[#allocation6 + $0x1aa0] sm:$0xff]  ;;  %v1089_v50 = vld [vmem:[#allocation6 + $0x1888] sm:$0xff] }
 0x1d9   : > { %2699 = vmatprep.subr.mxu1 %v1057_v51  ;;  %2631 = vmatpush2.msra.mxu0 %v990_v52  ;;  %v1155_v51 = vld [vmem:[#allocation6 + $0x1a98] sm:$0xff]  ;;  %v1088_v52 = vld [vmem:[#allocation6 + $0x1880] sm:$0xff] }
 0x1da   : > { %2700 = vmatpush2.msra.mxu1 %v1056_v53  ;;  %2632 = vmatprep.subr.mxu0 %v989_v54  ;;  %v1154_v53 = vld [vmem:[#allocation6 + $0x1a90] sm:$0xff]  ;;  %v1087_v54 = vld [vmem:[#allocation6 + $0x1878] sm:$0xff] }
 0x1db   : > { %2701 = vmatprep.subr.mxu1 %v1055_v55  ;;  %2633 = vmatpush2.msra.mxu0 %v988_v56  ;;  %v1153_v55 = vld [vmem:[#allocation6 + $0x1a88] sm:$0xff]  ;;  %v1086_v56 = vld [vmem:[#allocation6 + $0x1870] sm:$0xff] }
 0x1dc   : > { %2702 = vmatpush2.msra.mxu1 %v1054_v57  ;;  %2634 = vmatprep.subr.mxu0 %v987_v58  ;;  %v1152_v57 = vld [vmem:[#allocation6 + $0x1a80] sm:$0xff]  ;;  %v1085_v58 = vld [vmem:[#allocation6 + $0x1868] sm:$0xff] }
 0x1dd   : > { %2703 = vmatprep.subr.mxu1 %v1053_v59  ;;  %2635 = vmatpush2.msra.mxu0 %v986_v60  ;;  %v1151_v59 = vld [vmem:[#allocation6 + $0x1a78] sm:$0xff]  ;;  %v1084_v60 = vld [vmem:[#allocation6 + $0x1860] sm:$0xff] }
 0x1de   : > { %2704 = vmatpush2.msra.mxu1 %v1052_v61  ;;  %2636 = vmatprep.subr.mxu0 %v985_v62  ;;  %v1150_v61 = vld [vmem:[#allocation6 + $0x1a70] sm:$0xff]  ;;  %v1083_v62 = vld [vmem:[#allocation6 + $0x1858] sm:$0xff] }
 0x1df   : > { %2705 = vmatprep.subr.mxu1 %v1051_v63  ;;  %2637 = vmatpush2.msra.mxu0 %v984_v0  ;;  %v1149_v63 = vld [vmem:[#allocation6 + $0x1a68] sm:$0xff]  ;;  %v1082_v0 = vld [vmem:[#allocation6 + $0x1850] sm:$0xff] }
 0x1e0   : > { %2706 = vmatpush2.msra.mxu1 %v1050_v1  ;;  %2638 = vmatprep.subr.mxu0 %v983_v2  ;;  %v1148_v1 = vld [vmem:[#allocation6 + $0x1a60] sm:$0xff]  ;;  %v1081_v2 = vld [vmem:[#allocation6 + $0x1848] sm:$0xff] }
 0x1e1   : > { %2707 = vmatprep.subr.mxu1 %v1049_v3  ;;  %2639 = vmatpush2.msra.mxu0 %v982_v4  ;;  %v1147_v3 = vld [vmem:[#allocation6 + $0x1a58] sm:$0xff]  ;;  %v1080_v4 = vld [vmem:[#allocation6 + $0x1840] sm:$0xff] }
 0x1e2   : > { %2708 = vmatpush2.msra.mxu1 %v1048_v5  ;;  %2640 = vmatprep.subr.mxu0 %v981_v6  ;;  %v1146_v5 = vld [vmem:[#allocation6 + $0x1a50] sm:$0xff]  ;;  %v1079_v6 = vld [vmem:[#allocation6 + $0x1838] sm:$0xff] }
 0x1e3   : > { %2709 = vmatprep.subr.mxu1 %v1047_v7  ;;  %2641 = vmatpush2.msra.mxu0 %v980_v8  ;;  %v1145_v7 = vld [vmem:[#allocation6 + $0x1a48] sm:$0xff]  ;;  %v1078_v8 = vld [vmem:[#allocation6 + $0x1830] sm:$0xff] }
 0x1e4   : > { %2710 = vmatpush2.msra.mxu1 %v1046_v9  ;;  %2642 = vmatprep.subr.mxu0 %v979_v10  ;;  %v1144_v9 = vld [vmem:[#allocation6 + $0x1a40] sm:$0xff]  ;;  %v1077_v10 = vld [vmem:[#allocation6 + $0x1828] sm:$0xff] }
 0x1e5   : > { %2711 = vmatprep.subr.mxu1 %v1045_v11  ;;  %2643 = vmatpush2.msra.mxu0 %v978_v12  ;;  %v1143_v11 = vld [vmem:[#allocation6 + $0x1a38] sm:$0xff]  ;;  %v1076_v12 = vld [vmem:[#allocation6 + $0x1820] sm:$0xff] }
 0x1e6   : > { %2712 = vmatpush2.msra.mxu1 %v1044_v13  ;;  %2644 = vmatprep.subr.mxu0 %v977_v14  ;;  %v1142_v13 = vld [vmem:[#allocation6 + $0x1a30] sm:$0xff]  ;;  %v1075_v14 = vld [vmem:[#allocation6 + $0x1818] sm:$0xff] }
 0x1e7   : > { %2713 = vmatprep.subr.mxu1 %v1043_v15  ;;  %2645 = vmatpush2.msra.mxu0 %v976_v16  ;;  %v1141_v15 = vld [vmem:[#allocation6 + $0x1a28] sm:$0xff]  ;;  %v1074_v16 = vld [vmem:[#allocation6 + $0x1810] sm:$0xff] }
 0x1e8   : > { %2646 = vmatprep.mubr.f32.mxu0 %v276_v17  ;;  %2714 = vmatpush2.msra.mxu1 %v1042_v18  ;;  %v1140_v17 = vld [vmem:[#allocation6 + $0x1a20] sm:$0xff]  ;;  %v1073_v18 = vld [vmem:[#allocation6 + $0x1808] sm:$0xff] }
 0x1e9   : > { %2647 = vmatmul.mubr.f32.vlgmr.msra.gmra.mxu0 %v275_v19  ;;  %2715 = vmatprep.subr.mxu1 %v1041_v20  ;;  %v1139_v19 = vld [vmem:[#allocation6 + $0x1a18] sm:$0xff]  ;;  %v1072_v20 = vld [vmem:[#allocation6 + $0x1800] sm:$0xff] }
 0x1ea   : > { %2724 = vmatprep.subr.mxu0 %v1103_v21  ;;  %2716 = vmatpush2.msra.mxu1 %v1040_v22  ;;  %v1138_v21 = vld [vmem:[#allocation6 + $0x1a10] sm:$0xff]  ;;  %v1135_v22 = vld [vmem:[#allocation6 + $0x19f8] sm:$0xff] }
 0x1eb   : > { %2717 = vmatprep.mubr.f32.mxu1 %v278_v23  ;;  %2725 = vmatpush1.msra.mxu0 %v1102_v24  ;;  %v1137_v23 = vld [vmem:[#allocation6 + $0x1a08] sm:$0xff]  ;;  %v1134_v24 = vld [vmem:[#allocation6 + $0x19f0] sm:$0xff] }
 0x1ec   : > { %2718 = vmatmul.mubr.f32.vlgmr.msra.gmra.mxu1 %v277_v25  ;;  %2726 = vmatprep.subr.mxu0 %v1101_v26  ;;  %v1136_v25 = vld [vmem:[#allocation6 + $0x1a00] sm:$0xff]  ;;  %v1133_v26 = vld [vmem:[#allocation6 + $0x19e8] sm:$0xff] }
 0x1ed   : > { %2795 = vmatprep.subr.mxu1 %v1167_v27  ;;  %2727 = vmatpush1.msra.mxu0 %v1100_v28  ;;  %v1199_v27 = vld [vmem:[#allocation6 + $0x1bf8] sm:$0xff]  ;;  %v1132_v28 = vld [vmem:[#allocation6 + $0x19e0] sm:$0xff] }
 0x1ee   : > { %2796 = vmatpush1.msra.mxu1 %v1166_v29  ;;  %2728 = vmatprep.subr.mxu0 %v1099_v30  ;;  %v1198_v29 = vld [vmem:[#allocation6 + $0x1bf0] sm:$0xff]  ;;  %v1131_v30 = vld [vmem:[#allocation6 + $0x19d8] sm:$0xff] }
 0x1ef   : > { %2797 = vmatprep.subr.mxu1 %v1165_v31  ;;  %2729 = vmatpush1.msra.mxu0 %v1098_v32  ;;  %v1197_v31 = vld [vmem:[#allocation6 + $0x1be8] sm:$0xff]  ;;  %v1130_v32 = vld [vmem:[#allocation6 + $0x19d0] sm:$0xff] }
 0x1f0   : > { %2798 = vmatpush1.msra.mxu1 %v1164_v33  ;;  %2730 = vmatprep.subr.mxu0 %v1097_v34  ;;  %v1196_v33 = vld [vmem:[#allocation6 + $0x1be0] sm:$0xff]  ;;  %v1129_v34 = vld [vmem:[#allocation6 + $0x19c8] sm:$0xff] }
 0x1f1   : > { %2799 = vmatprep.subr.mxu1 %v1163_v35  ;;  %2731 = vmatpush1.msra.mxu0 %v1096_v36  ;;  %v1195_v35 = vld [vmem:[#allocation6 + $0x1bd8] sm:$0xff]  ;;  %v1128_v36 = vld [vmem:[#allocation6 + $0x19c0] sm:$0xff] }
 0x1f2   : > { %2800 = vmatpush1.msra.mxu1 %v1162_v37  ;;  %2732 = vmatprep.subr.mxu0 %v1095_v38  ;;  %v1194_v37 = vld [vmem:[#allocation6 + $0x1bd0] sm:$0xff]  ;;  %v1127_v38 = vld [vmem:[#allocation6 + $0x19b8] sm:$0xff] }
 0x1f3   : > { %2801 = vmatprep.subr.mxu1 %v1161_v39  ;;  %2733 = vmatpush1.msra.mxu0 %v1094_v40  ;;  %v1193_v39 = vld [vmem:[#allocation6 + $0x1bc8] sm:$0xff]  ;;  %v1126_v40 = vld [vmem:[#allocation6 + $0x19b0] sm:$0xff] }
 0x1f4   : > { %2802 = vmatpush1.msra.mxu1 %v1160_v41  ;;  %2734 = vmatprep.subr.mxu0 %v1093_v42  ;;  %v1192_v41 = vld [vmem:[#allocation6 + $0x1bc0] sm:$0xff]  ;;  %v1125_v42 = vld [vmem:[#allocation6 + $0x19a8] sm:$0xff] }
 0x1f5   : > { %2803 = vmatprep.subr.mxu1 %v1159_v43  ;;  %2735 = vmatpush1.msra.mxu0 %v1092_v44  ;;  %v1191_v43 = vld [vmem:[#allocation6 + $0x1bb8] sm:$0xff]  ;;  %v1124_v44 = vld [vmem:[#allocation6 + $0x19a0] sm:$0xff] }
 0x1f6   : > { %2804 = vmatpush1.msra.mxu1 %v1158_v45  ;;  %2736 = vmatprep.subr.mxu0 %v1091_v46  ;;  %v1190_v45 = vld [vmem:[#allocation6 + $0x1bb0] sm:$0xff]  ;;  %v1123_v46 = vld [vmem:[#allocation6 + $0x1998] sm:$0xff] }
 0x1f7   : > { %2805 = vmatprep.subr.mxu1 %v1157_v47  ;;  %2737 = vmatpush1.msra.mxu0 %v1090_v48  ;;  %v1189_v47 = vld [vmem:[#allocation6 + $0x1ba8] sm:$0xff]  ;;  %v1122_v48 = vld [vmem:[#allocation6 + $0x1990] sm:$0xff] }
 0x1f8   : > { %2806 = vmatpush1.msra.mxu1 %v1156_v49  ;;  %2738 = vmatprep.subr.mxu0 %v1089_v50  ;;  %v1188_v49 = vld [vmem:[#allocation6 + $0x1ba0] sm:$0xff]  ;;  %v1121_v50 = vld [vmem:[#allocation6 + $0x1988] sm:$0xff] }
 0x1f9   : > { %2807 = vmatprep.subr.mxu1 %v1155_v51  ;;  %2739 = vmatpush1.msra.mxu0 %v1088_v52  ;;  %v1187_v51 = vld [vmem:[#allocation6 + $0x1b98] sm:$0xff]  ;;  %v1120_v52 = vld [vmem:[#allocation6 + $0x1980] sm:$0xff] }
 0x1fa   : > { %2808 = vmatpush1.msra.mxu1 %v1154_v53  ;;  %2740 = vmatprep.subr.mxu0 %v1087_v54  ;;  %v1186_v53 = vld [vmem:[#allocation6 + $0x1b90] sm:$0xff]  ;;  %v1119_v54 = vld [vmem:[#allocation6 + $0x1978] sm:$0xff] }
 0x1fb   : > { %2809 = vmatprep.subr.mxu1 %v1153_v55  ;;  %2741 = vmatpush1.msra.mxu0 %v1086_v56  ;;  %v1185_v55 = vld [vmem:[#allocation6 + $0x1b88] sm:$0xff]  ;;  %v1118_v56 = vld [vmem:[#allocation6 + $0x1970] sm:$0xff] }
 0x1fc   : > { %2810 = vmatpush1.msra.mxu1 %v1152_v57  ;;  %2742 = vmatprep.subr.mxu0 %v1085_v58  ;;  %v1184_v57 = vld [vmem:[#allocation6 + $0x1b80] sm:$0xff]  ;;  %v1117_v58 = vld [vmem:[#allocation6 + $0x1968] sm:$0xff] }
 0x1fd   : > { %2811 = vmatprep.subr.mxu1 %v1151_v59  ;;  %2743 = vmatpush1.msra.mxu0 %v1084_v60  ;;  %v1183_v59 = vld [vmem:[#allocation6 + $0x1b78] sm:$0xff]  ;;  %v1116_v60 = vld [vmem:[#allocation6 + $0x1960] sm:$0xff] }
 0x1fe   : > { %2812 = vmatpush1.msra.mxu1 %v1150_v61  ;;  %2744 = vmatprep.subr.mxu0 %v1083_v62  ;;  %v1182_v61 = vld [vmem:[#allocation6 + $0x1b70] sm:$0xff]  ;;  %v1115_v62 = vld [vmem:[#allocation6 + $0x1958] sm:$0xff] }
 0x1ff   : > { %2813 = vmatprep.subr.mxu1 %v1149_v63  ;;  %2745 = vmatpush1.msra.mxu0 %v1082_v0  ;;  %v1181_v63 = vld [vmem:[#allocation6 + $0x1b68] sm:$0xff]  ;;  %v1114_v0 = vld [vmem:[#allocation6 + $0x1950] sm:$0xff] }
 0x200   : > { %2814 = vmatpush1.msra.mxu1 %v1148_v1  ;;  %2746 = vmatprep.subr.mxu0 %v1081_v2  ;;  %v1180_v1 = vld [vmem:[#allocation6 + $0x1b60] sm:$0xff]  ;;  %v1113_v2 = vld [vmem:[#allocation6 + $0x1948] sm:$0xff] }
 0x201   : > { %2815 = vmatprep.subr.mxu1 %v1147_v3  ;;  %2747 = vmatpush1.msra.mxu0 %v1080_v4  ;;  %v1179_v3 = vld [vmem:[#allocation6 + $0x1b58] sm:$0xff]  ;;  %v1112_v4 = vld [vmem:[#allocation6 + $0x1940] sm:$0xff] }
 0x202   : > { %2816 = vmatpush1.msra.mxu1 %v1146_v5  ;;  %2748 = vmatprep.subr.mxu0 %v1079_v6  ;;  %v1178_v5 = vld [vmem:[#allocation6 + $0x1b50] sm:$0xff]  ;;  %v1111_v6 = vld [vmem:[#allocation6 + $0x1938] sm:$0xff] }
 0x203   : > { %2817 = vmatprep.subr.mxu1 %v1145_v7  ;;  %2749 = vmatpush1.msra.mxu0 %v1078_v8  ;;  %v1177_v7 = vld [vmem:[#allocation6 + $0x1b48] sm:$0xff]  ;;  %v1110_v8 = vld [vmem:[#allocation6 + $0x1930] sm:$0xff] }
 0x204   : > { %2818 = vmatpush1.msra.mxu1 %v1144_v9  ;;  %2750 = vmatprep.subr.mxu0 %v1077_v10  ;;  %v1176_v9 = vld [vmem:[#allocation6 + $0x1b40] sm:$0xff]  ;;  %v1109_v10 = vld [vmem:[#allocation6 + $0x1928] sm:$0xff] }
 0x205   : > { %2819 = vmatprep.subr.mxu1 %v1143_v11  ;;  %2751 = vmatpush1.msra.mxu0 %v1076_v12  ;;  %v1175_v11 = vld [vmem:[#allocation6 + $0x1b38] sm:$0xff]  ;;  %v1108_v12 = vld [vmem:[#allocation6 + $0x1920] sm:$0xff] }
 0x206   : > { %2820 = vmatpush1.msra.mxu1 %v1142_v13  ;;  %2752 = vmatprep.subr.mxu0 %v1075_v14  ;;  %v1174_v13 = vld [vmem:[#allocation6 + $0x1b30] sm:$0xff]  ;;  %v1107_v14 = vld [vmem:[#allocation6 + $0x1918] sm:$0xff] }
 0x207   : > { %2821 = vmatprep.subr.mxu1 %v1141_v15  ;;  %2753 = vmatpush1.msra.mxu0 %v1074_v16  ;;  %v1173_v15 = vld [vmem:[#allocation6 + $0x1b28] sm:$0xff]  ;;  %v1106_v16 = vld [vmem:[#allocation6 + $0x1910] sm:$0xff] }
 0x208   : > { %2822 = vmatpush1.msra.mxu1 %v1140_v17  ;;  %2754 = vmatprep.subr.mxu0 %v1073_v18  ;;  %v1172_v17 = vld [vmem:[#allocation6 + $0x1b20] sm:$0xff]  ;;  %v1105_v18 = vld [vmem:[#allocation6 + $0x1908] sm:$0xff] }
 0x209   : > { %2823 = vmatprep.subr.mxu1 %v1139_v19  ;;  %2755 = vmatpush1.msra.mxu0 %v1072_v20  ;;  %v1171_v19 = vld [vmem:[#allocation6 + $0x1b18] sm:$0xff]  ;;  %v1104_v20 = vld [vmem:[#allocation6 + $0x1900] sm:$0xff] }
 0x20a   : > { %2824 = vmatpush1.msra.mxu1 %v1138_v21  ;;  %2756 = vmatprep.subr.mxu0 %v1135_v22  ;;  %v280_v21 = vld [vmem:[%s6995_s20 + $0xc8] sm:$0xff]  ;;  %v1170_v22 = vld [vmem:[#allocation6 + $0x1b10] sm:$0xff] }
 0x20b   : > { %2825 = vmatprep.subr.mxu1 %v1137_v23  ;;  %2757 = vmatpush2.msra.mxu0 %v1134_v24  ;;  %v279_v23 = vld [vmem:[%s6995_s20 + $0xc0] sm:$0xff]  ;;  %v1169_v24 = vld [vmem:[#allocation6 + $0x1b08] sm:$0xff] }
 0x20c   : > { %2826 = vmatpush1.msra.mxu1 %v1136_v25  ;;  %2758 = vmatprep.subr.mxu0 %v1133_v26  ;;  %v1231_v25 = vld [vmem:[#allocation6 + $0x1cf8] sm:$0xff]  ;;  %v1168_v26 = vld [vmem:[#allocation6 + $0x1b00] sm:$0xff] }
 0x20d   : > { %2827 = vmatprep.subr.mxu1 %v1199_v27  ;;  %2759 = vmatpush2.msra.mxu0 %v1132_v28  ;;  %v282_v27 = vld [vmem:[%s6995_s20 + $0xd8] sm:$0xff] }
 0x20e   : > { %2828 = vmatpush2.msra.mxu1 %v1198_v29  ;;  %2760 = vmatprep.subr.mxu0 %v1131_v30  ;;  %v1230_v28 = vld [vmem:[#allocation6 + $0x1cf0] sm:$0xff]  ;;  %v281_v29 = vld [vmem:[%s6995_s20 + $0xd0] sm:$0xff] }
 0x20f   : > { %2829 = vmatprep.subr.mxu1 %v1197_v31  ;;  %2761 = vmatpush2.msra.mxu0 %v1130_v32  ;;  %v1229_v30 = vld [vmem:[#allocation6 + $0x1ce8] sm:$0xff]  ;;  %v1295_v31 = vld [vmem:[#allocation6 + $0x1ef8] sm:$0xff]  ;;  %v1228_v32 = vld [vmem:[#allocation6 + $0x1ce0] sm:$0xff] }
 0x210   : > { %2830 = vmatpush2.msra.mxu1 %v1196_v33  ;;  %2762 = vmatprep.subr.mxu0 %v1129_v34  ;;  %v1294_v33 = vld [vmem:[#allocation6 + $0x1ef0] sm:$0xff]  ;;  %v1227_v34 = vld [vmem:[#allocation6 + $0x1cd8] sm:$0xff] }
 0x211   : > { %2831 = vmatprep.subr.mxu1 %v1195_v35  ;;  %2763 = vmatpush2.msra.mxu0 %v1128_v36  ;;  %v1293_v35 = vld [vmem:[#allocation6 + $0x1ee8] sm:$0xff]  ;;  %v1226_v36 = vld [vmem:[#allocation6 + $0x1cd0] sm:$0xff] }
 0x212   : > { %2832 = vmatpush2.msra.mxu1 %v1194_v37  ;;  %2764 = vmatprep.subr.mxu0 %v1127_v38  ;;  %v1292_v37 = vld [vmem:[#allocation6 + $0x1ee0] sm:$0xff]  ;;  %v1225_v38 = vld [vmem:[#allocation6 + $0x1cc8] sm:$0xff] }
 0x213   : > { %2833 = vmatprep.subr.mxu1 %v1193_v39  ;;  %2765 = vmatpush2.msra.mxu0 %v1126_v40  ;;  %v1291_v39 = vld [vmem:[#allocation6 + $0x1ed8] sm:$0xff]  ;;  %v1224_v40 = vld [vmem:[#allocation6 + $0x1cc0] sm:$0xff] }
 0x214   : > { %2834 = vmatpush2.msra.mxu1 %v1192_v41  ;;  %2766 = vmatprep.subr.mxu0 %v1125_v42  ;;  %v1290_v41 = vld [vmem:[#allocation6 + $0x1ed0] sm:$0xff]  ;;  %v1223_v42 = vld [vmem:[#allocation6 + $0x1cb8] sm:$0xff] }
 0x215   : > { %2835 = vmatprep.subr.mxu1 %v1191_v43  ;;  %2767 = vmatpush2.msra.mxu0 %v1124_v44  ;;  %v1289_v43 = vld [vmem:[#allocation6 + $0x1ec8] sm:$0xff]  ;;  %v1222_v44 = vld [vmem:[#allocation6 + $0x1cb0] sm:$0xff] }
 0x216   : > { %2836 = vmatpush2.msra.mxu1 %v1190_v45  ;;  %2768 = vmatprep.subr.mxu0 %v1123_v46  ;;  %v1288_v45 = vld [vmem:[#allocation6 + $0x1ec0] sm:$0xff]  ;;  %v1221_v46 = vld [vmem:[#allocation6 + $0x1ca8] sm:$0xff] }
 0x217   : > { %2837 = vmatprep.subr.mxu1 %v1189_v47  ;;  %2769 = vmatpush2.msra.mxu0 %v1122_v48  ;;  %v1287_v47 = vld [vmem:[#allocation6 + $0x1eb8] sm:$0xff]  ;;  %v1220_v48 = vld [vmem:[#allocation6 + $0x1ca0] sm:$0xff] }
 0x218   : > { %2838 = vmatpush2.msra.mxu1 %v1188_v49  ;;  %2770 = vmatprep.subr.mxu0 %v1121_v50  ;;  %v1286_v49 = vld [vmem:[#allocation6 + $0x1eb0] sm:$0xff]  ;;  %v1219_v50 = vld [vmem:[#allocation6 + $0x1c98] sm:$0xff] }
 0x219   : > { %2839 = vmatprep.subr.mxu1 %v1187_v51  ;;  %2771 = vmatpush2.msra.mxu0 %v1120_v52  ;;  %v1285_v51 = vld [vmem:[#allocation6 + $0x1ea8] sm:$0xff]  ;;  %v1218_v52 = vld [vmem:[#allocation6 + $0x1c90] sm:$0xff] }
 0x21a   : > { %2840 = vmatpush2.msra.mxu1 %v1186_v53  ;;  %2772 = vmatprep.subr.mxu0 %v1119_v54  ;;  %v1284_v53 = vld [vmem:[#allocation6 + $0x1ea0] sm:$0xff]  ;;  %v1217_v54 = vld [vmem:[#allocation6 + $0x1c88] sm:$0xff] }
 0x21b   : > { %2841 = vmatprep.subr.mxu1 %v1185_v55  ;;  %2773 = vmatpush2.msra.mxu0 %v1118_v56  ;;  %v1283_v55 = vld [vmem:[#allocation6 + $0x1e98] sm:$0xff]  ;;  %v1216_v56 = vld [vmem:[#allocation6 + $0x1c80] sm:$0xff] }
 0x21c   : > { %2842 = vmatpush2.msra.mxu1 %v1184_v57  ;;  %2774 = vmatprep.subr.mxu0 %v1117_v58  ;;  %v1282_v57 = vld [vmem:[#allocation6 + $0x1e90] sm:$0xff]  ;;  %v1215_v58 = vld [vmem:[#allocation6 + $0x1c78] sm:$0xff] }
 0x21d   : > { %2843 = vmatprep.subr.mxu1 %v1183_v59  ;;  %2775 = vmatpush2.msra.mxu0 %v1116_v60  ;;  %v1281_v59 = vld [vmem:[#allocation6 + $0x1e88] sm:$0xff]  ;;  %v1214_v60 = vld [vmem:[#allocation6 + $0x1c70] sm:$0xff] }
 0x21e   : > { %2844 = vmatpush2.msra.mxu1 %v1182_v61  ;;  %2776 = vmatprep.subr.mxu0 %v1115_v62  ;;  %v1280_v61 = vld [vmem:[#allocation6 + $0x1e80] sm:$0xff]  ;;  %v1213_v62 = vld [vmem:[#allocation6 + $0x1c68] sm:$0xff] }
 0x21f   : > { %2845 = vmatprep.subr.mxu1 %v1181_v63  ;;  %2777 = vmatpush2.msra.mxu0 %v1114_v0  ;;  %v1279_v63 = vld [vmem:[#allocation6 + $0x1e78] sm:$0xff]  ;;  %v1212_v0 = vld [vmem:[#allocation6 + $0x1c60] sm:$0xff] }
 0x220   : > { %2846 = vmatpush2.msra.mxu1 %v1180_v1  ;;  %2778 = vmatprep.subr.mxu0 %v1113_v2  ;;  %v1278_v1 = vld [vmem:[#allocation6 + $0x1e70] sm:$0xff]  ;;  %v1211_v2 = vld [vmem:[#allocation6 + $0x1c58] sm:$0xff] }
 0x221   : > { %2847 = vmatprep.subr.mxu1 %v1179_v3  ;;  %2779 = vmatpush2.msra.mxu0 %v1112_v4  ;;  %v1277_v3 = vld [vmem:[#allocation6 + $0x1e68] sm:$0xff]  ;;  %v1210_v4 = vld [vmem:[#allocation6 + $0x1c50] sm:$0xff] }
 0x222   : > { %2848 = vmatpush2.msra.mxu1 %v1178_v5  ;;  %2780 = vmatprep.subr.mxu0 %v1111_v6  ;;  %v1276_v5 = vld [vmem:[#allocation6 + $0x1e60] sm:$0xff]  ;;  %v1209_v6 = vld [vmem:[#allocation6 + $0x1c48] sm:$0xff] }
 0x223   : > { %2849 = vmatprep.subr.mxu1 %v1177_v7  ;;  %2781 = vmatpush2.msra.mxu0 %v1110_v8  ;;  %v1275_v7 = vld [vmem:[#allocation6 + $0x1e58] sm:$0xff]  ;;  %v1208_v8 = vld [vmem:[#allocation6 + $0x1c40] sm:$0xff] }
 0x224   : > { %2850 = vmatpush2.msra.mxu1 %v1176_v9  ;;  %2782 = vmatprep.subr.mxu0 %v1109_v10  ;;  %v1274_v9 = vld [vmem:[#allocation6 + $0x1e50] sm:$0xff]  ;;  %v1207_v10 = vld [vmem:[#allocation6 + $0x1c38] sm:$0xff] }
 0x225   : > { %2851 = vmatprep.subr.mxu1 %v1175_v11  ;;  %2783 = vmatpush2.msra.mxu0 %v1108_v12  ;;  %v1273_v11 = vld [vmem:[#allocation6 + $0x1e48] sm:$0xff]  ;;  %v1206_v12 = vld [vmem:[#allocation6 + $0x1c30] sm:$0xff] }
 0x226   : > { %2852 = vmatpush2.msra.mxu1 %v1174_v13  ;;  %2784 = vmatprep.subr.mxu0 %v1107_v14  ;;  %v1272_v13 = vld [vmem:[#allocation6 + $0x1e40] sm:$0xff]  ;;  %v1205_v14 = vld [vmem:[#allocation6 + $0x1c28] sm:$0xff] }
 0x227   : > { %2853 = vmatprep.subr.mxu1 %v1173_v15  ;;  %2785 = vmatpush2.msra.mxu0 %v1106_v16  ;;  %v1271_v15 = vld [vmem:[#allocation6 + $0x1e38] sm:$0xff]  ;;  %v1204_v16 = vld [vmem:[#allocation6 + $0x1c20] sm:$0xff] }
 0x228   : > { %2854 = vmatpush2.msra.mxu1 %v1172_v17  ;;  %2786 = vmatprep.subr.mxu0 %v1105_v18  ;;  %v1270_v17 = vld [vmem:[#allocation6 + $0x1e30] sm:$0xff]  ;;  %v1203_v18 = vld [vmem:[#allocation6 + $0x1c18] sm:$0xff] }
 0x229   : > { %2855 = vmatprep.subr.mxu1 %v1171_v19  ;;  %2787 = vmatpush2.msra.mxu0 %v1104_v20  ;;  %v1269_v19 = vld [vmem:[#allocation6 + $0x1e28] sm:$0xff]  ;;  %v1202_v20 = vld [vmem:[#allocation6 + $0x1c10] sm:$0xff] }
 0x22a   : > { %2788 = vmatprep.mubr.f32.mxu0 %v280_v21  ;;  %2856 = vmatpush2.msra.mxu1 %v1170_v22  ;;  %v1268_v21 = vld [vmem:[#allocation6 + $0x1e20] sm:$0xff]  ;;  %v1201_v22 = vld [vmem:[#allocation6 + $0x1c08] sm:$0xff] }
 0x22b   : > { %2789 = vmatmul.mubr.f32.vlgmr.msra.gmra.mxu0 %v279_v23  ;;  %2857 = vmatprep.subr.mxu1 %v1169_v24  ;;  %v1267_v23 = vld [vmem:[#allocation6 + $0x1e18] sm:$0xff]  ;;  %v1200_v24 = vld [vmem:[#allocation6 + $0x1c00] sm:$0xff] }
 0x22c   : > { %2866 = vmatprep.subr.mxu0 %v1231_v25  ;;  %2858 = vmatpush2.msra.mxu1 %v1168_v26  ;;  %v1266_v25 = vld [vmem:[#allocation6 + $0x1e10] sm:$0xff]  ;;  %v1263_v26 = vld [vmem:[#allocation6 + $0x1df8] sm:$0xff] }
 0x22d   : > { %2859 = vmatprep.mubr.f32.mxu1 %v282_v27  ;;  %2867 = vmatpush1.msra.mxu0 %v1230_v28  ;;  %v1265_v27 = vld [vmem:[#allocation6 + $0x1e08] sm:$0xff]  ;;  %v1262_v28 = vld [vmem:[#allocation6 + $0x1df0] sm:$0xff] }
 0x22e   : > { %2860 = vmatmul.mubr.f32.vlgmr.msra.gmra.mxu1 %v281_v29  ;;  %2868 = vmatprep.subr.mxu0 %v1229_v30  ;;  %v1264_v29 = vld [vmem:[#allocation6 + $0x1e00] sm:$0xff]  ;;  %v1261_v30 = vld [vmem:[#allocation6 + $0x1de8] sm:$0xff] }
 0x22f   : > { %2937 = vmatprep.subr.mxu1 %v1295_v31  ;;  %2869 = vmatpush1.msra.mxu0 %v1228_v32  ;;  %v1327_v31 = vld [vmem:[#allocation6 + $0x1ff8] sm:$0xff]  ;;  %v1260_v32 = vld [vmem:[#allocation6 + $0x1de0] sm:$0xff] }
 0x230   : > { %2938 = vmatpush1.msra.mxu1 %v1294_v33  ;;  %2870 = vmatprep.subr.mxu0 %v1227_v34  ;;  %v1326_v33 = vld [vmem:[#allocation6 + $0x1ff0] sm:$0xff]  ;;  %v1259_v34 = vld [vmem:[#allocation6 + $0x1dd8] sm:$0xff] }
 0x231   : > { %2939 = vmatprep.subr.mxu1 %v1293_v35  ;;  %2871 = vmatpush1.msra.mxu0 %v1226_v36  ;;  %v1325_v35 = vld [vmem:[#allocation6 + $0x1fe8] sm:$0xff]  ;;  %v1258_v36 = vld [vmem:[#allocation6 + $0x1dd0] sm:$0xff] }
 0x232   : > { %2940 = vmatpush1.msra.mxu1 %v1292_v37  ;;  %2872 = vmatprep.subr.mxu0 %v1225_v38  ;;  %v1324_v37 = vld [vmem:[#allocation6 + $0x1fe0] sm:$0xff]  ;;  %v1257_v38 = vld [vmem:[#allocation6 + $0x1dc8] sm:$0xff] }
 0x233   : > { %2941 = vmatprep.subr.mxu1 %v1291_v39  ;;  %2873 = vmatpush1.msra.mxu0 %v1224_v40  ;;  %v1323_v39 = vld [vmem:[#allocation6 + $0x1fd8] sm:$0xff]  ;;  %v1256_v40 = vld [vmem:[#allocation6 + $0x1dc0] sm:$0xff] }
 0x234   : > { %2942 = vmatpush1.msra.mxu1 %v1290_v41  ;;  %2874 = vmatprep.subr.mxu0 %v1223_v42  ;;  %v1322_v41 = vld [vmem:[#allocation6 + $0x1fd0] sm:$0xff]  ;;  %v1255_v42 = vld [vmem:[#allocation6 + $0x1db8] sm:$0xff] }
 0x235   : > { %2943 = vmatprep.subr.mxu1 %v1289_v43  ;;  %2875 = vmatpush1.msra.mxu0 %v1222_v44  ;;  %v1321_v43 = vld [vmem:[#allocation6 + $0x1fc8] sm:$0xff]  ;;  %v1254_v44 = vld [vmem:[#allocation6 + $0x1db0] sm:$0xff] }
 0x236   : > { %2944 = vmatpush1.msra.mxu1 %v1288_v45  ;;  %2876 = vmatprep.subr.mxu0 %v1221_v46  ;;  %v1320_v45 = vld [vmem:[#allocation6 + $0x1fc0] sm:$0xff]  ;;  %v1253_v46 = vld [vmem:[#allocation6 + $0x1da8] sm:$0xff] }
 0x237   : > { %2945 = vmatprep.subr.mxu1 %v1287_v47  ;;  %2877 = vmatpush1.msra.mxu0 %v1220_v48  ;;  %v1319_v47 = vld [vmem:[#allocation6 + $0x1fb8] sm:$0xff]  ;;  %v1252_v48 = vld [vmem:[#allocation6 + $0x1da0] sm:$0xff] }
 0x238   : > { %2946 = vmatpush1.msra.mxu1 %v1286_v49  ;;  %2878 = vmatprep.subr.mxu0 %v1219_v50  ;;  %v1318_v49 = vld [vmem:[#allocation6 + $0x1fb0] sm:$0xff]  ;;  %v1251_v50 = vld [vmem:[#allocation6 + $0x1d98] sm:$0xff] }
 0x239   : > { %2947 = vmatprep.subr.mxu1 %v1285_v51  ;;  %2879 = vmatpush1.msra.mxu0 %v1218_v52  ;;  %v1317_v51 = vld [vmem:[#allocation6 + $0x1fa8] sm:$0xff]  ;;  %v1250_v52 = vld [vmem:[#allocation6 + $0x1d90] sm:$0xff] }
 0x23a   : > { %2948 = vmatpush1.msra.mxu1 %v1284_v53  ;;  %2880 = vmatprep.subr.mxu0 %v1217_v54  ;;  %v1316_v53 = vld [vmem:[#allocation6 + $0x1fa0] sm:$0xff]  ;;  %v1249_v54 = vld [vmem:[#allocation6 + $0x1d88] sm:$0xff] }
 0x23b   : > { %2949 = vmatprep.subr.mxu1 %v1283_v55  ;;  %2881 = vmatpush1.msra.mxu0 %v1216_v56  ;;  %v1315_v55 = vld [vmem:[#allocation6 + $0x1f98] sm:$0xff]  ;;  %v1248_v56 = vld [vmem:[#allocation6 + $0x1d80] sm:$0xff] }
 0x23c   : > { %2950 = vmatpush1.msra.mxu1 %v1282_v57  ;;  %2882 = vmatprep.subr.mxu0 %v1215_v58  ;;  %v1314_v57 = vld [vmem:[#allocation6 + $0x1f90] sm:$0xff]  ;;  %v1247_v58 = vld [vmem:[#allocation6 + $0x1d78] sm:$0xff] }
 0x23d   : > { %2951 = vmatprep.subr.mxu1 %v1281_v59  ;;  %2883 = vmatpush1.msra.mxu0 %v1214_v60  ;;  %v1313_v59 = vld [vmem:[#allocation6 + $0x1f88] sm:$0xff]  ;;  %v1246_v60 = vld [vmem:[#allocation6 + $0x1d70] sm:$0xff] }
 0x23e   : > { %2952 = vmatpush1.msra.mxu1 %v1280_v61  ;;  %2884 = vmatprep.subr.mxu0 %v1213_v62  ;;  %v1312_v61 = vld [vmem:[#allocation6 + $0x1f80] sm:$0xff]  ;;  %v1245_v62 = vld [vmem:[#allocation6 + $0x1d68] sm:$0xff] }
 0x23f   : > { %2953 = vmatprep.subr.mxu1 %v1279_v63  ;;  %2885 = vmatpush1.msra.mxu0 %v1212_v0  ;;  %v1311_v63 = vld [vmem:[#allocation6 + $0x1f78] sm:$0xff]  ;;  %v1244_v0 = vld [vmem:[#allocation6 + $0x1d60] sm:$0xff] }
 0x240   : > { %2954 = vmatpush1.msra.mxu1 %v1278_v1  ;;  %2886 = vmatprep.subr.mxu0 %v1211_v2  ;;  %v1310_v1 = vld [vmem:[#allocation6 + $0x1f70] sm:$0xff]  ;;  %v1243_v2 = vld [vmem:[#allocation6 + $0x1d58] sm:$0xff] }
 0x241   : > { %2955 = vmatprep.subr.mxu1 %v1277_v3  ;;  %2887 = vmatpush1.msra.mxu0 %v1210_v4  ;;  %v1309_v3 = vld [vmem:[#allocation6 + $0x1f68] sm:$0xff]  ;;  %v1242_v4 = vld [vmem:[#allocation6 + $0x1d50] sm:$0xff] }
 0x242   : > { %2956 = vmatpush1.msra.mxu1 %v1276_v5  ;;  %2888 = vmatprep.subr.mxu0 %v1209_v6  ;;  %v1308_v5 = vld [vmem:[#allocation6 + $0x1f60] sm:$0xff]  ;;  %v1241_v6 = vld [vmem:[#allocation6 + $0x1d48] sm:$0xff] }
 0x243   : > { %2957 = vmatprep.subr.mxu1 %v1275_v7  ;;  %2889 = vmatpush1.msra.mxu0 %v1208_v8  ;;  %v1307_v7 = vld [vmem:[#allocation6 + $0x1f58] sm:$0xff]  ;;  %v1240_v8 = vld [vmem:[#allocation6 + $0x1d40] sm:$0xff] }
 0x244   : > { %2958 = vmatpush1.msra.mxu1 %v1274_v9  ;;  %2890 = vmatprep.subr.mxu0 %v1207_v10  ;;  %v1306_v9 = vld [vmem:[#allocation6 + $0x1f50] sm:$0xff]  ;;  %v1239_v10 = vld [vmem:[#allocation6 + $0x1d38] sm:$0xff] }
 0x245   : > { %2959 = vmatprep.subr.mxu1 %v1273_v11  ;;  %2891 = vmatpush1.msra.mxu0 %v1206_v12  ;;  %v1305_v11 = vld [vmem:[#allocation6 + $0x1f48] sm:$0xff]  ;;  %v1238_v12 = vld [vmem:[#allocation6 + $0x1d30] sm:$0xff] }
 0x246   : > { %2960 = vmatpush1.msra.mxu1 %v1272_v13  ;;  %2892 = vmatprep.subr.mxu0 %v1205_v14  ;;  %v1304_v13 = vld [vmem:[#allocation6 + $0x1f40] sm:$0xff]  ;;  %v1237_v14 = vld [vmem:[#allocation6 + $0x1d28] sm:$0xff] }
 0x247   : > { %2961 = vmatprep.subr.mxu1 %v1271_v15  ;;  %2893 = vmatpush1.msra.mxu0 %v1204_v16  ;;  %v1303_v15 = vld [vmem:[#allocation6 + $0x1f38] sm:$0xff]  ;;  %v1236_v16 = vld [vmem:[#allocation6 + $0x1d20] sm:$0xff] }
 0x248   : > { %2962 = vmatpush1.msra.mxu1 %v1270_v17  ;;  %2894 = vmatprep.subr.mxu0 %v1203_v18  ;;  %v1302_v17 = vld [vmem:[#allocation6 + $0x1f30] sm:$0xff]  ;;  %v1235_v18 = vld [vmem:[#allocation6 + $0x1d18] sm:$0xff] }
 0x249   : > { %2963 = vmatprep.subr.mxu1 %v1269_v19  ;;  %2895 = vmatpush1.msra.mxu0 %v1202_v20  ;;  %v1301_v19 = vld [vmem:[#allocation6 + $0x1f28] sm:$0xff]  ;;  %v1234_v20 = vld [vmem:[#allocation6 + $0x1d10] sm:$0xff] }
 0x24a   : > { %2964 = vmatpush1.msra.mxu1 %v1268_v21  ;;  %2896 = vmatprep.subr.mxu0 %v1201_v22  ;;  %v1300_v21 = vld [vmem:[#allocation6 + $0x1f20] sm:$0xff]  ;;  %v1233_v22 = vld [vmem:[#allocation6 + $0x1d08] sm:$0xff] }
 0x24b   : > { %2965 = vmatprep.subr.mxu1 %v1267_v23  ;;  %2897 = vmatpush1.msra.mxu0 %v1200_v24  ;;  %v1299_v23 = vld [vmem:[#allocation6 + $0x1f18] sm:$0xff]  ;;  %v1232_v24 = vld [vmem:[#allocation6 + $0x1d00] sm:$0xff] }
 0x24c   : > { %2966 = vmatpush1.msra.mxu1 %v1266_v25  ;;  %2898 = vmatprep.subr.mxu0 %v1263_v26  ;;  %v284_v25 = vld [vmem:[%s6995_s20 + $0xe8] sm:$0xff]  ;;  %v1298_v26 = vld [vmem:[#allocation6 + $0x1f10] sm:$0xff] }
 0x24d   : > { %2967 = vmatprep.subr.mxu1 %v1265_v27  ;;  %2899 = vmatpush2.msra.mxu0 %v1262_v28  ;;  %v283_v27 = vld [vmem:[%s6995_s20 + $0xe0] sm:$0xff]  ;;  %v1297_v28 = vld [vmem:[#allocation6 + $0x1f08] sm:$0xff] }
 0x24e   : > { %2968 = vmatpush1.msra.mxu1 %v1264_v29  ;;  %2900 = vmatprep.subr.mxu0 %v1261_v30  ;;  %v1359_v29 = vld [vmem:[#allocation6 + $0x20f8] sm:$0xff]  ;;  %v1296_v30 = vld [vmem:[#allocation6 + $0x1f00] sm:$0xff] }
 0x24f   : > { %2969 = vmatprep.subr.mxu1 %v1327_v31  ;;  %2901 = vmatpush2.msra.mxu0 %v1260_v32  ;;  %v286_v31 = vld [vmem:[%s6995_s20 + $0xf8] sm:$0xff] }
 0x250   : > { %2970 = vmatpush2.msra.mxu1 %v1326_v33  ;;  %2902 = vmatprep.subr.mxu0 %v1259_v34  ;;  %v1358_v32 = vld [vmem:[#allocation6 + $0x20f0] sm:$0xff]  ;;  %v285_v33 = vld [vmem:[%s6995_s20 + $0xf0] sm:$0xff] }
 0x251   : > { %2971 = vmatprep.subr.mxu1 %v1325_v35  ;;  %2903 = vmatpush2.msra.mxu0 %v1258_v36  ;;  %v1357_v34 = vld [vmem:[#allocation6 + $0x20e8] sm:$0xff]  ;;  %v1423_v35 = vld [vmem:[#allocation6 + $0x22f8] sm:$0xff]  ;;  %v1356_v36 = vld [vmem:[#allocation6 + $0x20e0] sm:$0xff] }
 0x252   : > { %2972 = vmatpush2.msra.mxu1 %v1324_v37  ;;  %2904 = vmatprep.subr.mxu0 %v1257_v38  ;;  %v1422_v37 = vld [vmem:[#allocation6 + $0x22f0] sm:$0xff]  ;;  %v1355_v38 = vld [vmem:[#allocation6 + $0x20d8] sm:$0xff] }
 0x253   : > { %2973 = vmatprep.subr.mxu1 %v1323_v39  ;;  %2905 = vmatpush2.msra.mxu0 %v1256_v40  ;;  %v1421_v39 = vld [vmem:[#allocation6 + $0x22e8] sm:$0xff]  ;;  %v1354_v40 = vld [vmem:[#allocation6 + $0x20d0] sm:$0xff] }
 0x254   : > { %2974 = vmatpush2.msra.mxu1 %v1322_v41  ;;  %2906 = vmatprep.subr.mxu0 %v1255_v42  ;;  %v1420_v41 = vld [vmem:[#allocation6 + $0x22e0] sm:$0xff]  ;;  %v1353_v42 = vld [vmem:[#allocation6 + $0x20c8] sm:$0xff] }
 0x255   : > { %2975 = vmatprep.subr.mxu1 %v1321_v43  ;;  %2907 = vmatpush2.msra.mxu0 %v1254_v44  ;;  %v1419_v43 = vld [vmem:[#allocation6 + $0x22d8] sm:$0xff]  ;;  %v1352_v44 = vld [vmem:[#allocation6 + $0x20c0] sm:$0xff] }
 0x256   : > { %2976 = vmatpush2.msra.mxu1 %v1320_v45  ;;  %2908 = vmatprep.subr.mxu0 %v1253_v46  ;;  %v1418_v45 = vld [vmem:[#allocation6 + $0x22d0] sm:$0xff]  ;;  %v1351_v46 = vld [vmem:[#allocation6 + $0x20b8] sm:$0xff] }
 0x257   : > { %2977 = vmatprep.subr.mxu1 %v1319_v47  ;;  %2909 = vmatpush2.msra.mxu0 %v1252_v48  ;;  %v1417_v47 = vld [vmem:[#allocation6 + $0x22c8] sm:$0xff]  ;;  %v1350_v48 = vld [vmem:[#allocation6 + $0x20b0] sm:$0xff] }
 0x258   : > { %2978 = vmatpush2.msra.mxu1 %v1318_v49  ;;  %2910 = vmatprep.subr.mxu0 %v1251_v50  ;;  %v1416_v49 = vld [vmem:[#allocation6 + $0x22c0] sm:$0xff]  ;;  %v1349_v50 = vld [vmem:[#allocation6 + $0x20a8] sm:$0xff] }
 0x259   : > { %2979 = vmatprep.subr.mxu1 %v1317_v51  ;;  %2911 = vmatpush2.msra.mxu0 %v1250_v52  ;;  %v1415_v51 = vld [vmem:[#allocation6 + $0x22b8] sm:$0xff]  ;;  %v1348_v52 = vld [vmem:[#allocation6 + $0x20a0] sm:$0xff] }
 0x25a   : > { %2980 = vmatpush2.msra.mxu1 %v1316_v53  ;;  %2912 = vmatprep.subr.mxu0 %v1249_v54  ;;  %v1414_v53 = vld [vmem:[#allocation6 + $0x22b0] sm:$0xff]  ;;  %v1347_v54 = vld [vmem:[#allocation6 + $0x2098] sm:$0xff] }
 0x25b   : > { %2981 = vmatprep.subr.mxu1 %v1315_v55  ;;  %2913 = vmatpush2.msra.mxu0 %v1248_v56  ;;  %v1413_v55 = vld [vmem:[#allocation6 + $0x22a8] sm:$0xff]  ;;  %v1346_v56 = vld [vmem:[#allocation6 + $0x2090] sm:$0xff] }
 0x25c   : > { %2982 = vmatpush2.msra.mxu1 %v1314_v57  ;;  %2914 = vmatprep.subr.mxu0 %v1247_v58  ;;  %v1412_v57 = vld [vmem:[#allocation6 + $0x22a0] sm:$0xff]  ;;  %v1345_v58 = vld [vmem:[#allocation6 + $0x2088] sm:$0xff] }
 0x25d   : > { %2983 = vmatprep.subr.mxu1 %v1313_v59  ;;  %2915 = vmatpush2.msra.mxu0 %v1246_v60  ;;  %v1411_v59 = vld [vmem:[#allocation6 + $0x2298] sm:$0xff]  ;;  %v1344_v60 = vld [vmem:[#allocation6 + $0x2080] sm:$0xff] }
 0x25e   : > { %2984 = vmatpush2.msra.mxu1 %v1312_v61  ;;  %2916 = vmatprep.subr.mxu0 %v1245_v62  ;;  %v1410_v61 = vld [vmem:[#allocation6 + $0x2290] sm:$0xff]  ;;  %v1343_v62 = vld [vmem:[#allocation6 + $0x2078] sm:$0xff] }
 0x25f   : > { %2985 = vmatprep.subr.mxu1 %v1311_v63  ;;  %2917 = vmatpush2.msra.mxu0 %v1244_v0  ;;  %v1409_v63 = vld [vmem:[#allocation6 + $0x2288] sm:$0xff]  ;;  %v1342_v0 = vld [vmem:[#allocation6 + $0x2070] sm:$0xff] }
 0x260   : > { %2986 = vmatpush2.msra.mxu1 %v1310_v1  ;;  %2918 = vmatprep.subr.mxu0 %v1243_v2  ;;  %v1408_v1 = vld [vmem:[#allocation6 + $0x2280] sm:$0xff]  ;;  %v1341_v2 = vld [vmem:[#allocation6 + $0x2068] sm:$0xff] }
 0x261   : > { %2987 = vmatprep.subr.mxu1 %v1309_v3  ;;  %2919 = vmatpush2.msra.mxu0 %v1242_v4  ;;  %v1407_v3 = vld [vmem:[#allocation6 + $0x2278] sm:$0xff]  ;;  %v1340_v4 = vld [vmem:[#allocation6 + $0x2060] sm:$0xff] }
 0x262   : > { %2988 = vmatpush2.msra.mxu1 %v1308_v5  ;;  %2920 = vmatprep.subr.mxu0 %v1241_v6  ;;  %v1406_v5 = vld [vmem:[#allocation6 + $0x2270] sm:$0xff]  ;;  %v1339_v6 = vld [vmem:[#allocation6 + $0x2058] sm:$0xff] }
 0x263   : > { %2989 = vmatprep.subr.mxu1 %v1307_v7  ;;  %2921 = vmatpush2.msra.mxu0 %v1240_v8  ;;  %v1405_v7 = vld [vmem:[#allocation6 + $0x2268] sm:$0xff]  ;;  %v1338_v8 = vld [vmem:[#allocation6 + $0x2050] sm:$0xff] }
 0x264   : > { %2990 = vmatpush2.msra.mxu1 %v1306_v9  ;;  %2922 = vmatprep.subr.mxu0 %v1239_v10  ;;  %v1404_v9 = vld [vmem:[#allocation6 + $0x2260] sm:$0xff]  ;;  %v1337_v10 = vld [vmem:[#allocation6 + $0x2048] sm:$0xff] }
 0x265   : > { %2991 = vmatprep.subr.mxu1 %v1305_v11  ;;  %2923 = vmatpush2.msra.mxu0 %v1238_v12  ;;  %v1403_v11 = vld [vmem:[#allocation6 + $0x2258] sm:$0xff]  ;;  %v1336_v12 = vld [vmem:[#allocation6 + $0x2040] sm:$0xff] }
 0x266   : > { %2992 = vmatpush2.msra.mxu1 %v1304_v13  ;;  %2924 = vmatprep.subr.mxu0 %v1237_v14  ;;  %v1402_v13 = vld [vmem:[#allocation6 + $0x2250] sm:$0xff]  ;;  %v1335_v14 = vld [vmem:[#allocation6 + $0x2038] sm:$0xff] }
 0x267   : > { %2993 = vmatprep.subr.mxu1 %v1303_v15  ;;  %2925 = vmatpush2.msra.mxu0 %v1236_v16  ;;  %v1401_v15 = vld [vmem:[#allocation6 + $0x2248] sm:$0xff]  ;;  %v1334_v16 = vld [vmem:[#allocation6 + $0x2030] sm:$0xff] }
 0x268   : > { %2994 = vmatpush2.msra.mxu1 %v1302_v17  ;;  %2926 = vmatprep.subr.mxu0 %v1235_v18  ;;  %v1400_v17 = vld [vmem:[#allocation6 + $0x2240] sm:$0xff]  ;;  %v1333_v18 = vld [vmem:[#allocation6 + $0x2028] sm:$0xff] }
 0x269   : > { %2995 = vmatprep.subr.mxu1 %v1301_v19  ;;  %2927 = vmatpush2.msra.mxu0 %v1234_v20  ;;  %v1399_v19 = vld [vmem:[#allocation6 + $0x2238] sm:$0xff]  ;;  %v1332_v20 = vld [vmem:[#allocation6 + $0x2020] sm:$0xff] }
 0x26a   : > { %2996 = vmatpush2.msra.mxu1 %v1300_v21  ;;  %2928 = vmatprep.subr.mxu0 %v1233_v22  ;;  %v1398_v21 = vld [vmem:[#allocation6 + $0x2230] sm:$0xff]  ;;  %v1331_v22 = vld [vmem:[#allocation6 + $0x2018] sm:$0xff] }
 0x26b   : > { %2997 = vmatprep.subr.mxu1 %v1299_v23  ;;  %2929 = vmatpush2.msra.mxu0 %v1232_v24  ;;  %v1397_v23 = vld [vmem:[#allocation6 + $0x2228] sm:$0xff]  ;;  %v1330_v24 = vld [vmem:[#allocation6 + $0x2010] sm:$0xff] }
 0x26c   : > { %2930 = vmatprep.mubr.f32.mxu0 %v284_v25  ;;  %2998 = vmatpush2.msra.mxu1 %v1298_v26  ;;  %v1396_v25 = vld [vmem:[#allocation6 + $0x2220] sm:$0xff]  ;;  %v1329_v26 = vld [vmem:[#allocation6 + $0x2008] sm:$0xff] }
 0x26d   : > { %2931 = vmatmul.mubr.f32.vlgmr.msra.gmra.mxu0 %v283_v27  ;;  %2999 = vmatprep.subr.mxu1 %v1297_v28  ;;  %v1395_v27 = vld [vmem:[#allocation6 + $0x2218] sm:$0xff]  ;;  %v1328_v28 = vld [vmem:[#allocation6 + $0x2000] sm:$0xff] }
 0x26e   : > { %3008 = vmatprep.subr.mxu0 %v1359_v29  ;;  %3000 = vmatpush2.msra.mxu1 %v1296_v30  ;;  %v1394_v29 = vld [vmem:[#allocation6 + $0x2210] sm:$0xff]  ;;  %v1391_v30 = vld [vmem:[#allocation6 + $0x21f8] sm:$0xff] }
 0x26f   : > { %3001 = vmatprep.mubr.f32.mxu1 %v286_v31  ;;  %3009 = vmatpush1.msra.mxu0 %v1358_v32  ;;  %v1393_v31 = vld [vmem:[#allocation6 + $0x2208] sm:$0xff]  ;;  %v1390_v32 = vld [vmem:[#allocation6 + $0x21f0] sm:$0xff] }
 0x270   : > { %3002 = vmatmul.mubr.f32.vlgmr.msra.gmra.mxu1 %v285_v33  ;;  %3010 = vmatprep.subr.mxu0 %v1357_v34  ;;  %v1392_v33 = vld [vmem:[#allocation6 + $0x2200] sm:$0xff]  ;;  %v1389_v34 = vld [vmem:[#allocation6 + $0x21e8] sm:$0xff] }
 0x271   : > { %3079 = vmatprep.subr.mxu1 %v1423_v35  ;;  %3011 = vmatpush1.msra.mxu0 %v1356_v36  ;;  %v1455_v35 = vld [vmem:[#allocation6 + $0x23f8] sm:$0xff]  ;;  %v1388_v36 = vld [vmem:[#allocation6 + $0x21e0] sm:$0xff] }
 0x272   : > { %3080 = vmatpush1.msra.mxu1 %v1422_v37  ;;  %3012 = vmatprep.subr.mxu0 %v1355_v38  ;;  %v1454_v37 = vld [vmem:[#allocation6 + $0x23f0] sm:$0xff]  ;;  %v1387_v38 = vld [vmem:[#allocation6 + $0x21d8] sm:$0xff] }
 0x273   : > { %3081 = vmatprep.subr.mxu1 %v1421_v39  ;;  %3013 = vmatpush1.msra.mxu0 %v1354_v40  ;;  %v1453_v39 = vld [vmem:[#allocation6 + $0x23e8] sm:$0xff]  ;;  %v1386_v40 = vld [vmem:[#allocation6 + $0x21d0] sm:$0xff] }
 0x274   : > { %3082 = vmatpush1.msra.mxu1 %v1420_v41  ;;  %3014 = vmatprep.subr.mxu0 %v1353_v42  ;;  %v1452_v41 = vld [vmem:[#allocation6 + $0x23e0] sm:$0xff]  ;;  %v1385_v42 = vld [vmem:[#allocation6 + $0x21c8] sm:$0xff] }
 0x275   : > { %3083 = vmatprep.subr.mxu1 %v1419_v43  ;;  %3015 = vmatpush1.msra.mxu0 %v1352_v44  ;;  %v1451_v43 = vld [vmem:[#allocation6 + $0x23d8] sm:$0xff]  ;;  %v1384_v44 = vld [vmem:[#allocation6 + $0x21c0] sm:$0xff] }
 0x276   : > { %3084 = vmatpush1.msra.mxu1 %v1418_v45  ;;  %3016 = vmatprep.subr.mxu0 %v1351_v46  ;;  %v1450_v45 = vld [vmem:[#allocation6 + $0x23d0] sm:$0xff]  ;;  %v1383_v46 = vld [vmem:[#allocation6 + $0x21b8] sm:$0xff] }
 0x277   : > { %3085 = vmatprep.subr.mxu1 %v1417_v47  ;;  %3017 = vmatpush1.msra.mxu0 %v1350_v48  ;;  %v1449_v47 = vld [vmem:[#allocation6 + $0x23c8] sm:$0xff]  ;;  %v1382_v48 = vld [vmem:[#allocation6 + $0x21b0] sm:$0xff] }
 0x278   : > { %3086 = vmatpush1.msra.mxu1 %v1416_v49  ;;  %3018 = vmatprep.subr.mxu0 %v1349_v50  ;;  %v1448_v49 = vld [vmem:[#allocation6 + $0x23c0] sm:$0xff]  ;;  %v1381_v50 = vld [vmem:[#allocation6 + $0x21a8] sm:$0xff] }
 0x279   : > { %3087 = vmatprep.subr.mxu1 %v1415_v51  ;;  %3019 = vmatpush1.msra.mxu0 %v1348_v52  ;;  %v1447_v51 = vld [vmem:[#allocation6 + $0x23b8] sm:$0xff]  ;;  %v1380_v52 = vld [vmem:[#allocation6 + $0x21a0] sm:$0xff] }
 0x27a   : > { %3088 = vmatpush1.msra.mxu1 %v1414_v53  ;;  %3020 = vmatprep.subr.mxu0 %v1347_v54  ;;  %v1446_v53 = vld [vmem:[#allocation6 + $0x23b0] sm:$0xff]  ;;  %v1379_v54 = vld [vmem:[#allocation6 + $0x2198] sm:$0xff] }
 0x27b   : > { %3089 = vmatprep.subr.mxu1 %v1413_v55  ;;  %3021 = vmatpush1.msra.mxu0 %v1346_v56  ;;  %v1445_v55 = vld [vmem:[#allocation6 + $0x23a8] sm:$0xff]  ;;  %v1378_v56 = vld [vmem:[#allocation6 + $0x2190] sm:$0xff] }
 0x27c   : > { %3090 = vmatpush1.msra.mxu1 %v1412_v57  ;;  %3022 = vmatprep.subr.mxu0 %v1345_v58  ;;  %v1444_v57 = vld [vmem:[#allocation6 + $0x23a0] sm:$0xff]  ;;  %v1377_v58 = vld [vmem:[#allocation6 + $0x2188] sm:$0xff] }
 0x27d   : > { %3091 = vmatprep.subr.mxu1 %v1411_v59  ;;  %3023 = vmatpush1.msra.mxu0 %v1344_v60  ;;  %v1443_v59 = vld [vmem:[#allocation6 + $0x2398] sm:$0xff]  ;;  %v1376_v60 = vld [vmem:[#allocation6 + $0x2180] sm:$0xff] }
 0x27e   : > { %3092 = vmatpush1.msra.mxu1 %v1410_v61  ;;  %3024 = vmatprep.subr.mxu0 %v1343_v62  ;;  %v1442_v61 = vld [vmem:[#allocation6 + $0x2390] sm:$0xff]  ;;  %v1375_v62 = vld [vmem:[#allocation6 + $0x2178] sm:$0xff] }
 0x27f   : > { %3093 = vmatprep.subr.mxu1 %v1409_v63  ;;  %3025 = vmatpush1.msra.mxu0 %v1342_v0  ;;  %v1441_v63 = vld [vmem:[#allocation6 + $0x2388] sm:$0xff]  ;;  %v1374_v0 = vld [vmem:[#allocation6 + $0x2170] sm:$0xff] }
 0x280   : > { %3094 = vmatpush1.msra.mxu1 %v1408_v1  ;;  %3026 = vmatprep.subr.mxu0 %v1341_v2  ;;  %v1440_v1 = vld [vmem:[#allocation6 + $0x2380] sm:$0xff]  ;;  %v1373_v2 = vld [vmem:[#allocation6 + $0x2168] sm:$0xff] }
 0x281   : > { %3095 = vmatprep.subr.mxu1 %v1407_v3  ;;  %3027 = vmatpush1.msra.mxu0 %v1340_v4  ;;  %v1439_v3 = vld [vmem:[#allocation6 + $0x2378] sm:$0xff]  ;;  %v1372_v4 = vld [vmem:[#allocation6 + $0x2160] sm:$0xff] }
 0x282   : > { %3096 = vmatpush1.msra.mxu1 %v1406_v5  ;;  %3028 = vmatprep.subr.mxu0 %v1339_v6  ;;  %v1438_v5 = vld [vmem:[#allocation6 + $0x2370] sm:$0xff]  ;;  %v1371_v6 = vld [vmem:[#allocation6 + $0x2158] sm:$0xff] }
 0x283   : > { %3097 = vmatprep.subr.mxu1 %v1405_v7  ;;  %3029 = vmatpush1.msra.mxu0 %v1338_v8  ;;  %v1437_v7 = vld [vmem:[#allocation6 + $0x2368] sm:$0xff]  ;;  %v1370_v8 = vld [vmem:[#allocation6 + $0x2150] sm:$0xff] }
 0x284   : > { %3098 = vmatpush1.msra.mxu1 %v1404_v9  ;;  %3030 = vmatprep.subr.mxu0 %v1337_v10  ;;  %v1436_v9 = vld [vmem:[#allocation6 + $0x2360] sm:$0xff]  ;;  %v1369_v10 = vld [vmem:[#allocation6 + $0x2148] sm:$0xff] }
 0x285   : > { %3099 = vmatprep.subr.mxu1 %v1403_v11  ;;  %3031 = vmatpush1.msra.mxu0 %v1336_v12  ;;  %v1435_v11 = vld [vmem:[#allocation6 + $0x2358] sm:$0xff]  ;;  %v1368_v12 = vld [vmem:[#allocation6 + $0x2140] sm:$0xff] }
 0x286   : > { %3100 = vmatpush1.msra.mxu1 %v1402_v13  ;;  %3032 = vmatprep.subr.mxu0 %v1335_v14  ;;  %v1434_v13 = vld [vmem:[#allocation6 + $0x2350] sm:$0xff]  ;;  %v1367_v14 = vld [vmem:[#allocation6 + $0x2138] sm:$0xff] }
 0x287   : > { %3101 = vmatprep.subr.mxu1 %v1401_v15  ;;  %3033 = vmatpush1.msra.mxu0 %v1334_v16  ;;  %v1433_v15 = vld [vmem:[#allocation6 + $0x2348] sm:$0xff]  ;;  %v1366_v16 = vld [vmem:[#allocation6 + $0x2130] sm:$0xff] }
 0x288   : > { %3102 = vmatpush1.msra.mxu1 %v1400_v17  ;;  %3034 = vmatprep.subr.mxu0 %v1333_v18  ;;  %v1432_v17 = vld [vmem:[#allocation6 + $0x2340] sm:$0xff]  ;;  %v1365_v18 = vld [vmem:[#allocation6 + $0x2128] sm:$0xff] }
 0x289   : > { %3103 = vmatprep.subr.mxu1 %v1399_v19  ;;  %3035 = vmatpush1.msra.mxu0 %v1332_v20  ;;  %v1431_v19 = vld [vmem:[#allocation6 + $0x2338] sm:$0xff]  ;;  %v1364_v20 = vld [vmem:[#allocation6 + $0x2120] sm:$0xff] }
 0x28a   : > { %3104 = vmatpush1.msra.mxu1 %v1398_v21  ;;  %3036 = vmatprep.subr.mxu0 %v1331_v22  ;;  %v1430_v21 = vld [vmem:[#allocation6 + $0x2330] sm:$0xff]  ;;  %v1363_v22 = vld [vmem:[#allocation6 + $0x2118] sm:$0xff] }
 0x28b   : > { %3105 = vmatprep.subr.mxu1 %v1397_v23  ;;  %3037 = vmatpush1.msra.mxu0 %v1330_v24  ;;  %v1429_v23 = vld [vmem:[#allocation6 + $0x2328] sm:$0xff]  ;;  %v1362_v24 = vld [vmem:[#allocation6 + $0x2110] sm:$0xff] }
 0x28c   : > { %3106 = vmatpush1.msra.mxu1 %v1396_v25  ;;  %3038 = vmatprep.subr.mxu0 %v1329_v26  ;;  %v1428_v25 = vld [vmem:[#allocation6 + $0x2320] sm:$0xff]  ;;  %v1361_v26 = vld [vmem:[#allocation6 + $0x2108] sm:$0xff] }
 0x28d   : > { %3107 = vmatprep.subr.mxu1 %v1395_v27  ;;  %3039 = vmatpush1.msra.mxu0 %v1328_v28  ;;  %v1427_v27 = vld [vmem:[#allocation6 + $0x2318] sm:$0xff]  ;;  %v1360_v28 = vld [vmem:[#allocation6 + $0x2100] sm:$0xff] }
 0x28e   : > { %3108 = vmatpush1.msra.mxu1 %v1394_v29  ;;  %3040 = vmatprep.subr.mxu0 %v1391_v30  ;;  %v288_v29 = vld [vmem:[%s6995_s20 + $0x108] sm:$0xff]  ;;  %v1426_v30 = vld [vmem:[#allocation6 + $0x2310] sm:$0xff] }
 0x28f   : > { %3109 = vmatprep.subr.mxu1 %v1393_v31  ;;  %3041 = vmatpush2.msra.mxu0 %v1390_v32  ;;  %v287_v31 = vld [vmem:[%s6995_s20 + $0x100] sm:$0xff]  ;;  %v1425_v32 = vld [vmem:[#allocation6 + $0x2308] sm:$0xff] }
 0x290   : > { %3110 = vmatpush1.msra.mxu1 %v1392_v33  ;;  %3042 = vmatprep.subr.mxu0 %v1389_v34  ;;  %v1487_v33 = vld [vmem:[#allocation6 + $0x24f8] sm:$0xff]  ;;  %v1424_v34 = vld [vmem:[#allocation6 + $0x2300] sm:$0xff] }
 0x291   : > { %3111 = vmatprep.subr.mxu1 %v1455_v35  ;;  %3043 = vmatpush2.msra.mxu0 %v1388_v36  ;;  %v290_v35 = vld [vmem:[%s6995_s20 + $0x118] sm:$0xff] }
 0x292   : > { %3112 = vmatpush2.msra.mxu1 %v1454_v37  ;;  %3044 = vmatprep.subr.mxu0 %v1387_v38  ;;  %v1486_v36 = vld [vmem:[#allocation6 + $0x24f0] sm:$0xff]  ;;  %v289_v37 = vld [vmem:[%s6995_s20 + $0x110] sm:$0xff] }
 0x293   : > { %3113 = vmatprep.subr.mxu1 %v1453_v39  ;;  %3045 = vmatpush2.msra.mxu0 %v1386_v40  ;;  %v1485_v38 = vld [vmem:[#allocation6 + $0x24e8] sm:$0xff]  ;;  %v1551_v39 = vld [vmem:[#allocation6 + $0x26f8] sm:$0xff]  ;;  %v1484_v40 = vld [vmem:[#allocation6 + $0x24e0] sm:$0xff] }
 0x294   : > { %3114 = vmatpush2.msra.mxu1 %v1452_v41  ;;  %3046 = vmatprep.subr.mxu0 %v1385_v42  ;;  %v1550_v41 = vld [vmem:[#allocation6 + $0x26f0] sm:$0xff]  ;;  %v1483_v42 = vld [vmem:[#allocation6 + $0x24d8] sm:$0xff] }
 0x295   : > { %3115 = vmatprep.subr.mxu1 %v1451_v43  ;;  %3047 = vmatpush2.msra.mxu0 %v1384_v44  ;;  %v1549_v43 = vld [vmem:[#allocation6 + $0x26e8] sm:$0xff]  ;;  %v1482_v44 = vld [vmem:[#allocation6 + $0x24d0] sm:$0xff] }
 0x296   : > { %3116 = vmatpush2.msra.mxu1 %v1450_v45  ;;  %3048 = vmatprep.subr.mxu0 %v1383_v46  ;;  %v1548_v45 = vld [vmem:[#allocation6 + $0x26e0] sm:$0xff]  ;;  %v1481_v46 = vld [vmem:[#allocation6 + $0x24c8] sm:$0xff] }
 0x297   : > { %3117 = vmatprep.subr.mxu1 %v1449_v47  ;;  %3049 = vmatpush2.msra.mxu0 %v1382_v48  ;;  %v1547_v47 = vld [vmem:[#allocation6 + $0x26d8] sm:$0xff]  ;;  %v1480_v48 = vld [vmem:[#allocation6 + $0x24c0] sm:$0xff] }
 0x298   : > { %3118 = vmatpush2.msra.mxu1 %v1448_v49  ;;  %3050 = vmatprep.subr.mxu0 %v1381_v50  ;;  %v1546_v49 = vld [vmem:[#allocation6 + $0x26d0] sm:$0xff]  ;;  %v1479_v50 = vld [vmem:[#allocation6 + $0x24b8] sm:$0xff] }
 0x299   : > { %3119 = vmatprep.subr.mxu1 %v1447_v51  ;;  %3051 = vmatpush2.msra.mxu0 %v1380_v52  ;;  %v1545_v51 = vld [vmem:[#allocation6 + $0x26c8] sm:$0xff]  ;;  %v1478_v52 = vld [vmem:[#allocation6 + $0x24b0] sm:$0xff] }
 0x29a   : > { %3120 = vmatpush2.msra.mxu1 %v1446_v53  ;;  %3052 = vmatprep.subr.mxu0 %v1379_v54  ;;  %v1544_v53 = vld [vmem:[#allocation6 + $0x26c0] sm:$0xff]  ;;  %v1477_v54 = vld [vmem:[#allocation6 + $0x24a8] sm:$0xff] }
 0x29b   : > { %3121 = vmatprep.subr.mxu1 %v1445_v55  ;;  %3053 = vmatpush2.msra.mxu0 %v1378_v56  ;;  %v1543_v55 = vld [vmem:[#allocation6 + $0x26b8] sm:$0xff]  ;;  %v1476_v56 = vld [vmem:[#allocation6 + $0x24a0] sm:$0xff] }
 0x29c   : > { %3122 = vmatpush2.msra.mxu1 %v1444_v57  ;;  %3054 = vmatprep.subr.mxu0 %v1377_v58  ;;  %v1542_v57 = vld [vmem:[#allocation6 + $0x26b0] sm:$0xff]  ;;  %v1475_v58 = vld [vmem:[#allocation6 + $0x2498] sm:$0xff] }
 0x29d   : > { %3123 = vmatprep.subr.mxu1 %v1443_v59  ;;  %3055 = vmatpush2.msra.mxu0 %v1376_v60  ;;  %v1541_v59 = vld [vmem:[#allocation6 + $0x26a8] sm:$0xff]  ;;  %v1474_v60 = vld [vmem:[#allocation6 + $0x2490] sm:$0xff] }
 0x29e   : > { %3124 = vmatpush2.msra.mxu1 %v1442_v61  ;;  %3056 = vmatprep.subr.mxu0 %v1375_v62  ;;  %v1540_v61 = vld [vmem:[#allocation6 + $0x26a0] sm:$0xff]  ;;  %v1473_v62 = vld [vmem:[#allocation6 + $0x2488] sm:$0xff] }
 0x29f   : > { %3125 = vmatprep.subr.mxu1 %v1441_v63  ;;  %3057 = vmatpush2.msra.mxu0 %v1374_v0  ;;  %v1539_v63 = vld [vmem:[#allocation6 + $0x2698] sm:$0xff]  ;;  %v1472_v0 = vld [vmem:[#allocation6 + $0x2480] sm:$0xff] }
 0x2a0   : > { %3126 = vmatpush2.msra.mxu1 %v1440_v1  ;;  %3058 = vmatprep.subr.mxu0 %v1373_v2  ;;  %v1538_v1 = vld [vmem:[#allocation6 + $0x2690] sm:$0xff]  ;;  %v1471_v2 = vld [vmem:[#allocation6 + $0x2478] sm:$0xff] }
 0x2a1   : > { %3127 = vmatprep.subr.mxu1 %v1439_v3  ;;  %3059 = vmatpush2.msra.mxu0 %v1372_v4  ;;  %v1537_v3 = vld [vmem:[#allocation6 + $0x2688] sm:$0xff]  ;;  %v1470_v4 = vld [vmem:[#allocation6 + $0x2470] sm:$0xff] }
 0x2a2   : > { %3128 = vmatpush2.msra.mxu1 %v1438_v5  ;;  %3060 = vmatprep.subr.mxu0 %v1371_v6  ;;  %v1536_v5 = vld [vmem:[#allocation6 + $0x2680] sm:$0xff]  ;;  %v1469_v6 = vld [vmem:[#allocation6 + $0x2468] sm:$0xff] }
 0x2a3   : > { %3129 = vmatprep.subr.mxu1 %v1437_v7  ;;  %3061 = vmatpush2.msra.mxu0 %v1370_v8  ;;  %v1535_v7 = vld [vmem:[#allocation6 + $0x2678] sm:$0xff]  ;;  %v1468_v8 = vld [vmem:[#allocation6 + $0x2460] sm:$0xff] }
 0x2a4   : > { %3130 = vmatpush2.msra.mxu1 %v1436_v9  ;;  %3062 = vmatprep.subr.mxu0 %v1369_v10  ;;  %v1534_v9 = vld [vmem:[#allocation6 + $0x2670] sm:$0xff]  ;;  %v1467_v10 = vld [vmem:[#allocation6 + $0x2458] sm:$0xff] }
 0x2a5   : > { %3131 = vmatprep.subr.mxu1 %v1435_v11  ;;  %3063 = vmatpush2.msra.mxu0 %v1368_v12  ;;  %v1533_v11 = vld [vmem:[#allocation6 + $0x2668] sm:$0xff]  ;;  %v1466_v12 = vld [vmem:[#allocation6 + $0x2450] sm:$0xff] }
 0x2a6   : > { %3132 = vmatpush2.msra.mxu1 %v1434_v13  ;;  %3064 = vmatprep.subr.mxu0 %v1367_v14  ;;  %v1532_v13 = vld [vmem:[#allocation6 + $0x2660] sm:$0xff]  ;;  %v1465_v14 = vld [vmem:[#allocation6 + $0x2448] sm:$0xff] }
 0x2a7   : > { %3133 = vmatprep.subr.mxu1 %v1433_v15  ;;  %3065 = vmatpush2.msra.mxu0 %v1366_v16  ;;  %v1531_v15 = vld [vmem:[#allocation6 + $0x2658] sm:$0xff]  ;;  %v1464_v16 = vld [vmem:[#allocation6 + $0x2440] sm:$0xff] }
 0x2a8   : > { %3134 = vmatpush2.msra.mxu1 %v1432_v17  ;;  %3066 = vmatprep.subr.mxu0 %v1365_v18  ;;  %v1530_v17 = vld [vmem:[#allocation6 + $0x2650] sm:$0xff]  ;;  %v1463_v18 = vld [vmem:[#allocation6 + $0x2438] sm:$0xff] }
 0x2a9   : > { %3135 = vmatprep.subr.mxu1 %v1431_v19  ;;  %3067 = vmatpush2.msra.mxu0 %v1364_v20  ;;  %v1529_v19 = vld [vmem:[#allocation6 + $0x2648] sm:$0xff]  ;;  %v1462_v20 = vld [vmem:[#allocation6 + $0x2430] sm:$0xff] }
 0x2aa   : > { %3136 = vmatpush2.msra.mxu1 %v1430_v21  ;;  %3068 = vmatprep.subr.mxu0 %v1363_v22  ;;  %v1528_v21 = vld [vmem:[#allocation6 + $0x2640] sm:$0xff]  ;;  %v1461_v22 = vld [vmem:[#allocation6 + $0x2428] sm:$0xff] }
 0x2ab   : > { %3137 = vmatprep.subr.mxu1 %v1429_v23  ;;  %3069 = vmatpush2.msra.mxu0 %v1362_v24  ;;  %v1527_v23 = vld [vmem:[#allocation6 + $0x2638] sm:$0xff]  ;;  %v1460_v24 = vld [vmem:[#allocation6 + $0x2420] sm:$0xff] }
 0x2ac   : > { %3138 = vmatpush2.msra.mxu1 %v1428_v25  ;;  %3070 = vmatprep.subr.mxu0 %v1361_v26  ;;  %v1526_v25 = vld [vmem:[#allocation6 + $0x2630] sm:$0xff]  ;;  %v1459_v26 = vld [vmem:[#allocation6 + $0x2418] sm:$0xff] }
 0x2ad   : > { %3139 = vmatprep.subr.mxu1 %v1427_v27  ;;  %3071 = vmatpush2.msra.mxu0 %v1360_v28  ;;  %v1525_v27 = vld [vmem:[#allocation6 + $0x2628] sm:$0xff]  ;;  %v1458_v28 = vld [vmem:[#allocation6 + $0x2410] sm:$0xff] }
 0x2ae   : > { %3072 = vmatprep.mubr.f32.mxu0 %v288_v29  ;;  %3140 = vmatpush2.msra.mxu1 %v1426_v30  ;;  %v1524_v29 = vld [vmem:[#allocation6 + $0x2620] sm:$0xff]  ;;  %v1457_v30 = vld [vmem:[#allocation6 + $0x2408] sm:$0xff] }
 0x2af   : > { %3073 = vmatmul.mubr.f32.vlgmr.msra.gmra.mxu0 %v287_v31  ;;  %3141 = vmatprep.subr.mxu1 %v1425_v32  ;;  %v1523_v31 = vld [vmem:[#allocation6 + $0x2618] sm:$0xff]  ;;  %v1456_v32 = vld [vmem:[#allocation6 + $0x2400] sm:$0xff] }
 0x2b0   : > { %3150 = vmatprep.subr.mxu0 %v1487_v33  ;;  %3142 = vmatpush2.msra.mxu1 %v1424_v34  ;;  %v1522_v33 = vld [vmem:[#allocation6 + $0x2610] sm:$0xff]  ;;  %v1519_v34 = vld [vmem:[#allocation6 + $0x25f8] sm:$0xff] }
 0x2b1   : > { %3143 = vmatprep.mubr.f32.mxu1 %v290_v35  ;;  %3151 = vmatpush1.msra.mxu0 %v1486_v36  ;;  %v1521_v35 = vld [vmem:[#allocation6 + $0x2608] sm:$0xff]  ;;  %v1518_v36 = vld [vmem:[#allocation6 + $0x25f0] sm:$0xff] }
 0x2b2   : > { %3144 = vmatmul.mubr.f32.vlgmr.msra.gmra.mxu1 %v289_v37  ;;  %3152 = vmatprep.subr.mxu0 %v1485_v38  ;;  %v1520_v37 = vld [vmem:[#allocation6 + $0x2600] sm:$0xff]  ;;  %v1517_v38 = vld [vmem:[#allocation6 + $0x25e8] sm:$0xff] }
 0x2b3   : > { %3221 = vmatprep.subr.mxu1 %v1551_v39  ;;  %3153 = vmatpush1.msra.mxu0 %v1484_v40  ;;  %v1583_v39 = vld [vmem:[#allocation6 + $0x27f8] sm:$0xff]  ;;  %v1516_v40 = vld [vmem:[#allocation6 + $0x25e0] sm:$0xff] }
 0x2b4   : > { %3222 = vmatpush1.msra.mxu1 %v1550_v41  ;;  %3154 = vmatprep.subr.mxu0 %v1483_v42  ;;  %v1582_v41 = vld [vmem:[#allocation6 + $0x27f0] sm:$0xff]  ;;  %v1515_v42 = vld [vmem:[#allocation6 + $0x25d8] sm:$0xff] }
 0x2b5   : > { %3223 = vmatprep.subr.mxu1 %v1549_v43  ;;  %3155 = vmatpush1.msra.mxu0 %v1482_v44  ;;  %v1581_v43 = vld [vmem:[#allocation6 + $0x27e8] sm:$0xff]  ;;  %v1514_v44 = vld [vmem:[#allocation6 + $0x25d0] sm:$0xff] }
 0x2b6   : > { %3224 = vmatpush1.msra.mxu1 %v1548_v45  ;;  %3156 = vmatprep.subr.mxu0 %v1481_v46  ;;  %v1580_v45 = vld [vmem:[#allocation6 + $0x27e0] sm:$0xff]  ;;  %v1513_v46 = vld [vmem:[#allocation6 + $0x25c8] sm:$0xff] }
 0x2b7   : > { %3225 = vmatprep.subr.mxu1 %v1547_v47  ;;  %3157 = vmatpush1.msra.mxu0 %v1480_v48  ;;  %v1579_v47 = vld [vmem:[#allocation6 + $0x27d8] sm:$0xff]  ;;  %v1512_v48 = vld [vmem:[#allocation6 + $0x25c0] sm:$0xff] }
 0x2b8   : > { %3226 = vmatpush1.msra.mxu1 %v1546_v49  ;;  %3158 = vmatprep.subr.mxu0 %v1479_v50  ;;  %v1578_v49 = vld [vmem:[#allocation6 + $0x27d0] sm:$0xff]  ;;  %v1511_v50 = vld [vmem:[#allocation6 + $0x25b8] sm:$0xff] }
 0x2b9   : > { %3227 = vmatprep.subr.mxu1 %v1545_v51  ;;  %3159 = vmatpush1.msra.mxu0 %v1478_v52  ;;  %v1577_v51 = vld [vmem:[#allocation6 + $0x27c8] sm:$0xff]  ;;  %v1510_v52 = vld [vmem:[#allocation6 + $0x25b0] sm:$0xff] }
 0x2ba   : > { %3228 = vmatpush1.msra.mxu1 %v1544_v53  ;;  %3160 = vmatprep.subr.mxu0 %v1477_v54  ;;  %v1576_v53 = vld [vmem:[#allocation6 + $0x27c0] sm:$0xff]  ;;  %v1509_v54 = vld [vmem:[#allocation6 + $0x25a8] sm:$0xff] }
 0x2bb   : > { %3229 = vmatprep.subr.mxu1 %v1543_v55  ;;  %3161 = vmatpush1.msra.mxu0 %v1476_v56  ;;  %v1575_v55 = vld [vmem:[#allocation6 + $0x27b8] sm:$0xff]  ;;  %v1508_v56 = vld [vmem:[#allocation6 + $0x25a0] sm:$0xff] }
 0x2bc   : > { %3230 = vmatpush1.msra.mxu1 %v1542_v57  ;;  %3162 = vmatprep.subr.mxu0 %v1475_v58  ;;  %v1574_v57 = vld [vmem:[#allocation6 + $0x27b0] sm:$0xff]  ;;  %v1507_v58 = vld [vmem:[#allocation6 + $0x2598] sm:$0xff] }
 0x2bd   : > { %3231 = vmatprep.subr.mxu1 %v1541_v59  ;;  %3163 = vmatpush1.msra.mxu0 %v1474_v60  ;;  %v1573_v59 = vld [vmem:[#allocation6 + $0x27a8] sm:$0xff]  ;;  %v1506_v60 = vld [vmem:[#allocation6 + $0x2590] sm:$0xff] }
 0x2be   : > { %3232 = vmatpush1.msra.mxu1 %v1540_v61  ;;  %3164 = vmatprep.subr.mxu0 %v1473_v62  ;;  %v1572_v61 = vld [vmem:[#allocation6 + $0x27a0] sm:$0xff]  ;;  %v1505_v62 = vld [vmem:[#allocation6 + $0x2588] sm:$0xff] }
 0x2bf   : > { %3233 = vmatprep.subr.mxu1 %v1539_v63  ;;  %3165 = vmatpush1.msra.mxu0 %v1472_v0  ;;  %v1571_v63 = vld [vmem:[#allocation6 + $0x2798] sm:$0xff]  ;;  %v1504_v0 = vld [vmem:[#allocation6 + $0x2580] sm:$0xff] }
 0x2c0   : > { %3234 = vmatpush1.msra.mxu1 %v1538_v1  ;;  %3166 = vmatprep.subr.mxu0 %v1471_v2  ;;  %v1570_v1 = vld [vmem:[#allocation6 + $0x2790] sm:$0xff]  ;;  %v1503_v2 = vld [vmem:[#allocation6 + $0x2578] sm:$0xff] }
 0x2c1   : > { %3235 = vmatprep.subr.mxu1 %v1537_v3  ;;  %3167 = vmatpush1.msra.mxu0 %v1470_v4  ;;  %v1569_v3 = vld [vmem:[#allocation6 + $0x2788] sm:$0xff]  ;;  %v1502_v4 = vld [vmem:[#allocation6 + $0x2570] sm:$0xff] }
 0x2c2   : > { %3236 = vmatpush1.msra.mxu1 %v1536_v5  ;;  %3168 = vmatprep.subr.mxu0 %v1469_v6  ;;  %v1568_v5 = vld [vmem:[#allocation6 + $0x2780] sm:$0xff]  ;;  %v1501_v6 = vld [vmem:[#allocation6 + $0x2568] sm:$0xff] }
 0x2c3   : > { %3237 = vmatprep.subr.mxu1 %v1535_v7  ;;  %3169 = vmatpush1.msra.mxu0 %v1468_v8  ;;  %v1567_v7 = vld [vmem:[#allocation6 + $0x2778] sm:$0xff]  ;;  %v1500_v8 = vld [vmem:[#allocation6 + $0x2560] sm:$0xff] }
 0x2c4   : > { %3238 = vmatpush1.msra.mxu1 %v1534_v9  ;;  %3170 = vmatprep.subr.mxu0 %v1467_v10  ;;  %v1566_v9 = vld [vmem:[#allocation6 + $0x2770] sm:$0xff]  ;;  %v1499_v10 = vld [vmem:[#allocation6 + $0x2558] sm:$0xff] }
 0x2c5   : > { %3239 = vmatprep.subr.mxu1 %v1533_v11  ;;  %3171 = vmatpush1.msra.mxu0 %v1466_v12  ;;  %v1565_v11 = vld [vmem:[#allocation6 + $0x2768] sm:$0xff]  ;;  %v1498_v12 = vld [vmem:[#allocation6 + $0x2550] sm:$0xff] }
 0x2c6   : > { %3240 = vmatpush1.msra.mxu1 %v1532_v13  ;;  %3172 = vmatprep.subr.mxu0 %v1465_v14  ;;  %v1564_v13 = vld [vmem:[#allocation6 + $0x2760] sm:$0xff]  ;;  %v1497_v14 = vld [vmem:[#allocation6 + $0x2548] sm:$0xff] }
 0x2c7   : > { %3241 = vmatprep.subr.mxu1 %v1531_v15  ;;  %3173 = vmatpush1.msra.mxu0 %v1464_v16  ;;  %v1563_v15 = vld [vmem:[#allocation6 + $0x2758] sm:$0xff]  ;;  %v1496_v16 = vld [vmem:[#allocation6 + $0x2540] sm:$0xff] }
 0x2c8   : > { %3242 = vmatpush1.msra.mxu1 %v1530_v17  ;;  %3174 = vmatprep.subr.mxu0 %v1463_v18  ;;  %v1562_v17 = vld [vmem:[#allocation6 + $0x2750] sm:$0xff]  ;;  %v1495_v18 = vld [vmem:[#allocation6 + $0x2538] sm:$0xff] }
 0x2c9   : > { %3243 = vmatprep.subr.mxu1 %v1529_v19  ;;  %3175 = vmatpush1.msra.mxu0 %v1462_v20  ;;  %v1561_v19 = vld [vmem:[#allocation6 + $0x2748] sm:$0xff]  ;;  %v1494_v20 = vld [vmem:[#allocation6 + $0x2530] sm:$0xff] }
 0x2ca   : > { %3244 = vmatpush1.msra.mxu1 %v1528_v21  ;;  %3176 = vmatprep.subr.mxu0 %v1461_v22  ;;  %v1560_v21 = vld [vmem:[#allocation6 + $0x2740] sm:$0xff]  ;;  %v1493_v22 = vld [vmem:[#allocation6 + $0x2528] sm:$0xff] }
 0x2cb   : > { %3245 = vmatprep.subr.mxu1 %v1527_v23  ;;  %3177 = vmatpush1.msra.mxu0 %v1460_v24  ;;  %v1559_v23 = vld [vmem:[#allocation6 + $0x2738] sm:$0xff]  ;;  %v1492_v24 = vld [vmem:[#allocation6 + $0x2520] sm:$0xff] }
 0x2cc   : > { %3246 = vmatpush1.msra.mxu1 %v1526_v25  ;;  %3178 = vmatprep.subr.mxu0 %v1459_v26  ;;  %v1558_v25 = vld [vmem:[#allocation6 + $0x2730] sm:$0xff]  ;;  %v1491_v26 = vld [vmem:[#allocation6 + $0x2518] sm:$0xff] }
 0x2cd   : > { %3247 = vmatprep.subr.mxu1 %v1525_v27  ;;  %3179 = vmatpush1.msra.mxu0 %v1458_v28  ;;  %v1557_v27 = vld [vmem:[#allocation6 + $0x2728] sm:$0xff]  ;;  %v1490_v28 = vld [vmem:[#allocation6 + $0x2510] sm:$0xff] }
 0x2ce   : > { %3248 = vmatpush1.msra.mxu1 %v1524_v29  ;;  %3180 = vmatprep.subr.mxu0 %v1457_v30  ;;  %v1556_v29 = vld [vmem:[#allocation6 + $0x2720] sm:$0xff]  ;;  %v1489_v30 = vld [vmem:[#allocation6 + $0x2508] sm:$0xff] }
 0x2cf   : > { %3249 = vmatprep.subr.mxu1 %v1523_v31  ;;  %3181 = vmatpush1.msra.mxu0 %v1456_v32  ;;  %v1555_v31 = vld [vmem:[#allocation6 + $0x2718] sm:$0xff]  ;;  %v1488_v32 = vld [vmem:[#allocation6 + $0x2500] sm:$0xff] }
 0x2d0   : > { %3250 = vmatpush1.msra.mxu1 %v1522_v33  ;;  %3182 = vmatprep.subr.mxu0 %v1519_v34  ;;  %v292_v33 = vld [vmem:[%s6995_s20 + $0x128] sm:$0xff]  ;;  %v1554_v34 = vld [vmem:[#allocation6 + $0x2710] sm:$0xff] }
 0x2d1   : > { %3251 = vmatprep.subr.mxu1 %v1521_v35  ;;  %3183 = vmatpush2.msra.mxu0 %v1518_v36  ;;  %v291_v35 = vld [vmem:[%s6995_s20 + $0x120] sm:$0xff]  ;;  %v1553_v36 = vld [vmem:[#allocation6 + $0x2708] sm:$0xff] }
 0x2d2   : > { %3252 = vmatpush1.msra.mxu1 %v1520_v37  ;;  %3184 = vmatprep.subr.mxu0 %v1517_v38  ;;  %v1615_v37 = vld [vmem:[#allocation6 + $0x28f8] sm:$0xff]  ;;  %v1552_v38 = vld [vmem:[#allocation6 + $0x2700] sm:$0xff] }
 0x2d3   : > { %3253 = vmatprep.subr.mxu1 %v1583_v39  ;;  %3185 = vmatpush2.msra.mxu0 %v1516_v40  ;;  %v294_v39 = vld [vmem:[%s6995_s20 + $0x138] sm:$0xff] }
 0x2d4   : > { %3254 = vmatpush2.msra.mxu1 %v1582_v41  ;;  %3186 = vmatprep.subr.mxu0 %v1515_v42  ;;  %v1614_v40 = vld [vmem:[#allocation6 + $0x28f0] sm:$0xff]  ;;  %v293_v41 = vld [vmem:[%s6995_s20 + $0x130] sm:$0xff] }
 0x2d5   : > { %3255 = vmatprep.subr.mxu1 %v1581_v43  ;;  %3187 = vmatpush2.msra.mxu0 %v1514_v44  ;;  %v1613_v42 = vld [vmem:[#allocation6 + $0x28e8] sm:$0xff]  ;;  %v1679_v43 = vld [vmem:[#allocation6 + $0x2af8] sm:$0xff]  ;;  %v1612_v44 = vld [vmem:[#allocation6 + $0x28e0] sm:$0xff] }
 0x2d6   : > { %3256 = vmatpush2.msra.mxu1 %v1580_v45  ;;  %3188 = vmatprep.subr.mxu0 %v1513_v46  ;;  %v1678_v45 = vld [vmem:[#allocation6 + $0x2af0] sm:$0xff]  ;;  %v1611_v46 = vld [vmem:[#allocation6 + $0x28d8] sm:$0xff] }
 0x2d7   : > { %3257 = vmatprep.subr.mxu1 %v1579_v47  ;;  %3189 = vmatpush2.msra.mxu0 %v1512_v48  ;;  %v1677_v47 = vld [vmem:[#allocation6 + $0x2ae8] sm:$0xff]  ;;  %v1610_v48 = vld [vmem:[#allocation6 + $0x28d0] sm:$0xff] }
 0x2d8   : > { %3258 = vmatpush2.msra.mxu1 %v1578_v49  ;;  %3190 = vmatprep.subr.mxu0 %v1511_v50  ;;  %v1676_v49 = vld [vmem:[#allocation6 + $0x2ae0] sm:$0xff]  ;;  %v1609_v50 = vld [vmem:[#allocation6 + $0x28c8] sm:$0xff] }
 0x2d9   : > { %3259 = vmatprep.subr.mxu1 %v1577_v51  ;;  %3191 = vmatpush2.msra.mxu0 %v1510_v52  ;;  %v1675_v51 = vld [vmem:[#allocation6 + $0x2ad8] sm:$0xff]  ;;  %v1608_v52 = vld [vmem:[#allocation6 + $0x28c0] sm:$0xff] }
 0x2da   : > { %3260 = vmatpush2.msra.mxu1 %v1576_v53  ;;  %3192 = vmatprep.subr.mxu0 %v1509_v54  ;;  %v1674_v53 = vld [vmem:[#allocation6 + $0x2ad0] sm:$0xff]  ;;  %v1607_v54 = vld [vmem:[#allocation6 + $0x28b8] sm:$0xff] }
 0x2db   : > { %3261 = vmatprep.subr.mxu1 %v1575_v55  ;;  %3193 = vmatpush2.msra.mxu0 %v1508_v56  ;;  %v1673_v55 = vld [vmem:[#allocation6 + $0x2ac8] sm:$0xff]  ;;  %v1606_v56 = vld [vmem:[#allocation6 + $0x28b0] sm:$0xff] }
 0x2dc   : > { %3262 = vmatpush2.msra.mxu1 %v1574_v57  ;;  %3194 = vmatprep.subr.mxu0 %v1507_v58  ;;  %v1672_v57 = vld [vmem:[#allocation6 + $0x2ac0] sm:$0xff]  ;;  %v1605_v58 = vld [vmem:[#allocation6 + $0x28a8] sm:$0xff] }
 0x2dd   : > { %3263 = vmatprep.subr.mxu1 %v1573_v59  ;;  %3195 = vmatpush2.msra.mxu0 %v1506_v60  ;;  %v1671_v59 = vld [vmem:[#allocation6 + $0x2ab8] sm:$0xff]  ;;  %v1604_v60 = vld [vmem:[#allocation6 + $0x28a0] sm:$0xff] }
 0x2de   : > { %3264 = vmatpush2.msra.mxu1 %v1572_v61  ;;  %3196 = vmatprep.subr.mxu0 %v1505_v62  ;;  %v1670_v61 = vld [vmem:[#allocation6 + $0x2ab0] sm:$0xff]  ;;  %v1603_v62 = vld [vmem:[#allocation6 + $0x2898] sm:$0xff] }
 0x2df   : > { %3265 = vmatprep.subr.mxu1 %v1571_v63  ;;  %3197 = vmatpush2.msra.mxu0 %v1504_v0  ;;  %v1669_v63 = vld [vmem:[#allocation6 + $0x2aa8] sm:$0xff]  ;;  %v1602_v0 = vld [vmem:[#allocation6 + $0x2890] sm:$0xff] }
 0x2e0   : > { %3266 = vmatpush2.msra.mxu1 %v1570_v1  ;;  %3198 = vmatprep.subr.mxu0 %v1503_v2  ;;  %v1668_v1 = vld [vmem:[#allocation6 + $0x2aa0] sm:$0xff]  ;;  %v1601_v2 = vld [vmem:[#allocation6 + $0x2888] sm:$0xff] }
 0x2e1   : > { %3267 = vmatprep.subr.mxu1 %v1569_v3  ;;  %3199 = vmatpush2.msra.mxu0 %v1502_v4  ;;  %v1667_v3 = vld [vmem:[#allocation6 + $0x2a98] sm:$0xff]  ;;  %v1600_v4 = vld [vmem:[#allocation6 + $0x2880] sm:$0xff] }
 0x2e2   : > { %3268 = vmatpush2.msra.mxu1 %v1568_v5  ;;  %3200 = vmatprep.subr.mxu0 %v1501_v6  ;;  %v1666_v5 = vld [vmem:[#allocation6 + $0x2a90] sm:$0xff]  ;;  %v1599_v6 = vld [vmem:[#allocation6 + $0x2878] sm:$0xff] }
 0x2e3   : > { %3269 = vmatprep.subr.mxu1 %v1567_v7  ;;  %3201 = vmatpush2.msra.mxu0 %v1500_v8  ;;  %v1665_v7 = vld [vmem:[#allocation6 + $0x2a88] sm:$0xff]  ;;  %v1598_v8 = vld [vmem:[#allocation6 + $0x2870] sm:$0xff] }
 0x2e4   : > { %3270 = vmatpush2.msra.mxu1 %v1566_v9  ;;  %3202 = vmatprep.subr.mxu0 %v1499_v10  ;;  %v1664_v9 = vld [vmem:[#allocation6 + $0x2a80] sm:$0xff]  ;;  %v1597_v10 = vld [vmem:[#allocation6 + $0x2868] sm:$0xff] }
 0x2e5   : > { %3271 = vmatprep.subr.mxu1 %v1565_v11  ;;  %3203 = vmatpush2.msra.mxu0 %v1498_v12  ;;  %v1663_v11 = vld [vmem:[#allocation6 + $0x2a78] sm:$0xff]  ;;  %v1596_v12 = vld [vmem:[#allocation6 + $0x2860] sm:$0xff] }
 0x2e6   : > { %3272 = vmatpush2.msra.mxu1 %v1564_v13  ;;  %3204 = vmatprep.subr.mxu0 %v1497_v14  ;;  %v1662_v13 = vld [vmem:[#allocation6 + $0x2a70] sm:$0xff]  ;;  %v1595_v14 = vld [vmem:[#allocation6 + $0x2858] sm:$0xff] }
 0x2e7   : > { %3273 = vmatprep.subr.mxu1 %v1563_v15  ;;  %3205 = vmatpush2.msra.mxu0 %v1496_v16  ;;  %v1661_v15 = vld [vmem:[#allocation6 + $0x2a68] sm:$0xff]  ;;  %v1594_v16 = vld [vmem:[#allocation6 + $0x2850] sm:$0xff] }
 0x2e8   : > { %3274 = vmatpush2.msra.mxu1 %v1562_v17  ;;  %3206 = vmatprep.subr.mxu0 %v1495_v18  ;;  %v1660_v17 = vld [vmem:[#allocation6 + $0x2a60] sm:$0xff]  ;;  %v1593_v18 = vld [vmem:[#allocation6 + $0x2848] sm:$0xff] }
 0x2e9   : > { %3275 = vmatprep.subr.mxu1 %v1561_v19  ;;  %3207 = vmatpush2.msra.mxu0 %v1494_v20  ;;  %v1659_v19 = vld [vmem:[#allocation6 + $0x2a58] sm:$0xff]  ;;  %v1592_v20 = vld [vmem:[#allocation6 + $0x2840] sm:$0xff] }
 0x2ea   : > { %3276 = vmatpush2.msra.mxu1 %v1560_v21  ;;  %3208 = vmatprep.subr.mxu0 %v1493_v22  ;;  %v1658_v21 = vld [vmem:[#allocation6 + $0x2a50] sm:$0xff]  ;;  %v1591_v22 = vld [vmem:[#allocation6 + $0x2838] sm:$0xff] }
 0x2eb   : > { %3277 = vmatprep.subr.mxu1 %v1559_v23  ;;  %3209 = vmatpush2.msra.mxu0 %v1492_v24  ;;  %v1657_v23 = vld [vmem:[#allocation6 + $0x2a48] sm:$0xff]  ;;  %v1590_v24 = vld [vmem:[#allocation6 + $0x2830] sm:$0xff] }
 0x2ec   : > { %3278 = vmatpush2.msra.mxu1 %v1558_v25  ;;  %3210 = vmatprep.subr.mxu0 %v1491_v26  ;;  %v1656_v25 = vld [vmem:[#allocation6 + $0x2a40] sm:$0xff]  ;;  %v1589_v26 = vld [vmem:[#allocation6 + $0x2828] sm:$0xff] }
 0x2ed   : > { %3279 = vmatprep.subr.mxu1 %v1557_v27  ;;  %3211 = vmatpush2.msra.mxu0 %v1490_v28  ;;  %v1655_v27 = vld [vmem:[#allocation6 + $0x2a38] sm:$0xff]  ;;  %v1588_v28 = vld [vmem:[#allocation6 + $0x2820] sm:$0xff] }
 0x2ee   : > { %3280 = vmatpush2.msra.mxu1 %v1556_v29  ;;  %3212 = vmatprep.subr.mxu0 %v1489_v30  ;;  %v1654_v29 = vld [vmem:[#allocation6 + $0x2a30] sm:$0xff]  ;;  %v1587_v30 = vld [vmem:[#allocation6 + $0x2818] sm:$0xff] }
 0x2ef   : > { %3281 = vmatprep.subr.mxu1 %v1555_v31  ;;  %3213 = vmatpush2.msra.mxu0 %v1488_v32  ;;  %v1653_v31 = vld [vmem:[#allocation6 + $0x2a28] sm:$0xff]  ;;  %v1586_v32 = vld [vmem:[#allocation6 + $0x2810] sm:$0xff] }
 0x2f0   : > { %3214 = vmatprep.mubr.f32.mxu0 %v292_v33  ;;  %3282 = vmatpush2.msra.mxu1 %v1554_v34  ;;  %v1652_v33 = vld [vmem:[#allocation6 + $0x2a20] sm:$0xff]  ;;  %v1585_v34 = vld [vmem:[#allocation6 + $0x2808] sm:$0xff] }
 0x2f1   : > { %3215 = vmatmul.mubr.f32.vlgmr.msra.gmra.mxu0 %v291_v35  ;;  %3283 = vmatprep.subr.mxu1 %v1553_v36  ;;  %v1651_v35 = vld [vmem:[#allocation6 + $0x2a18] sm:$0xff]  ;;  %v1584_v36 = vld [vmem:[#allocation6 + $0x2800] sm:$0xff] }
 0x2f2   : > { %3292 = vmatprep.subr.mxu0 %v1615_v37  ;;  %3284 = vmatpush2.msra.mxu1 %v1552_v38  ;;  %v1650_v37 = vld [vmem:[#allocation6 + $0x2a10] sm:$0xff]  ;;  %v1647_v38 = vld [vmem:[#allocation6 + $0x29f8] sm:$0xff] }
 0x2f3   : > { %3285 = vmatprep.mubr.f32.mxu1 %v294_v39  ;;  %3293 = vmatpush1.msra.mxu0 %v1614_v40  ;;  %v1649_v39 = vld [vmem:[#allocation6 + $0x2a08] sm:$0xff]  ;;  %v1646_v40 = vld [vmem:[#allocation6 + $0x29f0] sm:$0xff] }
 0x2f4   : > { %3286 = vmatmul.mubr.f32.vlgmr.msra.gmra.mxu1 %v293_v41  ;;  %3294 = vmatprep.subr.mxu0 %v1613_v42  ;;  %v1648_v41 = vld [vmem:[#allocation6 + $0x2a00] sm:$0xff]  ;;  %v1645_v42 = vld [vmem:[#allocation6 + $0x29e8] sm:$0xff] }
 0x2f5   : > { %3363 = vmatprep.subr.mxu1 %v1679_v43  ;;  %3295 = vmatpush1.msra.mxu0 %v1612_v44  ;;  %v1711_v43 = vld [vmem:[#allocation6 + $0x2bf8] sm:$0xff]  ;;  %v1644_v44 = vld [vmem:[#allocation6 + $0x29e0] sm:$0xff] }
 0x2f6   : > { %3364 = vmatpush1.msra.mxu1 %v1678_v45  ;;  %3296 = vmatprep.subr.mxu0 %v1611_v46  ;;  %v1710_v45 = vld [vmem:[#allocation6 + $0x2bf0] sm:$0xff]  ;;  %v1643_v46 = vld [vmem:[#allocation6 + $0x29d8] sm:$0xff] }
 0x2f7   : > { %3365 = vmatprep.subr.mxu1 %v1677_v47  ;;  %3297 = vmatpush1.msra.mxu0 %v1610_v48  ;;  %v1709_v47 = vld [vmem:[#allocation6 + $0x2be8] sm:$0xff]  ;;  %v1642_v48 = vld [vmem:[#allocation6 + $0x29d0] sm:$0xff] }
 0x2f8   : > { %3366 = vmatpush1.msra.mxu1 %v1676_v49  ;;  %3298 = vmatprep.subr.mxu0 %v1609_v50  ;;  %v1708_v49 = vld [vmem:[#allocation6 + $0x2be0] sm:$0xff]  ;;  %v1641_v50 = vld [vmem:[#allocation6 + $0x29c8] sm:$0xff] }
 0x2f9   : > { %3367 = vmatprep.subr.mxu1 %v1675_v51  ;;  %3299 = vmatpush1.msra.mxu0 %v1608_v52  ;;  %v1707_v51 = vld [vmem:[#allocation6 + $0x2bd8] sm:$0xff]  ;;  %v1640_v52 = vld [vmem:[#allocation6 + $0x29c0] sm:$0xff] }
 0x2fa   : > { %3368 = vmatpush1.msra.mxu1 %v1674_v53  ;;  %3300 = vmatprep.subr.mxu0 %v1607_v54  ;;  %v1706_v53 = vld [vmem:[#allocation6 + $0x2bd0] sm:$0xff]  ;;  %v1639_v54 = vld [vmem:[#allocation6 + $0x29b8] sm:$0xff] }
 0x2fb   : > { %3369 = vmatprep.subr.mxu1 %v1673_v55  ;;  %3301 = vmatpush1.msra.mxu0 %v1606_v56  ;;  %v1705_v55 = vld [vmem:[#allocation6 + $0x2bc8] sm:$0xff]  ;;  %v1638_v56 = vld [vmem:[#allocation6 + $0x29b0] sm:$0xff] }
 0x2fc   : > { %3370 = vmatpush1.msra.mxu1 %v1672_v57  ;;  %3302 = vmatprep.subr.mxu0 %v1605_v58  ;;  %v1704_v57 = vld [vmem:[#allocation6 + $0x2bc0] sm:$0xff]  ;;  %v1637_v58 = vld [vmem:[#allocation6 + $0x29a8] sm:$0xff] }
 0x2fd   : > { %3371 = vmatprep.subr.mxu1 %v1671_v59  ;;  %3303 = vmatpush1.msra.mxu0 %v1604_v60  ;;  %v1703_v59 = vld [vmem:[#allocation6 + $0x2bb8] sm:$0xff]  ;;  %v1636_v60 = vld [vmem:[#allocation6 + $0x29a0] sm:$0xff] }
 0x2fe   : > { %3372 = vmatpush1.msra.mxu1 %v1670_v61  ;;  %3304 = vmatprep.subr.mxu0 %v1603_v62  ;;  %v1702_v61 = vld [vmem:[#allocation6 + $0x2bb0] sm:$0xff]  ;;  %v1635_v62 = vld [vmem:[#allocation6 + $0x2998] sm:$0xff] }
 0x2ff   : > { %3373 = vmatprep.subr.mxu1 %v1669_v63  ;;  %3305 = vmatpush1.msra.mxu0 %v1602_v0  ;;  %v1701_v63 = vld [vmem:[#allocation6 + $0x2ba8] sm:$0xff]  ;;  %v1634_v0 = vld [vmem:[#allocation6 + $0x2990] sm:$0xff] }
 0x300   : > { %3374 = vmatpush1.msra.mxu1 %v1668_v1  ;;  %3306 = vmatprep.subr.mxu0 %v1601_v2  ;;  %v1700_v1 = vld [vmem:[#allocation6 + $0x2ba0] sm:$0xff]  ;;  %v1633_v2 = vld [vmem:[#allocation6 + $0x2988] sm:$0xff] }
 0x301   : > { %3375 = vmatprep.subr.mxu1 %v1667_v3  ;;  %3307 = vmatpush1.msra.mxu0 %v1600_v4  ;;  %v1699_v3 = vld [vmem:[#allocation6 + $0x2b98] sm:$0xff]  ;;  %v1632_v4 = vld [vmem:[#allocation6 + $0x2980] sm:$0xff] }
 0x302   : > { %3376 = vmatpush1.msra.mxu1 %v1666_v5  ;;  %3308 = vmatprep.subr.mxu0 %v1599_v6  ;;  %v1698_v5 = vld [vmem:[#allocation6 + $0x2b90] sm:$0xff]  ;;  %v1631_v6 = vld [vmem:[#allocation6 + $0x2978] sm:$0xff] }
 0x303   : > { %3377 = vmatprep.subr.mxu1 %v1665_v7  ;;  %3309 = vmatpush1.msra.mxu0 %v1598_v8  ;;  %v1697_v7 = vld [vmem:[#allocation6 + $0x2b88] sm:$0xff]  ;;  %v1630_v8 = vld [vmem:[#allocation6 + $0x2970] sm:$0xff] }
 0x304   : > { %3378 = vmatpush1.msra.mxu1 %v1664_v9  ;;  %3310 = vmatprep.subr.mxu0 %v1597_v10  ;;  %v1696_v9 = vld [vmem:[#allocation6 + $0x2b80] sm:$0xff]  ;;  %v1629_v10 = vld [vmem:[#allocation6 + $0x2968] sm:$0xff] }
 0x305   : > { %3379 = vmatprep.subr.mxu1 %v1663_v11  ;;  %3311 = vmatpush1.msra.mxu0 %v1596_v12  ;;  %v1695_v11 = vld [vmem:[#allocation6 + $0x2b78] sm:$0xff]  ;;  %v1628_v12 = vld [vmem:[#allocation6 + $0x2960] sm:$0xff] }
 0x306   : > { %3380 = vmatpush1.msra.mxu1 %v1662_v13  ;;  %3312 = vmatprep.subr.mxu0 %v1595_v14  ;;  %v1694_v13 = vld [vmem:[#allocation6 + $0x2b70] sm:$0xff]  ;;  %v1627_v14 = vld [vmem:[#allocation6 + $0x2958] sm:$0xff] }
 0x307   : > { %3381 = vmatprep.subr.mxu1 %v1661_v15  ;;  %3313 = vmatpush1.msra.mxu0 %v1594_v16  ;;  %v1693_v15 = vld [vmem:[#allocation6 + $0x2b68] sm:$0xff]  ;;  %v1626_v16 = vld [vmem:[#allocation6 + $0x2950] sm:$0xff] }
 0x308   : > { %3382 = vmatpush1.msra.mxu1 %v1660_v17  ;;  %3314 = vmatprep.subr.mxu0 %v1593_v18  ;;  %v1692_v17 = vld [vmem:[#allocation6 + $0x2b60] sm:$0xff]  ;;  %v1625_v18 = vld [vmem:[#allocation6 + $0x2948] sm:$0xff] }
 0x309   : > { %3383 = vmatprep.subr.mxu1 %v1659_v19  ;;  %3315 = vmatpush1.msra.mxu0 %v1592_v20  ;;  %v1691_v19 = vld [vmem:[#allocation6 + $0x2b58] sm:$0xff]  ;;  %v1624_v20 = vld [vmem:[#allocation6 + $0x2940] sm:$0xff] }
 0x30a   : > { %3384 = vmatpush1.msra.mxu1 %v1658_v21  ;;  %3316 = vmatprep.subr.mxu0 %v1591_v22  ;;  %v1690_v21 = vld [vmem:[#allocation6 + $0x2b50] sm:$0xff]  ;;  %v1623_v22 = vld [vmem:[#allocation6 + $0x2938] sm:$0xff] }
 0x30b   : > { %3385 = vmatprep.subr.mxu1 %v1657_v23  ;;  %3317 = vmatpush1.msra.mxu0 %v1590_v24  ;;  %v1689_v23 = vld [vmem:[#allocation6 + $0x2b48] sm:$0xff]  ;;  %v1622_v24 = vld [vmem:[#allocation6 + $0x2930] sm:$0xff] }
 0x30c   : > { %3386 = vmatpush1.msra.mxu1 %v1656_v25  ;;  %3318 = vmatprep.subr.mxu0 %v1589_v26  ;;  %v1688_v25 = vld [vmem:[#allocation6 + $0x2b40] sm:$0xff]  ;;  %v1621_v26 = vld [vmem:[#allocation6 + $0x2928] sm:$0xff] }
 0x30d   : > { %3387 = vmatprep.subr.mxu1 %v1655_v27  ;;  %3319 = vmatpush1.msra.mxu0 %v1588_v28  ;;  %v1687_v27 = vld [vmem:[#allocation6 + $0x2b38] sm:$0xff]  ;;  %v1620_v28 = vld [vmem:[#allocation6 + $0x2920] sm:$0xff] }
 0x30e   : > { %3388 = vmatpush1.msra.mxu1 %v1654_v29  ;;  %3320 = vmatprep.subr.mxu0 %v1587_v30  ;;  %v1686_v29 = vld [vmem:[#allocation6 + $0x2b30] sm:$0xff]  ;;  %v1619_v30 = vld [vmem:[#allocation6 + $0x2918] sm:$0xff] }
 0x30f   : > { %3389 = vmatprep.subr.mxu1 %v1653_v31  ;;  %3321 = vmatpush1.msra.mxu0 %v1586_v32  ;;  %v1685_v31 = vld [vmem:[#allocation6 + $0x2b28] sm:$0xff]  ;;  %v1618_v32 = vld [vmem:[#allocation6 + $0x2910] sm:$0xff] }
 0x310   : > { %3390 = vmatpush1.msra.mxu1 %v1652_v33  ;;  %3322 = vmatprep.subr.mxu0 %v1585_v34  ;;  %v1684_v33 = vld [vmem:[#allocation6 + $0x2b20] sm:$0xff]  ;;  %v1617_v34 = vld [vmem:[#allocation6 + $0x2908] sm:$0xff] }
 0x311   : > { %3391 = vmatprep.subr.mxu1 %v1651_v35  ;;  %3323 = vmatpush1.msra.mxu0 %v1584_v36  ;;  %v1683_v35 = vld [vmem:[#allocation6 + $0x2b18] sm:$0xff]  ;;  %v1616_v36 = vld [vmem:[#allocation6 + $0x2900] sm:$0xff] }
 0x312   : > { %3392 = vmatpush1.msra.mxu1 %v1650_v37  ;;  %3324 = vmatprep.subr.mxu0 %v1647_v38  ;;  %v296_v37 = vld [vmem:[%s6995_s20 + $0x148] sm:$0xff]  ;;  %v1682_v38 = vld [vmem:[#allocation6 + $0x2b10] sm:$0xff] }
 0x313   : > { %3393 = vmatprep.subr.mxu1 %v1649_v39  ;;  %3325 = vmatpush2.msra.mxu0 %v1646_v40  ;;  %v295_v39 = vld [vmem:[%s6995_s20 + $0x140] sm:$0xff]  ;;  %v1681_v40 = vld [vmem:[#allocation6 + $0x2b08] sm:$0xff] }
 0x314   : > { %3394 = vmatpush1.msra.mxu1 %v1648_v41  ;;  %3326 = vmatprep.subr.mxu0 %v1645_v42  ;;  %v1743_v41 = vld [vmem:[#allocation6 + $0x2cf8] sm:$0xff]  ;;  %v1680_v42 = vld [vmem:[#allocation6 + $0x2b00] sm:$0xff] }
 0x315   : > { %3395 = vmatprep.subr.mxu1 %v1711_v43  ;;  %3327 = vmatpush2.msra.mxu0 %v1644_v44  ;;  %v298_v43 = vld [vmem:[%s6995_s20 + $0x158] sm:$0xff] }
 0x316   : > { %3396 = vmatpush2.msra.mxu1 %v1710_v45  ;;  %3328 = vmatprep.subr.mxu0 %v1643_v46  ;;  %v1742_v44 = vld [vmem:[#allocation6 + $0x2cf0] sm:$0xff]  ;;  %v297_v45 = vld [vmem:[%s6995_s20 + $0x150] sm:$0xff] }
 0x317   : > { %3397 = vmatprep.subr.mxu1 %v1709_v47  ;;  %3329 = vmatpush2.msra.mxu0 %v1642_v48  ;;  %v1741_v46 = vld [vmem:[#allocation6 + $0x2ce8] sm:$0xff]  ;;  %v1807_v47 = vld [vmem:[#allocation6 + $0x2ef8] sm:$0xff]  ;;  %v1740_v48 = vld [vmem:[#allocation6 + $0x2ce0] sm:$0xff] }
 0x318   : > { %3398 = vmatpush2.msra.mxu1 %v1708_v49  ;;  %3330 = vmatprep.subr.mxu0 %v1641_v50  ;;  %v1806_v49 = vld [vmem:[#allocation6 + $0x2ef0] sm:$0xff]  ;;  %v1739_v50 = vld [vmem:[#allocation6 + $0x2cd8] sm:$0xff] }
 0x319   : > { %3399 = vmatprep.subr.mxu1 %v1707_v51  ;;  %3331 = vmatpush2.msra.mxu0 %v1640_v52  ;;  %v1805_v51 = vld [vmem:[#allocation6 + $0x2ee8] sm:$0xff]  ;;  %v1738_v52 = vld [vmem:[#allocation6 + $0x2cd0] sm:$0xff] }
 0x31a   : > { %3400 = vmatpush2.msra.mxu1 %v1706_v53  ;;  %3332 = vmatprep.subr.mxu0 %v1639_v54  ;;  %v1804_v53 = vld [vmem:[#allocation6 + $0x2ee0] sm:$0xff]  ;;  %v1737_v54 = vld [vmem:[#allocation6 + $0x2cc8] sm:$0xff] }
 0x31b   : > { %3401 = vmatprep.subr.mxu1 %v1705_v55  ;;  %3333 = vmatpush2.msra.mxu0 %v1638_v56  ;;  %v1803_v55 = vld [vmem:[#allocation6 + $0x2ed8] sm:$0xff]  ;;  %v1736_v56 = vld [vmem:[#allocation6 + $0x2cc0] sm:$0xff] }
 0x31c   : > { %3402 = vmatpush2.msra.mxu1 %v1704_v57  ;;  %3334 = vmatprep.subr.mxu0 %v1637_v58  ;;  %v1802_v57 = vld [vmem:[#allocation6 + $0x2ed0] sm:$0xff]  ;;  %v1735_v58 = vld [vmem:[#allocation6 + $0x2cb8] sm:$0xff] }
 0x31d   : > { %3403 = vmatprep.subr.mxu1 %v1703_v59  ;;  %3335 = vmatpush2.msra.mxu0 %v1636_v60  ;;  %v1801_v59 = vld [vmem:[#allocation6 + $0x2ec8] sm:$0xff]  ;;  %v1734_v60 = vld [vmem:[#allocation6 + $0x2cb0] sm:$0xff] }
 0x31e   : > { %3404 = vmatpush2.msra.mxu1 %v1702_v61  ;;  %3336 = vmatprep.subr.mxu0 %v1635_v62  ;;  %v1800_v61 = vld [vmem:[#allocation6 + $0x2ec0] sm:$0xff]  ;;  %v1733_v62 = vld [vmem:[#allocation6 + $0x2ca8] sm:$0xff] }
 0x31f   : > { %3405 = vmatprep.subr.mxu1 %v1701_v63  ;;  %3337 = vmatpush2.msra.mxu0 %v1634_v0  ;;  %v1799_v63 = vld [vmem:[#allocation6 + $0x2eb8] sm:$0xff]  ;;  %v1732_v0 = vld [vmem:[#allocation6 + $0x2ca0] sm:$0xff] }
 0x320   : > { %3406 = vmatpush2.msra.mxu1 %v1700_v1  ;;  %3338 = vmatprep.subr.mxu0 %v1633_v2  ;;  %v1798_v1 = vld [vmem:[#allocation6 + $0x2eb0] sm:$0xff]  ;;  %v1731_v2 = vld [vmem:[#allocation6 + $0x2c98] sm:$0xff] }
 0x321   : > { %3407 = vmatprep.subr.mxu1 %v1699_v3  ;;  %3339 = vmatpush2.msra.mxu0 %v1632_v4  ;;  %v1797_v3 = vld [vmem:[#allocation6 + $0x2ea8] sm:$0xff]  ;;  %v1730_v4 = vld [vmem:[#allocation6 + $0x2c90] sm:$0xff] }
 0x322   : > { %3408 = vmatpush2.msra.mxu1 %v1698_v5  ;;  %3340 = vmatprep.subr.mxu0 %v1631_v6  ;;  %v1796_v5 = vld [vmem:[#allocation6 + $0x2ea0] sm:$0xff]  ;;  %v1729_v6 = vld [vmem:[#allocation6 + $0x2c88] sm:$0xff] }
 0x323   : > { %3409 = vmatprep.subr.mxu1 %v1697_v7  ;;  %3341 = vmatpush2.msra.mxu0 %v1630_v8  ;;  %v1795_v7 = vld [vmem:[#allocation6 + $0x2e98] sm:$0xff]  ;;  %v1728_v8 = vld [vmem:[#allocation6 + $0x2c80] sm:$0xff] }
 0x324   : > { %3410 = vmatpush2.msra.mxu1 %v1696_v9  ;;  %3342 = vmatprep.subr.mxu0 %v1629_v10  ;;  %v1794_v9 = vld [vmem:[#allocation6 + $0x2e90] sm:$0xff]  ;;  %v1727_v10 = vld [vmem:[#allocation6 + $0x2c78] sm:$0xff] }
 0x325   : > { %3411 = vmatprep.subr.mxu1 %v1695_v11  ;;  %3343 = vmatpush2.msra.mxu0 %v1628_v12  ;;  %v1793_v11 = vld [vmem:[#allocation6 + $0x2e88] sm:$0xff]  ;;  %v1726_v12 = vld [vmem:[#allocation6 + $0x2c70] sm:$0xff] }
 0x326   : > { %3412 = vmatpush2.msra.mxu1 %v1694_v13  ;;  %3344 = vmatprep.subr.mxu0 %v1627_v14  ;;  %v1792_v13 = vld [vmem:[#allocation6 + $0x2e80] sm:$0xff]  ;;  %v1725_v14 = vld [vmem:[#allocation6 + $0x2c68] sm:$0xff] }
 0x327   : > { %3413 = vmatprep.subr.mxu1 %v1693_v15  ;;  %3345 = vmatpush2.msra.mxu0 %v1626_v16  ;;  %v1791_v15 = vld [vmem:[#allocation6 + $0x2e78] sm:$0xff]  ;;  %v1724_v16 = vld [vmem:[#allocation6 + $0x2c60] sm:$0xff] }
 0x328   : > { %3414 = vmatpush2.msra.mxu1 %v1692_v17  ;;  %3346 = vmatprep.subr.mxu0 %v1625_v18  ;;  %v1790_v17 = vld [vmem:[#allocation6 + $0x2e70] sm:$0xff]  ;;  %v1723_v18 = vld [vmem:[#allocation6 + $0x2c58] sm:$0xff] }
 0x329   : > { %3415 = vmatprep.subr.mxu1 %v1691_v19  ;;  %3347 = vmatpush2.msra.mxu0 %v1624_v20  ;;  %v1789_v19 = vld [vmem:[#allocation6 + $0x2e68] sm:$0xff]  ;;  %v1722_v20 = vld [vmem:[#allocation6 + $0x2c50] sm:$0xff] }
 0x32a   : > { %3416 = vmatpush2.msra.mxu1 %v1690_v21  ;;  %3348 = vmatprep.subr.mxu0 %v1623_v22  ;;  %v1788_v21 = vld [vmem:[#allocation6 + $0x2e60] sm:$0xff]  ;;  %v1721_v22 = vld [vmem:[#allocation6 + $0x2c48] sm:$0xff] }
 0x32b   : > { %3417 = vmatprep.subr.mxu1 %v1689_v23  ;;  %3349 = vmatpush2.msra.mxu0 %v1622_v24  ;;  %v1787_v23 = vld [vmem:[#allocation6 + $0x2e58] sm:$0xff]  ;;  %v1720_v24 = vld [vmem:[#allocation6 + $0x2c40] sm:$0xff] }
 0x32c   : > { %3418 = vmatpush2.msra.mxu1 %v1688_v25  ;;  %3350 = vmatprep.subr.mxu0 %v1621_v26  ;;  %v1786_v25 = vld [vmem:[#allocation6 + $0x2e50] sm:$0xff]  ;;  %v1719_v26 = vld [vmem:[#allocation6 + $0x2c38] sm:$0xff] }
 0x32d   : > { %3419 = vmatprep.subr.mxu1 %v1687_v27  ;;  %3351 = vmatpush2.msra.mxu0 %v1620_v28  ;;  %v1785_v27 = vld [vmem:[#allocation6 + $0x2e48] sm:$0xff]  ;;  %v1718_v28 = vld [vmem:[#allocation6 + $0x2c30] sm:$0xff] }
 0x32e   : > { %3420 = vmatpush2.msra.mxu1 %v1686_v29  ;;  %3352 = vmatprep.subr.mxu0 %v1619_v30  ;;  %v1784_v29 = vld [vmem:[#allocation6 + $0x2e40] sm:$0xff]  ;;  %v1717_v30 = vld [vmem:[#allocation6 + $0x2c28] sm:$0xff] }
 0x32f   : > { %3421 = vmatprep.subr.mxu1 %v1685_v31  ;;  %3353 = vmatpush2.msra.mxu0 %v1618_v32  ;;  %v1783_v31 = vld [vmem:[#allocation6 + $0x2e38] sm:$0xff]  ;;  %v1716_v32 = vld [vmem:[#allocation6 + $0x2c20] sm:$0xff] }
 0x330   : > { %3422 = vmatpush2.msra.mxu1 %v1684_v33  ;;  %3354 = vmatprep.subr.mxu0 %v1617_v34  ;;  %v1782_v33 = vld [vmem:[#allocation6 + $0x2e30] sm:$0xff]  ;;  %v1715_v34 = vld [vmem:[#allocation6 + $0x2c18] sm:$0xff] }
 0x331   : > { %3423 = vmatprep.subr.mxu1 %v1683_v35  ;;  %3355 = vmatpush2.msra.mxu0 %v1616_v36  ;;  %v1781_v35 = vld [vmem:[#allocation6 + $0x2e28] sm:$0xff]  ;;  %v1714_v36 = vld [vmem:[#allocation6 + $0x2c10] sm:$0xff] }
 0x332   : > { %3356 = vmatprep.mubr.f32.mxu0 %v296_v37  ;;  %3424 = vmatpush2.msra.mxu1 %v1682_v38  ;;  %v1780_v37 = vld [vmem:[#allocation6 + $0x2e20] sm:$0xff]  ;;  %v1713_v38 = vld [vmem:[#allocation6 + $0x2c08] sm:$0xff] }
 0x333   : > { %3357 = vmatmul.mubr.f32.vlgmr.msra.gmra.mxu0 %v295_v39  ;;  %3425 = vmatprep.subr.mxu1 %v1681_v40  ;;  %v1779_v39 = vld [vmem:[#allocation6 + $0x2e18] sm:$0xff]  ;;  %v1712_v40 = vld [vmem:[#allocation6 + $0x2c00] sm:$0xff] }
 0x334   : > { %3434 = vmatprep.subr.mxu0 %v1743_v41  ;;  %3426 = vmatpush2.msra.mxu1 %v1680_v42  ;;  %v1778_v41 = vld [vmem:[#allocation6 + $0x2e10] sm:$0xff]  ;;  %v1775_v42 = vld [vmem:[#allocation6 + $0x2df8] sm:$0xff] }
 0x335   : > { %3427 = vmatprep.mubr.f32.mxu1 %v298_v43  ;;  %3435 = vmatpush1.msra.mxu0 %v1742_v44  ;;  %v1777_v43 = vld [vmem:[#allocation6 + $0x2e08] sm:$0xff]  ;;  %v1774_v44 = vld [vmem:[#allocation6 + $0x2df0] sm:$0xff] }
 0x336   : > { %3428 = vmatmul.mubr.f32.vlgmr.msra.gmra.mxu1 %v297_v45  ;;  %3436 = vmatprep.subr.mxu0 %v1741_v46  ;;  %v1776_v45 = vld [vmem:[#allocation6 + $0x2e00] sm:$0xff]  ;;  %v1773_v46 = vld [vmem:[#allocation6 + $0x2de8] sm:$0xff] }
 0x337   : > { %3505 = vmatprep.subr.mxu1 %v1807_v47  ;;  %3437 = vmatpush1.msra.mxu0 %v1740_v48  ;;  %v1839_v47 = vld [vmem:[#allocation6 + $0x2ff8] sm:$0xff]  ;;  %v1772_v48 = vld [vmem:[#allocation6 + $0x2de0] sm:$0xff] }
 0x338   : > { %3506 = vmatpush1.msra.mxu1 %v1806_v49  ;;  %3438 = vmatprep.subr.mxu0 %v1739_v50  ;;  %v1838_v49 = vld [vmem:[#allocation6 + $0x2ff0] sm:$0xff]  ;;  %v1771_v50 = vld [vmem:[#allocation6 + $0x2dd8] sm:$0xff] }
 0x339   : > { %3507 = vmatprep.subr.mxu1 %v1805_v51  ;;  %3439 = vmatpush1.msra.mxu0 %v1738_v52  ;;  %v1837_v51 = vld [vmem:[#allocation6 + $0x2fe8] sm:$0xff]  ;;  %v1770_v52 = vld [vmem:[#allocation6 + $0x2dd0] sm:$0xff] }
 0x33a   : > { %3508 = vmatpush1.msra.mxu1 %v1804_v53  ;;  %3440 = vmatprep.subr.mxu0 %v1737_v54  ;;  %v1836_v53 = vld [vmem:[#allocation6 + $0x2fe0] sm:$0xff]  ;;  %v1769_v54 = vld [vmem:[#allocation6 + $0x2dc8] sm:$0xff] }
 0x33b   : > { %3509 = vmatprep.subr.mxu1 %v1803_v55  ;;  %3441 = vmatpush1.msra.mxu0 %v1736_v56  ;;  %v1835_v55 = vld [vmem:[#allocation6 + $0x2fd8] sm:$0xff]  ;;  %v1768_v56 = vld [vmem:[#allocation6 + $0x2dc0] sm:$0xff] }
 0x33c   : > { %3510 = vmatpush1.msra.mxu1 %v1802_v57  ;;  %3442 = vmatprep.subr.mxu0 %v1735_v58  ;;  %v1834_v57 = vld [vmem:[#allocation6 + $0x2fd0] sm:$0xff]  ;;  %v1767_v58 = vld [vmem:[#allocation6 + $0x2db8] sm:$0xff] }
 0x33d   : > { %3511 = vmatprep.subr.mxu1 %v1801_v59  ;;  %3443 = vmatpush1.msra.mxu0 %v1734_v60  ;;  %v1833_v59 = vld [vmem:[#allocation6 + $0x2fc8] sm:$0xff]  ;;  %v1766_v60 = vld [vmem:[#allocation6 + $0x2db0] sm:$0xff] }
 0x33e   : > { %3512 = vmatpush1.msra.mxu1 %v1800_v61  ;;  %3444 = vmatprep.subr.mxu0 %v1733_v62  ;;  %v1832_v61 = vld [vmem:[#allocation6 + $0x2fc0] sm:$0xff]  ;;  %v1765_v62 = vld [vmem:[#allocation6 + $0x2da8] sm:$0xff] }
 0x33f   : > { %3513 = vmatprep.subr.mxu1 %v1799_v63  ;;  %3445 = vmatpush1.msra.mxu0 %v1732_v0  ;;  %v1831_v63 = vld [vmem:[#allocation6 + $0x2fb8] sm:$0xff]  ;;  %v1764_v0 = vld [vmem:[#allocation6 + $0x2da0] sm:$0xff] }
 0x340   : > { %3514 = vmatpush1.msra.mxu1 %v1798_v1  ;;  %3446 = vmatprep.subr.mxu0 %v1731_v2  ;;  %v1830_v1 = vld [vmem:[#allocation6 + $0x2fb0] sm:$0xff]  ;;  %v1763_v2 = vld [vmem:[#allocation6 + $0x2d98] sm:$0xff] }
 0x341   : > { %3515 = vmatprep.subr.mxu1 %v1797_v3  ;;  %3447 = vmatpush1.msra.mxu0 %v1730_v4  ;;  %v1829_v3 = vld [vmem:[#allocation6 + $0x2fa8] sm:$0xff]  ;;  %v1762_v4 = vld [vmem:[#allocation6 + $0x2d90] sm:$0xff] }
 0x342   : > { %3516 = vmatpush1.msra.mxu1 %v1796_v5  ;;  %3448 = vmatprep.subr.mxu0 %v1729_v6  ;;  %v1828_v5 = vld [vmem:[#allocation6 + $0x2fa0] sm:$0xff]  ;;  %v1761_v6 = vld [vmem:[#allocation6 + $0x2d88] sm:$0xff] }
 0x343   : > { %3517 = vmatprep.subr.mxu1 %v1795_v7  ;;  %3449 = vmatpush1.msra.mxu0 %v1728_v8  ;;  %v1827_v7 = vld [vmem:[#allocation6 + $0x2f98] sm:$0xff]  ;;  %v1760_v8 = vld [vmem:[#allocation6 + $0x2d80] sm:$0xff] }
 0x344   : > { %3518 = vmatpush1.msra.mxu1 %v1794_v9  ;;  %3450 = vmatprep.subr.mxu0 %v1727_v10  ;;  %v1826_v9 = vld [vmem:[#allocation6 + $0x2f90] sm:$0xff]  ;;  %v1759_v10 = vld [vmem:[#allocation6 + $0x2d78] sm:$0xff] }
 0x345   : > { %3519 = vmatprep.subr.mxu1 %v1793_v11  ;;  %3451 = vmatpush1.msra.mxu0 %v1726_v12  ;;  %v1825_v11 = vld [vmem:[#allocation6 + $0x2f88] sm:$0xff]  ;;  %v1758_v12 = vld [vmem:[#allocation6 + $0x2d70] sm:$0xff] }
 0x346   : > { %3520 = vmatpush1.msra.mxu1 %v1792_v13  ;;  %3452 = vmatprep.subr.mxu0 %v1725_v14  ;;  %v1824_v13 = vld [vmem:[#allocation6 + $0x2f80] sm:$0xff]  ;;  %v1757_v14 = vld [vmem:[#allocation6 + $0x2d68] sm:$0xff] }
 0x347   : > { %3521 = vmatprep.subr.mxu1 %v1791_v15  ;;  %3453 = vmatpush1.msra.mxu0 %v1724_v16  ;;  %v1823_v15 = vld [vmem:[#allocation6 + $0x2f78] sm:$0xff]  ;;  %v1756_v16 = vld [vmem:[#allocation6 + $0x2d60] sm:$0xff] }
 0x348   : > { %3522 = vmatpush1.msra.mxu1 %v1790_v17  ;;  %3454 = vmatprep.subr.mxu0 %v1723_v18  ;;  %v1822_v17 = vld [vmem:[#allocation6 + $0x2f70] sm:$0xff]  ;;  %v1755_v18 = vld [vmem:[#allocation6 + $0x2d58] sm:$0xff] }
 0x349   : > { %3523 = vmatprep.subr.mxu1 %v1789_v19  ;;  %3455 = vmatpush1.msra.mxu0 %v1722_v20  ;;  %v1821_v19 = vld [vmem:[#allocation6 + $0x2f68] sm:$0xff]  ;;  %v1754_v20 = vld [vmem:[#allocation6 + $0x2d50] sm:$0xff] }
 0x34a   : > { %3524 = vmatpush1.msra.mxu1 %v1788_v21  ;;  %3456 = vmatprep.subr.mxu0 %v1721_v22  ;;  %v1820_v21 = vld [vmem:[#allocation6 + $0x2f60] sm:$0xff]  ;;  %v1753_v22 = vld [vmem:[#allocation6 + $0x2d48] sm:$0xff] }
 0x34b   : > { %3525 = vmatprep.subr.mxu1 %v1787_v23  ;;  %3457 = vmatpush1.msra.mxu0 %v1720_v24  ;;  %v1819_v23 = vld [vmem:[#allocation6 + $0x2f58] sm:$0xff]  ;;  %v1752_v24 = vld [vmem:[#allocation6 + $0x2d40] sm:$0xff] }
 0x34c   : > { %3526 = vmatpush1.msra.mxu1 %v1786_v25  ;;  %3458 = vmatprep.subr.mxu0 %v1719_v26  ;;  %v1818_v25 = vld [vmem:[#allocation6 + $0x2f50] sm:$0xff]  ;;  %v1751_v26 = vld [vmem:[#allocation6 + $0x2d38] sm:$0xff] }
 0x34d   : > { %3527 = vmatprep.subr.mxu1 %v1785_v27  ;;  %3459 = vmatpush1.msra.mxu0 %v1718_v28  ;;  %v1817_v27 = vld [vmem:[#allocation6 + $0x2f48] sm:$0xff]  ;;  %v1750_v28 = vld [vmem:[#allocation6 + $0x2d30] sm:$0xff] }
 0x34e   : > { %3528 = vmatpush1.msra.mxu1 %v1784_v29  ;;  %3460 = vmatprep.subr.mxu0 %v1717_v30  ;;  %v1816_v29 = vld [vmem:[#allocation6 + $0x2f40] sm:$0xff]  ;;  %v1749_v30 = vld [vmem:[#allocation6 + $0x2d28] sm:$0xff] }
 0x34f   : > { %3529 = vmatprep.subr.mxu1 %v1783_v31  ;;  %3461 = vmatpush1.msra.mxu0 %v1716_v32  ;;  %v1815_v31 = vld [vmem:[#allocation6 + $0x2f38] sm:$0xff]  ;;  %v1748_v32 = vld [vmem:[#allocation6 + $0x2d20] sm:$0xff] }
 0x350   : > { %3530 = vmatpush1.msra.mxu1 %v1782_v33  ;;  %3462 = vmatprep.subr.mxu0 %v1715_v34  ;;  %v1814_v33 = vld [vmem:[#allocation6 + $0x2f30] sm:$0xff]  ;;  %v1747_v34 = vld [vmem:[#allocation6 + $0x2d18] sm:$0xff] }
 0x351   : > { %3531 = vmatprep.subr.mxu1 %v1781_v35  ;;  %3463 = vmatpush1.msra.mxu0 %v1714_v36  ;;  %v1813_v35 = vld [vmem:[#allocation6 + $0x2f28] sm:$0xff]  ;;  %v1746_v36 = vld [vmem:[#allocation6 + $0x2d10] sm:$0xff] }
 0x352   : > { %3532 = vmatpush1.msra.mxu1 %v1780_v37  ;;  %3464 = vmatprep.subr.mxu0 %v1713_v38  ;;  %v1812_v37 = vld [vmem:[#allocation6 + $0x2f20] sm:$0xff]  ;;  %v1745_v38 = vld [vmem:[#allocation6 + $0x2d08] sm:$0xff] }
 0x353   : > { %3533 = vmatprep.subr.mxu1 %v1779_v39  ;;  %3465 = vmatpush1.msra.mxu0 %v1712_v40  ;;  %v1811_v39 = vld [vmem:[#allocation6 + $0x2f18] sm:$0xff]  ;;  %v1744_v40 = vld [vmem:[#allocation6 + $0x2d00] sm:$0xff] }
 0x354   : > { %3534 = vmatpush1.msra.mxu1 %v1778_v41  ;;  %3466 = vmatprep.subr.mxu0 %v1775_v42  ;;  %v300_v41 = vld [vmem:[%s6995_s20 + $0x168] sm:$0xff]  ;;  %v1810_v42 = vld [vmem:[#allocation6 + $0x2f10] sm:$0xff] }
 0x355   : > { %3535 = vmatprep.subr.mxu1 %v1777_v43  ;;  %3467 = vmatpush2.msra.mxu0 %v1774_v44  ;;  %v299_v43 = vld [vmem:[%s6995_s20 + $0x160] sm:$0xff]  ;;  %v1809_v44 = vld [vmem:[#allocation6 + $0x2f08] sm:$0xff] }
 0x356   : > { %3536 = vmatpush1.msra.mxu1 %v1776_v45  ;;  %3468 = vmatprep.subr.mxu0 %v1773_v46  ;;  %v1871_v45 = vld [vmem:[#allocation6 + $0x30f8] sm:$0xff]  ;;  %v1808_v46 = vld [vmem:[#allocation6 + $0x2f00] sm:$0xff] }
 0x357   : > { %3537 = vmatprep.subr.mxu1 %v1839_v47  ;;  %3469 = vmatpush2.msra.mxu0 %v1772_v48  ;;  %v302_v47 = vld [vmem:[%s6995_s20 + $0x178] sm:$0xff] }
 0x358   : > { %3538 = vmatpush2.msra.mxu1 %v1838_v49  ;;  %3470 = vmatprep.subr.mxu0 %v1771_v50  ;;  %v1870_v48 = vld [vmem:[#allocation6 + $0x30f0] sm:$0xff]  ;;  %v301_v49 = vld [vmem:[%s6995_s20 + $0x170] sm:$0xff] }
 0x359   : > { %3539 = vmatprep.subr.mxu1 %v1837_v51  ;;  %3471 = vmatpush2.msra.mxu0 %v1770_v52  ;;  %v1869_v50 = vld [vmem:[#allocation6 + $0x30e8] sm:$0xff]  ;;  %v1868_v51 = vld [vmem:[#allocation6 + $0x30e0] sm:$0xff]  ;;  %v1867_v52 = vld [vmem:[#allocation6 + $0x30d8] sm:$0xff] }
 0x35a   : > { %3540 = vmatpush2.msra.mxu1 %v1836_v53  ;;  %3472 = vmatprep.subr.mxu0 %v1769_v54  ;;  %v1866_v53 = vld [vmem:[#allocation6 + $0x30d0] sm:$0xff]  ;;  %v6838_v54 = vmov 0.0  }
 0x35b   : > { %3541 = vmatprep.subr.mxu1 %v1835_v55  ;;  %3473 = vmatpush2.msra.mxu0 %v1768_v56  ;;  %v1865_v55 = vld [vmem:[#allocation6 + $0x30c8] sm:$0xff]  ;;  %v1864_v56 = vld [vmem:[#allocation6 + $0x30c0] sm:$0xff] }
 0x35c   : > { %3542 = vmatpush2.msra.mxu1 %v1834_v57  ;;  %3474 = vmatprep.subr.mxu0 %v1767_v58  ;;  %v1863_v57 = vld [vmem:[#allocation6 + $0x30b8] sm:$0xff]  ;;  %v1862_v58 = vld [vmem:[#allocation6 + $0x30b0] sm:$0xff] }
 0x35d   : > { %3543 = vmatprep.subr.mxu1 %v1833_v59  ;;  %3475 = vmatpush2.msra.mxu0 %v1766_v60  ;;  %v1861_v59 = vld [vmem:[#allocation6 + $0x30a8] sm:$0xff]  ;;  %v1860_v60 = vld [vmem:[#allocation6 + $0x30a0] sm:$0xff] }
 0x35e   : > { %3544 = vmatpush2.msra.mxu1 %v1832_v61  ;;  %3476 = vmatprep.subr.mxu0 %v1765_v62  ;;  %v1859_v61 = vld [vmem:[#allocation6 + $0x3098] sm:$0xff]  ;;  %v1858_v62 = vld [vmem:[#allocation6 + $0x3090] sm:$0xff] }
 0x35f   : > { %3545 = vmatprep.subr.mxu1 %v1831_v63  ;;  %3477 = vmatpush2.msra.mxu0 %v1764_v0  ;;  %v1857_v63 = vld [vmem:[#allocation6 + $0x3088] sm:$0xff]  ;;  %v1856_v0 = vld [vmem:[#allocation6 + $0x3080] sm:$0xff] }
 0x360   : > { %3546 = vmatpush2.msra.mxu1 %v1830_v1  ;;  %3478 = vmatprep.subr.mxu0 %v1763_v2  ;;  %v1855_v1 = vld [vmem:[#allocation6 + $0x3078] sm:$0xff]  ;;  %v1854_v2 = vld [vmem:[#allocation6 + $0x3070] sm:$0xff] }
 0x361   : > { %3547 = vmatprep.subr.mxu1 %v1829_v3  ;;  %3479 = vmatpush2.msra.mxu0 %v1762_v4  ;;  %v1853_v3 = vld [vmem:[#allocation6 + $0x3068] sm:$0xff]  ;;  %v1852_v4 = vld [vmem:[#allocation6 + $0x3060] sm:$0xff] }
 0x362   : > { %3548 = vmatpush2.msra.mxu1 %v1828_v5  ;;  %3480 = vmatprep.subr.mxu0 %v1761_v6  ;;  %v1851_v5 = vld [vmem:[#allocation6 + $0x3058] sm:$0xff]  ;;  %v1850_v6 = vld [vmem:[#allocation6 + $0x3050] sm:$0xff] }
 0x363   : > { %3549 = vmatprep.subr.mxu1 %v1827_v7  ;;  %3481 = vmatpush2.msra.mxu0 %v1760_v8  ;;  %v1849_v7 = vld [vmem:[#allocation6 + $0x3048] sm:$0xff]  ;;  %v1848_v8 = vld [vmem:[#allocation6 + $0x3040] sm:$0xff] }
 0x364   : > { %3550 = vmatpush2.msra.mxu1 %v1826_v9  ;;  %3482 = vmatprep.subr.mxu0 %v1759_v10  ;;  %v1847_v9 = vld [vmem:[#allocation6 + $0x3038] sm:$0xff]  ;;  %v1846_v10 = vld [vmem:[#allocation6 + $0x3030] sm:$0xff] }
 0x365   : > { %3551 = vmatprep.subr.mxu1 %v1825_v11  ;;  %3483 = vmatpush2.msra.mxu0 %v1758_v12  ;;  %v1845_v11 = vld [vmem:[#allocation6 + $0x3028] sm:$0xff]  ;;  %v1844_v12 = vld [vmem:[#allocation6 + $0x3020] sm:$0xff] }
 0x366   : > { %3552 = vmatpush2.msra.mxu1 %v1824_v13  ;;  %3484 = vmatprep.subr.mxu0 %v1757_v14  ;;  %v1843_v13 = vld [vmem:[#allocation6 + $0x3018] sm:$0xff]  ;;  %v1842_v14 = vld [vmem:[#allocation6 + $0x3010] sm:$0xff] }
 0x367   : > { %3553 = vmatprep.subr.mxu1 %v1823_v15  ;;  %3485 = vmatpush2.msra.mxu0 %v1756_v16  ;;  %v1841_v15 = vld [vmem:[#allocation6 + $0x3008] sm:$0xff]  ;;  %v1840_v16 = vld [vmem:[#allocation6 + $0x3000] sm:$0xff] }
 0x368   : > { %3554 = vmatpush2.msra.mxu1 %v1822_v17  ;;  %3486 = vmatprep.subr.mxu0 %v1755_v18  ;;  %v303_v17 = vld [vmem:[%s6995_s20 + $0x180] sm:$0xff]  ;;  %v4410_v18 = vld [vmem:[#allocation8 + $0x1700] sm:$0xff] }
 0x369   : > { %3555 = vmatprep.subr.mxu1 %v1821_v19  ;;  %3487 = vmatpush2.msra.mxu0 %v1754_v20  ;;  %v4412_v19 = vld [vmem:[#allocation8 + $0x1710] sm:$0xff]  ;;  %v4409_v20 = vld [vmem:[#allocation8 + $0x16f8] sm:$0xff] }
 0x36a   : > { %3556 = vmatpush2.msra.mxu1 %v1820_v21  ;;  %3488 = vmatprep.subr.mxu0 %v1753_v22  ;;  %v4411_v21 = vld [vmem:[#allocation8 + $0x1708] sm:$0xff]  ;;  %v4361_v22 = vld [vmem:[#allocation8 + $0x1578] sm:$0xff] }
 0x36b   : > { %3557 = vmatprep.subr.mxu1 %v1819_v23  ;;  %3489 = vmatpush2.msra.mxu0 %v1752_v24  ;;  %v4363_v23 = vld [vmem:[#allocation8 + $0x1588] sm:$0xff]  ;;  %v4360_v24 = vld [vmem:[#allocation8 + $0x1570] sm:$0xff] }
 0x36c   : > { %3558 = vmatpush2.msra.mxu1 %v1818_v25  ;;  %3490 = vmatprep.subr.mxu0 %v1751_v26  ;;  %v4362_v25 = vld [vmem:[#allocation8 + $0x1580] sm:$0xff]  ;;  %v4312_v26 = vld [vmem:[#allocation8 + $0x13f0] sm:$0xff] }
 0x36d   : > { %3559 = vmatprep.subr.mxu1 %v1817_v27  ;;  %3491 = vmatpush2.msra.mxu0 %v1750_v28  ;;  %v4314_v27 = vld [vmem:[#allocation8 + $0x1400] sm:$0xff]  ;;  %v4311_v28 = vld [vmem:[#allocation8 + $0x13e8] sm:$0xff] }
 0x36e   : > { %3560 = vmatpush2.msra.mxu1 %v1816_v29  ;;  %3492 = vmatprep.subr.mxu0 %v1749_v30  ;;  %v4313_v29 = vld [vmem:[#allocation8 + $0x13f8] sm:$0xff]  ;;  %v4263_v30 = vld [vmem:[#allocation8 + $0x1268] sm:$0xff] }
 0x36f   : > { %3561 = vmatprep.subr.mxu1 %v1815_v31  ;;  %3493 = vmatpush2.msra.mxu0 %v1748_v32  ;;  %v4265_v31 = vld [vmem:[#allocation8 + $0x1278] sm:$0xff]  ;;  %v4262_v32 = vld [vmem:[#allocation8 + $0x1260] sm:$0xff] }
 0x370   : > { %3562 = vmatpush2.msra.mxu1 %v1814_v33  ;;  %3494 = vmatprep.subr.mxu0 %v1747_v34  ;;  %v4264_v33 = vld [vmem:[#allocation8 + $0x1270] sm:$0xff]  ;;  %v4214_v34 = vld [vmem:[#allocation8 + $0x10e0] sm:$0xff] }
 0x371   : > { %3563 = vmatprep.subr.mxu1 %v1813_v35  ;;  %3495 = vmatpush2.msra.mxu0 %v1746_v36  ;;  %v4216_v35 = vld [vmem:[#allocation8 + $0x10f0] sm:$0xff]  ;;  %v1938_v36 = vpop.f32.mrf.mxu0 }
 0x372   : > { %3564 = vmatpush2.msra.mxu1 %v1812_v37  ;;  %3496 = vmatprep.subr.mxu0 %v1745_v38  ;;  %v4213_v37 = vld [vmem:[#allocation8 + $0x10d8] sm:$0xff]  ;;  %v4215_v38 = vld [vmem:[#allocation8 + $0x10e8] sm:$0xff] }
 0x373   : > { %3565 = vmatprep.subr.mxu1 %v1811_v39  ;;  %3497 = vmatpush2.msra.mxu0 %v1744_v40  ;;  %v4165_v39 = vld [vmem:[#allocation8 + $0xf58] sm:$0xff]  ;;  %v4167_v40 = vld [vmem:[#allocation8 + $0xf68] sm:$0xff] }
 0x374   : > { %3498 = vmatprep.mubr.f32.mxu0 %v300_v41  ;;  %3566 = vmatpush2.msra.mxu1 %v1810_v42  ;;  %v4164_v41 = vld [vmem:[#allocation8 + $0xf50] sm:$0xff]  ;;  %v4166_v42 = vld [vmem:[#allocation8 + $0xf60] sm:$0xff] }
 0x375   : > { %3499 = vmatmul.mubr.f32.vlgmr.msra.gmra.mxu0 %v299_v43  ;;  %3567 = vmatprep.subr.mxu1 %v1809_v44  ;;  %v4116_v43 = vld [vmem:[#allocation8 + $0xdd0] sm:$0xff]  ;;  %v4118_v44 = vld [vmem:[#allocation8 + $0xde0] sm:$0xff] }
 0x376   : > { %3576 = vmatprep.subr.mxu0 %v1871_v45  ;;  %3568 = vmatpush2.msra.mxu1 %v1808_v46  ;;  %v2009_v45 = vpop.f32.mrf.mxu1  ;;  %v1940_v46 = vpop.f32.mrf.mxu0 }
 0x377   : > { %3569 = vmatprep.mubr.f32.mxu1 %v302_v47  ;;  %3577 = vmatpush1.msra.mxu0 %v1870_v48  ;;  %v4115_v47 = vld [vmem:[#allocation8 + $0xdc8] sm:$0xff]  ;;  %v4117_v48 = vld [vmem:[#allocation8 + $0xdd8] sm:$0xff] }
 0x378   : > { %3570 = vmatmul.mubr.f32.vlgmr.msra.gmra.mxu1 %v301_v49  ;;  %3578 = vmatprep.subr.mxu0 %v1869_v50  ;;  %v4067_v49 = vld [vmem:[#allocation8 + $0xc48] sm:$0xff]  ;;  %v4069_v50 = vld [vmem:[#allocation8 + $0xc58] sm:$0xff] }
 0x379   : > { %3640 = vmatprep.mubr.f32.mxu0 %v6838_v54  ;;  %3579 = vmatpush1.msra.mxu0 %v1868_v51  ;;  %v2080_v51 = vpop.f32.mrf.mxu0 }
 0x37a   : > { %4522 = vmatprep.mubr.f32.mxu1 %v6838_v54  ;;  %3580 = vmatprep.subr.mxu0 %v1867_v52  ;;  %v4066_v52 = vld [vmem:[#allocation8 + $0xc40] sm:$0xff] }
 0x37b   : > { %3581 = vmatpush1.msra.mxu0 %v1866_v53  ;;  %4458 = vmatprep.subr.mxu1 %v4410_v18  ;;  %v4068_v53 = vld [vmem:[#allocation8 + $0xc50] sm:$0xff]  ;;  %v3821_v18 = vld [vmem:[#allocation8 + $0x498] sm:$0xff] }
 0x37c   : > { %3582 = vmatprep.subr.mxu0 %v1865_v55  ;;  %4459 = vmatpush1.msra.mxu1 %v4409_v20  ;;  %v4018_v55 = vld [vmem:[#allocation8 + $0xac0] sm:$0xff] }
 0x37d   : > { %3583 = vmatpush1.msra.mxu0 %v1864_v56  ;;  %4460 = vmatprep.subr.mxu1 %v4361_v22  ;;  %v4020_v56 = vld [vmem:[#allocation8 + $0xad0] sm:$0xff]  ;;  %v3775_v22 = vld [vmem:[#allocation8 + $0x328] sm:$0xff] }
 0x37e   : > { %3584 = vmatprep.subr.mxu0 %v1863_v57  ;;  %4461 = vmatpush1.msra.mxu1 %v4360_v24  ;;  %v2011_v57 = vpop.f32.mrf.mxu1 }
 0x37f   : > { %3585 = vmatpush1.msra.mxu0 %v1862_v58  ;;  %4462 = vmatprep.subr.mxu1 %v4312_v26  ;;  %v4017_v58 = vld [vmem:[#allocation8 + $0xab8] sm:$0xff]  ;;  %v3774_v26 = vld [vmem:[#allocation8 + $0x320] sm:$0xff] }
 0x380   : > { %3586 = vmatprep.subr.mxu0 %v1861_v59  ;;  %4463 = vmatpush1.msra.mxu1 %v4311_v28  ;;  %v4019_v59 = vld [vmem:[#allocation8 + $0xac8] sm:$0xff] }
 0x381   : > { %3587 = vmatpush1.msra.mxu0 %v1860_v60  ;;  %4464 = vmatprep.subr.mxu1 %v4263_v30  ;;  %v2010_v60 = vadd.f32 %v2009_v45, %v1938_v36  ;;  %v3726_v30 = vld [vmem:[#allocation8 + $0x1a0] sm:$0xff]  ;;  %v3677_v36 = vld [vmem:[#allocation8 + $0x18] sm:$0xff] }
 0x382   : > { %3588 = vmatprep.subr.mxu0 %v1859_v61  ;;  %4465 = vmatpush1.msra.mxu1 %v4262_v32  ;;  %v3969_v61 = vld [vmem:[#allocation8 + $0x938] sm:$0xff]  ;;  %v3723_v32 = vld [vmem:[#allocation8 + $0x188] sm:$0xff] }
 0x383   : > { %3589 = vmatpush1.msra.mxu0 %v1858_v62  ;;  %4466 = vmatprep.subr.mxu1 %v4214_v34  ;;  %v3971_v62 = vld [vmem:[#allocation8 + $0x948] sm:$0xff] }
 0x384   : > { %3590 = vmatprep.subr.mxu0 %v1857_v63  ;;  %4467 = vmatpush1.msra.mxu1 %v4213_v37  ;;  %v2082_v63 = vpop.f32.mrf.mxu0 }
 0x385   : > { %3591 = vmatpush1.msra.mxu0 %v1856_v0  ;;  %4468 = vmatprep.subr.mxu1 %v4165_v39  ;;  %v2151_v0 = vpop.f32.mrf.mxu1  ;;  %v3676_v39 = vld [vmem:[#allocation8 + $0x10] sm:$0xff] }
 0x386   : > { %3592 = vmatprep.subr.mxu0 %v1855_v1  ;;  %4469 = vmatpush1.msra.mxu1 %v4164_v41  ;;  %v3968_v1 = vld [vmem:[#allocation8 + $0x930] sm:$0xff]  ;;  %v4414_v41 = vld [vmem:[#allocation8 + $0x1720] sm:$0xff] }
 0x387   : > { %3593 = vmatpush1.msra.mxu0 %v1854_v2  ;;  %4470 = vmatprep.subr.mxu1 %v4116_v43  ;;  %v3970_v2 = vld [vmem:[#allocation8 + $0x940] sm:$0xff] }
 0x388   : > { %3594 = vmatprep.subr.mxu0 %v1853_v3  ;;  %4471 = vmatpush1.msra.mxu1 %v4115_v47  ;;  %v2012_v3 = vadd.f32 %v2011_v57, %v1940_v46 }
 0x389   : > { %3595 = vmatpush1.msra.mxu0 %v1852_v4  ;;  %4472 = vmatprep.subr.mxu1 %v4067_v49  ;;  %v2081_v4 = vadd.f32 %v2080_v51, %v2010_v60 }
 0x38a   : > { %3596 = vmatprep.subr.mxu0 %v1851_v5  ;;  %4473 = vmatpush1.msra.mxu1 %v4066_v52  ;;  %v3920_v5 = vld [vmem:[#allocation8 + $0x7b0] sm:$0xff] }
 0x38b   : > { %3597 = vmatpush1.msra.mxu0 %v1850_v6  ;;  %4474 = vmatprep.subr.mxu1 %v4018_v55  ;;  %v3922_v6 = vld [vmem:[#allocation8 + $0x7c0] sm:$0xff]  ;;  %v2152_v20 = vadd.f32 %v2151_v0, %v2081_v4 }
 0x38c   : > { %3598 = vmatprep.subr.mxu0 %v1849_v7  ;;  %4475 = vmatpush1.msra.mxu1 %v4017_v58  ;;  %v3919_v7 = vld [vmem:[#allocation8 + $0x7a8] sm:$0xff] }
 0x38d   : > { %3599 = vmatpush1.msra.mxu0 %v1848_v8  ;;  %4476 = vmatprep.subr.mxu1 %v3969_v61  ;;  %v2222_v8 = vpop.f32.mrf.mxu0 }
 0x38e   : > { %3600 = vmatprep.subr.mxu0 %v1847_v9  ;;  %4477 = vmatpush1.msra.mxu1 %v3968_v1  ;;  %v3921_v9 = vld [vmem:[#allocation8 + $0x7b8] sm:$0xff]  ;;  %v2223_v28 = vadd.f32 %v2222_v8, %v2152_v20 }
 0x38f   : > { %3601 = vmatpush1.msra.mxu0 %v1846_v10  ;;  %4478 = vmatprep.subr.mxu1 %v3920_v5  ;;  %v3871_v10 = vld [vmem:[#allocation8 + $0x628] sm:$0xff] }
 0x390   : > { %3602 = vmatprep.subr.mxu0 %v1845_v11  ;;  %v3873_v11 = vld [vmem:[#allocation8 + $0x638] sm:$0xff]  ;;  %4479 = vmatpush1.msra.mxu1 %v3919_v7 }
 0x391   : > { %3603 = vmatpush1.msra.mxu0 %v1844_v12  ;;  %v2083_v12 = vadd.f32 %v2082_v63, %v2012_v3  ;;  %4480 = vmatprep.subr.mxu1 %v3871_v10 }
 0x392   : > { %3604 = vmatprep.subr.mxu0 %v1843_v13  ;;  %v3870_v13 = vld [vmem:[#allocation8 + $0x620] sm:$0xff] }
 0x393   : > { %3605 = vmatpush1.msra.mxu0 %v1842_v14  ;;  %v3872_v14 = vld [vmem:[#allocation8 + $0x630] sm:$0xff]  ;;  %4481 = vmatpush1.msra.mxu1 %v3870_v13 }
 0x394   : > { %3606 = vmatprep.subr.mxu0 %v1841_v15  ;;  %v3822_v15 = vld [vmem:[#allocation8 + $0x4a0] sm:$0xff] }
 0x395   : > { %3607 = vmatpush1.msra.mxu0 %v1840_v16  ;;  %v2153_v16 = vpop.f32.mrf.mxu1  ;;  %4482 = vmatprep.subr.mxu1 %v3822_v15 }
 0x396   : > { %3641 = vmatmul.mubr.f32.vlgmr.msra.gmra.mxu0 %v303_v17  ;;  %4529 = vmatprep.subr.mxu0 %v4412_v19  ;;  %v3824_v17 = vld [vmem:[#allocation8 + $0x4b0] sm:$0xff]  ;;  %v3823_v19 = vld [vmem:[#allocation8 + $0x4a8] sm:$0xff] }
 0x397   : > { %4593 = vmatprep.mubr.f32.mxu0 %v6838_v54  ;;  %4530 = vmatpush1.msra.mxu0 %v4411_v21  ;;  %v3773_v21 = vld [vmem:[#allocation8 + $0x318] sm:$0xff]  ;;  %v2293_v24 = vpop.f32.mrf.mxu1 }
 0x398   : > { %4531 = vmatprep.subr.mxu0 %v4363_v23  ;;  %v2224_v23 = vpop.f32.mrf.mxu0  ;;  %4483 = vmatpush1.msra.mxu1 %v3821_v18 }
 0x399   : > { %4532 = vmatpush1.msra.mxu0 %v4362_v25  ;;  %v3772_v25 = vld [vmem:[#allocation8 + $0x310] sm:$0xff]  ;;  %4484 = vmatprep.subr.mxu1 %v3773_v21  ;;  %v2295_v37 = vpop.f32.mrf.mxu1 }
 0x39a   : > { %4533 = vmatprep.subr.mxu0 %v4314_v27  ;;  %v2154_v27 = vadd.f32 %v2153_v16, %v2083_v12  ;;  %4485 = vmatpush1.msra.mxu1 %v3772_v25 }
 0x39b   : > { %4534 = vmatpush1.msra.mxu0 %v4313_v29  ;;  %v3724_v29 = vld [vmem:[#allocation8 + $0x190] sm:$0xff] }
 0x39c   : > { %4535 = vmatprep.subr.mxu0 %v4265_v31  ;;  %v2364_v31 = vpop.f32.mrf.mxu0  ;;  %v2225_v34 = vadd.f32 %v2224_v23, %v2154_v27  ;;  %4486 = vmatprep.subr.mxu1 %v3724_v29 }
 0x39d   : > { %4536 = vmatpush1.msra.mxu0 %v4264_v33  ;;  %v3725_v33 = vld [vmem:[#allocation8 + $0x198] sm:$0xff]  ;;  %4487 = vmatpush1.msra.mxu1 %v3723_v32 }
 0x39e   : > { %4537 = vmatprep.subr.mxu0 %v4216_v35  ;;  %v3675_v35 = vld [vmem:[#allocation8 + $0x8] sm:$0xff]  ;;  %v2366_v43 = vpop.f32.mrf.mxu0  ;;  %v2296_v45 = vadd.f32 %v2295_v37, %v2225_v34 }
 0x39f   : > { %4538 = vmatpush1.msra.mxu0 %v4215_v38  ;;  %v3674_v38 = vld [vmem:[#allocation8] sm:$0xff]  ;;  %4488 = vmatprep.subr.mxu1 %v3675_v35 }
 0x3a0   : > { %4539 = vmatprep.subr.mxu0 %v4167_v40  ;;  %v2294_v40 = vadd.f32 %v2293_v24, %v2223_v28  ;;  %4489 = vmatpush1.msra.mxu1 %v3674_v38  ;;  %v2506_v47 = vpop.f32.mrf.mxu0 }
 0x3a1   : > { %4540 = vmatpush1.msra.mxu0 %v4166_v42  ;;  %v4416_v42 = vld [vmem:[#allocation8 + $0x1730] sm:$0xff]  ;;  %4600 = vmatprep.subr.mxu1 %v4414_v41 }
 0x3a2   : > { %4541 = vmatprep.subr.mxu0 %v4118_v44  ;;  %v2435_v44 = vpop.f32.mrf.mxu1  ;;  %v2365_v46 = vadd.f32 %v2364_v31, %v2294_v40  ;;  %v2508_v51 = vpop.f32.mrf.mxu0 }
 0x3a3   : > { %4542 = vmatpush1.msra.mxu0 %v4117_v48  ;;  %v2367_v48 = vadd.f32 %v2366_v43, %v2296_v45 }
 0x3a4   : > { %4543 = vmatprep.subr.mxu0 %v4069_v50  ;;  %v2437_v49 = vpop.f32.mrf.mxu1  ;;  %v2436_v50 = vadd.f32 %v2435_v44, %v2365_v46 }
 0x3a5   : > { %4544 = vmatpush1.msra.mxu0 %v4068_v53  ;;  %v2438_v53 = vadd.f32 %v2437_v49, %v2367_v48 }
 0x3a6   : > { %4545 = vmatprep.subr.mxu0 %v4020_v56  ;;  %v2577_v52 = vpop.f32.mrf.mxu1  ;;  %v2507_v55 = vadd.f32 %v2506_v47, %v2436_v50  ;;  %v2648_v56 = vpop.f32.mrf.mxu0 }
 0x3a7   : > { %4546 = vmatpush1.msra.mxu0 %v4019_v59  ;;  %v2509_v57 = vadd.f32 %v2508_v51, %v2438_v53 }
 0x3a8   : > { %4547 = vmatprep.subr.mxu0 %v3971_v62  ;;  %v2579_v58 = vpop.f32.mrf.mxu1  ;;  %v2578_v59 = vadd.f32 %v2577_v52, %v2507_v55  ;;  %v2650_v60 = vpop.f32.mrf.mxu0  ;;  %v3648_v52 = vstv %s3647_s21 }
 0x3a9   : > { %4548 = vmatpush1.msra.mxu0 %v3970_v2  ;;  %v2580_v62 = vadd.f32 %v2579_v58, %v2509_v57  ;;  %v3657_v57 = vstv %s6458_s23 }
 0x3aa   : > { %4549 = vmatprep.subr.mxu0 %v3922_v6  ;;  %v2719_v61 = vpop.f32.mrf.mxu1  ;;  %v2649_v63 = vadd.f32 %v2648_v56, %v2578_v59  ;;  %v2790_v0 = vpop.f32.mrf.mxu0 }
 0x3ab   : > { %4550 = vmatpush1.msra.mxu0 %v3921_v9  ;;  %v2651_v1 = vadd.f32 %v2650_v60, %v2580_v62 }
 0x3ac   : > { %4551 = vmatprep.subr.mxu0 %v3873_v11  ;;  %v2721_v2 = vpop.f32.mrf.mxu1  ;;  %v2720_v3 = vadd.f32 %v2719_v61, %v2649_v63  ;;  %v2792_v4 = vpop.f32.mrf.mxu0 }
 0x3ad   : > { %4552 = vmatpush1.msra.mxu0 %v3872_v14  ;;  %v2722_v6 = vadd.f32 %v2721_v2, %v2651_v1 }
 0x3ae   : > { %4553 = vmatprep.subr.mxu0 %v3824_v17  ;;  %v2861_v5 = vpop.f32.mrf.mxu1  ;;  %v2791_v7 = vadd.f32 %v2790_v0, %v2720_v3  ;;  %v2932_v8 = vpop.f32.mrf.mxu0 }
 0x3af   : > { %4554 = vmatpush1.msra.mxu0 %v3823_v19  ;;  %v2793_v9 = vadd.f32 %v2792_v4, %v2722_v6 }
 0x3b0   : > { %4555 = vmatprep.subr.mxu0 %v3775_v22  ;;  %v2863_v10 = vpop.f32.mrf.mxu1  ;;  %v2862_v11 = vadd.f32 %v2861_v5, %v2791_v7  ;;  %v2934_v12 = vpop.f32.mrf.mxu0 }
 0x3b1   : > { %4556 = vmatpush1.msra.mxu0 %v3774_v26  ;;  %v2864_v14 = vadd.f32 %v2863_v10, %v2793_v9 }
 0x3b2   : > { %4557 = vmatprep.subr.mxu0 %v3726_v30  ;;  %v3003_v13 = vpop.f32.mrf.mxu1  ;;  %v2933_v15 = vadd.f32 %v2932_v8, %v2862_v11  ;;  %v3074_v16 = vpop.f32.mrf.mxu0  ;;  %v4413_v11 = vld [vmem:[#allocation8 + $0x1718] sm:$0xff] }
 0x3b3   : > { %4558 = vmatpush1.msra.mxu0 %v3725_v33  ;;  %v2935_v17 = vadd.f32 %v2934_v12, %v2864_v14  ;;  %v4415_v12 = vld [vmem:[#allocation8 + $0x1728] sm:$0xff]  ;;  %v4365_v14 = vld [vmem:[#allocation8 + $0x1598] sm:$0xff] }
 0x3b4   : > { %4559 = vmatprep.subr.mxu0 %v3677_v36  ;;  %v3005_v18 = vpop.f32.mrf.mxu1  ;;  %v3004_v19 = vadd.f32 %v3003_v13, %v2933_v15  ;;  %v3076_v20 = vpop.f32.mrf.mxu0  ;;  %v4367_v15 = vld [vmem:[#allocation8 + $0x15a8] sm:$0xff] }
 0x3b5   : > { %4560 = vmatpush1.msra.mxu0 %v3676_v39  ;;  %v3006_v22 = vadd.f32 %v3005_v18, %v2935_v17  ;;  %v4366_v17 = vld [vmem:[#allocation8 + $0x15a0] sm:$0xff]  ;;  %v4316_v18 = vld [vmem:[#allocation8 + $0x1410] sm:$0xff] }
 0x3b6   : > { %4671 = vmatprep.subr.mxu0 %v4416_v42  ;;  %v3145_v21 = vpop.f32.mrf.mxu1  ;;  %v3075_v23 = vadd.f32 %v3074_v16, %v3004_v19  ;;  %v3216_v24 = vpop.f32.mrf.mxu0  ;;  %v4364_v16 = vld [vmem:[#allocation8 + $0x1590] sm:$0xff]  ;;  %v4318_v19 = vld [vmem:[#allocation8 + $0x1420] sm:$0xff] }
 0x3b7   : > { %v3077_v25 = vadd.f32 %v3076_v20, %v3006_v22  ;;  %v4315_v20 = vld [vmem:[#allocation8 + $0x1408] sm:$0xff] }
 0x3b8   : > { %v3147_v26 = vpop.f32.mrf.mxu1  ;;  %v3146_v27 = vadd.f32 %v3145_v21, %v3075_v23  ;;  %v3218_v28 = vpop.f32.mrf.mxu0  ;;  %v4317_v21 = vld [vmem:[#allocation8 + $0x1418] sm:$0xff]  ;;  %v4267_v22 = vld [vmem:[#allocation8 + $0x1288] sm:$0xff] }
 0x3b9   : > { %v3148_v30 = vadd.f32 %v3147_v26, %v3077_v25  ;;  %v4269_v23 = vld [vmem:[#allocation8 + $0x1298] sm:$0xff]  ;;  %v4268_v25 = vld [vmem:[#allocation8 + $0x1290] sm:$0xff]  ;;  %v4218_v26 = vld [vmem:[#allocation8 + $0x1100] sm:$0xff] }
 0x3ba   : > { %v3287_v29 = vpop.f32.mrf.mxu1  ;;  %v3217_v31 = vadd.f32 %v3216_v24, %v3146_v27  ;;  %v4266_v24 = vld [vmem:[#allocation8 + $0x1280] sm:$0xff]  ;;  %v4220_v27 = vld [vmem:[#allocation8 + $0x1110] sm:$0xff] }
 0x3bb   : > { %v3219_v33 = vadd.f32 %v3218_v28, %v3148_v30  ;;  %v4217_v28 = vld [vmem:[#allocation8 + $0x10f8] sm:$0xff] }
 0x3bc   : > { %v3289_v34 = vpop.f32.mrf.mxu1  ;;  %v3288_v35 = vadd.f32 %v3287_v29, %v3217_v31  ;;  %v4219_v29 = vld [vmem:[#allocation8 + $0x1108] sm:$0xff]  ;;  %v4169_v30 = vld [vmem:[#allocation8 + $0xf78] sm:$0xff] }
 0x3bd   : > { %v3290_v38 = vadd.f32 %v3289_v34, %v3219_v33  ;;  %v4171_v31 = vld [vmem:[#allocation8 + $0xf88] sm:$0xff]  ;;  %v4170_v33 = vld [vmem:[#allocation8 + $0xf80] sm:$0xff]  ;;  %v4120_v34 = vld [vmem:[#allocation8 + $0xdf0] sm:$0xff] }
 0x3f3   : > { %v3358_v32 = vpop.f32.mrf.mxu0 }
 0x3f4   : > { %v3359_v39 = vadd.f32 %v3358_v32, %v3288_v35  ;;  %v4168_v32 = vld [vmem:[#allocation8 + $0xf70] sm:$0xff]  ;;  %v4122_v35 = vld [vmem:[#allocation8 + $0xe00] sm:$0xff] }
 0x3f5   : > { %v3360_v36 = vpop.f32.mrf.mxu0 }
 0x3f6   : > { %v3429_v37 = vpop.f32.mrf.mxu1  ;;  %v3361_v41 = vadd.f32 %v3360_v36, %v3290_v38  ;;  %v4119_v36 = vld [vmem:[#allocation8 + $0xde8] sm:$0xff] }
 0x3f7   : > { %v3430_v43 = vadd.f32 %v3429_v37, %v3359_v39  ;;  %v4121_v37 = vld [vmem:[#allocation8 + $0xdf8] sm:$0xff]  ;;  %v4071_v38 = vld [vmem:[#allocation8 + $0xc68] sm:$0xff] }
 0x3f8   : > { %v3431_v42 = vpop.f32.mrf.mxu1  ;;  %v4073_v39 = vld [vmem:[#allocation8 + $0xc78] sm:$0xff] }
 0x3f9   : > { %v3432_v46 = vadd.f32 %v3431_v42, %v3361_v41  ;;  %v4072_v41 = vld [vmem:[#allocation8 + $0xc70] sm:$0xff]  ;;  %v4022_v42 = vld [vmem:[#allocation8 + $0xae0] sm:$0xff] }
 0x435   : > { %v3500_v40 = vpop.f32.mrf.mxu0 }
 0x436   : > { %v3501_v47 = vadd.f32 %v3500_v40, %v3430_v43  ;;  %v4070_v40 = vld [vmem:[#allocation8 + $0xc60] sm:$0xff]  ;;  %v4024_v43 = vld [vmem:[#allocation8 + $0xaf0] sm:$0xff] }
 0x437   : > { %v3502_v44 = vpop.f32.mrf.mxu0 }
 0x438   : > { %v3571_v45 = vpop.f32.mrf.mxu1  ;;  %v3503_v48 = vadd.f32 %v3502_v44, %v3432_v46  ;;  %v4021_v44 = vld [vmem:[#allocation8 + $0xad8] sm:$0xff] }
 0x439   : > { %v3572_v50 = vadd.f32 %v3571_v45, %v3501_v47  ;;  %v4023_v45 = vld [vmem:[#allocation8 + $0xae8] sm:$0xff]  ;;  %v3973_v46 = vld [vmem:[#allocation8 + $0x958] sm:$0xff] }
 0x43a   : > { %v3573_v49 = vpop.f32.mrf.mxu1  ;;  %v3975_v47 = vld [vmem:[#allocation8 + $0x968] sm:$0xff] }
 0x43b   : > { %v3574_v53 = vadd.f32 %v3573_v49, %v3503_v48  ;;  %v3972_v48 = vld [vmem:[#allocation8 + $0x950] sm:$0xff]  ;;  %v3974_v49 = vld [vmem:[#allocation8 + $0x960] sm:$0xff] }
 0x456   : > { %v3642_v51 = vpop.f32.mrf.mxu0 }
 0x457   : > { %v3643_v55 = vadd.f32 %v3642_v51, %v3572_v50  ;;  %v3924_v50 = vld [vmem:[#allocation8 + $0x7d0] sm:$0xff]  ;;  %v3926_v51 = vld [vmem:[#allocation8 + $0x7e0] sm:$0xff] }
 0x458   : > { %v3644_v56 = vpop.f32.mrf.mxu0 }
 0x459   : > { %v3649_v58 = vadd.f32 %v3648_v52, %v3643_v55  ;;  %v3645_v59 = vadd.f32 %v3644_v56, %v3574_v53  ;;  %v3923_v52 = vld [vmem:[#allocation8 + $0x7c8] sm:$0xff]  ;;  %v3925_v53 = vld [vmem:[#allocation8 + $0x7d8] sm:$0xff] }
 0x45a   : > { %v3875_v55 = vld [vmem:[#allocation8 + $0x648] sm:$0xff]  ;;  %v3877_v56 = vld [vmem:[#allocation8 + $0x658] sm:$0xff] }
 0x45b   : > { %v6457_v60 = vmul.f32 -1.442695, %v3649_v58  ;;  %v3658_v61 = vadd.f32 %v3657_v57, %v3645_v59  ;;  %v3874_v57 = vld [vmem:[#allocation8 + $0x640] sm:$0xff]  ;;  %v3876_v58 = vld [vmem:[#allocation8 + $0x650] sm:$0xff] }
 0x45c   : > { %v3826_v59 = vld [vmem:[#allocation8 + $0x4c0] sm:$0xff] }
 0x45d   : > { %6604 = vpow2.f32 %v6457_v60  ;;  %v6459_v62 = vmul.f32 -1.442695, %v3658_v61  ;;  %v3828_v60 = vld [vmem:[#allocation8 + $0x4d0] sm:$0xff]  ;;  %v3825_v61 = vld [vmem:[#allocation8 + $0x4b8] sm:$0xff] }
 0x45f   : > { %6606 = vpow2.f32 %v6459_v62  ;;  %v3827_v62 = vld [vmem:[#allocation8 + $0x4c8] sm:$0xff] }
 0x46a   : > { %v6605_v63 = vpop.eup %6604 }
 0x46b   : > { %v3653_v0 = vadd.f32 1.0, %v6605_v63  ;;  %v3777_v63 = vld [vmem:[#allocation8 + $0x338] sm:$0xff] }
 0x46c   : > { %v6607_v1 = vpop.eup %6606 }
 0x46d   : > { %v3662_v2 = vadd.f32 1.0, %v6607_v1  ;;  %6608 = vrcp.f32 %v3653_v0  ;;  %v3779_v0 = vld [vmem:[#allocation8 + $0x348] sm:$0xff]  ;;  %v3776_v1 = vld [vmem:[#allocation8 + $0x330] sm:$0xff] }
 0x46f   : > { %6610 = vrcp.f32 %v3662_v2  ;;  %v3778_v2 = vld [vmem:[#allocation8 + $0x340] sm:$0xff] }
 0x47a   : > { %v6609_v3 = vpop.eup %6608 }
 0x47c   : > { %v6611_v4 = vpop.eup %6610 }
 0x47d   : > { %v3665_v5 = vmul.f32 %v6611_v4, %v6609_v3  ;;  %v3728_v3 = vld [vmem:[#allocation8 + $0x1b0] sm:$0xff]  ;;  %v3730_v4 = vld [vmem:[#allocation8 + $0x1c0] sm:$0xff] }
 0x47f   : > { %v6460_v6 = vadd.f32 -0.2, %v3665_v5  ;;  %v3727_v5 = vld [vmem:[#allocation8 + $0x1a8] sm:$0xff] }
 0x481   : > { %v6461_v7 = vmul.f32 -2.0, %v6460_v6  ;;  %v3729_v6 = vld [vmem:[#allocation8 + $0x1b8] sm:$0xff] }
 0x483   : > { %v3669_v8 = vmul.f32 1.442695, %v6461_v7  ;;  %v3679_v7 = vld [vmem:[#allocation8 + $0x28] sm:$0xff] }
 0x485   : > { %6612 = vpow2.f32 %v3669_v8  ;;  %v3681_v8 = vld [vmem:[#allocation8 + $0x38] sm:$0xff] }
 0x492   : > { %v6613_v9 = vpop.eup %6612 }
 0x493   : > { %v3671_v10 = vadd.f32 1.0, %v6613_v9  ;;  %v3678_v9 = vld [vmem:[#allocation8 + $0x20] sm:$0xff] }
 0x495   : > { %6614 = vrcp.f32 %v3671_v10  ;;  %v3680_v10 = vld [vmem:[#allocation8 + $0x30] sm:$0xff] }
 0x4a2   : > { %v7061_v13 = vpop.eup %6614 }
 0x4a3   : > { %4523 = vmatmul.mubr.f32.vlgmr.msra.gmra.mxu1 %v7061_v13  ;;  %4594 = vmatmul.mubr.f32.vlgmr.msra.gmra.mxu0 %v7061_v13 }
 0x4a4   : > { %4601 = vmatpush1.msra.mxu1 %v4413_v11  ;;  %4672 = vmatpush1.msra.mxu0 %v4415_v12  ;;  %v4418_v11 = vld [vmem:[#allocation8 + $0x1740] sm:$0xff]  ;;  %v4420_v12 = vld [vmem:[#allocation8 + $0x1750] sm:$0xff] }
 0x4a5   : > { %4602 = vmatprep.subr.mxu1 %v4365_v14  ;;  %4673 = vmatprep.subr.mxu0 %v4367_v15  ;;  %v4417_v14 = vld [vmem:[#allocation8 + $0x1738] sm:$0xff]  ;;  %v4419_v15 = vld [vmem:[#allocation8 + $0x1748] sm:$0xff] }
 0x4a6   : > { %4603 = vmatpush1.msra.mxu1 %v4364_v16  ;;  %4674 = vmatpush1.msra.mxu0 %v4366_v17  ;;  %v4369_v16 = vld [vmem:[#allocation8 + $0x15b8] sm:$0xff]  ;;  %v4371_v17 = vld [vmem:[#allocation8 + $0x15c8] sm:$0xff] }
 0x4a7   : > { %4604 = vmatprep.subr.mxu1 %v4316_v18  ;;  %4675 = vmatprep.subr.mxu0 %v4318_v19  ;;  %v4368_v18 = vld [vmem:[#allocation8 + $0x15b0] sm:$0xff]  ;;  %v4370_v19 = vld [vmem:[#allocation8 + $0x15c0] sm:$0xff] }
 0x4a8   : > { %4605 = vmatpush1.msra.mxu1 %v4315_v20  ;;  %4676 = vmatpush1.msra.mxu0 %v4317_v21  ;;  %v4320_v20 = vld [vmem:[#allocation8 + $0x1430] sm:$0xff]  ;;  %v4322_v21 = vld [vmem:[#allocation8 + $0x1440] sm:$0xff] }
 0x4a9   : > { %4606 = vmatprep.subr.mxu1 %v4267_v22  ;;  %4677 = vmatprep.subr.mxu0 %v4269_v23  ;;  %v4319_v22 = vld [vmem:[#allocation8 + $0x1428] sm:$0xff]  ;;  %v4321_v23 = vld [vmem:[#allocation8 + $0x1438] sm:$0xff] }
 0x4aa   : > { %4607 = vmatpush1.msra.mxu1 %v4266_v24  ;;  %4678 = vmatpush1.msra.mxu0 %v4268_v25  ;;  %v4271_v24 = vld [vmem:[#allocation8 + $0x12a8] sm:$0xff]  ;;  %v4273_v25 = vld [vmem:[#allocation8 + $0x12b8] sm:$0xff] }
 0x4ab   : > { %4608 = vmatprep.subr.mxu1 %v4218_v26  ;;  %4679 = vmatprep.subr.mxu0 %v4220_v27  ;;  %v4270_v26 = vld [vmem:[#allocation8 + $0x12a0] sm:$0xff]  ;;  %v4272_v27 = vld [vmem:[#allocation8 + $0x12b0] sm:$0xff] }
 0x4ac   : > { %4609 = vmatpush1.msra.mxu1 %v4217_v28  ;;  %4680 = vmatpush1.msra.mxu0 %v4219_v29  ;;  %v4222_v28 = vld [vmem:[#allocation8 + $0x1120] sm:$0xff]  ;;  %v4224_v29 = vld [vmem:[#allocation8 + $0x1130] sm:$0xff] }
 0x4ad   : > { %4610 = vmatprep.subr.mxu1 %v4169_v30  ;;  %4681 = vmatprep.subr.mxu0 %v4171_v31  ;;  %v4221_v30 = vld [vmem:[#allocation8 + $0x1118] sm:$0xff]  ;;  %v4223_v31 = vld [vmem:[#allocation8 + $0x1128] sm:$0xff] }
 0x4ae   : > { %4611 = vmatpush1.msra.mxu1 %v4168_v32  ;;  %4682 = vmatpush1.msra.mxu0 %v4170_v33  ;;  %v4173_v32 = vld [vmem:[#allocation8 + $0xf98] sm:$0xff]  ;;  %v4175_v33 = vld [vmem:[#allocation8 + $0xfa8] sm:$0xff] }
 0x4af   : > { %4612 = vmatprep.subr.mxu1 %v4120_v34  ;;  %4683 = vmatprep.subr.mxu0 %v4122_v35  ;;  %v4172_v34 = vld [vmem:[#allocation8 + $0xf90] sm:$0xff]  ;;  %v4174_v35 = vld [vmem:[#allocation8 + $0xfa0] sm:$0xff] }
 0x4b0   : > { %4613 = vmatpush1.msra.mxu1 %v4119_v36  ;;  %4684 = vmatpush1.msra.mxu0 %v4121_v37  ;;  %v4124_v36 = vld [vmem:[#allocation8 + $0xe10] sm:$0xff]  ;;  %v4126_v37 = vld [vmem:[#allocation8 + $0xe20] sm:$0xff] }
 0x4b1   : > { %4614 = vmatprep.subr.mxu1 %v4071_v38  ;;  %4685 = vmatprep.subr.mxu0 %v4073_v39  ;;  %v4123_v38 = vld [vmem:[#allocation8 + $0xe08] sm:$0xff]  ;;  %v4125_v39 = vld [vmem:[#allocation8 + $0xe18] sm:$0xff] }
 0x4b2   : > { %4615 = vmatpush1.msra.mxu1 %v4070_v40  ;;  %4686 = vmatpush1.msra.mxu0 %v4072_v41  ;;  %v4075_v40 = vld [vmem:[#allocation8 + $0xc88] sm:$0xff]  ;;  %v4077_v41 = vld [vmem:[#allocation8 + $0xc98] sm:$0xff] }
 0x4b3   : > { %4616 = vmatprep.subr.mxu1 %v4022_v42  ;;  %4687 = vmatprep.subr.mxu0 %v4024_v43  ;;  %v4074_v42 = vld [vmem:[#allocation8 + $0xc80] sm:$0xff]  ;;  %v4076_v43 = vld [vmem:[#allocation8 + $0xc90] sm:$0xff] }
 0x4b4   : > { %4617 = vmatpush1.msra.mxu1 %v4021_v44  ;;  %4688 = vmatpush1.msra.mxu0 %v4023_v45  ;;  %v4026_v44 = vld [vmem:[#allocation8 + $0xb00] sm:$0xff]  ;;  %v4028_v45 = vld [vmem:[#allocation8 + $0xb10] sm:$0xff] }
 0x4b5   : > { %4618 = vmatprep.subr.mxu1 %v3973_v46  ;;  %4689 = vmatprep.subr.mxu0 %v3975_v47  ;;  %v4025_v46 = vld [vmem:[#allocation8 + $0xaf8] sm:$0xff]  ;;  %v4027_v47 = vld [vmem:[#allocation8 + $0xb08] sm:$0xff] }
 0x4b6   : > { %4619 = vmatpush1.msra.mxu1 %v3972_v48  ;;  %4690 = vmatpush1.msra.mxu0 %v3974_v49  ;;  %v3977_v48 = vld [vmem:[#allocation8 + $0x978] sm:$0xff]  ;;  %v3979_v49 = vld [vmem:[#allocation8 + $0x988] sm:$0xff] }
 0x4b7   : > { %4620 = vmatprep.subr.mxu1 %v3924_v50  ;;  %4691 = vmatprep.subr.mxu0 %v3926_v51  ;;  %v3976_v50 = vld [vmem:[#allocation8 + $0x970] sm:$0xff]  ;;  %v3978_v51 = vld [vmem:[#allocation8 + $0x980] sm:$0xff] }
 0x4b8   : > { %4621 = vmatpush1.msra.mxu1 %v3923_v52  ;;  %4692 = vmatpush1.msra.mxu0 %v3925_v53  ;;  %v3928_v52 = vld [vmem:[#allocation8 + $0x7f0] sm:$0xff]  ;;  %v3930_v53 = vld [vmem:[#allocation8 + $0x800] sm:$0xff] }
 0x4b9   : > { %4622 = vmatprep.subr.mxu1 %v3875_v55  ;;  %4693 = vmatprep.subr.mxu0 %v3877_v56  ;;  %v3927_v55 = vld [vmem:[#allocation8 + $0x7e8] sm:$0xff]  ;;  %v3929_v56 = vld [vmem:[#allocation8 + $0x7f8] sm:$0xff] }
 0x4ba   : > { %4623 = vmatpush1.msra.mxu1 %v3874_v57  ;;  %4694 = vmatpush1.msra.mxu0 %v3876_v58  ;;  %v3879_v57 = vld [vmem:[#allocation8 + $0x668] sm:$0xff]  ;;  %v3881_v58 = vld [vmem:[#allocation8 + $0x678] sm:$0xff] }
 0x4bb   : > { %4624 = vmatprep.subr.mxu1 %v3826_v59  ;;  %4695 = vmatprep.subr.mxu0 %v3828_v60  ;;  %v3878_v59 = vld [vmem:[#allocation8 + $0x660] sm:$0xff]  ;;  %v3880_v60 = vld [vmem:[#allocation8 + $0x670] sm:$0xff] }
 0x4bc   : > { %4625 = vmatpush1.msra.mxu1 %v3825_v61  ;;  %4696 = vmatpush1.msra.mxu0 %v3827_v62  ;;  %v3830_v61 = vld [vmem:[#allocation8 + $0x4e0] sm:$0xff]  ;;  %v3832_v62 = vld [vmem:[#allocation8 + $0x4f0] sm:$0xff] }
 0x4bd   : > { %4626 = vmatprep.subr.mxu1 %v3777_v63  ;;  %4697 = vmatprep.subr.mxu0 %v3779_v0  ;;  %v3829_v63 = vld [vmem:[#allocation8 + $0x4d8] sm:$0xff]  ;;  %v3831_v0 = vld [vmem:[#allocation8 + $0x4e8] sm:$0xff] }
 0x4be   : > { %4627 = vmatpush1.msra.mxu1 %v3776_v1  ;;  %4698 = vmatpush1.msra.mxu0 %v3778_v2  ;;  %v3781_v1 = vld [vmem:[#allocation8 + $0x358] sm:$0xff]  ;;  %v3783_v2 = vld [vmem:[#allocation8 + $0x368] sm:$0xff] }
 0x4bf   : > { %4628 = vmatprep.subr.mxu1 %v3728_v3  ;;  %4699 = vmatprep.subr.mxu0 %v3730_v4  ;;  %v3780_v3 = vld [vmem:[#allocation8 + $0x350] sm:$0xff]  ;;  %v3782_v4 = vld [vmem:[#allocation8 + $0x360] sm:$0xff] }
 0x4c0   : > { %4629 = vmatpush1.msra.mxu1 %v3727_v5  ;;  %4700 = vmatpush1.msra.mxu0 %v3729_v6  ;;  %v3732_v5 = vld [vmem:[#allocation8 + $0x1d0] sm:$0xff]  ;;  %v3734_v6 = vld [vmem:[#allocation8 + $0x1e0] sm:$0xff] }
 0x4c1   : > { %4630 = vmatprep.subr.mxu1 %v3679_v7  ;;  %4701 = vmatprep.subr.mxu0 %v3681_v8  ;;  %v3731_v7 = vld [vmem:[#allocation8 + $0x1c8] sm:$0xff]  ;;  %v3733_v8 = vld [vmem:[#allocation8 + $0x1d8] sm:$0xff] }
 0x4c2   : > { %4631 = vmatpush1.msra.mxu1 %v3678_v9  ;;  %4664 = vmatprep.mubr.f32.mxu1 %v6838_v54  ;;  %v3683_v9 = vld [vmem:[#allocation8 + $0x48] sm:$0xff] }
 0x4c3   : > { %4702 = vmatpush1.msra.mxu0 %v3680_v10  ;;  %4735 = vmatprep.mubr.f32.mxu0 %v6838_v54  ;;  %v3685_v10 = vld [vmem:[#allocation8 + $0x58] sm:$0xff] }
 0x4c4   : > { %4665 = vmatmul.mubr.f32.vlgmr.msra.gmra.mxu1 %v7061_v13  ;;  %4736 = vmatmul.mubr.f32.vlgmr.msra.gmra.mxu0 %v7061_v13 }
 0x4c5   : > { %4742 = vmatprep.subr.mxu1 %v4418_v11  ;;  %4813 = vmatprep.subr.mxu0 %v4420_v12  ;;  %v3682_v11 = vld [vmem:[#allocation8 + $0x40] sm:$0xff]  ;;  %v3684_v12 = vld [vmem:[#allocation8 + $0x50] sm:$0xff] }
 0x4c6   : > { %4743 = vmatpush1.msra.mxu1 %v4417_v14  ;;  %4814 = vmatpush1.msra.mxu0 %v4419_v15  ;;  %v4422_v14 = vld [vmem:[#allocation8 + $0x1760] sm:$0xff]  ;;  %v4424_v15 = vld [vmem:[#allocation8 + $0x1770] sm:$0xff] }
 0x4c7   : > { %4744 = vmatprep.subr.mxu1 %v4369_v16  ;;  %4815 = vmatprep.subr.mxu0 %v4371_v17  ;;  %v4421_v16 = vld [vmem:[#allocation8 + $0x1758] sm:$0xff]  ;;  %v4423_v17 = vld [vmem:[#allocation8 + $0x1768] sm:$0xff] }
 0x4c8   : > { %4745 = vmatpush1.msra.mxu1 %v4368_v18  ;;  %4816 = vmatpush1.msra.mxu0 %v4370_v19  ;;  %v4373_v18 = vld [vmem:[#allocation8 + $0x15d8] sm:$0xff]  ;;  %v4375_v19 = vld [vmem:[#allocation8 + $0x15e8] sm:$0xff] }
 0x4c9   : > { %4746 = vmatprep.subr.mxu1 %v4320_v20  ;;  %4817 = vmatprep.subr.mxu0 %v4322_v21  ;;  %v4372_v20 = vld [vmem:[#allocation8 + $0x15d0] sm:$0xff]  ;;  %v4374_v21 = vld [vmem:[#allocation8 + $0x15e0] sm:$0xff] }
 0x4ca   : > { %4747 = vmatpush1.msra.mxu1 %v4319_v22  ;;  %4818 = vmatpush1.msra.mxu0 %v4321_v23  ;;  %v4324_v22 = vld [vmem:[#allocation8 + $0x1450] sm:$0xff]  ;;  %v4326_v23 = vld [vmem:[#allocation8 + $0x1460] sm:$0xff] }
 0x4cb   : > { %4748 = vmatprep.subr.mxu1 %v4271_v24  ;;  %4819 = vmatprep.subr.mxu0 %v4273_v25  ;;  %v4323_v24 = vld [vmem:[#allocation8 + $0x1448] sm:$0xff]  ;;  %v4325_v25 = vld [vmem:[#allocation8 + $0x1458] sm:$0xff] }
 0x4cc   : > { %4749 = vmatpush1.msra.mxu1 %v4270_v26  ;;  %4820 = vmatpush1.msra.mxu0 %v4272_v27  ;;  %v4275_v26 = vld [vmem:[#allocation8 + $0x12c8] sm:$0xff]  ;;  %v4277_v27 = vld [vmem:[#allocation8 + $0x12d8] sm:$0xff] }
 0x4cd   : > { %4750 = vmatprep.subr.mxu1 %v4222_v28  ;;  %4821 = vmatprep.subr.mxu0 %v4224_v29  ;;  %v4274_v28 = vld [vmem:[#allocation8 + $0x12c0] sm:$0xff]  ;;  %v4276_v29 = vld [vmem:[#allocation8 + $0x12d0] sm:$0xff] }
 0x4ce   : > { %4751 = vmatpush1.msra.mxu1 %v4221_v30  ;;  %4822 = vmatpush1.msra.mxu0 %v4223_v31  ;;  %v4226_v30 = vld [vmem:[#allocation8 + $0x1140] sm:$0xff]  ;;  %v4228_v31 = vld [vmem:[#allocation8 + $0x1150] sm:$0xff] }
 0x4cf   : > { %4752 = vmatprep.subr.mxu1 %v4173_v32  ;;  %4823 = vmatprep.subr.mxu0 %v4175_v33  ;;  %v4225_v32 = vld [vmem:[#allocation8 + $0x1138] sm:$0xff]  ;;  %v4227_v33 = vld [vmem:[#allocation8 + $0x1148] sm:$0xff] }
 0x4d0   : > { %4753 = vmatpush1.msra.mxu1 %v4172_v34  ;;  %4824 = vmatpush1.msra.mxu0 %v4174_v35  ;;  %v4177_v34 = vld [vmem:[#allocation8 + $0xfb8] sm:$0xff]  ;;  %v4179_v35 = vld [vmem:[#allocation8 + $0xfc8] sm:$0xff] }
 0x4d1   : > { %4754 = vmatprep.subr.mxu1 %v4124_v36  ;;  %4825 = vmatprep.subr.mxu0 %v4126_v37  ;;  %v4176_v36 = vld [vmem:[#allocation8 + $0xfb0] sm:$0xff]  ;;  %v4178_v37 = vld [vmem:[#allocation8 + $0xfc0] sm:$0xff] }
 0x4d2   : > { %4755 = vmatpush1.msra.mxu1 %v4123_v38  ;;  %4826 = vmatpush1.msra.mxu0 %v4125_v39  ;;  %v4128_v38 = vld [vmem:[#allocation8 + $0xe30] sm:$0xff]  ;;  %v4130_v39 = vld [vmem:[#allocation8 + $0xe40] sm:$0xff] }
 0x4d3   : > { %4756 = vmatprep.subr.mxu1 %v4075_v40  ;;  %4827 = vmatprep.subr.mxu0 %v4077_v41  ;;  %v4127_v40 = vld [vmem:[#allocation8 + $0xe28] sm:$0xff]  ;;  %v4129_v41 = vld [vmem:[#allocation8 + $0xe38] sm:$0xff] }
 0x4d4   : > { %4757 = vmatpush1.msra.mxu1 %v4074_v42  ;;  %4828 = vmatpush1.msra.mxu0 %v4076_v43  ;;  %v4079_v42 = vld [vmem:[#allocation8 + $0xca8] sm:$0xff]  ;;  %v4081_v43 = vld [vmem:[#allocation8 + $0xcb8] sm:$0xff] }
 0x4d5   : > { %4758 = vmatprep.subr.mxu1 %v4026_v44  ;;  %4829 = vmatprep.subr.mxu0 %v4028_v45  ;;  %v4078_v44 = vld [vmem:[#allocation8 + $0xca0] sm:$0xff]  ;;  %v4080_v45 = vld [vmem:[#allocation8 + $0xcb0] sm:$0xff] }
 0x4d6   : > { %4759 = vmatpush1.msra.mxu1 %v4025_v46  ;;  %4830 = vmatpush1.msra.mxu0 %v4027_v47  ;;  %v4030_v46 = vld [vmem:[#allocation8 + $0xb20] sm:$0xff]  ;;  %v4032_v47 = vld [vmem:[#allocation8 + $0xb30] sm:$0xff] }
 0x4d7   : > { %4760 = vmatprep.subr.mxu1 %v3977_v48  ;;  %4831 = vmatprep.subr.mxu0 %v3979_v49  ;;  %v4029_v48 = vld [vmem:[#allocation8 + $0xb18] sm:$0xff]  ;;  %v4031_v49 = vld [vmem:[#allocation8 + $0xb28] sm:$0xff] }
 0x4d8   : > { %4761 = vmatpush1.msra.mxu1 %v3976_v50  ;;  %4832 = vmatpush1.msra.mxu0 %v3978_v51  ;;  %v3981_v50 = vld [vmem:[#allocation8 + $0x998] sm:$0xff]  ;;  %v3983_v51 = vld [vmem:[#allocation8 + $0x9a8] sm:$0xff] }
 0x4d9   : > { %4762 = vmatprep.subr.mxu1 %v3928_v52  ;;  %4833 = vmatprep.subr.mxu0 %v3930_v53  ;;  %v3980_v52 = vld [vmem:[#allocation8 + $0x990] sm:$0xff]  ;;  %v3982_v53 = vld [vmem:[#allocation8 + $0x9a0] sm:$0xff] }
 0x4da   : > { %4763 = vmatpush1.msra.mxu1 %v3927_v55  ;;  %4834 = vmatpush1.msra.mxu0 %v3929_v56  ;;  %v3932_v55 = vld [vmem:[#allocation8 + $0x810] sm:$0xff]  ;;  %v3934_v56 = vld [vmem:[#allocation8 + $0x820] sm:$0xff] }
 0x4db   : > { %4764 = vmatprep.subr.mxu1 %v3879_v57  ;;  %4835 = vmatprep.subr.mxu0 %v3881_v58  ;;  %v3931_v57 = vld [vmem:[#allocation8 + $0x808] sm:$0xff]  ;;  %v3933_v58 = vld [vmem:[#allocation8 + $0x818] sm:$0xff] }
 0x4dc   : > { %4765 = vmatpush1.msra.mxu1 %v3878_v59  ;;  %4836 = vmatpush1.msra.mxu0 %v3880_v60  ;;  %v3883_v59 = vld [vmem:[#allocation8 + $0x688] sm:$0xff]  ;;  %v3885_v60 = vld [vmem:[#allocation8 + $0x698] sm:$0xff] }
 0x4dd   : > { %4766 = vmatprep.subr.mxu1 %v3830_v61  ;;  %4837 = vmatprep.subr.mxu0 %v3832_v62  ;;  %v3882_v61 = vld [vmem:[#allocation8 + $0x680] sm:$0xff]  ;;  %v3884_v62 = vld [vmem:[#allocation8 + $0x690] sm:$0xff] }
 0x4de   : > { %4767 = vmatpush1.msra.mxu1 %v3829_v63  ;;  %4838 = vmatpush1.msra.mxu0 %v3831_v0  ;;  %v3834_v63 = vld [vmem:[#allocation8 + $0x500] sm:$0xff]  ;;  %v3836_v0 = vld [vmem:[#allocation8 + $0x510] sm:$0xff] }
 0x4df   : > { %4768 = vmatprep.subr.mxu1 %v3781_v1  ;;  %4839 = vmatprep.subr.mxu0 %v3783_v2  ;;  %v3833_v1 = vld [vmem:[#allocation8 + $0x4f8] sm:$0xff]  ;;  %v3835_v2 = vld [vmem:[#allocation8 + $0x508] sm:$0xff] }
 0x4e0   : > { %4769 = vmatpush1.msra.mxu1 %v3780_v3  ;;  %4840 = vmatpush1.msra.mxu0 %v3782_v4  ;;  %v3785_v3 = vld [vmem:[#allocation8 + $0x378] sm:$0xff]  ;;  %v3787_v4 = vld [vmem:[#allocation8 + $0x388] sm:$0xff] }
 0x4e1   : > { %4770 = vmatprep.subr.mxu1 %v3732_v5  ;;  %4841 = vmatprep.subr.mxu0 %v3734_v6  ;;  %v3784_v5 = vld [vmem:[#allocation8 + $0x370] sm:$0xff]  ;;  %v3786_v6 = vld [vmem:[#allocation8 + $0x380] sm:$0xff] }
 0x4e2   : > { %4771 = vmatpush1.msra.mxu1 %v3731_v7  ;;  %4842 = vmatpush1.msra.mxu0 %v3733_v8  ;;  %v3736_v7 = vld [vmem:[#allocation8 + $0x1f0] sm:$0xff]  ;;  %v3738_v8 = vld [vmem:[#allocation8 + $0x200] sm:$0xff] }
 0x4e3   : > { %4772 = vmatprep.subr.mxu1 %v3683_v9  ;;  %4843 = vmatprep.subr.mxu0 %v3685_v10  ;;  %v3735_v9 = vld [vmem:[#allocation8 + $0x1e8] sm:$0xff]  ;;  %v3737_v10 = vld [vmem:[#allocation8 + $0x1f8] sm:$0xff] }
 0x4e4   : > { %4773 = vmatpush1.msra.mxu1 %v3682_v11  ;;  %4806 = vmatprep.mubr.f32.mxu1 %v6838_v54  ;;  %v3687_v11 = vld [vmem:[#allocation8 + $0x68] sm:$0xff] }
 0x4e5   : > { %4844 = vmatpush1.msra.mxu0 %v3684_v12  ;;  %4877 = vmatprep.mubr.f32.mxu0 %v6838_v54  ;;  %v3689_v12 = vld [vmem:[#allocation8 + $0x78] sm:$0xff] }
 0x4e6   : > { %4807 = vmatmul.mubr.f32.vlgmr.msra.gmra.mxu1 %v7061_v13  ;;  %4878 = vmatmul.mubr.f32.vlgmr.msra.gmra.mxu0 %v7061_v13 }
 0x4e7   : > { %4884 = vmatprep.subr.mxu1 %v4422_v14  ;;  %4955 = vmatprep.subr.mxu0 %v4424_v15  ;;  %v3686_v14 = vld [vmem:[#allocation8 + $0x60] sm:$0xff]  ;;  %v3688_v15 = vld [vmem:[#allocation8 + $0x70] sm:$0xff] }
 0x4e8   : > { %4885 = vmatpush1.msra.mxu1 %v4421_v16  ;;  %4956 = vmatpush1.msra.mxu0 %v4423_v17  ;;  %v4426_v16 = vld [vmem:[#allocation8 + $0x1780] sm:$0xff]  ;;  %v4428_v17 = vld [vmem:[#allocation8 + $0x1790] sm:$0xff] }
 0x4e9   : > { %4886 = vmatprep.subr.mxu1 %v4373_v18  ;;  %4957 = vmatprep.subr.mxu0 %v4375_v19  ;;  %v4425_v18 = vld [vmem:[#allocation8 + $0x1778] sm:$0xff]  ;;  %v4427_v19 = vld [vmem:[#allocation8 + $0x1788] sm:$0xff] }
 0x4ea   : > { %4887 = vmatpush1.msra.mxu1 %v4372_v20  ;;  %4958 = vmatpush1.msra.mxu0 %v4374_v21  ;;  %v4377_v20 = vld [vmem:[#allocation8 + $0x15f8] sm:$0xff]  ;;  %v4379_v21 = vld [vmem:[#allocation8 + $0x1608] sm:$0xff] }
 0x4eb   : > { %4888 = vmatprep.subr.mxu1 %v4324_v22  ;;  %4959 = vmatprep.subr.mxu0 %v4326_v23  ;;  %v4376_v22 = vld [vmem:[#allocation8 + $0x15f0] sm:$0xff]  ;;  %v4378_v23 = vld [vmem:[#allocation8 + $0x1600] sm:$0xff] }
 0x4ec   : > { %4889 = vmatpush1.msra.mxu1 %v4323_v24  ;;  %4960 = vmatpush1.msra.mxu0 %v4325_v25  ;;  %v4328_v24 = vld [vmem:[#allocation8 + $0x1470] sm:$0xff]  ;;  %v4330_v25 = vld [vmem:[#allocation8 + $0x1480] sm:$0xff] }
 0x4ed   : > { %4890 = vmatprep.subr.mxu1 %v4275_v26  ;;  %4961 = vmatprep.subr.mxu0 %v4277_v27  ;;  %v4327_v26 = vld [vmem:[#allocation8 + $0x1468] sm:$0xff]  ;;  %v4329_v27 = vld [vmem:[#allocation8 + $0x1478] sm:$0xff] }
 0x4ee   : > { %4891 = vmatpush1.msra.mxu1 %v4274_v28  ;;  %4962 = vmatpush1.msra.mxu0 %v4276_v29  ;;  %v4279_v28 = vld [vmem:[#allocation8 + $0x12e8] sm:$0xff]  ;;  %v4281_v29 = vld [vmem:[#allocation8 + $0x12f8] sm:$0xff] }
 0x4ef   : > { %4892 = vmatprep.subr.mxu1 %v4226_v30  ;;  %4963 = vmatprep.subr.mxu0 %v4228_v31  ;;  %v4278_v30 = vld [vmem:[#allocation8 + $0x12e0] sm:$0xff]  ;;  %v4280_v31 = vld [vmem:[#allocation8 + $0x12f0] sm:$0xff] }
 0x4f0   : > { %4893 = vmatpush1.msra.mxu1 %v4225_v32  ;;  %4964 = vmatpush1.msra.mxu0 %v4227_v33  ;;  %v4230_v32 = vld [vmem:[#allocation8 + $0x1160] sm:$0xff]  ;;  %v4232_v33 = vld [vmem:[#allocation8 + $0x1170] sm:$0xff] }
 0x4f1   : > { %4894 = vmatprep.subr.mxu1 %v4177_v34  ;;  %4965 = vmatprep.subr.mxu0 %v4179_v35  ;;  %v4229_v34 = vld [vmem:[#allocation8 + $0x1158] sm:$0xff]  ;;  %v4231_v35 = vld [vmem:[#allocation8 + $0x1168] sm:$0xff] }
 0x4f2   : > { %4895 = vmatpush1.msra.mxu1 %v4176_v36  ;;  %4966 = vmatpush1.msra.mxu0 %v4178_v37  ;;  %v4181_v36 = vld [vmem:[#allocation8 + $0xfd8] sm:$0xff]  ;;  %v4183_v37 = vld [vmem:[#allocation8 + $0xfe8] sm:$0xff] }
 0x4f3   : > { %4896 = vmatprep.subr.mxu1 %v4128_v38  ;;  %4967 = vmatprep.subr.mxu0 %v4130_v39  ;;  %v4180_v38 = vld [vmem:[#allocation8 + $0xfd0] sm:$0xff]  ;;  %v4182_v39 = vld [vmem:[#allocation8 + $0xfe0] sm:$0xff] }
 0x4f4   : > { %4897 = vmatpush1.msra.mxu1 %v4127_v40  ;;  %4968 = vmatpush1.msra.mxu0 %v4129_v41  ;;  %v4132_v40 = vld [vmem:[#allocation8 + $0xe50] sm:$0xff]  ;;  %v4134_v41 = vld [vmem:[#allocation8 + $0xe60] sm:$0xff] }
 0x4f5   : > { %4898 = vmatprep.subr.mxu1 %v4079_v42  ;;  %4969 = vmatprep.subr.mxu0 %v4081_v43  ;;  %v4131_v42 = vld [vmem:[#allocation8 + $0xe48] sm:$0xff]  ;;  %v4133_v43 = vld [vmem:[#allocation8 + $0xe58] sm:$0xff] }
 0x4f6   : > { %4899 = vmatpush1.msra.mxu1 %v4078_v44  ;;  %4970 = vmatpush1.msra.mxu0 %v4080_v45  ;;  %v4083_v44 = vld [vmem:[#allocation8 + $0xcc8] sm:$0xff]  ;;  %v4085_v45 = vld [vmem:[#allocation8 + $0xcd8] sm:$0xff] }
 0x4f7   : > { %4900 = vmatprep.subr.mxu1 %v4030_v46  ;;  %4971 = vmatprep.subr.mxu0 %v4032_v47  ;;  %v4082_v46 = vld [vmem:[#allocation8 + $0xcc0] sm:$0xff]  ;;  %v4084_v47 = vld [vmem:[#allocation8 + $0xcd0] sm:$0xff] }
 0x4f8   : > { %4901 = vmatpush1.msra.mxu1 %v4029_v48  ;;  %4972 = vmatpush1.msra.mxu0 %v4031_v49  ;;  %v4034_v48 = vld [vmem:[#allocation8 + $0xb40] sm:$0xff]  ;;  %v4036_v49 = vld [vmem:[#allocation8 + $0xb50] sm:$0xff] }
 0x4f9   : > { %4902 = vmatprep.subr.mxu1 %v3981_v50  ;;  %4973 = vmatprep.subr.mxu0 %v3983_v51  ;;  %v4033_v50 = vld [vmem:[#allocation8 + $0xb38] sm:$0xff]  ;;  %v4035_v51 = vld [vmem:[#allocation8 + $0xb48] sm:$0xff] }
 0x4fa   : > { %4903 = vmatpush1.msra.mxu1 %v3980_v52  ;;  %4974 = vmatpush1.msra.mxu0 %v3982_v53  ;;  %v3985_v52 = vld [vmem:[#allocation8 + $0x9b8] sm:$0xff]  ;;  %v3987_v53 = vld [vmem:[#allocation8 + $0x9c8] sm:$0xff] }
 0x4fb   : > { %4904 = vmatprep.subr.mxu1 %v3932_v55  ;;  %4975 = vmatprep.subr.mxu0 %v3934_v56  ;;  %v3984_v55 = vld [vmem:[#allocation8 + $0x9b0] sm:$0xff]  ;;  %v3986_v56 = vld [vmem:[#allocation8 + $0x9c0] sm:$0xff] }
 0x4fc   : > { %4905 = vmatpush1.msra.mxu1 %v3931_v57  ;;  %4976 = vmatpush1.msra.mxu0 %v3933_v58  ;;  %v3936_v57 = vld [vmem:[#allocation8 + $0x830] sm:$0xff]  ;;  %v3938_v58 = vld [vmem:[#allocation8 + $0x840] sm:$0xff] }
 0x4fd   : > { %4906 = vmatprep.subr.mxu1 %v3883_v59  ;;  %4977 = vmatprep.subr.mxu0 %v3885_v60  ;;  %v3935_v59 = vld [vmem:[#allocation8 + $0x828] sm:$0xff]  ;;  %v3937_v60 = vld [vmem:[#allocation8 + $0x838] sm:$0xff] }
 0x4fe   : > { %4907 = vmatpush1.msra.mxu1 %v3882_v61  ;;  %4978 = vmatpush1.msra.mxu0 %v3884_v62  ;;  %v3887_v61 = vld [vmem:[#allocation8 + $0x6a8] sm:$0xff]  ;;  %v3889_v62 = vld [vmem:[#allocation8 + $0x6b8] sm:$0xff] }
 0x4ff   : > { %4908 = vmatprep.subr.mxu1 %v3834_v63  ;;  %4979 = vmatprep.subr.mxu0 %v3836_v0  ;;  %v3886_v63 = vld [vmem:[#allocation8 + $0x6a0] sm:$0xff]  ;;  %v3888_v0 = vld [vmem:[#allocation8 + $0x6b0] sm:$0xff] }
 0x500   : > { %4909 = vmatpush1.msra.mxu1 %v3833_v1  ;;  %4980 = vmatpush1.msra.mxu0 %v3835_v2  ;;  %v3838_v1 = vld [vmem:[#allocation8 + $0x520] sm:$0xff]  ;;  %v3840_v2 = vld [vmem:[#allocation8 + $0x530] sm:$0xff] }
 0x501   : > { %4910 = vmatprep.subr.mxu1 %v3785_v3  ;;  %4981 = vmatprep.subr.mxu0 %v3787_v4  ;;  %v3837_v3 = vld [vmem:[#allocation8 + $0x518] sm:$0xff]  ;;  %v3839_v4 = vld [vmem:[#allocation8 + $0x528] sm:$0xff] }
 0x502   : > { %4911 = vmatpush1.msra.mxu1 %v3784_v5  ;;  %4982 = vmatpush1.msra.mxu0 %v3786_v6  ;;  %v3789_v5 = vld [vmem:[#allocation8 + $0x398] sm:$0xff]  ;;  %v3791_v6 = vld [vmem:[#allocation8 + $0x3a8] sm:$0xff] }
 0x503   : > { %4912 = vmatprep.subr.mxu1 %v3736_v7  ;;  %4983 = vmatprep.subr.mxu0 %v3738_v8  ;;  %v3788_v7 = vld [vmem:[#allocation8 + $0x390] sm:$0xff]  ;;  %v3790_v8 = vld [vmem:[#allocation8 + $0x3a0] sm:$0xff] }
 0x504   : > { %4913 = vmatpush1.msra.mxu1 %v3735_v9  ;;  %4984 = vmatpush1.msra.mxu0 %v3737_v10  ;;  %v3740_v9 = vld [vmem:[#allocation8 + $0x210] sm:$0xff]  ;;  %v3742_v10 = vld [vmem:[#allocation8 + $0x220] sm:$0xff] }
 0x505   : > { %4914 = vmatprep.subr.mxu1 %v3687_v11  ;;  %4985 = vmatprep.subr.mxu0 %v3689_v12  ;;  %v3739_v11 = vld [vmem:[#allocation8 + $0x208] sm:$0xff]  ;;  %v3741_v12 = vld [vmem:[#allocation8 + $0x218] sm:$0xff] }
 0x506   : > { %4915 = vmatpush1.msra.mxu1 %v3686_v14  ;;  %4948 = vmatprep.mubr.f32.mxu1 %v6838_v54  ;;  %v3691_v14 = vld [vmem:[#allocation8 + $0x88] sm:$0xff] }
 0x507   : > { %4986 = vmatpush1.msra.mxu0 %v3688_v15  ;;  %5019 = vmatprep.mubr.f32.mxu0 %v6838_v54  ;;  %v3693_v15 = vld [vmem:[#allocation8 + $0x98] sm:$0xff] }
 0x508   : > { %4949 = vmatmul.mubr.f32.vlgmr.msra.gmra.mxu1 %v7061_v13  ;;  %5020 = vmatmul.mubr.f32.vlgmr.msra.gmra.mxu0 %v7061_v13 }
 0x509   : > { %5026 = vmatprep.subr.mxu1 %v4426_v16  ;;  %5097 = vmatprep.subr.mxu0 %v4428_v17  ;;  %v3690_v16 = vld [vmem:[#allocation8 + $0x80] sm:$0xff]  ;;  %v3692_v17 = vld [vmem:[#allocation8 + $0x90] sm:$0xff] }
 0x50a   : > { %5027 = vmatpush1.msra.mxu1 %v4425_v18  ;;  %5098 = vmatpush1.msra.mxu0 %v4427_v19  ;;  %v4430_v18 = vld [vmem:[#allocation8 + $0x17a0] sm:$0xff]  ;;  %v4432_v19 = vld [vmem:[#allocation8 + $0x17b0] sm:$0xff] }
 0x50b   : > { %5028 = vmatprep.subr.mxu1 %v4377_v20  ;;  %5099 = vmatprep.subr.mxu0 %v4379_v21  ;;  %v4429_v20 = vld [vmem:[#allocation8 + $0x1798] sm:$0xff]  ;;  %v4431_v21 = vld [vmem:[#allocation8 + $0x17a8] sm:$0xff] }
 0x50c   : > { %5029 = vmatpush1.msra.mxu1 %v4376_v22  ;;  %5100 = vmatpush1.msra.mxu0 %v4378_v23  ;;  %v4381_v22 = vld [vmem:[#allocation8 + $0x1618] sm:$0xff]  ;;  %v4383_v23 = vld [vmem:[#allocation8 + $0x1628] sm:$0xff] }
 0x50d   : > { %5030 = vmatprep.subr.mxu1 %v4328_v24  ;;  %5101 = vmatprep.subr.mxu0 %v4330_v25  ;;  %v4380_v24 = vld [vmem:[#allocation8 + $0x1610] sm:$0xff]  ;;  %v4382_v25 = vld [vmem:[#allocation8 + $0x1620] sm:$0xff] }
 0x50e   : > { %5031 = vmatpush1.msra.mxu1 %v4327_v26  ;;  %5102 = vmatpush1.msra.mxu0 %v4329_v27  ;;  %v4332_v26 = vld [vmem:[#allocation8 + $0x1490] sm:$0xff]  ;;  %v4334_v27 = vld [vmem:[#allocation8 + $0x14a0] sm:$0xff] }
 0x50f   : > { %5032 = vmatprep.subr.mxu1 %v4279_v28  ;;  %5103 = vmatprep.subr.mxu0 %v4281_v29  ;;  %v4331_v28 = vld [vmem:[#allocation8 + $0x1488] sm:$0xff]  ;;  %v4333_v29 = vld [vmem:[#allocation8 + $0x1498] sm:$0xff] }
 0x510   : > { %5033 = vmatpush1.msra.mxu1 %v4278_v30  ;;  %5104 = vmatpush1.msra.mxu0 %v4280_v31  ;;  %v4283_v30 = vld [vmem:[#allocation8 + $0x1308] sm:$0xff]  ;;  %v4285_v31 = vld [vmem:[#allocation8 + $0x1318] sm:$0xff] }
 0x511   : > { %5034 = vmatprep.subr.mxu1 %v4230_v32  ;;  %5105 = vmatprep.subr.mxu0 %v4232_v33  ;;  %v4282_v32 = vld [vmem:[#allocation8 + $0x1300] sm:$0xff]  ;;  %v4284_v33 = vld [vmem:[#allocation8 + $0x1310] sm:$0xff] }
 0x512   : > { %5035 = vmatpush1.msra.mxu1 %v4229_v34  ;;  %5106 = vmatpush1.msra.mxu0 %v4231_v35  ;;  %v4234_v34 = vld [vmem:[#allocation8 + $0x1180] sm:$0xff]  ;;  %v4236_v35 = vld [vmem:[#allocation8 + $0x1190] sm:$0xff] }
 0x513   : > { %5036 = vmatprep.subr.mxu1 %v4181_v36  ;;  %5107 = vmatprep.subr.mxu0 %v4183_v37  ;;  %v4233_v36 = vld [vmem:[#allocation8 + $0x1178] sm:$0xff]  ;;  %v4235_v37 = vld [vmem:[#allocation8 + $0x1188] sm:$0xff] }
 0x514   : > { %5037 = vmatpush1.msra.mxu1 %v4180_v38  ;;  %5108 = vmatpush1.msra.mxu0 %v4182_v39  ;;  %v4185_v38 = vld [vmem:[#allocation8 + $0xff8] sm:$0xff]  ;;  %v4187_v39 = vld [vmem:[#allocation8 + $0x1008] sm:$0xff] }
 0x515   : > { %5038 = vmatprep.subr.mxu1 %v4132_v40  ;;  %5109 = vmatprep.subr.mxu0 %v4134_v41  ;;  %v4184_v40 = vld [vmem:[#allocation8 + $0xff0] sm:$0xff]  ;;  %v4186_v41 = vld [vmem:[#allocation8 + $0x1000] sm:$0xff] }
 0x516   : > { %5039 = vmatpush1.msra.mxu1 %v4131_v42  ;;  %5110 = vmatpush1.msra.mxu0 %v4133_v43  ;;  %v4136_v42 = vld [vmem:[#allocation8 + $0xe70] sm:$0xff]  ;;  %v4138_v43 = vld [vmem:[#allocation8 + $0xe80] sm:$0xff] }
 0x517   : > { %5040 = vmatprep.subr.mxu1 %v4083_v44  ;;  %5111 = vmatprep.subr.mxu0 %v4085_v45  ;;  %v4135_v44 = vld [vmem:[#allocation8 + $0xe68] sm:$0xff]  ;;  %v4137_v45 = vld [vmem:[#allocation8 + $0xe78] sm:$0xff] }
 0x518   : > { %5041 = vmatpush1.msra.mxu1 %v4082_v46  ;;  %5112 = vmatpush1.msra.mxu0 %v4084_v47  ;;  %v4087_v46 = vld [vmem:[#allocation8 + $0xce8] sm:$0xff]  ;;  %v4089_v47 = vld [vmem:[#allocation8 + $0xcf8] sm:$0xff] }
 0x519   : > { %5042 = vmatprep.subr.mxu1 %v4034_v48  ;;  %5113 = vmatprep.subr.mxu0 %v4036_v49  ;;  %v4086_v48 = vld [vmem:[#allocation8 + $0xce0] sm:$0xff]  ;;  %v4088_v49 = vld [vmem:[#allocation8 + $0xcf0] sm:$0xff] }
 0x51a   : > { %5043 = vmatpush1.msra.mxu1 %v4033_v50  ;;  %5114 = vmatpush1.msra.mxu0 %v4035_v51  ;;  %v4038_v50 = vld [vmem:[#allocation8 + $0xb60] sm:$0xff]  ;;  %v4040_v51 = vld [vmem:[#allocation8 + $0xb70] sm:$0xff] }
 0x51b   : > { %5044 = vmatprep.subr.mxu1 %v3985_v52  ;;  %5115 = vmatprep.subr.mxu0 %v3987_v53  ;;  %v4037_v52 = vld [vmem:[#allocation8 + $0xb58] sm:$0xff]  ;;  %v4039_v53 = vld [vmem:[#allocation8 + $0xb68] sm:$0xff] }
 0x51c   : > { %5045 = vmatpush1.msra.mxu1 %v3984_v55  ;;  %5116 = vmatpush1.msra.mxu0 %v3986_v56  ;;  %v3989_v55 = vld [vmem:[#allocation8 + $0x9d8] sm:$0xff]  ;;  %v3991_v56 = vld [vmem:[#allocation8 + $0x9e8] sm:$0xff] }
 0x51d   : > { %5046 = vmatprep.subr.mxu1 %v3936_v57  ;;  %5117 = vmatprep.subr.mxu0 %v3938_v58  ;;  %v3988_v57 = vld [vmem:[#allocation8 + $0x9d0] sm:$0xff]  ;;  %v3990_v58 = vld [vmem:[#allocation8 + $0x9e0] sm:$0xff] }
 0x51e   : > { %5047 = vmatpush1.msra.mxu1 %v3935_v59  ;;  %5118 = vmatpush1.msra.mxu0 %v3937_v60  ;;  %v3940_v59 = vld [vmem:[#allocation8 + $0x850] sm:$0xff]  ;;  %v3942_v60 = vld [vmem:[#allocation8 + $0x860] sm:$0xff] }
 0x51f   : > { %5048 = vmatprep.subr.mxu1 %v3887_v61  ;;  %5119 = vmatprep.subr.mxu0 %v3889_v62  ;;  %v3939_v61 = vld [vmem:[#allocation8 + $0x848] sm:$0xff]  ;;  %v3941_v62 = vld [vmem:[#allocation8 + $0x858] sm:$0xff] }
 0x520   : > { %5049 = vmatpush1.msra.mxu1 %v3886_v63  ;;  %5120 = vmatpush1.msra.mxu0 %v3888_v0  ;;  %v3891_v63 = vld [vmem:[#allocation8 + $0x6c8] sm:$0xff]  ;;  %v3893_v0 = vld [vmem:[#allocation8 + $0x6d8] sm:$0xff] }
 0x521   : > { %5050 = vmatprep.subr.mxu1 %v3838_v1  ;;  %5121 = vmatprep.subr.mxu0 %v3840_v2  ;;  %v3890_v1 = vld [vmem:[#allocation8 + $0x6c0] sm:$0xff]  ;;  %v3892_v2 = vld [vmem:[#allocation8 + $0x6d0] sm:$0xff] }
 0x522   : > { %5051 = vmatpush1.msra.mxu1 %v3837_v3  ;;  %5122 = vmatpush1.msra.mxu0 %v3839_v4  ;;  %v3842_v3 = vld [vmem:[#allocation8 + $0x540] sm:$0xff]  ;;  %v3844_v4 = vld [vmem:[#allocation8 + $0x550] sm:$0xff] }
 0x523   : > { %5052 = vmatprep.subr.mxu1 %v3789_v5  ;;  %5123 = vmatprep.subr.mxu0 %v3791_v6  ;;  %v3841_v5 = vld [vmem:[#allocation8 + $0x538] sm:$0xff]  ;;  %v3843_v6 = vld [vmem:[#allocation8 + $0x548] sm:$0xff] }
 0x524   : > { %5053 = vmatpush1.msra.mxu1 %v3788_v7  ;;  %5124 = vmatpush1.msra.mxu0 %v3790_v8  ;;  %v3793_v7 = vld [vmem:[#allocation8 + $0x3b8] sm:$0xff]  ;;  %v3795_v8 = vld [vmem:[#allocation8 + $0x3c8] sm:$0xff] }
 0x525   : > { %5054 = vmatprep.subr.mxu1 %v3740_v9  ;;  %5125 = vmatprep.subr.mxu0 %v3742_v10  ;;  %v3792_v9 = vld [vmem:[#allocation8 + $0x3b0] sm:$0xff]  ;;  %v3794_v10 = vld [vmem:[#allocation8 + $0x3c0] sm:$0xff] }
 0x526   : > { %5055 = vmatpush1.msra.mxu1 %v3739_v11  ;;  %5126 = vmatpush1.msra.mxu0 %v3741_v12  ;;  %v3744_v11 = vld [vmem:[#allocation8 + $0x230] sm:$0xff]  ;;  %v3746_v12 = vld [vmem:[#allocation8 + $0x240] sm:$0xff] }
 0x527   : > { %5056 = vmatprep.subr.mxu1 %v3691_v14  ;;  %5127 = vmatprep.subr.mxu0 %v3693_v15  ;;  %v3743_v14 = vld [vmem:[#allocation8 + $0x228] sm:$0xff]  ;;  %v3745_v15 = vld [vmem:[#allocation8 + $0x238] sm:$0xff] }
 0x528   : > { %5057 = vmatpush1.msra.mxu1 %v3690_v16  ;;  %5090 = vmatprep.mubr.f32.mxu1 %v6838_v54  ;;  %v3695_v16 = vld [vmem:[#allocation8 + $0xa8] sm:$0xff] }
 0x529   : > { %5128 = vmatpush1.msra.mxu0 %v3692_v17  ;;  %5161 = vmatprep.mubr.f32.mxu0 %v6838_v54  ;;  %v3697_v17 = vld [vmem:[#allocation8 + $0xb8] sm:$0xff] }
 0x52a   : > { %5091 = vmatmul.mubr.f32.vlgmr.msra.gmra.mxu1 %v7061_v13  ;;  %5162 = vmatmul.mubr.f32.vlgmr.msra.gmra.mxu0 %v7061_v13 }
 0x52b   : > { %5168 = vmatprep.subr.mxu1 %v4430_v18  ;;  %5239 = vmatprep.subr.mxu0 %v4432_v19  ;;  %v3694_v18 = vld [vmem:[#allocation8 + $0xa0] sm:$0xff]  ;;  %v3696_v19 = vld [vmem:[#allocation8 + $0xb0] sm:$0xff] }
 0x52c   : > { %5169 = vmatpush1.msra.mxu1 %v4429_v20  ;;  %5240 = vmatpush1.msra.mxu0 %v4431_v21  ;;  %v4434_v20 = vld [vmem:[#allocation8 + $0x17c0] sm:$0xff]  ;;  %v4436_v21 = vld [vmem:[#allocation8 + $0x17d0] sm:$0xff] }
 0x52d   : > { %5170 = vmatprep.subr.mxu1 %v4381_v22  ;;  %5241 = vmatprep.subr.mxu0 %v4383_v23  ;;  %v4433_v22 = vld [vmem:[#allocation8 + $0x17b8] sm:$0xff]  ;;  %v4435_v23 = vld [vmem:[#allocation8 + $0x17c8] sm:$0xff] }
 0x52e   : > { %5171 = vmatpush1.msra.mxu1 %v4380_v24  ;;  %5242 = vmatpush1.msra.mxu0 %v4382_v25  ;;  %v4385_v24 = vld [vmem:[#allocation8 + $0x1638] sm:$0xff]  ;;  %v4387_v25 = vld [vmem:[#allocation8 + $0x1648] sm:$0xff] }
 0x52f   : > { %5172 = vmatprep.subr.mxu1 %v4332_v26  ;;  %5243 = vmatprep.subr.mxu0 %v4334_v27  ;;  %v4384_v26 = vld [vmem:[#allocation8 + $0x1630] sm:$0xff]  ;;  %v4386_v27 = vld [vmem:[#allocation8 + $0x1640] sm:$0xff] }
 0x530   : > { %5173 = vmatpush1.msra.mxu1 %v4331_v28  ;;  %5244 = vmatpush1.msra.mxu0 %v4333_v29  ;;  %v4336_v28 = vld [vmem:[#allocation8 + $0x14b0] sm:$0xff]  ;;  %v4338_v29 = vld [vmem:[#allocation8 + $0x14c0] sm:$0xff] }
 0x531   : > { %5174 = vmatprep.subr.mxu1 %v4283_v30  ;;  %5245 = vmatprep.subr.mxu0 %v4285_v31  ;;  %v4335_v30 = vld [vmem:[#allocation8 + $0x14a8] sm:$0xff]  ;;  %v4337_v31 = vld [vmem:[#allocation8 + $0x14b8] sm:$0xff] }
 0x532   : > { %5175 = vmatpush1.msra.mxu1 %v4282_v32  ;;  %5246 = vmatpush1.msra.mxu0 %v4284_v33  ;;  %v4287_v32 = vld [vmem:[#allocation8 + $0x1328] sm:$0xff]  ;;  %v4289_v33 = vld [vmem:[#allocation8 + $0x1338] sm:$0xff] }
 0x533   : > { %5176 = vmatprep.subr.mxu1 %v4234_v34  ;;  %5247 = vmatprep.subr.mxu0 %v4236_v35  ;;  %v4286_v34 = vld [vmem:[#allocation8 + $0x1320] sm:$0xff]  ;;  %v4288_v35 = vld [vmem:[#allocation8 + $0x1330] sm:$0xff] }
 0x534   : > { %5177 = vmatpush1.msra.mxu1 %v4233_v36  ;;  %5248 = vmatpush1.msra.mxu0 %v4235_v37  ;;  %v4238_v36 = vld [vmem:[#allocation8 + $0x11a0] sm:$0xff]  ;;  %v4240_v37 = vld [vmem:[#allocation8 + $0x11b0] sm:$0xff] }
 0x535   : > { %5178 = vmatprep.subr.mxu1 %v4185_v38  ;;  %5249 = vmatprep.subr.mxu0 %v4187_v39  ;;  %v4237_v38 = vld [vmem:[#allocation8 + $0x1198] sm:$0xff]  ;;  %v4239_v39 = vld [vmem:[#allocation8 + $0x11a8] sm:$0xff] }
 0x536   : > { %5179 = vmatpush1.msra.mxu1 %v4184_v40  ;;  %5250 = vmatpush1.msra.mxu0 %v4186_v41  ;;  %v4189_v40 = vld [vmem:[#allocation8 + $0x1018] sm:$0xff]  ;;  %v4191_v41 = vld [vmem:[#allocation8 + $0x1028] sm:$0xff] }
 0x537   : > { %5180 = vmatprep.subr.mxu1 %v4136_v42  ;;  %5251 = vmatprep.subr.mxu0 %v4138_v43  ;;  %v4188_v42 = vld [vmem:[#allocation8 + $0x1010] sm:$0xff]  ;;  %v4190_v43 = vld [vmem:[#allocation8 + $0x1020] sm:$0xff] }
 0x538   : > { %5181 = vmatpush1.msra.mxu1 %v4135_v44  ;;  %5252 = vmatpush1.msra.mxu0 %v4137_v45  ;;  %v4140_v44 = vld [vmem:[#allocation8 + $0xe90] sm:$0xff]  ;;  %v4142_v45 = vld [vmem:[#allocation8 + $0xea0] sm:$0xff] }
 0x539   : > { %5182 = vmatprep.subr.mxu1 %v4087_v46  ;;  %5253 = vmatprep.subr.mxu0 %v4089_v47  ;;  %v4139_v46 = vld [vmem:[#allocation8 + $0xe88] sm:$0xff]  ;;  %v4141_v47 = vld [vmem:[#allocation8 + $0xe98] sm:$0xff] }
 0x53a   : > { %5183 = vmatpush1.msra.mxu1 %v4086_v48  ;;  %5254 = vmatpush1.msra.mxu0 %v4088_v49  ;;  %v4091_v48 = vld [vmem:[#allocation8 + $0xd08] sm:$0xff]  ;;  %v4093_v49 = vld [vmem:[#allocation8 + $0xd18] sm:$0xff] }
 0x53b   : > { %5184 = vmatprep.subr.mxu1 %v4038_v50  ;;  %5255 = vmatprep.subr.mxu0 %v4040_v51  ;;  %v4090_v50 = vld [vmem:[#allocation8 + $0xd00] sm:$0xff]  ;;  %v4092_v51 = vld [vmem:[#allocation8 + $0xd10] sm:$0xff] }
 0x53c   : > { %5185 = vmatpush1.msra.mxu1 %v4037_v52  ;;  %5256 = vmatpush1.msra.mxu0 %v4039_v53  ;;  %v4042_v52 = vld [vmem:[#allocation8 + $0xb80] sm:$0xff]  ;;  %v4044_v53 = vld [vmem:[#allocation8 + $0xb90] sm:$0xff] }
 0x53d   : > { %5186 = vmatprep.subr.mxu1 %v3989_v55  ;;  %5257 = vmatprep.subr.mxu0 %v3991_v56  ;;  %v4041_v55 = vld [vmem:[#allocation8 + $0xb78] sm:$0xff]  ;;  %v4043_v56 = vld [vmem:[#allocation8 + $0xb88] sm:$0xff] }
 0x53e   : > { %5187 = vmatpush1.msra.mxu1 %v3988_v57  ;;  %5258 = vmatpush1.msra.mxu0 %v3990_v58  ;;  %v3993_v57 = vld [vmem:[#allocation8 + $0x9f8] sm:$0xff]  ;;  %v3995_v58 = vld [vmem:[#allocation8 + $0xa08] sm:$0xff] }
 0x53f   : > { %5188 = vmatprep.subr.mxu1 %v3940_v59  ;;  %5259 = vmatprep.subr.mxu0 %v3942_v60  ;;  %v3992_v59 = vld [vmem:[#allocation8 + $0x9f0] sm:$0xff]  ;;  %v3994_v60 = vld [vmem:[#allocation8 + $0xa00] sm:$0xff] }
 0x540   : > { %5189 = vmatpush1.msra.mxu1 %v3939_v61  ;;  %5260 = vmatpush1.msra.mxu0 %v3941_v62  ;;  %v3944_v61 = vld [vmem:[#allocation8 + $0x870] sm:$0xff]  ;;  %v3946_v62 = vld [vmem:[#allocation8 + $0x880] sm:$0xff] }
 0x541   : > { %5190 = vmatprep.subr.mxu1 %v3891_v63  ;;  %5261 = vmatprep.subr.mxu0 %v3893_v0  ;;  %v3943_v63 = vld [vmem:[#allocation8 + $0x868] sm:$0xff]  ;;  %v3945_v0 = vld [vmem:[#allocation8 + $0x878] sm:$0xff] }
 0x542   : > { %5191 = vmatpush1.msra.mxu1 %v3890_v1  ;;  %5262 = vmatpush1.msra.mxu0 %v3892_v2  ;;  %v3895_v1 = vld [vmem:[#allocation8 + $0x6e8] sm:$0xff]  ;;  %v3897_v2 = vld [vmem:[#allocation8 + $0x6f8] sm:$0xff] }
 0x543   : > { %5192 = vmatprep.subr.mxu1 %v3842_v3  ;;  %5263 = vmatprep.subr.mxu0 %v3844_v4  ;;  %v3894_v3 = vld [vmem:[#allocation8 + $0x6e0] sm:$0xff]  ;;  %v3896_v4 = vld [vmem:[#allocation8 + $0x6f0] sm:$0xff] }
 0x544   : > { %5193 = vmatpush1.msra.mxu1 %v3841_v5  ;;  %5264 = vmatpush1.msra.mxu0 %v3843_v6  ;;  %v3846_v5 = vld [vmem:[#allocation8 + $0x560] sm:$0xff]  ;;  %v3848_v6 = vld [vmem:[#allocation8 + $0x570] sm:$0xff] }
 0x545   : > { %5194 = vmatprep.subr.mxu1 %v3793_v7  ;;  %5265 = vmatprep.subr.mxu0 %v3795_v8  ;;  %v3845_v7 = vld [vmem:[#allocation8 + $0x558] sm:$0xff]  ;;  %v3847_v8 = vld [vmem:[#allocation8 + $0x568] sm:$0xff] }
 0x546   : > { %5195 = vmatpush1.msra.mxu1 %v3792_v9  ;;  %5266 = vmatpush1.msra.mxu0 %v3794_v10 }
 0x547   : > { %5196 = vmatprep.subr.mxu1 %v3744_v11  ;;  %5267 = vmatprep.subr.mxu0 %v3746_v12  ;;  %v3797_v11 = vld [vmem:[#allocation8 + $0x3d8] sm:$0xff]  ;;  %v3799_v12 = vld [vmem:[#allocation8 + $0x3e8] sm:$0xff] }
 0x548   : > { %5197 = vmatpush1.msra.mxu1 %v3743_v14  ;;  %5268 = vmatpush1.msra.mxu0 %v3745_v15  ;;  %v6616_v14 = vld [vmem:[%s6995_s20] sm:$0xff] }
 0x549   : > { %5198 = vmatprep.subr.mxu1 %v3695_v16  ;;  %5269 = vmatprep.subr.mxu0 %v3697_v17  ;;  %v6617_v16 = vld [vmem:[%s6995_s20 + $0x10] sm:$0xff] }
 0x54a   : > { %5199 = vmatpush1.msra.mxu1 %v3694_v18  ;;  %5232 = vmatprep.mubr.f32.mxu1 %v6838_v54  ;;  %v3796_v18 = vld [vmem:[#allocation8 + $0x3d0] sm:$0xff] }
 0x54b   : > { %5270 = vmatpush1.msra.mxu0 %v3696_v19  ;;  %5303 = vmatprep.mubr.f32.mxu0 %v6838_v54  ;;  %v3798_v19 = vld [vmem:[#allocation8 + $0x3e0] sm:$0xff] }
 0x54c   : > { %5233 = vmatmul.mubr.f32.vlgmr.msra.gmra.mxu1 %v7061_v13  ;;  %5304 = vmatmul.mubr.f32.vlgmr.msra.gmra.mxu0 %v7061_v13 }
 0x54d   : > { %5310 = vmatprep.subr.mxu1 %v4434_v20  ;;  %5381 = vmatprep.subr.mxu0 %v4436_v21 }
 0x54e   : > { %5311 = vmatpush1.msra.mxu1 %v4433_v22  ;;  %5382 = vmatpush1.msra.mxu0 %v4435_v23  ;;  %v3748_v22 = vld [vmem:[#allocation8 + $0x250] sm:$0xff]  ;;  %v3750_v23 = vld [vmem:[#allocation8 + $0x260] sm:$0xff] }
 0x54f   : > { %5312 = vmatprep.subr.mxu1 %v4385_v24  ;;  %5383 = vmatprep.subr.mxu0 %v4387_v25  ;;  %v6618_v24 = vld [vmem:[%s6995_s20 + $0x8] sm:$0xff] }
 0x550   : > { %5313 = vmatpush1.msra.mxu1 %v4384_v26  ;;  %5384 = vmatpush1.msra.mxu0 %v4386_v27  ;;  %v6619_v26 = vld [vmem:[%s6995_s20 + $0x18] sm:$0xff] }
 0x551   : > { %5314 = vmatprep.subr.mxu1 %v4336_v28  ;;  %5385 = vmatprep.subr.mxu0 %v4338_v29  ;;  %v3747_v28 = vld [vmem:[#allocation8 + $0x248] sm:$0xff]  ;;  %v3749_v29 = vld [vmem:[#allocation8 + $0x258] sm:$0xff] }
 0x552   : > { %5315 = vmatpush1.msra.mxu1 %v4335_v30  ;;  %5386 = vmatpush1.msra.mxu0 %v4337_v31  ;;  %v3699_v30 = vld [vmem:[#allocation8 + $0xc8] sm:$0xff]  ;;  %v3701_v31 = vld [vmem:[#allocation8 + $0xd8] sm:$0xff] }
 0x553   : > { %5316 = vmatprep.subr.mxu1 %v4287_v32  ;;  %5387 = vmatprep.subr.mxu0 %v4289_v33  ;;  %v3698_v32 = vld [vmem:[#allocation8 + $0xc0] sm:$0xff]  ;;  %v3700_v33 = vld [vmem:[#allocation8 + $0xd0] sm:$0xff] }
 0x554   : > { %5317 = vmatpush1.msra.mxu1 %v4286_v34  ;;  %5388 = vmatpush1.msra.mxu0 %v4288_v35  ;;  %v4438_v34 = vld [vmem:[#allocation8 + $0x17e0] sm:$0xff]  ;;  %v4440_v35 = vld [vmem:[#allocation8 + $0x17f0] sm:$0xff] }
 0x555   : > { %5318 = vmatprep.subr.mxu1 %v4238_v36  ;;  %5389 = vmatprep.subr.mxu0 %v4240_v37  ;;  %v4437_v36 = vld [vmem:[#allocation8 + $0x17d8] sm:$0xff]  ;;  %v4439_v37 = vld [vmem:[#allocation8 + $0x17e8] sm:$0xff] }
 0x556   : > { %5319 = vmatpush1.msra.mxu1 %v4237_v38  ;;  %5390 = vmatpush1.msra.mxu0 %v4239_v39  ;;  %v4389_v38 = vld [vmem:[#allocation8 + $0x1658] sm:$0xff]  ;;  %v4391_v39 = vld [vmem:[#allocation8 + $0x1668] sm:$0xff] }
 0x557   : > { %5320 = vmatprep.subr.mxu1 %v4189_v40  ;;  %5391 = vmatprep.subr.mxu0 %v4191_v41  ;;  %v4388_v40 = vld [vmem:[#allocation8 + $0x1650] sm:$0xff]  ;;  %v4390_v41 = vld [vmem:[#allocation8 + $0x1660] sm:$0xff] }
 0x558   : > { %5321 = vmatpush1.msra.mxu1 %v4188_v42  ;;  %5392 = vmatpush1.msra.mxu0 %v4190_v43  ;;  %v4340_v42 = vld [vmem:[#allocation8 + $0x14d0] sm:$0xff]  ;;  %v4342_v43 = vld [vmem:[#allocation8 + $0x14e0] sm:$0xff] }
 0x559   : > { %5322 = vmatprep.subr.mxu1 %v4140_v44  ;;  %5393 = vmatprep.subr.mxu0 %v4142_v45  ;;  %v4339_v44 = vld [vmem:[#allocation8 + $0x14c8] sm:$0xff]  ;;  %v4341_v45 = vld [vmem:[#allocation8 + $0x14d8] sm:$0xff] }
 0x55a   : > { %5323 = vmatpush1.msra.mxu1 %v4139_v46  ;;  %5394 = vmatpush1.msra.mxu0 %v4141_v47  ;;  %v4291_v46 = vld [vmem:[#allocation8 + $0x1348] sm:$0xff]  ;;  %v4293_v47 = vld [vmem:[#allocation8 + $0x1358] sm:$0xff] }
 0x55b   : > { %5324 = vmatprep.subr.mxu1 %v4091_v48  ;;  %5395 = vmatprep.subr.mxu0 %v4093_v49  ;;  %v4290_v48 = vld [vmem:[#allocation8 + $0x1340] sm:$0xff]  ;;  %v4292_v49 = vld [vmem:[#allocation8 + $0x1350] sm:$0xff] }
 0x55c   : > { %5325 = vmatpush1.msra.mxu1 %v4090_v50  ;;  %5396 = vmatpush1.msra.mxu0 %v4092_v51  ;;  %v4242_v50 = vld [vmem:[#allocation8 + $0x11c0] sm:$0xff]  ;;  %v4244_v51 = vld [vmem:[#allocation8 + $0x11d0] sm:$0xff] }
 0x55d   : > { %5326 = vmatprep.subr.mxu1 %v4042_v52  ;;  %5397 = vmatprep.subr.mxu0 %v4044_v53  ;;  %v4241_v52 = vld [vmem:[#allocation8 + $0x11b8] sm:$0xff]  ;;  %v4243_v53 = vld [vmem:[#allocation8 + $0x11c8] sm:$0xff] }
 0x55e   : > { %5327 = vmatpush1.msra.mxu1 %v4041_v55  ;;  %5398 = vmatpush1.msra.mxu0 %v4043_v56  ;;  %v4193_v55 = vld [vmem:[#allocation8 + $0x1038] sm:$0xff]  ;;  %v4195_v56 = vld [vmem:[#allocation8 + $0x1048] sm:$0xff] }
 0x55f   : > { %5328 = vmatprep.subr.mxu1 %v3993_v57  ;;  %5399 = vmatprep.subr.mxu0 %v3995_v58  ;;  %v4192_v57 = vld [vmem:[#allocation8 + $0x1030] sm:$0xff]  ;;  %v4194_v58 = vld [vmem:[#allocation8 + $0x1040] sm:$0xff] }
 0x560   : > { %5329 = vmatpush1.msra.mxu1 %v3992_v59  ;;  %5400 = vmatpush1.msra.mxu0 %v3994_v60  ;;  %v4144_v59 = vld [vmem:[#allocation8 + $0xeb0] sm:$0xff]  ;;  %v4146_v60 = vld [vmem:[#allocation8 + $0xec0] sm:$0xff] }
 0x561   : > { %5330 = vmatprep.subr.mxu1 %v3944_v61  ;;  %5401 = vmatprep.subr.mxu0 %v3946_v62  ;;  %v4143_v61 = vld [vmem:[#allocation8 + $0xea8] sm:$0xff]  ;;  %v4145_v62 = vld [vmem:[#allocation8 + $0xeb8] sm:$0xff] }
 0x562   : > { %5331 = vmatpush1.msra.mxu1 %v3943_v63  ;;  %5402 = vmatpush1.msra.mxu0 %v3945_v0  ;;  %v4095_v63 = vld [vmem:[#allocation8 + $0xd28] sm:$0xff]  ;;  %v4097_v0 = vld [vmem:[#allocation8 + $0xd38] sm:$0xff] }
 0x563   : > { %5332 = vmatprep.subr.mxu1 %v3895_v1  ;;  %5403 = vmatprep.subr.mxu0 %v3897_v2  ;;  %v4524_v9 = vpop.f32.mrf.mxu1  ;;  %v4595_v10 = vpop.f32.mrf.mxu0  ;;  %v4094_v1 = vld [vmem:[#allocation8 + $0xd20] sm:$0xff]  ;;  %v4096_v2 = vld [vmem:[#allocation8 + $0xd30] sm:$0xff] }
 0x564   : > { %5333 = vmatpush1.msra.mxu1 %v3894_v3  ;;  %5404 = vmatpush1.msra.mxu0 %v3896_v4  ;;  %v6232_v15 = vmul.f32 %v6616_v14, %v4524_v9  ;;  %v6234_v17 = vmul.f32 %v6617_v16, %v4595_v10  ;;  %v4046_v3 = vld [vmem:[#allocation8 + $0xba0] sm:$0xff]  ;;  %v4048_v4 = vld [vmem:[#allocation8 + $0xbb0] sm:$0xff]  ;;  %v3947_v14 = vld [vmem:[#allocation8 + $0x888] sm:$0xff] }
 0x565   : > { %5334 = vmatprep.subr.mxu1 %v3846_v5  ;;  %5405 = vmatprep.subr.mxu0 %v3848_v6  ;;  %v4526_v20 = vpop.f32.mrf.mxu1  ;;  %v4597_v21 = vpop.f32.mrf.mxu0  ;;  %v4045_v5 = vld [vmem:[#allocation8 + $0xb98] sm:$0xff]  ;;  %v4047_v6 = vld [vmem:[#allocation8 + $0xba8] sm:$0xff]  ;;  %v3996_v9 = vld [vmem:[#allocation8 + $0xa10] sm:$0xff] }
 0x566   : > { %5335 = vmatpush1.msra.mxu1 %v3845_v7  ;;  %5406 = vmatpush1.msra.mxu0 %v3847_v8  ;;  %6281 = vst [vmem:[%s7089_s6] sm:$0xff] %v6232_v15  ;;  %6283 = vst [vmem:[%s7089_s6 + $0x10] sm:$0xff] %v6234_v17  ;;  %v6233_v25 = vmul.f32 %v6618_v24, %v4526_v20  ;;  %v6235_v27 = vmul.f32 %v6619_v26, %v4597_v21  ;;  %v3997_v7 = vld [vmem:[#allocation8 + $0xa18] sm:$0xff]  ;;  %v3999_v8 = vld [vmem:[#allocation8 + $0xa28] sm:$0xff] }
 0x567   : > { %5336 = vmatprep.subr.mxu1 %v3797_v11  ;;  %5407 = vmatprep.subr.mxu0 %v3799_v12  ;;  %v3998_v10 = vld [vmem:[#allocation8 + $0xa20] sm:$0xff]  ;;  %v3948_v11 = vld [vmem:[#allocation8 + $0x890] sm:$0xff]  ;;  %v3949_v15 = vld [vmem:[#allocation8 + $0x898] sm:$0xff] }
 0x568   : > { %5337 = vmatpush1.msra.mxu1 %v3796_v18  ;;  %5408 = vmatpush1.msra.mxu0 %v3798_v19  ;;  %6282 = vst [vmem:[%s7089_s6 + $0x8] sm:$0xff] %v6233_v25  ;;  %6284 = vst [vmem:[%s7089_s6 + $0x18] sm:$0xff] %v6235_v27  ;;  %v3950_v12 = vld [vmem:[#allocation8 + $0x8a0] sm:$0xff]  ;;  %v3899_v16 = vld [vmem:[#allocation8 + $0x708] sm:$0xff] }
 0x569   : > { %5338 = vmatprep.subr.mxu1 %v3748_v22  ;;  %5409 = vmatprep.subr.mxu0 %v3750_v23  ;;  %v3901_v17 = vld [vmem:[#allocation8 + $0x718] sm:$0xff]  ;;  %v3898_v18 = vld [vmem:[#allocation8 + $0x700] sm:$0xff]  ;;  %v3900_v19 = vld [vmem:[#allocation8 + $0x710] sm:$0xff] }
 0x56a   : > { %5339 = vmatpush1.msra.mxu1 %v3747_v28  ;;  %5410 = vmatpush1.msra.mxu0 %v3749_v29  ;;  %v3850_v20 = vld [vmem:[#allocation8 + $0x580] sm:$0xff]  ;;  %v3852_v21 = vld [vmem:[#allocation8 + $0x590] sm:$0xff]  ;;  %v3849_v24 = vld [vmem:[#allocation8 + $0x578] sm:$0xff] }
 0x56b   : > { %5340 = vmatprep.subr.mxu1 %v3699_v30  ;;  %5411 = vmatprep.subr.mxu0 %v3701_v31  ;;  %v3851_v25 = vld [vmem:[#allocation8 + $0x588] sm:$0xff]  ;;  %v6620_v26 = vld [vmem:[%s6995_s20 + $0x20] sm:$0xff] }
 0x56c   : > { %5341 = vmatpush1.msra.mxu1 %v3698_v32  ;;  %5374 = vmatprep.mubr.f32.mxu1 %v6838_v54  ;;  %v6621_v28 = vld [vmem:[%s6995_s20 + $0x30] sm:$0xff]  ;;  %v3801_v30 = vld [vmem:[#allocation8 + $0x3f8] sm:$0xff] }
 0x56d   : > { %5412 = vmatpush1.msra.mxu0 %v3700_v33  ;;  %5445 = vmatprep.mubr.f32.mxu0 %v6838_v54  ;;  %v3803_v31 = vld [vmem:[#allocation8 + $0x408] sm:$0xff] }
 0x56e   : > { %5375 = vmatmul.mubr.f32.vlgmr.msra.gmra.mxu1 %v7061_v13  ;;  %5446 = vmatmul.mubr.f32.vlgmr.msra.gmra.mxu0 %v7061_v13 }
 0x56f   : > { %5452 = vmatprep.subr.mxu1 %v4438_v34  ;;  %5523 = vmatprep.subr.mxu0 %v4440_v35  ;;  %v3800_v34 = vld [vmem:[#allocation8 + $0x3f0] sm:$0xff]  ;;  %v3802_v35 = vld [vmem:[#allocation8 + $0x400] sm:$0xff] }
 0x570   : > { %5453 = vmatpush1.msra.mxu1 %v4437_v36  ;;  %5524 = vmatpush1.msra.mxu0 %v4439_v37  ;;  %v6622_v36 = vld [vmem:[%s6995_s20 + $0x28] sm:$0xff] }
 0x571   : > { %5454 = vmatprep.subr.mxu1 %v4389_v38  ;;  %5525 = vmatprep.subr.mxu0 %v4391_v39  ;;  %v6623_v38 = vld [vmem:[%s6995_s20 + $0x38] sm:$0xff] }
 0x572   : > { %5455 = vmatpush1.msra.mxu1 %v4388_v40  ;;  %5526 = vmatpush1.msra.mxu0 %v4390_v41  ;;  %v3752_v40 = vld [vmem:[#allocation8 + $0x270] sm:$0xff]  ;;  %v3754_v41 = vld [vmem:[#allocation8 + $0x280] sm:$0xff] }
 0x573   : > { %5456 = vmatprep.subr.mxu1 %v4340_v42  ;;  %5527 = vmatprep.subr.mxu0 %v4342_v43  ;;  %v3751_v42 = vld [vmem:[#allocation8 + $0x268] sm:$0xff]  ;;  %v3753_v43 = vld [vmem:[#allocation8 + $0x278] sm:$0xff] }
 0x574   : > { %5457 = vmatpush1.msra.mxu1 %v4339_v44  ;;  %5528 = vmatpush1.msra.mxu0 %v4341_v45  ;;  %v3703_v44 = vld [vmem:[#allocation8 + $0xe8] sm:$0xff]  ;;  %v3705_v45 = vld [vmem:[#allocation8 + $0xf8] sm:$0xff] }
 0x575   : > { %5458 = vmatprep.subr.mxu1 %v4291_v46  ;;  %5529 = vmatprep.subr.mxu0 %v4293_v47  ;;  %v3702_v46 = vld [vmem:[#allocation8 + $0xe0] sm:$0xff]  ;;  %v3704_v47 = vld [vmem:[#allocation8 + $0xf0] sm:$0xff] }
 0x576   : > { %5459 = vmatpush1.msra.mxu1 %v4290_v48  ;;  %5530 = vmatpush1.msra.mxu0 %v4292_v49  ;;  %v4442_v48 = vld [vmem:[#allocation8 + $0x1800] sm:$0xff]  ;;  %v4444_v49 = vld [vmem:[#allocation8 + $0x1810] sm:$0xff] }
 0x577   : > { %5460 = vmatprep.subr.mxu1 %v4242_v50  ;;  %5531 = vmatprep.subr.mxu0 %v4244_v51  ;;  %v4441_v50 = vld [vmem:[#allocation8 + $0x17f8] sm:$0xff]  ;;  %v4443_v51 = vld [vmem:[#allocation8 + $0x1808] sm:$0xff] }
 0x578   : > { %5461 = vmatpush1.msra.mxu1 %v4241_v52  ;;  %5532 = vmatpush1.msra.mxu0 %v4243_v53  ;;  %v4393_v52 = vld [vmem:[#allocation8 + $0x1678] sm:$0xff]  ;;  %v4395_v53 = vld [vmem:[#allocation8 + $0x1688] sm:$0xff] }
 0x579   : > { %5462 = vmatprep.subr.mxu1 %v4193_v55  ;;  %5533 = vmatprep.subr.mxu0 %v4195_v56  ;;  %v4392_v55 = vld [vmem:[#allocation8 + $0x1670] sm:$0xff]  ;;  %v4394_v56 = vld [vmem:[#allocation8 + $0x1680] sm:$0xff] }
 0x57a   : > { %5463 = vmatpush1.msra.mxu1 %v4192_v57  ;;  %5534 = vmatpush1.msra.mxu0 %v4194_v58  ;;  %v4344_v57 = vld [vmem:[#allocation8 + $0x14f0] sm:$0xff]  ;;  %v4346_v58 = vld [vmem:[#allocation8 + $0x1500] sm:$0xff] }
 0x57b   : > { %5464 = vmatprep.subr.mxu1 %v4144_v59  ;;  %5535 = vmatprep.subr.mxu0 %v4146_v60  ;;  %v4343_v59 = vld [vmem:[#allocation8 + $0x14e8] sm:$0xff]  ;;  %v4345_v60 = vld [vmem:[#allocation8 + $0x14f8] sm:$0xff] }
 0x57c   : > { %5465 = vmatpush1.msra.mxu1 %v4143_v61  ;;  %5536 = vmatpush1.msra.mxu0 %v4145_v62  ;;  %v4295_v61 = vld [vmem:[#allocation8 + $0x1368] sm:$0xff]  ;;  %v4297_v62 = vld [vmem:[#allocation8 + $0x1378] sm:$0xff] }
 0x57d   : > { %5466 = vmatprep.subr.mxu1 %v4095_v63  ;;  %5537 = vmatprep.subr.mxu0 %v4097_v0  ;;  %v4294_v63 = vld [vmem:[#allocation8 + $0x1360] sm:$0xff]  ;;  %v4296_v0 = vld [vmem:[#allocation8 + $0x1370] sm:$0xff] }
 0x57e   : > { %5467 = vmatpush1.msra.mxu1 %v4094_v1  ;;  %5538 = vmatpush1.msra.mxu0 %v4096_v2  ;;  %v4246_v1 = vld [vmem:[#allocation8 + $0x11e0] sm:$0xff]  ;;  %v4248_v2 = vld [vmem:[#allocation8 + $0x11f0] sm:$0xff] }
 0x57f   : > { %5468 = vmatprep.subr.mxu1 %v4046_v3  ;;  %5539 = vmatprep.subr.mxu0 %v4048_v4  ;;  %v4245_v3 = vld [vmem:[#allocation8 + $0x11d8] sm:$0xff]  ;;  %v4247_v4 = vld [vmem:[#allocation8 + $0x11e8] sm:$0xff] }
 0x580   : > { %5469 = vmatpush1.msra.mxu1 %v4045_v5  ;;  %5540 = vmatpush1.msra.mxu0 %v4047_v6  ;;  %v4197_v5 = vld [vmem:[#allocation8 + $0x1058] sm:$0xff]  ;;  %v4199_v6 = vld [vmem:[#allocation8 + $0x1068] sm:$0xff] }
 0x581   : > { %5470 = vmatprep.subr.mxu1 %v3997_v7  ;;  %5541 = vmatprep.subr.mxu0 %v3999_v8  ;;  %v4196_v7 = vld [vmem:[#allocation8 + $0x1050] sm:$0xff]  ;;  %v4198_v8 = vld [vmem:[#allocation8 + $0x1060] sm:$0xff] }
 0x582   : > { %5471 = vmatpush1.msra.mxu1 %v3996_v9  ;;  %5542 = vmatpush1.msra.mxu0 %v3998_v10  ;;  %v4148_v9 = vld [vmem:[#allocation8 + $0xed0] sm:$0xff]  ;;  %v4150_v10 = vld [vmem:[#allocation8 + $0xee0] sm:$0xff] }
 0x583   : > { %5472 = vmatprep.subr.mxu1 %v3948_v11  ;;  %5543 = vmatprep.subr.mxu0 %v3950_v12  ;;  %v4147_v11 = vld [vmem:[#allocation8 + $0xec8] sm:$0xff]  ;;  %v4149_v12 = vld [vmem:[#allocation8 + $0xed8] sm:$0xff] }
 0x584   : > { %5473 = vmatpush1.msra.mxu1 %v3947_v14  ;;  %5544 = vmatpush1.msra.mxu0 %v3949_v15  ;;  %v4666_v22 = vpop.f32.mrf.mxu1  ;;  %v4737_v23 = vpop.f32.mrf.mxu0  ;;  %v4099_v14 = vld [vmem:[#allocation8 + $0xd48] sm:$0xff]  ;;  %v4101_v15 = vld [vmem:[#allocation8 + $0xd58] sm:$0xff] }
 0x585   : > { %5474 = vmatprep.subr.mxu1 %v3899_v16  ;;  %5545 = vmatprep.subr.mxu0 %v3901_v17  ;;  %v6236_v27 = vmul.f32 %v6620_v26, %v4666_v22  ;;  %v6238_v29 = vmul.f32 %v6621_v28, %v4737_v23  ;;  %v4098_v16 = vld [vmem:[#allocation8 + $0xd40] sm:$0xff]  ;;  %v4100_v17 = vld [vmem:[#allocation8 + $0xd50] sm:$0xff]  ;;  %v4001_v22 = vld [vmem:[#allocation8 + $0xa38] sm:$0xff] }
 0x586   : > { %5475 = vmatpush1.msra.mxu1 %v3898_v18  ;;  %5546 = vmatpush1.msra.mxu0 %v3900_v19  ;;  %v4668_v32 = vpop.f32.mrf.mxu1  ;;  %v4739_v33 = vpop.f32.mrf.mxu0  ;;  %v4050_v18 = vld [vmem:[#allocation8 + $0xbc0] sm:$0xff]  ;;  %v4052_v19 = vld [vmem:[#allocation8 + $0xbd0] sm:$0xff]  ;;  %v4003_v23 = vld [vmem:[#allocation8 + $0xa48] sm:$0xff] }
 0x587   : > { %5476 = vmatprep.subr.mxu1 %v3850_v20  ;;  %5547 = vmatprep.subr.mxu0 %v3852_v21  ;;  %6285 = vst [vmem:[%s7089_s6 + $0x20] sm:$0xff] %v6236_v27  ;;  %6287 = vst [vmem:[%s7089_s6 + $0x30] sm:$0xff] %v6238_v29  ;;  %v6237_v37 = vmul.f32 %v6622_v36, %v4668_v32  ;;  %v6239_v39 = vmul.f32 %v6623_v38, %v4739_v33  ;;  %v4049_v20 = vld [vmem:[#allocation8 + $0xbb8] sm:$0xff]  ;;  %v4051_v21 = vld [vmem:[#allocation8 + $0xbc8] sm:$0xff] }
 0x588   : > { %5477 = vmatpush1.msra.mxu1 %v3849_v24  ;;  %5548 = vmatpush1.msra.mxu0 %v3851_v25  ;;  %v4000_v24 = vld [vmem:[#allocation8 + $0xa30] sm:$0xff]  ;;  %v4002_v25 = vld [vmem:[#allocation8 + $0xa40] sm:$0xff]  ;;  %v3951_v28 = vld [vmem:[#allocation8 + $0x8a8] sm:$0xff] }
 0x589   : > { %5478 = vmatprep.subr.mxu1 %v3801_v30  ;;  %5549 = vmatprep.subr.mxu0 %v3803_v31  ;;  %6286 = vst [vmem:[%s7089_s6 + $0x28] sm:$0xff] %v6237_v37  ;;  %6288 = vst [vmem:[%s7089_s6 + $0x38] sm:$0xff] %v6239_v39  ;;  %v3952_v26 = vld [vmem:[#allocation8 + $0x8b0] sm:$0xff]  ;;  %v3954_v27 = vld [vmem:[#allocation8 + $0x8c0] sm:$0xff] }
 0x58a   : > { %5479 = vmatpush1.msra.mxu1 %v3800_v34  ;;  %5550 = vmatpush1.msra.mxu0 %v3802_v35  ;;  %v3953_v29 = vld [vmem:[#allocation8 + $0x8b8] sm:$0xff]  ;;  %v3903_v30 = vld [vmem:[#allocation8 + $0x728] sm:$0xff]  ;;  %v3902_v32 = vld [vmem:[#allocation8 + $0x720] sm:$0xff] }
 0x58b   : > { %5480 = vmatprep.subr.mxu1 %v3752_v40  ;;  %5551 = vmatprep.subr.mxu0 %v3754_v41  ;;  %v3905_v31 = vld [vmem:[#allocation8 + $0x738] sm:$0xff]  ;;  %v3904_v33 = vld [vmem:[#allocation8 + $0x730] sm:$0xff]  ;;  %v3854_v34 = vld [vmem:[#allocation8 + $0x5a0] sm:$0xff] }
 0x58c   : > { %5481 = vmatpush1.msra.mxu1 %v3751_v42  ;;  %5552 = vmatpush1.msra.mxu0 %v3753_v43  ;;  %v3856_v35 = vld [vmem:[#allocation8 + $0x5b0] sm:$0xff]  ;;  %v3853_v38 = vld [vmem:[#allocation8 + $0x598] sm:$0xff]  ;;  %v3855_v39 = vld [vmem:[#allocation8 + $0x5a8] sm:$0xff] }
 0x58d   : > { %5482 = vmatprep.subr.mxu1 %v3703_v44  ;;  %5553 = vmatprep.subr.mxu0 %v3705_v45  ;;  %v6624_v40 = vld [vmem:[%s6995_s20 + $0x40] sm:$0xff]  ;;  %v6625_v42 = vld [vmem:[%s6995_s20 + $0x50] sm:$0xff] }
 0x58e   : > { %5483 = vmatpush1.msra.mxu1 %v3702_v46  ;;  %5516 = vmatprep.mubr.f32.mxu1 %v6838_v54  ;;  %v3805_v44 = vld [vmem:[#allocation8 + $0x418] sm:$0xff]  ;;  %v3807_v45 = vld [vmem:[#allocation8 + $0x428] sm:$0xff] }
 0x58f   : > { %5554 = vmatpush1.msra.mxu0 %v3704_v47  ;;  %5587 = vmatprep.mubr.f32.mxu0 %v6838_v54 }
 0x590   : > { %5517 = vmatmul.mubr.f32.vlgmr.msra.gmra.mxu1 %v7061_v13  ;;  %5588 = vmatmul.mubr.f32.vlgmr.msra.gmra.mxu0 %v7061_v13 }
 0x591   : > { %5594 = vmatprep.subr.mxu1 %v4442_v48  ;;  %5665 = vmatprep.subr.mxu0 %v4444_v49  ;;  %v3804_v48 = vld [vmem:[#allocation8 + $0x410] sm:$0xff]  ;;  %v3806_v49 = vld [vmem:[#allocation8 + $0x420] sm:$0xff] }
 0x592   : > { %5595 = vmatpush1.msra.mxu1 %v4441_v50  ;;  %5666 = vmatpush1.msra.mxu0 %v4443_v51  ;;  %v6626_v50 = vld [vmem:[%s6995_s20 + $0x48] sm:$0xff] }
 0x593   : > { %5596 = vmatprep.subr.mxu1 %v4393_v52  ;;  %5667 = vmatprep.subr.mxu0 %v4395_v53  ;;  %v6627_v52 = vld [vmem:[%s6995_s20 + $0x58] sm:$0xff] }
 0x594   : > { %5597 = vmatpush1.msra.mxu1 %v4392_v55  ;;  %5668 = vmatpush1.msra.mxu0 %v4394_v56  ;;  %v3756_v55 = vld [vmem:[#allocation8 + $0x290] sm:$0xff]  ;;  %v3758_v56 = vld [vmem:[#allocation8 + $0x2a0] sm:$0xff] }
 0x595   : > { %5598 = vmatprep.subr.mxu1 %v4344_v57  ;;  %5669 = vmatprep.subr.mxu0 %v4346_v58  ;;  %v3755_v57 = vld [vmem:[#allocation8 + $0x288] sm:$0xff]  ;;  %v3757_v58 = vld [vmem:[#allocation8 + $0x298] sm:$0xff] }
 0x596   : > { %5599 = vmatpush1.msra.mxu1 %v4343_v59  ;;  %5670 = vmatpush1.msra.mxu0 %v4345_v60  ;;  %v3707_v59 = vld [vmem:[#allocation8 + $0x108] sm:$0xff]  ;;  %v3709_v60 = vld [vmem:[#allocation8 + $0x118] sm:$0xff] }
 0x597   : > { %5600 = vmatprep.subr.mxu1 %v4295_v61  ;;  %5671 = vmatprep.subr.mxu0 %v4297_v62  ;;  %v3706_v61 = vld [vmem:[#allocation8 + $0x100] sm:$0xff]  ;;  %v3708_v62 = vld [vmem:[#allocation8 + $0x110] sm:$0xff] }
 0x598   : > { %5601 = vmatpush1.msra.mxu1 %v4294_v63  ;;  %5672 = vmatpush1.msra.mxu0 %v4296_v0  ;;  %v4446_v63 = vld [vmem:[#allocation8 + $0x1820] sm:$0xff]  ;;  %v4448_v0 = vld [vmem:[#allocation8 + $0x1830] sm:$0xff] }
 0x599   : > { %5602 = vmatprep.subr.mxu1 %v4246_v1  ;;  %5673 = vmatprep.subr.mxu0 %v4248_v2  ;;  %v4445_v1 = vld [vmem:[#allocation8 + $0x1818] sm:$0xff]  ;;  %v4447_v2 = vld [vmem:[#allocation8 + $0x1828] sm:$0xff] }
 0x59a   : > { %5603 = vmatpush1.msra.mxu1 %v4245_v3  ;;  %5674 = vmatpush1.msra.mxu0 %v4247_v4  ;;  %v4397_v3 = vld [vmem:[#allocation8 + $0x1698] sm:$0xff]  ;;  %v4399_v4 = vld [vmem:[#allocation8 + $0x16a8] sm:$0xff] }
 0x59b   : > { %5604 = vmatprep.subr.mxu1 %v4197_v5  ;;  %5675 = vmatprep.subr.mxu0 %v4199_v6  ;;  %v4396_v5 = vld [vmem:[#allocation8 + $0x1690] sm:$0xff]  ;;  %v4398_v6 = vld [vmem:[#allocation8 + $0x16a0] sm:$0xff] }
 0x59c   : > { %5605 = vmatpush1.msra.mxu1 %v4196_v7  ;;  %5676 = vmatpush1.msra.mxu0 %v4198_v8  ;;  %v4348_v7 = vld [vmem:[#allocation8 + $0x1510] sm:$0xff]  ;;  %v4350_v8 = vld [vmem:[#allocation8 + $0x1520] sm:$0xff] }
 0x59d   : > { %5606 = vmatprep.subr.mxu1 %v4148_v9  ;;  %5677 = vmatprep.subr.mxu0 %v4150_v10  ;;  %v4347_v9 = vld [vmem:[#allocation8 + $0x1508] sm:$0xff]  ;;  %v4349_v10 = vld [vmem:[#allocation8 + $0x1518] sm:$0xff] }
 0x59e   : > { %5607 = vmatpush1.msra.mxu1 %v4147_v11  ;;  %5678 = vmatpush1.msra.mxu0 %v4149_v12  ;;  %v4299_v11 = vld [vmem:[#allocation8 + $0x1388] sm:$0xff]  ;;  %v4301_v12 = vld [vmem:[#allocation8 + $0x1398] sm:$0xff] }
 0x59f   : > { %5608 = vmatprep.subr.mxu1 %v4099_v14  ;;  %5679 = vmatprep.subr.mxu0 %v4101_v15  ;;  %v4298_v14 = vld [vmem:[#allocation8 + $0x1380] sm:$0xff]  ;;  %v4300_v15 = vld [vmem:[#allocation8 + $0x1390] sm:$0xff] }
 0x5a0   : > { %5609 = vmatpush1.msra.mxu1 %v4098_v16  ;;  %5680 = vmatpush1.msra.mxu0 %v4100_v17  ;;  %v4250_v16 = vld [vmem:[#allocation8 + $0x1200] sm:$0xff]  ;;  %v4252_v17 = vld [vmem:[#allocation8 + $0x1210] sm:$0xff] }
 0x5a1   : > { %5610 = vmatprep.subr.mxu1 %v4050_v18  ;;  %5681 = vmatprep.subr.mxu0 %v4052_v19  ;;  %v4249_v18 = vld [vmem:[#allocation8 + $0x11f8] sm:$0xff]  ;;  %v4251_v19 = vld [vmem:[#allocation8 + $0x1208] sm:$0xff] }
 0x5a2   : > { %5611 = vmatpush1.msra.mxu1 %v4049_v20  ;;  %5682 = vmatpush1.msra.mxu0 %v4051_v21  ;;  %v4201_v20 = vld [vmem:[#allocation8 + $0x1078] sm:$0xff]  ;;  %v4203_v21 = vld [vmem:[#allocation8 + $0x1088] sm:$0xff] }
 0x5a3   : > { %5612 = vmatprep.subr.mxu1 %v4001_v22  ;;  %5683 = vmatprep.subr.mxu0 %v4003_v23  ;;  %v4200_v22 = vld [vmem:[#allocation8 + $0x1070] sm:$0xff]  ;;  %v4202_v23 = vld [vmem:[#allocation8 + $0x1080] sm:$0xff] }
 0x5a4   : > { %5613 = vmatpush1.msra.mxu1 %v4000_v24  ;;  %5684 = vmatpush1.msra.mxu0 %v4002_v25  ;;  %v4152_v24 = vld [vmem:[#allocation8 + $0xef0] sm:$0xff]  ;;  %v4154_v25 = vld [vmem:[#allocation8 + $0xf00] sm:$0xff] }
 0x5a5   : > { %5614 = vmatprep.subr.mxu1 %v3952_v26  ;;  %5685 = vmatprep.subr.mxu0 %v3954_v27  ;;  %v4151_v26 = vld [vmem:[#allocation8 + $0xee8] sm:$0xff]  ;;  %v4153_v27 = vld [vmem:[#allocation8 + $0xef8] sm:$0xff] }
 0x5a6   : > { %5615 = vmatpush1.msra.mxu1 %v3951_v28  ;;  %5686 = vmatpush1.msra.mxu0 %v3953_v29  ;;  %v4808_v36 = vpop.f32.mrf.mxu1  ;;  %v4879_v37 = vpop.f32.mrf.mxu0  ;;  %v4103_v28 = vld [vmem:[#allocation8 + $0xd68] sm:$0xff]  ;;  %v4105_v29 = vld [vmem:[#allocation8 + $0xd78] sm:$0xff] }
 0x5a7   : > { %5616 = vmatprep.subr.mxu1 %v3903_v30  ;;  %5687 = vmatprep.subr.mxu0 %v3905_v31  ;;  %v6240_v41 = vmul.f32 %v6624_v40, %v4808_v36  ;;  %v6242_v43 = vmul.f32 %v6625_v42, %v4879_v37  ;;  %v4102_v30 = vld [vmem:[#allocation8 + $0xd60] sm:$0xff]  ;;  %v4104_v31 = vld [vmem:[#allocation8 + $0xd70] sm:$0xff]  ;;  %v4005_v36 = vld [vmem:[#allocation8 + $0xa58] sm:$0xff] }
 0x5a8   : > { %5617 = vmatpush1.msra.mxu1 %v3902_v32  ;;  %5688 = vmatpush1.msra.mxu0 %v3904_v33  ;;  %v4810_v46 = vpop.f32.mrf.mxu1  ;;  %v4881_v47 = vpop.f32.mrf.mxu0  ;;  %v4054_v32 = vld [vmem:[#allocation8 + $0xbe0] sm:$0xff]  ;;  %v4056_v33 = vld [vmem:[#allocation8 + $0xbf0] sm:$0xff]  ;;  %v4007_v37 = vld [vmem:[#allocation8 + $0xa68] sm:$0xff] }
 0x5a9   : > { %5618 = vmatprep.subr.mxu1 %v3854_v34  ;;  %5689 = vmatprep.subr.mxu0 %v3856_v35  ;;  %6289 = vst [vmem:[%s7089_s6 + $0x40] sm:$0xff] %v6240_v41  ;;  %6291 = vst [vmem:[%s7089_s6 + $0x50] sm:$0xff] %v6242_v43  ;;  %v6241_v51 = vmul.f32 %v6626_v50, %v4810_v46  ;;  %v6243_v53 = vmul.f32 %v6627_v52, %v4881_v47  ;;  %v4053_v34 = vld [vmem:[#allocation8 + $0xbd8] sm:$0xff]  ;;  %v4055_v35 = vld [vmem:[#allocation8 + $0xbe8] sm:$0xff] }
 0x5aa   : > { %5619 = vmatpush1.msra.mxu1 %v3853_v38  ;;  %5690 = vmatpush1.msra.mxu0 %v3855_v39  ;;  %v4004_v38 = vld [vmem:[#allocation8 + $0xa50] sm:$0xff]  ;;  %v4006_v39 = vld [vmem:[#allocation8 + $0xa60] sm:$0xff]  ;;  %v3955_v42 = vld [vmem:[#allocation8 + $0x8c8] sm:$0xff] }
 0x5ab   : > { %5620 = vmatprep.subr.mxu1 %v3805_v44  ;;  %5691 = vmatprep.subr.mxu0 %v3807_v45  ;;  %6290 = vst [vmem:[%s7089_s6 + $0x48] sm:$0xff] %v6241_v51  ;;  %6292 = vst [vmem:[%s7089_s6 + $0x58] sm:$0xff] %v6243_v53  ;;  %v3956_v40 = vld [vmem:[#allocation8 + $0x8d0] sm:$0xff]  ;;  %v3958_v41 = vld [vmem:[#allocation8 + $0x8e0] sm:$0xff] }
 0x5ac   : > { %5621 = vmatpush1.msra.mxu1 %v3804_v48  ;;  %5692 = vmatpush1.msra.mxu0 %v3806_v49  ;;  %v3957_v43 = vld [vmem:[#allocation8 + $0x8d8] sm:$0xff]  ;;  %v3907_v44 = vld [vmem:[#allocation8 + $0x748] sm:$0xff]  ;;  %v3906_v46 = vld [vmem:[#allocation8 + $0x740] sm:$0xff] }
 0x5ad   : > { %5622 = vmatprep.subr.mxu1 %v3756_v55  ;;  %5693 = vmatprep.subr.mxu0 %v3758_v56  ;;  %v3909_v45 = vld [vmem:[#allocation8 + $0x758] sm:$0xff]  ;;  %v3908_v47 = vld [vmem:[#allocation8 + $0x750] sm:$0xff]  ;;  %v3858_v48 = vld [vmem:[#allocation8 + $0x5c0] sm:$0xff] }
 0x5ae   : > { %5623 = vmatpush1.msra.mxu1 %v3755_v57  ;;  %5694 = vmatpush1.msra.mxu0 %v3757_v58  ;;  %v3860_v49 = vld [vmem:[#allocation8 + $0x5d0] sm:$0xff]  ;;  %v3857_v52 = vld [vmem:[#allocation8 + $0x5b8] sm:$0xff]  ;;  %v3859_v53 = vld [vmem:[#allocation8 + $0x5c8] sm:$0xff] }
 0x5af   : > { %5624 = vmatprep.subr.mxu1 %v3707_v59  ;;  %5695 = vmatprep.subr.mxu0 %v3709_v60  ;;  %v6628_v55 = vld [vmem:[%s6995_s20 + $0x60] sm:$0xff]  ;;  %v6629_v57 = vld [vmem:[%s6995_s20 + $0x70] sm:$0xff] }
 0x5b0   : > { %5625 = vmatpush1.msra.mxu1 %v3706_v61  ;;  %5658 = vmatprep.mubr.f32.mxu1 %v6838_v54  ;;  %v3809_v59 = vld [vmem:[#allocation8 + $0x438] sm:$0xff]  ;;  %v3811_v60 = vld [vmem:[#allocation8 + $0x448] sm:$0xff] }
 0x5b1   : > { %5696 = vmatpush1.msra.mxu0 %v3708_v62  ;;  %5729 = vmatprep.mubr.f32.mxu0 %v6838_v54 }
 0x5b2   : > { %5659 = vmatmul.mubr.f32.vlgmr.msra.gmra.mxu1 %v7061_v13  ;;  %5730 = vmatmul.mubr.f32.vlgmr.msra.gmra.mxu0 %v7061_v13 }
 0x5b3   : > { %5736 = vmatprep.subr.mxu1 %v4446_v63  ;;  %5807 = vmatprep.subr.mxu0 %v4448_v0  ;;  %v3808_v63 = vld [vmem:[#allocation8 + $0x430] sm:$0xff]  ;;  %v3810_v0 = vld [vmem:[#allocation8 + $0x440] sm:$0xff] }
 0x5b4   : > { %5737 = vmatpush1.msra.mxu1 %v4445_v1  ;;  %5808 = vmatpush1.msra.mxu0 %v4447_v2  ;;  %v6630_v1 = vld [vmem:[%s6995_s20 + $0x68] sm:$0xff] }
 0x5b5   : > { %5738 = vmatprep.subr.mxu1 %v4397_v3  ;;  %5809 = vmatprep.subr.mxu0 %v4399_v4  ;;  %v6631_v3 = vld [vmem:[%s6995_s20 + $0x78] sm:$0xff] }
 0x5b6   : > { %5739 = vmatpush1.msra.mxu1 %v4396_v5  ;;  %5810 = vmatpush1.msra.mxu0 %v4398_v6  ;;  %v3760_v5 = vld [vmem:[#allocation8 + $0x2b0] sm:$0xff]  ;;  %v3762_v6 = vld [vmem:[#allocation8 + $0x2c0] sm:$0xff] }
 0x5b7   : > { %5740 = vmatprep.subr.mxu1 %v4348_v7  ;;  %5811 = vmatprep.subr.mxu0 %v4350_v8  ;;  %v3759_v7 = vld [vmem:[#allocation8 + $0x2a8] sm:$0xff]  ;;  %v3761_v8 = vld [vmem:[#allocation8 + $0x2b8] sm:$0xff] }
 0x5b8   : > { %5741 = vmatpush1.msra.mxu1 %v4347_v9  ;;  %5812 = vmatpush1.msra.mxu0 %v4349_v10  ;;  %v3711_v9 = vld [vmem:[#allocation8 + $0x128] sm:$0xff]  ;;  %v3713_v10 = vld [vmem:[#allocation8 + $0x138] sm:$0xff] }
 0x5b9   : > { %5742 = vmatprep.subr.mxu1 %v4299_v11  ;;  %5813 = vmatprep.subr.mxu0 %v4301_v12  ;;  %v3710_v11 = vld [vmem:[#allocation8 + $0x120] sm:$0xff]  ;;  %v3712_v12 = vld [vmem:[#allocation8 + $0x130] sm:$0xff] }
 0x5ba   : > { %5743 = vmatpush1.msra.mxu1 %v4298_v14  ;;  %5814 = vmatpush1.msra.mxu0 %v4300_v15  ;;  %v4450_v14 = vld [vmem:[#allocation8 + $0x1840] sm:$0xff]  ;;  %v4452_v15 = vld [vmem:[#allocation8 + $0x1850] sm:$0xff] }
 0x5bb   : > { %5744 = vmatprep.subr.mxu1 %v4250_v16  ;;  %5815 = vmatprep.subr.mxu0 %v4252_v17  ;;  %v4449_v16 = vld [vmem:[#allocation8 + $0x1838] sm:$0xff]  ;;  %v4451_v17 = vld [vmem:[#allocation8 + $0x1848] sm:$0xff] }
 0x5bc   : > { %5745 = vmatpush1.msra.mxu1 %v4249_v18  ;;  %5816 = vmatpush1.msra.mxu0 %v4251_v19  ;;  %v4401_v18 = vld [vmem:[#allocation8 + $0x16b8] sm:$0xff]  ;;  %v4403_v19 = vld [vmem:[#allocation8 + $0x16c8] sm:$0xff] }
 0x5bd   : > { %5746 = vmatprep.subr.mxu1 %v4201_v20  ;;  %5817 = vmatprep.subr.mxu0 %v4203_v21  ;;  %v4400_v20 = vld [vmem:[#allocation8 + $0x16b0] sm:$0xff]  ;;  %v4402_v21 = vld [vmem:[#allocation8 + $0x16c0] sm:$0xff] }
 0x5be   : > { %5747 = vmatpush1.msra.mxu1 %v4200_v22  ;;  %5818 = vmatpush1.msra.mxu0 %v4202_v23  ;;  %v4352_v22 = vld [vmem:[#allocation8 + $0x1530] sm:$0xff]  ;;  %v4354_v23 = vld [vmem:[#allocation8 + $0x1540] sm:$0xff] }
 0x5bf   : > { %5748 = vmatprep.subr.mxu1 %v4152_v24  ;;  %5819 = vmatprep.subr.mxu0 %v4154_v25  ;;  %v4351_v24 = vld [vmem:[#allocation8 + $0x1528] sm:$0xff]  ;;  %v4353_v25 = vld [vmem:[#allocation8 + $0x1538] sm:$0xff] }
 0x5c0   : > { %5749 = vmatpush1.msra.mxu1 %v4151_v26  ;;  %5820 = vmatpush1.msra.mxu0 %v4153_v27  ;;  %v4303_v26 = vld [vmem:[#allocation8 + $0x13a8] sm:$0xff]  ;;  %v4305_v27 = vld [vmem:[#allocation8 + $0x13b8] sm:$0xff] }
 0x5c1   : > { %5750 = vmatprep.subr.mxu1 %v4103_v28  ;;  %5821 = vmatprep.subr.mxu0 %v4105_v29  ;;  %v4302_v28 = vld [vmem:[#allocation8 + $0x13a0] sm:$0xff]  ;;  %v4304_v29 = vld [vmem:[#allocation8 + $0x13b0] sm:$0xff] }
 0x5c2   : > { %5751 = vmatpush1.msra.mxu1 %v4102_v30  ;;  %5822 = vmatpush1.msra.mxu0 %v4104_v31  ;;  %v4254_v30 = vld [vmem:[#allocation8 + $0x1220] sm:$0xff]  ;;  %v4256_v31 = vld [vmem:[#allocation8 + $0x1230] sm:$0xff] }
 0x5c3   : > { %5752 = vmatprep.subr.mxu1 %v4054_v32  ;;  %5823 = vmatprep.subr.mxu0 %v4056_v33  ;;  %v4253_v32 = vld [vmem:[#allocation8 + $0x1218] sm:$0xff]  ;;  %v4255_v33 = vld [vmem:[#allocation8 + $0x1228] sm:$0xff] }
 0x5c4   : > { %5753 = vmatpush1.msra.mxu1 %v4053_v34  ;;  %5824 = vmatpush1.msra.mxu0 %v4055_v35  ;;  %v4205_v34 = vld [vmem:[#allocation8 + $0x1098] sm:$0xff]  ;;  %v4207_v35 = vld [vmem:[#allocation8 + $0x10a8] sm:$0xff] }
 0x5c5   : > { %5754 = vmatprep.subr.mxu1 %v4005_v36  ;;  %5825 = vmatprep.subr.mxu0 %v4007_v37  ;;  %v4204_v36 = vld [vmem:[#allocation8 + $0x1090] sm:$0xff]  ;;  %v4206_v37 = vld [vmem:[#allocation8 + $0x10a0] sm:$0xff] }
 0x5c6   : > { %5755 = vmatpush1.msra.mxu1 %v4004_v38  ;;  %5826 = vmatpush1.msra.mxu0 %v4006_v39  ;;  %v4156_v38 = vld [vmem:[#allocation8 + $0xf10] sm:$0xff]  ;;  %v4158_v39 = vld [vmem:[#allocation8 + $0xf20] sm:$0xff] }
 0x5c7   : > { %5756 = vmatprep.subr.mxu1 %v3956_v40  ;;  %5827 = vmatprep.subr.mxu0 %v3958_v41  ;;  %v4155_v40 = vld [vmem:[#allocation8 + $0xf08] sm:$0xff]  ;;  %v4157_v41 = vld [vmem:[#allocation8 + $0xf18] sm:$0xff] }
 0x5c8   : > { %5757 = vmatpush1.msra.mxu1 %v3955_v42  ;;  %5828 = vmatpush1.msra.mxu0 %v3957_v43  ;;  %v4950_v50 = vpop.f32.mrf.mxu1  ;;  %v5021_v51 = vpop.f32.mrf.mxu0  ;;  %v4107_v42 = vld [vmem:[#allocation8 + $0xd88] sm:$0xff]  ;;  %v4109_v43 = vld [vmem:[#allocation8 + $0xd98] sm:$0xff] }
 0x5c9   : > { %5758 = vmatprep.subr.mxu1 %v3907_v44  ;;  %5829 = vmatprep.subr.mxu0 %v3909_v45  ;;  %v6244_v56 = vmul.f32 %v6628_v55, %v4950_v50  ;;  %v6246_v58 = vmul.f32 %v6629_v57, %v5021_v51  ;;  %v4106_v44 = vld [vmem:[#allocation8 + $0xd80] sm:$0xff]  ;;  %v4108_v45 = vld [vmem:[#allocation8 + $0xd90] sm:$0xff]  ;;  %v4009_v50 = vld [vmem:[#allocation8 + $0xa78] sm:$0xff] }
 0x5ca   : > { %5759 = vmatpush1.msra.mxu1 %v3906_v46  ;;  %5830 = vmatpush1.msra.mxu0 %v3908_v47  ;;  %v4952_v61 = vpop.f32.mrf.mxu1  ;;  %v5023_v62 = vpop.f32.mrf.mxu0  ;;  %v4058_v46 = vld [vmem:[#allocation8 + $0xc00] sm:$0xff]  ;;  %v4060_v47 = vld [vmem:[#allocation8 + $0xc10] sm:$0xff]  ;;  %v4011_v51 = vld [vmem:[#allocation8 + $0xa88] sm:$0xff] }
 0x5cb   : > { %5760 = vmatprep.subr.mxu1 %v3858_v48  ;;  %5831 = vmatprep.subr.mxu0 %v3860_v49  ;;  %6293 = vst [vmem:[%s7089_s6 + $0x60] sm:$0xff] %v6244_v56  ;;  %6295 = vst [vmem:[%s7089_s6 + $0x70] sm:$0xff] %v6246_v58  ;;  %v6245_v2 = vmul.f32 %v6630_v1, %v4952_v61  ;;  %v6247_v4 = vmul.f32 %v6631_v3, %v5023_v62  ;;  %v4057_v48 = vld [vmem:[#allocation8 + $0xbf8] sm:$0xff]  ;;  %v4059_v49 = vld [vmem:[#allocation8 + $0xc08] sm:$0xff] }
 0x5cc   : > { %5761 = vmatpush1.msra.mxu1 %v3857_v52  ;;  %5832 = vmatpush1.msra.mxu0 %v3859_v53  ;;  %v4008_v52 = vld [vmem:[#allocation8 + $0xa70] sm:$0xff]  ;;  %v4010_v53 = vld [vmem:[#allocation8 + $0xa80] sm:$0xff]  ;;  %v3959_v57 = vld [vmem:[#allocation8 + $0x8e8] sm:$0xff] }
 0x5cd   : > { %5762 = vmatprep.subr.mxu1 %v3809_v59  ;;  %5833 = vmatprep.subr.mxu0 %v3811_v60  ;;  %6294 = vst [vmem:[%s7089_s6 + $0x68] sm:$0xff] %v6245_v2  ;;  %6296 = vst [vmem:[%s7089_s6 + $0x78] sm:$0xff] %v6247_v4  ;;  %v3960_v55 = vld [vmem:[#allocation8 + $0x8f0] sm:$0xff]  ;;  %v3962_v56 = vld [vmem:[#allocation8 + $0x900] sm:$0xff] }
 0x5ce   : > { %5763 = vmatpush1.msra.mxu1 %v3808_v63  ;;  %5834 = vmatpush1.msra.mxu0 %v3810_v0  ;;  %v3961_v58 = vld [vmem:[#allocation8 + $0x8f8] sm:$0xff]  ;;  %v3911_v59 = vld [vmem:[#allocation8 + $0x768] sm:$0xff]  ;;  %v3910_v61 = vld [vmem:[#allocation8 + $0x760] sm:$0xff] }
 0x5cf   : > { %5764 = vmatprep.subr.mxu1 %v3760_v5  ;;  %5835 = vmatprep.subr.mxu0 %v3762_v6  ;;  %v3913_v60 = vld [vmem:[#allocation8 + $0x778] sm:$0xff]  ;;  %v3912_v62 = vld [vmem:[#allocation8 + $0x770] sm:$0xff]  ;;  %v3862_v63 = vld [vmem:[#allocation8 + $0x5e0] sm:$0xff] }
 0x5d0   : > { %5765 = vmatpush1.msra.mxu1 %v3759_v7  ;;  %5836 = vmatpush1.msra.mxu0 %v3761_v8  ;;  %v3864_v0 = vld [vmem:[#allocation8 + $0x5f0] sm:$0xff]  ;;  %v3861_v3 = vld [vmem:[#allocation8 + $0x5d8] sm:$0xff]  ;;  %v3863_v4 = vld [vmem:[#allocation8 + $0x5e8] sm:$0xff] }
 0x5d1   : > { %5766 = vmatprep.subr.mxu1 %v3711_v9  ;;  %5837 = vmatprep.subr.mxu0 %v3713_v10  ;;  %v6632_v5 = vld [vmem:[%s6995_s20 + $0x80] sm:$0xff]  ;;  %v6633_v7 = vld [vmem:[%s6995_s20 + $0x90] sm:$0xff] }
 0x5d2   : > { %5767 = vmatpush1.msra.mxu1 %v3710_v11  ;;  %5800 = vmatprep.mubr.f32.mxu1 %v6838_v54  ;;  %v3813_v9 = vld [vmem:[#allocation8 + $0x458] sm:$0xff]  ;;  %v3815_v10 = vld [vmem:[#allocation8 + $0x468] sm:$0xff] }
 0x5d3   : > { %5838 = vmatpush1.msra.mxu0 %v3712_v12  ;;  %5871 = vmatprep.mubr.f32.mxu0 %v6838_v54 }
 0x5d4   : > { %5801 = vmatmul.mubr.f32.vlgmr.msra.gmra.mxu1 %v7061_v13  ;;  %5872 = vmatmul.mubr.f32.vlgmr.msra.gmra.mxu0 %v7061_v13 }
 0x5d5   : > { %5878 = vmatprep.subr.mxu1 %v4450_v14  ;;  %5949 = vmatprep.subr.mxu0 %v4452_v15  ;;  %v3812_v14 = vld [vmem:[#allocation8 + $0x450] sm:$0xff]  ;;  %v3814_v15 = vld [vmem:[#allocation8 + $0x460] sm:$0xff] }
 0x5d6   : > { %5879 = vmatpush1.msra.mxu1 %v4449_v16  ;;  %5950 = vmatpush1.msra.mxu0 %v4451_v17  ;;  %v6634_v16 = vld [vmem:[%s6995_s20 + $0x88] sm:$0xff] }
 0x5d7   : > { %5880 = vmatprep.subr.mxu1 %v4401_v18  ;;  %5951 = vmatprep.subr.mxu0 %v4403_v19  ;;  %v6635_v18 = vld [vmem:[%s6995_s20 + $0x98] sm:$0xff] }
 0x5d8   : > { %5881 = vmatpush1.msra.mxu1 %v4400_v20  ;;  %5952 = vmatpush1.msra.mxu0 %v4402_v21  ;;  %v3764_v20 = vld [vmem:[#allocation8 + $0x2d0] sm:$0xff]  ;;  %v3766_v21 = vld [vmem:[#allocation8 + $0x2e0] sm:$0xff] }
 0x5d9   : > { %5882 = vmatprep.subr.mxu1 %v4352_v22  ;;  %5953 = vmatprep.subr.mxu0 %v4354_v23  ;;  %v3763_v22 = vld [vmem:[#allocation8 + $0x2c8] sm:$0xff]  ;;  %v3765_v23 = vld [vmem:[#allocation8 + $0x2d8] sm:$0xff] }
 0x5da   : > { %5883 = vmatpush1.msra.mxu1 %v4351_v24  ;;  %5954 = vmatpush1.msra.mxu0 %v4353_v25  ;;  %v3715_v24 = vld [vmem:[#allocation8 + $0x148] sm:$0xff]  ;;  %v3717_v25 = vld [vmem:[#allocation8 + $0x158] sm:$0xff] }
 0x5db   : > { %5884 = vmatprep.subr.mxu1 %v4303_v26  ;;  %5955 = vmatprep.subr.mxu0 %v4305_v27  ;;  %v3714_v26 = vld [vmem:[#allocation8 + $0x140] sm:$0xff]  ;;  %v3716_v27 = vld [vmem:[#allocation8 + $0x150] sm:$0xff] }
 0x5dc   : > { %5885 = vmatpush1.msra.mxu1 %v4302_v28  ;;  %5956 = vmatpush1.msra.mxu0 %v4304_v29  ;;  %v4454_v28 = vld [vmem:[#allocation8 + $0x1860] sm:$0xff]  ;;  %v4456_v29 = vld [vmem:[#allocation8 + $0x1870] sm:$0xff] }
 0x5dd   : > { %5886 = vmatprep.subr.mxu1 %v4254_v30  ;;  %5957 = vmatprep.subr.mxu0 %v4256_v31  ;;  %v4453_v30 = vld [vmem:[#allocation8 + $0x1858] sm:$0xff]  ;;  %v4455_v31 = vld [vmem:[#allocation8 + $0x1868] sm:$0xff] }
 0x5de   : > { %5887 = vmatpush1.msra.mxu1 %v4253_v32  ;;  %5958 = vmatpush1.msra.mxu0 %v4255_v33  ;;  %v4405_v32 = vld [vmem:[#allocation8 + $0x16d8] sm:$0xff]  ;;  %v4407_v33 = vld [vmem:[#allocation8 + $0x16e8] sm:$0xff] }
 0x5df   : > { %5888 = vmatprep.subr.mxu1 %v4205_v34  ;;  %5959 = vmatprep.subr.mxu0 %v4207_v35  ;;  %v4404_v34 = vld [vmem:[#allocation8 + $0x16d0] sm:$0xff]  ;;  %v4406_v35 = vld [vmem:[#allocation8 + $0x16e0] sm:$0xff] }
 0x5e0   : > { %5889 = vmatpush1.msra.mxu1 %v4204_v36  ;;  %5960 = vmatpush1.msra.mxu0 %v4206_v37  ;;  %v4356_v36 = vld [vmem:[#allocation8 + $0x1550] sm:$0xff]  ;;  %v4358_v37 = vld [vmem:[#allocation8 + $0x1560] sm:$0xff] }
 0x5e1   : > { %5890 = vmatprep.subr.mxu1 %v4156_v38  ;;  %5961 = vmatprep.subr.mxu0 %v4158_v39  ;;  %v4355_v38 = vld [vmem:[#allocation8 + $0x1548] sm:$0xff]  ;;  %v4357_v39 = vld [vmem:[#allocation8 + $0x1558] sm:$0xff] }
 0x5e2   : > { %5891 = vmatpush1.msra.mxu1 %v4155_v40  ;;  %5962 = vmatpush1.msra.mxu0 %v4157_v41  ;;  %v4307_v40 = vld [vmem:[#allocation8 + $0x13c8] sm:$0xff]  ;;  %v4309_v41 = vld [vmem:[#allocation8 + $0x13d8] sm:$0xff] }
 0x5e3   : > { %5892 = vmatprep.subr.mxu1 %v4107_v42  ;;  %5963 = vmatprep.subr.mxu0 %v4109_v43  ;;  %v4306_v42 = vld [vmem:[#allocation8 + $0x13c0] sm:$0xff]  ;;  %v4308_v43 = vld [vmem:[#allocation8 + $0x13d0] sm:$0xff] }
 0x5e4   : > { %5893 = vmatpush1.msra.mxu1 %v4106_v44  ;;  %5964 = vmatpush1.msra.mxu0 %v4108_v45  ;;  %v4258_v44 = vld [vmem:[#allocation8 + $0x1240] sm:$0xff]  ;;  %v4260_v45 = vld [vmem:[#allocation8 + $0x1250] sm:$0xff] }
 0x5e5   : > { %5894 = vmatprep.subr.mxu1 %v4058_v46  ;;  %5965 = vmatprep.subr.mxu0 %v4060_v47  ;;  %v4257_v46 = vld [vmem:[#allocation8 + $0x1238] sm:$0xff]  ;;  %v4259_v47 = vld [vmem:[#allocation8 + $0x1248] sm:$0xff] }
 0x5e6   : > { %5895 = vmatpush1.msra.mxu1 %v4057_v48  ;;  %5966 = vmatpush1.msra.mxu0 %v4059_v49  ;;  %v4209_v48 = vld [vmem:[#allocation8 + $0x10b8] sm:$0xff]  ;;  %v4211_v49 = vld [vmem:[#allocation8 + $0x10c8] sm:$0xff] }
 0x5e7   : > { %5896 = vmatprep.subr.mxu1 %v4009_v50  ;;  %5967 = vmatprep.subr.mxu0 %v4011_v51  ;;  %v4208_v50 = vld [vmem:[#allocation8 + $0x10b0] sm:$0xff]  ;;  %v4210_v51 = vld [vmem:[#allocation8 + $0x10c0] sm:$0xff] }
 0x5e8   : > { %5897 = vmatpush1.msra.mxu1 %v4008_v52  ;;  %5968 = vmatpush1.msra.mxu0 %v4010_v53  ;;  %v4160_v52 = vld [vmem:[#allocation8 + $0xf30] sm:$0xff]  ;;  %v4162_v53 = vld [vmem:[#allocation8 + $0xf40] sm:$0xff] }
 0x5e9   : > { %5898 = vmatprep.subr.mxu1 %v3960_v55  ;;  %5969 = vmatprep.subr.mxu0 %v3962_v56  ;;  %v4159_v55 = vld [vmem:[#allocation8 + $0xf28] sm:$0xff]  ;;  %v4161_v56 = vld [vmem:[#allocation8 + $0xf38] sm:$0xff] }
 0x5ea   : > { %5899 = vmatpush1.msra.mxu1 %v3959_v57  ;;  %5970 = vmatpush1.msra.mxu0 %v3961_v58  ;;  %v5092_v1 = vpop.f32.mrf.mxu1  ;;  %v5163_v2 = vpop.f32.mrf.mxu0  ;;  %v4111_v57 = vld [vmem:[#allocation8 + $0xda8] sm:$0xff]  ;;  %v4113_v58 = vld [vmem:[#allocation8 + $0xdb8] sm:$0xff] }
 0x5eb   : > { %5900 = vmatprep.subr.mxu1 %v3911_v59  ;;  %5971 = vmatprep.subr.mxu0 %v3913_v60  ;;  %v6248_v6 = vmul.f32 %v6632_v5, %v5092_v1  ;;  %v6250_v8 = vmul.f32 %v6633_v7, %v5163_v2  ;;  %v4110_v59 = vld [vmem:[#allocation8 + $0xda0] sm:$0xff]  ;;  %v4112_v60 = vld [vmem:[#allocation8 + $0xdb0] sm:$0xff]  ;;  %v4013_v1 = vld [vmem:[#allocation8 + $0xa98] sm:$0xff] }
 0x5ec   : > { %5901 = vmatpush1.msra.mxu1 %v3910_v61  ;;  %5972 = vmatpush1.msra.mxu0 %v3912_v62  ;;  %v5094_v11 = vpop.f32.mrf.mxu1  ;;  %v5165_v12 = vpop.f32.mrf.mxu0  ;;  %v4062_v61 = vld [vmem:[#allocation8 + $0xc20] sm:$0xff]  ;;  %v4064_v62 = vld [vmem:[#allocation8 + $0xc30] sm:$0xff]  ;;  %v4015_v2 = vld [vmem:[#allocation8 + $0xaa8] sm:$0xff] }
 0x5ed   : > { %5902 = vmatprep.subr.mxu1 %v3862_v63  ;;  %5973 = vmatprep.subr.mxu0 %v3864_v0  ;;  %6297 = vst [vmem:[%s7089_s6 + $0x80] sm:$0xff] %v6248_v6  ;;  %6299 = vst [vmem:[%s7089_s6 + $0x90] sm:$0xff] %v6250_v8  ;;  %v6249_v17 = vmul.f32 %v6634_v16, %v5094_v11  ;;  %v6251_v19 = vmul.f32 %v6635_v18, %v5165_v12  ;;  %v4061_v63 = vld [vmem:[#allocation8 + $0xc18] sm:$0xff]  ;;  %v4063_v0 = vld [vmem:[#allocation8 + $0xc28] sm:$0xff] }
 0x5ee   : > { %5903 = vmatpush1.msra.mxu1 %v3861_v3  ;;  %5974 = vmatpush1.msra.mxu0 %v3863_v4  ;;  %v4012_v3 = vld [vmem:[#allocation8 + $0xa90] sm:$0xff]  ;;  %v4014_v4 = vld [vmem:[#allocation8 + $0xaa0] sm:$0xff]  ;;  %v3963_v7 = vld [vmem:[#allocation8 + $0x908] sm:$0xff] }
 0x5ef   : > { %5904 = vmatprep.subr.mxu1 %v3813_v9  ;;  %5975 = vmatprep.subr.mxu0 %v3815_v10  ;;  %6298 = vst [vmem:[%s7089_s6 + $0x88] sm:$0xff] %v6249_v17  ;;  %6300 = vst [vmem:[%s7089_s6 + $0x98] sm:$0xff] %v6251_v19  ;;  %v3964_v5 = vld [vmem:[#allocation8 + $0x910] sm:$0xff]  ;;  %v3966_v6 = vld [vmem:[#allocation8 + $0x920] sm:$0xff] }
 0x5f0   : > { %5905 = vmatpush1.msra.mxu1 %v3812_v14  ;;  %5976 = vmatpush1.msra.mxu0 %v3814_v15  ;;  %v3965_v8 = vld [vmem:[#allocation8 + $0x918] sm:$0xff]  ;;  %v3915_v9 = vld [vmem:[#allocation8 + $0x788] sm:$0xff]  ;;  %v3914_v11 = vld [vmem:[#allocation8 + $0x780] sm:$0xff] }
 0x5f1   : > { %5906 = vmatprep.subr.mxu1 %v3764_v20  ;;  %5977 = vmatprep.subr.mxu0 %v3766_v21  ;;  %v3917_v10 = vld [vmem:[#allocation8 + $0x798] sm:$0xff]  ;;  %v3916_v12 = vld [vmem:[#allocation8 + $0x790] sm:$0xff]  ;;  %v3866_v14 = vld [vmem:[#allocation8 + $0x600] sm:$0xff] }
 0x5f2   : > { %5907 = vmatpush1.msra.mxu1 %v3763_v22  ;;  %5978 = vmatpush1.msra.mxu0 %v3765_v23  ;;  %v3868_v15 = vld [vmem:[#allocation8 + $0x610] sm:$0xff]  ;;  %v3865_v18 = vld [vmem:[#allocation8 + $0x5f8] sm:$0xff]  ;;  %v3867_v19 = vld [vmem:[#allocation8 + $0x608] sm:$0xff] }
 0x5f3   : > { %5908 = vmatprep.subr.mxu1 %v3715_v24  ;;  %5979 = vmatprep.subr.mxu0 %v3717_v25  ;;  %v6636_v20 = vld [vmem:[%s6995_s20 + $0xa0] sm:$0xff]  ;;  %v6637_v22 = vld [vmem:[%s6995_s20 + $0xb0] sm:$0xff] }
 0x5f4   : > { %5909 = vmatpush1.msra.mxu1 %v3714_v26  ;;  %5942 = vmatprep.mubr.f32.mxu1 %v6838_v54  ;;  %v3817_v24 = vld [vmem:[#allocation8 + $0x478] sm:$0xff]  ;;  %v3819_v25 = vld [vmem:[#allocation8 + $0x488] sm:$0xff] }
 0x5f5   : > { %5980 = vmatpush1.msra.mxu0 %v3716_v27  ;;  %6013 = vmatprep.mubr.f32.mxu0 %v6838_v54 }
 0x5f6   : > { %5943 = vmatmul.mubr.f32.vlgmr.msra.gmra.mxu1 %v7061_v13  ;;  %6014 = vmatmul.mubr.f32.vlgmr.msra.gmra.mxu0 %v7061_v13 }
 0x5f7   : > { %6020 = vmatprep.subr.mxu1 %v4454_v28  ;;  %6091 = vmatprep.subr.mxu0 %v4456_v29  ;;  %v3816_v28 = vld [vmem:[#allocation8 + $0x470] sm:$0xff]  ;;  %v3818_v29 = vld [vmem:[#allocation8 + $0x480] sm:$0xff] }
 0x5f8   : > { %6021 = vmatpush1.msra.mxu1 %v4453_v30  ;;  %6092 = vmatpush1.msra.mxu0 %v4455_v31  ;;  %v6638_v30 = vld [vmem:[%s6995_s20 + $0xa8] sm:$0xff] }
 0x5f9   : > { %6022 = vmatprep.subr.mxu1 %v4405_v32  ;;  %6093 = vmatprep.subr.mxu0 %v4407_v33  ;;  %v6639_v32 = vld [vmem:[%s6995_s20 + $0xb8] sm:$0xff] }
 0x5fa   : > { %6023 = vmatpush1.msra.mxu1 %v4404_v34  ;;  %6094 = vmatpush1.msra.mxu0 %v4406_v35  ;;  %v3768_v34 = vld [vmem:[#allocation8 + $0x2f0] sm:$0xff]  ;;  %v3770_v35 = vld [vmem:[#allocation8 + $0x300] sm:$0xff] }
 0x5fb   : > { %6024 = vmatprep.subr.mxu1 %v4356_v36  ;;  %6095 = vmatprep.subr.mxu0 %v4358_v37  ;;  %v3767_v36 = vld [vmem:[#allocation8 + $0x2e8] sm:$0xff]  ;;  %v3769_v37 = vld [vmem:[#allocation8 + $0x2f8] sm:$0xff] }
 0x5fc   : > { %6025 = vmatpush1.msra.mxu1 %v4355_v38  ;;  %6096 = vmatpush1.msra.mxu0 %v4357_v39  ;;  %v3719_v38 = vld [vmem:[#allocation8 + $0x168] sm:$0xff]  ;;  %v3721_v39 = vld [vmem:[#allocation8 + $0x178] sm:$0xff] }
 0x5fd   : > { %6026 = vmatprep.subr.mxu1 %v4307_v40  ;;  %6097 = vmatprep.subr.mxu0 %v4309_v41  ;;  %v3718_v40 = vld [vmem:[#allocation8 + $0x160] sm:$0xff]  ;;  %v3720_v41 = vld [vmem:[#allocation8 + $0x170] sm:$0xff] }
 0x5fe   : > { %6027 = vmatpush1.msra.mxu1 %v4306_v42  ;;  %6098 = vmatpush1.msra.mxu0 %v4308_v43  ;;  %v4457_v42 = vld [vmem:[#allocation8 + $0x1878] sm:$0xff]  ;;  %v4408_v43 = vld [vmem:[#allocation8 + $0x16f0] sm:$0xff] }
 0x5ff   : > { %6028 = vmatprep.subr.mxu1 %v4258_v44  ;;  %6099 = vmatprep.subr.mxu0 %v4260_v45  ;;  %v4359_v44 = vld [vmem:[#allocation8 + $0x1568] sm:$0xff]  ;;  %v4310_v45 = vld [vmem:[#allocation8 + $0x13e0] sm:$0xff] }
 0x600   : > { %6029 = vmatpush1.msra.mxu1 %v4257_v46  ;;  %6100 = vmatpush1.msra.mxu0 %v4259_v47  ;;  %v4261_v46 = vld [vmem:[#allocation8 + $0x1258] sm:$0xff]  ;;  %v4212_v47 = vld [vmem:[#allocation8 + $0x10d0] sm:$0xff] }
 0x601   : > { %6030 = vmatprep.subr.mxu1 %v4209_v48  ;;  %6101 = vmatprep.subr.mxu0 %v4211_v49  ;;  %v4163_v48 = vld [vmem:[#allocation8 + $0xf48] sm:$0xff]  ;;  %v4114_v49 = vld [vmem:[#allocation8 + $0xdc0] sm:$0xff] }
 0x602   : > { %6031 = vmatpush1.msra.mxu1 %v4208_v50  ;;  %6102 = vmatpush1.msra.mxu0 %v4210_v51  ;;  %v4065_v50 = vld [vmem:[#allocation8 + $0xc38] sm:$0xff]  ;;  %v4016_v51 = vld [vmem:[#allocation8 + $0xab0] sm:$0xff] }
 0x603   : > { %6032 = vmatprep.subr.mxu1 %v4160_v52  ;;  %6103 = vmatprep.subr.mxu0 %v4162_v53  ;;  %v3967_v52 = vld [vmem:[#allocation8 + $0x928] sm:$0xff]  ;;  %v3918_v53 = vld [vmem:[#allocation8 + $0x7a0] sm:$0xff] }
 0x604   : > { %6033 = vmatpush1.msra.mxu1 %v4159_v55  ;;  %6104 = vmatpush1.msra.mxu0 %v4161_v56 }
 0x605   : > { %6034 = vmatprep.subr.mxu1 %v4111_v57  ;;  %6105 = vmatprep.subr.mxu0 %v4113_v58  ;;  %v3869_v57 = vld [vmem:[#allocation8 + $0x618] sm:$0xff] }
 0x606   : > { %6035 = vmatpush1.msra.mxu1 %v4110_v59  ;;  %6106 = vmatpush1.msra.mxu0 %v4112_v60  ;;  %v6640_v58 = vld [vmem:[%s6995_s20 + $0xc0] sm:$0xff]  ;;  %v6641_v60 = vld [vmem:[%s6995_s20 + $0xd0] sm:$0xff] }
 0x607   : > { %6036 = vmatprep.subr.mxu1 %v4062_v61  ;;  %6107 = vmatprep.subr.mxu0 %v4064_v62 }
 0x608   : > { %6037 = vmatpush1.msra.mxu1 %v4061_v63  ;;  %6108 = vmatpush1.msra.mxu0 %v4063_v0  ;;  %v3820_v0 = vld [vmem:[#allocation8 + $0x490] sm:$0xff] }
 0x609   : > { %6038 = vmatprep.subr.mxu1 %v4013_v1  ;;  %6109 = vmatprep.subr.mxu0 %v4015_v2  ;;  %v6642_v1 = vld [vmem:[%s6995_s20 + $0xc8] sm:$0xff] }
 0x60a   : > { %6039 = vmatpush1.msra.mxu1 %v4012_v3  ;;  %6110 = vmatpush1.msra.mxu0 %v4014_v4  ;;  %v6643_v3 = vld [vmem:[%s6995_s20 + $0xd8] sm:$0xff] }
 0x60b   : > { %6040 = vmatprep.subr.mxu1 %v3964_v5  ;;  %6111 = vmatprep.subr.mxu0 %v3966_v6  ;;  %v3771_v5 = vld [vmem:[#allocation8 + $0x308] sm:$0xff]  ;;  %v3722_v6 = vld [vmem:[#allocation8 + $0x180] sm:$0xff] }
 0x60c   : > { %6041 = vmatpush1.msra.mxu1 %v3963_v7  ;;  %6112 = vmatpush1.msra.mxu0 %v3965_v8  ;;  %v5234_v16 = vpop.f32.mrf.mxu1  ;;  %v5305_v17 = vpop.f32.mrf.mxu0 }
 0x60d   : > { %6042 = vmatprep.subr.mxu1 %v3915_v9  ;;  %6113 = vmatprep.subr.mxu0 %v3917_v10  ;;  %v6252_v21 = vmul.f32 %v6636_v20, %v5234_v16  ;;  %v6254_v23 = vmul.f32 %v6637_v22, %v5305_v17  ;;  %v6644_v9 = vld [vmem:[%s6995_s20 + $0xe0] sm:$0xff]  ;;  %v6647_v17 = vld [vmem:[%s6995_s20 + $0xf8] sm:$0xff]  ;;  %v6649_v22 = vld [vmem:[%s6995_s20 + $0x110] sm:$0xff] }
 0x60e   : > { %6043 = vmatpush1.msra.mxu1 %v3914_v11  ;;  %6114 = vmatpush1.msra.mxu0 %v3916_v12  ;;  %v5236_v26 = vpop.f32.mrf.mxu1  ;;  %v5307_v27 = vpop.f32.mrf.mxu0  ;;  %v6645_v11 = vld [vmem:[%s6995_s20 + $0xf0] sm:$0xff]  ;;  %v6648_v20 = vld [vmem:[%s6995_s20 + $0x100] sm:$0xff] }
 0x60f   : > { %6044 = vmatprep.subr.mxu1 %v3866_v14  ;;  %6115 = vmatprep.subr.mxu0 %v3868_v15  ;;  %6301 = vst [vmem:[%s7089_s6 + $0xa0] sm:$0xff] %v6252_v21  ;;  %6303 = vst [vmem:[%s7089_s6 + $0xb0] sm:$0xff] %v6254_v23  ;;  %v6253_v31 = vmul.f32 %v6638_v30, %v5236_v26  ;;  %v6255_v33 = vmul.f32 %v6639_v32, %v5307_v27  ;;  %v6650_v26 = vld [vmem:[%s6995_s20 + $0x108] sm:$0xff]  ;;  %v6652_v32 = vld [vmem:[%s6995_s20 + $0x120] sm:$0xff] }
 0x610   : > { %6045 = vmatpush1.msra.mxu1 %v3865_v18  ;;  %6116 = vmatpush1.msra.mxu0 %v3867_v19 }
 0x611   : > { %6046 = vmatprep.subr.mxu1 %v3817_v24  ;;  %6117 = vmatprep.subr.mxu0 %v3819_v25  ;;  %6302 = vst [vmem:[%s7089_s6 + $0xa8] sm:$0xff] %v6253_v31  ;;  %6304 = vst [vmem:[%s7089_s6 + $0xb8] sm:$0xff] %v6255_v33 }
 0x612   : > { %6047 = vmatpush1.msra.mxu1 %v3816_v28  ;;  %6118 = vmatpush1.msra.mxu0 %v3818_v29  ;;  %v6651_v28 = vld [vmem:[%s6995_s20 + $0x118] sm:$0xff] }
 0x613   : > { %6048 = vmatprep.subr.mxu1 %v3768_v34  ;;  %6119 = vmatprep.subr.mxu0 %v3770_v35  ;;  %v6653_v34 = vld [vmem:[%s6995_s20 + $0x130] sm:$0xff] }
 0x614   : > { %6049 = vmatpush1.msra.mxu1 %v3767_v36  ;;  %6120 = vmatpush1.msra.mxu0 %v3769_v37 }
 0x615   : > { %6050 = vmatprep.subr.mxu1 %v3719_v38  ;;  %6121 = vmatprep.subr.mxu0 %v3721_v39  ;;  %v6654_v38 = vld [vmem:[%s6995_s20 + $0x128] sm:$0xff] }
 0x616   : > { %6051 = vmatpush1.msra.mxu1 %v3718_v40  ;;  %6084 = vmatprep.mubr.f32.mxu1 %v6838_v54  ;;  %v6655_v40 = vld [vmem:[%s6995_s20 + $0x138] sm:$0xff] }
 0x617   : > { %6122 = vmatpush1.msra.mxu0 %v3720_v41  ;;  %6155 = vmatprep.mubr.f32.mxu0 %v6838_v54 }
 0x618   : > { %6085 = vmatmul.mubr.f32.vlgmr.msra.gmra.mxu1 %v7061_v13  ;;  %6156 = vmatmul.mubr.f32.vlgmr.msra.gmra.mxu0 %v7061_v13 }
 0x619   : > { %6482 = vmatprep.subr.mxu1 %v6838_v54  ;;  %6514 = vmatprep.mubr.msk.f32.mxu1 %vm6839_vm0, %v6838_v54 }
 0x61a   : > { %6483 = vmatpush3.msra.mxu1 %v4457_v42 }
 0x61b   : > { %6484 = vmatprep.subr.mxu1 %v6838_v54 }
 0x61c   : > { %6485 = vmatpush3.msra.mxu1 %v4408_v43 }
 0x61d   : > { %6486 = vmatprep.subr.mxu1 %v6838_v54 }
 0x61e   : > { %6487 = vmatpush3.msra.mxu1 %v4359_v44  ;;  %v6656_v44 = vld [vmem:[%s6995_s20 + $0x140] sm:$0xff] }
 0x61f   : > { %6488 = vmatprep.subr.mxu1 %v6838_v54 }
 0x620   : > { %6489 = vmatpush3.msra.mxu1 %v4310_v45 }
 0x621   : > { %6490 = vmatprep.subr.mxu1 %v6838_v54 }
 0x622   : > { %6491 = vmatpush3.msra.mxu1 %v4261_v46  ;;  %v6657_v46 = vld [vmem:[%s6995_s20 + $0x150] sm:$0xff] }
 0x623   : > { %6492 = vmatprep.subr.mxu1 %v6838_v54 }
 0x624   : > { %6493 = vmatpush3.msra.mxu1 %v4212_v47 }
 0x625   : > { %6494 = vmatprep.subr.mxu1 %v6838_v54 }
 0x626   : > { %6495 = vmatpush3.msra.mxu1 %v4163_v48 }
 0x627   : > { %6496 = vmatprep.subr.mxu1 %v6838_v54 }
 0x628   : > { %6497 = vmatpush3.msra.mxu1 %v4114_v49 }
 0x629   : > { %6498 = vmatprep.subr.mxu1 %v6838_v54 }
 0x62a   : > { %6499 = vmatpush3.msra.mxu1 %v4065_v50  ;;  %v6658_v50 = vld [vmem:[%s6995_s20 + $0x148] sm:$0xff] }
 0x62b   : > { %6500 = vmatprep.subr.mxu1 %v6838_v54 }
 0x62c   : > { %6501 = vmatpush3.msra.mxu1 %v4016_v51 }
 0x62d   : > { %6502 = vmatprep.subr.mxu1 %v6838_v54 }
 0x62e   : > { %6503 = vmatpush3.msra.mxu1 %v3967_v52  ;;  %v5376_v55 = vpop.f32.mrf.mxu1  ;;  %v5447_v56 = vpop.f32.mrf.mxu0  ;;  %v6659_v52 = vld [vmem:[%s6995_s20 + $0x158] sm:$0xff] }
 0x62f   : > { %6504 = vmatprep.subr.mxu1 %v6838_v54  ;;  %v6256_v59 = vmul.f32 %v6640_v58, %v5376_v55  ;;  %v6258_v61 = vmul.f32 %v6641_v60, %v5447_v56 }
 0x630   : > { %6505 = vmatpush3.msra.mxu1 %v3918_v53  ;;  %v5378_v62 = vpop.f32.mrf.mxu1  ;;  %v5449_v63 = vpop.f32.mrf.mxu0 }
 0x631   : > { %6506 = vmatprep.subr.mxu1 %v6838_v54  ;;  %6305 = vst [vmem:[%s7089_s6 + $0xc0] sm:$0xff] %v6256_v59  ;;  %6307 = vst [vmem:[%s7089_s6 + $0xd0] sm:$0xff] %v6258_v61  ;;  %v6257_v2 = vmul.f32 %v6642_v1, %v5378_v62  ;;  %v6259_v4 = vmul.f32 %v6643_v3, %v5449_v63  ;;  %v6661_v59 = vld [vmem:[%s6995_s20 + $0x170] sm:$0xff]  ;;  %v6662_v63 = vld [vmem:[%s6995_s20 + $0x168] sm:$0xff] }
 0x632   : > { %6507 = vmatpush3.msra.mxu1 %v3869_v57  ;;  %v6660_v57 = vld [vmem:[%s6995_s20 + $0x160] sm:$0xff]  ;;  %v6663_v1 = vld [vmem:[%s6995_s20 + $0x178] sm:$0xff] }
 0x633   : > { %6508 = vmatprep.subr.mxu1 %v6838_v54  ;;  %6306 = vst [vmem:[%s7089_s6 + $0xc8] sm:$0xff] %v6257_v2  ;;  %6308 = vst [vmem:[%s7089_s6 + $0xd8] sm:$0xff] %v6259_v4  ;;  %v6664_v4 = vld [vmem:[%s6995_s20 + $0x180] sm:$0xff] }
 0x634   : > { %6509 = vmatpush3.msra.mxu1 %v3820_v0 }
 0x635   : > { %6510 = vmatprep.subr.mxu1 %v6838_v54 }
 0x636   : > { %6511 = vmatpush3.msra.mxu1 %v3771_v5 }
 0x637   : > { %6512 = vmatprep.subr.mxu1 %v6838_v54  ;;  %v6646_v54 = vld [vmem:[%s6995_s20 + $0xe8] sm:$0xff] }
 0x638   : > { %6513 = vmatpush3.msra.mxu1 %v3722_v6 }
 0x639   : > { %6515 = vmatmul.mubr.f32.vlgmr.msra.gmra.mxu1 %v7061_v13 }
 0x650   : > { %v5518_v7 = vpop.f32.mrf.mxu1  ;;  %v5589_v8 = vpop.f32.mrf.mxu0 }
 0x651   : > { %v6260_v10 = vmul.f32 %v6644_v9, %v5518_v7  ;;  %v6262_v12 = vmul.f32 %v6645_v11, %v5589_v8 }
 0x652   : > { %v5520_v14 = vpop.f32.mrf.mxu1  ;;  %v5591_v15 = vpop.f32.mrf.mxu0 }
 0x653   : > { %6309 = vst [vmem:[%s7089_s6 + $0xe0] sm:$0xff] %v6260_v10  ;;  %6311 = vst [vmem:[%s7089_s6 + $0xf0] sm:$0xff] %v6262_v12  ;;  %v6261_v16 = vmul.f32 %v6646_v54, %v5520_v14  ;;  %v6263_v13 = vmul.f32 %v6647_v17, %v5591_v15 }
 0x655   : > { %6310 = vst [vmem:[%s7089_s6 + $0xe8] sm:$0xff] %v6261_v16  ;;  %6312 = vst [vmem:[%s7089_s6 + $0xf8] sm:$0xff] %v6263_v13 }
 0x672   : > { %v5660_v18 = vpop.f32.mrf.mxu1  ;;  %v5731_v19 = vpop.f32.mrf.mxu0 }
 0x673   : > { %v6264_v21 = vmul.f32 %v6648_v20, %v5660_v18  ;;  %v6266_v23 = vmul.f32 %v6649_v22, %v5731_v19 }
 0x674   : > { %v5662_v24 = vpop.f32.mrf.mxu1  ;;  %v5733_v25 = vpop.f32.mrf.mxu0 }
 0x675   : > { %6313 = vst [vmem:[%s7089_s6 + $0x100] sm:$0xff] %v6264_v21  ;;  %6315 = vst [vmem:[%s7089_s6 + $0x110] sm:$0xff] %v6266_v23  ;;  %v6265_v27 = vmul.f32 %v6650_v26, %v5662_v24  ;;  %v6267_v29 = vmul.f32 %v6651_v28, %v5733_v25 }
 0x677   : > { %6314 = vst [vmem:[%s7089_s6 + $0x108] sm:$0xff] %v6265_v27  ;;  %6316 = vst [vmem:[%s7089_s6 + $0x118] sm:$0xff] %v6267_v29 }
 0x694   : > { %v5802_v30 = vpop.f32.mrf.mxu1  ;;  %v5873_v31 = vpop.f32.mrf.mxu0 }
 0x695   : > { %v6268_v33 = vmul.f32 %v6652_v32, %v5802_v30  ;;  %v6270_v35 = vmul.f32 %v6653_v34, %v5873_v31 }
 0x696   : > { %v5804_v36 = vpop.f32.mrf.mxu1  ;;  %v5875_v37 = vpop.f32.mrf.mxu0 }
 0x697   : > { %6317 = vst [vmem:[%s7089_s6 + $0x120] sm:$0xff] %v6268_v33  ;;  %6319 = vst [vmem:[%s7089_s6 + $0x130] sm:$0xff] %v6270_v35  ;;  %v6269_v39 = vmul.f32 %v6654_v38, %v5804_v36  ;;  %v6271_v41 = vmul.f32 %v6655_v40, %v5875_v37 }
 0x699   : > { %6318 = vst [vmem:[%s7089_s6 + $0x128] sm:$0xff] %v6269_v39  ;;  %6320 = vst [vmem:[%s7089_s6 + $0x138] sm:$0xff] %v6271_v41 }
 0x6b6   : > { %v5944_v42 = vpop.f32.mrf.mxu1  ;;  %v6015_v43 = vpop.f32.mrf.mxu0 }
 0x6b7   : > { %v6272_v45 = vmul.f32 %v6656_v44, %v5944_v42  ;;  %v6274_v47 = vmul.f32 %v6657_v46, %v6015_v43 }
 0x6b8   : > { %v5946_v48 = vpop.f32.mrf.mxu1  ;;  %v6017_v49 = vpop.f32.mrf.mxu0 }
 0x6b9   : > { %6321 = vst [vmem:[%s7089_s6 + $0x140] sm:$0xff] %v6272_v45  ;;  %6323 = vst [vmem:[%s7089_s6 + $0x150] sm:$0xff] %v6274_v47  ;;  %v6273_v51 = vmul.f32 %v6658_v50, %v5946_v48  ;;  %v6275_v53 = vmul.f32 %v6659_v52, %v6017_v49 }
 0x6bb   : > { %6322 = vst [vmem:[%s7089_s6 + $0x148] sm:$0xff] %v6273_v51  ;;  %6324 = vst [vmem:[%s7089_s6 + $0x158] sm:$0xff] %v6275_v53 }
 0x6d8   : > { %v6086_v55 = vpop.f32.mrf.mxu1  ;;  %v6157_v56 = vpop.f32.mrf.mxu0 }
 0x6d9   : > { %v6276_v58 = vmul.f32 %v6660_v57, %v6086_v55  ;;  %v6278_v60 = vmul.f32 %v6661_v59, %v6157_v56 }
 0x6da   : > { %v6088_v61 = vpop.f32.mrf.mxu1  ;;  %v6159_v62 = vpop.f32.mrf.mxu0 }
 0x6db   : > { %6325 = vst [vmem:[%s7089_s6 + $0x160] sm:$0xff] %v6276_v58  ;;  %6327 = vst [vmem:[%s7089_s6 + $0x170] sm:$0xff] %v6278_v60  ;;  %v6277_v0 = vmul.f32 %v6662_v63, %v6088_v61  ;;  %v6279_v2 = vmul.f32 %v6663_v1, %v6159_v62 }
 0x6dd   : > { %6326 = vst [vmem:[%s7089_s6 + $0x168] sm:$0xff] %v6277_v0  ;;  %6328 = vst [vmem:[%s7089_s6 + $0x178] sm:$0xff] %v6279_v2 }
 0x6f9   : > { %v6228_v3 = vpop.f32.mrf.mxu1 }
 0x6fa   : > { %v6280_v5 = vmul.f32 %v6664_v4, %v6228_v3 }
 0x6fb   : > { %v6516_v6 = vpop.f32.mrf.mxu1 }
 0x6fc   : > { %6329 = vst [vmem:[%s7089_s6 + $0x180] sm:$0xff] %v6280_v5 }
 0x6fd   : > { %6769 = shalt.err (!%p6766_p5)
}
 0x6fe   : > { %s6770_s8 = scalar_lea.hbm %s7233_s27, 6272  ;;  %s6774_s14 = scalar_lea.hbm %s7275_s4, 12544 }
 0x6ff   : > { %p6771_p10 = scmp.ne.s32.totalorder %s7233_s27, %s6770_s8  ;;  %p6775_p9 = scmp.lt.s32.totalorder %s7233_s27, %s7275_s4 }
 0x700   : > { %p6776_p11 = scmp.lt.s32.totalorder %s6774_s14, %s6770_s8 }
 0x701   : > { %p6772_p4 = pnand %p6771_p10, %p7293_p2 }
 0x702   : > { %p6777_p0 = por %p6776_p11, %p6775_p9 }
 0x703   : > { %p6773_p8 = pneg %p6772_p4 }
 0x705   : > { %p6778_p1 = pnand %p6777_p0, %p6773_p8 }
 0x707   : > { %6781 = shalt.err (!%p6778_p1)
}
 0x708   : > { %6535 = dma.vmem_to_hbm [thread:$0]  (%p7293_p2), %s6346_s11, 6272, %s7233_s27, %s6331_s30  }
 0x709 PF: > { %s6357_s23 = sand.u32 1, %s6816_s15   ;;  %p7294_p6 = scmp.ne.s32.totalorder %s7281_s22, 0 }
 0x70a   : > { %p7295_p12 = scmp.ge.s32.totalorder %s6828_s18, 2  ;;  %s6358_s6 = scalar_lea.sflag [#allocation4], %s6357_s23 }
 0x70c   : > { %p6552_p3 = pnand %p7295_p12, %p7294_p6 }
 0x70e   : > { %p6553_p7 = pneg %p6552_p3 }
 0x710   : > { %6811 = dma.done.wait (%p6553_p7), %s6358_s6, 6272  }
 0x711   : > { %6813 = vsyncadd (%p6553_p7), %s6358_s6, 4294961024  ;;  %p19_p13 = scmp.ge.s32.totalorder %s6943_s24, 4   ;;  %s7296_s15 = smov %s6820_s16 }
 0x712   : > { %s7297_s16 = smov %s6824_s17  ;;  %s7298_s17 = smov %s6953_s29 }
 0x713   : > { %s7299_s18 = smov %s6943_s24  ;;  %21 = sbr.rel (!%p19_p13) target bundleno = 7 (0x7), region = 94 }
 0x718   :  { %6363 = vsyncpa [#allocation3], 1 }
 0x719   :  { %6365 = vsyncpa [#allocation3 + $0x1], 1 }
 0x71a   :  { %6366 = vsyncpa [#allocation7], 1 }
 0x71b   :  { %6367 = vsyncpa [#allocation4], 1 }
 0x71c   :  { %6369 = vsyncpa [#allocation4 + $0x1], 1 }
 0x71d   :  { %6370 = vsyncpa [#allocation5], 1 }
 0x71e   :  { %6372 = vsyncpa [#allocation5 + $0x1], 1 }

</bundles_post_ra>
